<compile_context>
chip_gen: v7x
topology: tpu7x:2x2x1
jax: 0.10.0
libtpu: 0.0.40
codegen_flags: <defaults>
</compile_context>

<pallas_src>
import functools
import math

import jax
import jax.numpy as jnp
import numpy as np
from jax.experimental import pallas as pl
from jax.experimental.pallas import tpu as pltpu

_LANES = 128


# -----------------------------------------------------------------------------
# Small helpers
# -----------------------------------------------------------------------------
def _round_up(x, m):
    return (x + m - 1) // m * m


def _cdiv(a, b):
    return (a + b - 1) // b


def _pad_lanes(x, cp):
    c = x.shape[-1]
    if c == cp:
        return x
    return jnp.pad(x, [(0, 0)] * (x.ndim - 1) + [(0, cp - c)])


def _row_block(m):
    for bm in (1024, 512, 256, 128, 64, 32, 16, 8):
        if m % bm == 0:
            return bm
    return m


def _act(y, activation):
    if activation == "leaky":
        return jnp.where(y > 0, y, 0.1 * y)
    if activation == "linear":
        return y
    # TODO(synk): darknet also supports 'mish'/'logistic'; not used by this config.
    raise NotImplementedError(f"activation '{activation}' not implemented")


def _phase_decompose(x, s, k, ho, wo, fill):
    """(N, Hp, Wp, C) -> (N, s*s, Hq, Wq, C) stride-s phase split (space-to-depth).

    Total data volume is unchanged (1x); afterwards every conv/pool tap is a
    plain contiguous slice inside the kernel, even for stride > 1.
    """
    n, hp, wp, c = x.shape
    hq = max(_cdiv(hp, s), ho + (k - 1) // s)
    wq = max(_cdiv(wp, s), wo + (k - 1) // s)
    eh, ew = s * hq - hp, s * wq - wp
    if eh or ew:
        x = jnp.pad(x, ((0, 0), (0, eh), (0, ew), (0, 0)), constant_values=fill)
    if s == 1:
        return x[:, None], hq, wq
    x = x.reshape(n, hq, s, wq, s, c).transpose(0, 2, 4, 1, 3, 5)
    return x.reshape(n, s * s, hq, wq, c), hq, wq


def _referenced_after(model_cfg, target, after, limit):
    """True iff the output of cfg block `target` is consumed by a block > `after`."""
    for m in range(after + 1, limit + 1):
        name = list(model_cfg[m].keys())[0]
        p = model_cfg[m][name]
        if name == "route":
            refs = [l if l >= 0 else m + l for l in p["layers"]]
        elif name == "shortcut":
            f = p["from"]
            refs = [m - 1, f if f >= 0 else m + f]
        else:
            refs = [m - 1]
        if target in refs:
            return True
    return False


# -----------------------------------------------------------------------------
# Pallas kernels
# -----------------------------------------------------------------------------
def _conv_kernel(k, stride, activation, shortcut_act, yolo_scale, *refs):
    # refs: x, w, b, [residual], [yolo_cls], out
    x_ref, w_ref, b_ref = refs[0], refs[1], refs[2]
    i = 3
    r_ref = c_ref = None
    if shortcut_act is not None:
        r_ref = refs[i]
        i += 1
    if yolo_scale is not None:
        c_ref = refs[i]
        i += 1
    o_ref = refs[i]

    _, ho, wo, cop = o_ref.shape
    cpi = x_ref.shape[-1]
    m = ho * wo

    # shift-and-accumulate conv: one lane-dense MXU dot per (dy, dx) tap.
    acc = jnp.zeros((m, cop), jnp.float32)
    for dy in range(k):
        for dx in range(k):
            p = (dy % stride) * stride + (dx % stride)
            tap = x_ref[0, p, pl.ds(dy // stride, ho), pl.ds(dx // stride, wo), :]
            acc = acc + jnp.dot(tap.reshape(m, cpi), w_ref[dy * k + dx],
                                preferred_element_type=jnp.float32)

    y = _act(acc + b_ref[...], activation)

    if shortcut_act is not None:                       # fused shortcut epilogue
        y = _act(y + r_ref[...].reshape(m, cop), shortcut_act)

    if yolo_scale is not None:                         # fused yolo epilogue
        cls = c_ref[...]                               # (1, Cop): 0=xy, 1=wh, 2=rest
        sig = jax.nn.sigmoid(y)
        xy = yolo_scale * sig - 0.5 * (yolo_scale - 1.0)
        y = jnp.where(cls == 0, xy, jnp.where(cls == 1, y, sig))

    o_ref[...] = y.reshape(o_ref.shape).astype(o_ref.dtype)


def _maxpool_kernel(size, stride, x_ref, o_ref):
    _, ho, wo, cp = o_ref.shape
    r = None
    for dy in range(size):
        for dx in range(size):
            p = (dy % stride) * stride + (dx % stride)
            tap = x_ref[0, p, pl.ds(dy // stride, ho), pl.ds(dx // stride, wo), :]
            r = tap if r is None else jnp.maximum(r, tap)
    o_ref[...] = r.reshape(o_ref.shape)


def _add_act_kernel(activation, a_ref, b_ref, o_ref):
    o_ref[...] = _act(a_ref[...] + b_ref[...], activation)


def _yolo_kernel(scale, x_ref, cls_ref, o_ref):
    x = x_ref[...]
    cls = cls_ref[...]
    sig = jax.nn.sigmoid(x)
    xy = scale * sig - 0.5 * (scale - 1.0)
    o_ref[...] = jnp.where(cls == 0, xy, jnp.where(cls == 1, x, sig))


# -----------------------------------------------------------------------------
# Wrappers (glue + pallas_call)
# -----------------------------------------------------------------------------
def conv2d_fused(x, prm, blk, residual):
    """Fused Conv2d + bias + activation (+ optional shortcut-add / yolo epilogue)."""
    n, h, w, cpi = x.shape
    k, s, pad = blk["size"], blk["stride"], blk["pad"]
    ho, wo = h // s, w // s
    w_taps, b_row = prm["w"], prm["b"]
    cpo = w_taps.shape[-1]

    fs, fy = blk["fused_shortcut"], blk["fused_yolo"]
    shortcut_act = fs["activation"] if fs is not None else None
    yolo_scale = float(fy["scale_x_y"]) if fy is not None else None

    xp = jnp.pad(x, ((0, 0), (pad, pad), (pad, pad), (0, 0)))
    xph, hq, wq = _phase_decompose(xp, s, k, ho, wo, 0.0)
    p_phases = xph.shape[1]

    in_specs = [
        pl.BlockSpec((1, p_phases, hq, wq, cpi), lambda i: (i, 0, 0, 0, 0)),
        pl.BlockSpec((k * k, cpi, cpo), lambda i: (0, 0, 0)),
        pl.BlockSpec((1, cpo), lambda i: (0, 0)),
    ]
    args = [xph, w_taps, b_row]
    if fs is not None:
        in_specs.append(pl.BlockSpec((1, ho, wo, cpo), lambda i: (i, 0, 0, 0)))
        args.append(residual)
    if fy is not None:
        in_specs.append(pl.BlockSpec((1, cpo), lambda i: (0, 0)))
        args.append(prm["yolo_cls"])

    return pl.pallas_call(
        functools.partial(_conv_kernel, k, s, blk["activation"],
                          shortcut_act, yolo_scale),
        out_shape=jax.ShapeDtypeStruct((n, ho, wo, cpo), jnp.float32),
        grid=(n,),
        in_specs=in_specs,
        out_specs=pl.BlockSpec((1, ho, wo, cpo), lambda i: (i, 0, 0, 0)),
        compiler_params=pltpu.CompilerParams(
            dimension_semantics=("parallel",),
            # Per-step footprint (one image + weights + output, double-buffered)
            # stays well under v7x's 64 MiB physical VMEM.
            vmem_limit_bytes=32 * 1024 * 1024,
        ),
    )(*args)


def maxpool2d(x, size, stride):
    n, h, w, cp = x.shape
    ho, wo = h // stride, w // stride
    # TODO(synk): darknet pads overhanging max-pool windows; this config
    # (size == stride, H % stride == 0) never overhangs, -3e38 fill is inert.
    xph, hq, wq = _phase_decompose(x, stride, size, ho, wo, -3.0e38)
    p_phases = xph.shape[1]
    return pl.pallas_call(
        functools.partial(_maxpool_kernel, size, stride),
        out_shape=jax.ShapeDtypeStruct((n, ho, wo, cp), jnp.float32),
        grid=(n,),
        in_specs=[pl.BlockSpec((1, p_phases, hq, wq, cp),
                               lambda i: (i, 0, 0, 0, 0))],
        out_specs=pl.BlockSpec((1, ho, wo, cp), lambda i: (i, 0, 0, 0)),
        compiler_params=pltpu.CompilerParams(
            dimension_semantics=("parallel",),
            vmem_limit_bytes=32 * 1024 * 1024,
        ),
    )(xph)


def shortcut_add(a, b, activation):
    """Standalone shortcut (only used when epilogue fusion is not safe)."""
    n, h, w, cp = a.shape
    m = n * h * w
    bm = _row_block(m)
    y = pl.pallas_call(
        functools.partial(_add_act_kernel, activation),
        out_shape=jax.ShapeDtypeStruct((m, cp), jnp.float32),
        grid=(m // bm,),
        in_specs=[pl.BlockSpec((bm, cp), lambda i: (i, 0)),
                  pl.BlockSpec((bm, cp), lambda i: (i, 0))],
        out_specs=pl.BlockSpec((bm, cp), lambda i: (i, 0)),
        compiler_params=pltpu.CompilerParams(dimension_semantics=("parallel",)),
    )(a.reshape(m, cp), b.reshape(m, cp))
    return y.reshape(n, h, w, cp)


def yolo_activation(x, cls_map, scale):
    """Standalone yolo activation (only used when epilogue fusion is not safe)."""
    n, h, w, cp = x.shape
    m = n * h * w
    bm = _row_block(m)
    y = pl.pallas_call(
        functools.partial(_yolo_kernel, float(scale)),
        out_shape=jax.ShapeDtypeStruct((m, cp), jnp.float32),
        grid=(m // bm,),
        in_specs=[pl.BlockSpec((bm, cp), lambda i: (i, 0)),
                  pl.BlockSpec((1, cp), lambda i: (0, 0))],
        out_specs=pl.BlockSpec((bm, cp), lambda i: (i, 0)),
        compiler_params=pltpu.CompilerParams(dimension_semantics=("parallel",)),
    )(x.reshape(m, cp), cls_map)
    return y.reshape(n, h, w, cp)


# -----------------------------------------------------------------------------
# Network (mirrors darknet.Network's create_network / _forward / forward)
# -----------------------------------------------------------------------------
class PallasDarknetNetwork:
    def __init__(self, metadata, model_cfg, up_to_layer=None, key=None):
        if key is None:
            key = jax.random.PRNGKey(42)
        self.up_to_layer = up_to_layer
        c, h, w = metadata["channels"], metadata["height"], metadata["width"]
        self.in_shape_at_block = [(None, c, h, w)]
        self.out_shape_at_block = [(None, c, h, w)]
        self.blocks = []   # static python config only (no arrays)
        self.params = []   # per-block dict of jnp arrays (may be empty)

        limit = len(model_cfg) - 1
        if up_to_layer is not None:
            limit = min(up_to_layer, limit)

        for i, block in enumerate(model_cfg):
            if up_to_layer is not None and i > up_to_layer:
                break
            name = list(block.keys())[0]
            p = block[name]

            if name == "convolutional":
                _, cin, hin, win = self.out_shape_at_block[-1]
                cout, k, s = p["filters"], p["size"], p["stride"]
                pad = (k // 2) if p.get("pad", 1) else 0
                key, kw_, kb_ = jax.random.split(key, 3)
                # Deterministic synthetic parameters (BN fused into conv).
                wgt = jax.random.normal(kw_, (cout, cin, k, k), jnp.float32)
                wgt = wgt / math.sqrt(cin * k * k)
                bias = jax.random.normal(kb_, (cout,), jnp.float32) * 0.1
                cpi, cpo = _round_up(cin, _LANES), _round_up(cout, _LANES)
                # Hoisted once: (Cout,Cin,kh,kw) -> per-tap (k*k, Cpi, Cpo).
                w_taps = jnp.transpose(wgt, (2, 3, 1, 0)).reshape(k * k, cin, cout)
                w_taps = jnp.pad(w_taps, ((0, 0), (0, cpi - cin), (0, cpo - cout)))
                b_row = jnp.pad(bias, (0, cpo - cout)).reshape(1, cpo)
                self.blocks.append(dict(type="conv", size=k, stride=s, pad=pad,
                                        activation=p["activation"],
                                        cin=cin, cout=cout,
                                        fused_shortcut=None, fused_yolo=None))
                self.params.append(dict(w=w_taps, b=b_row))
                self.out_shape_at_block.append((None, cout, hin // s, win // s))

            elif name == "route":
                layers = p["layers"]
                groups = p.get("groups", 1)
                gid = p.get("group_id", 0)
                if len(layers) == 1:
                    _, cin, hin, win = self.out_shape_at_block[layers[0]]
                    self.blocks.append(dict(type="route_slice", layer=layers[0],
                                            groups=groups, group_id=gid))
                    self.params.append({})
                    self.out_shape_at_block.append((None, cin // groups, hin, win))
                else:
                    shp = [self.out_shape_at_block[l] for l in layers]
                    cout = sum(s_[1] for s_ in shp)
                    self.blocks.append(dict(type="route_concat",
                                            layers=list(layers)))
                    self.params.append({})
                    self.out_shape_at_block.append((None, cout, shp[0][2], shp[0][3]))

            elif name == "shortcut":
                f = p["from"]
                act = p["activation"]
                from_abs = f if f >= 0 else i + f
                prev = self.blocks[-1] if self.blocks else None
                fuse = (prev is not None and prev["type"] == "conv"
                        and prev["fused_yolo"] is None
                        and from_abs != i - 1
                        and not _referenced_after(model_cfg, i - 1, i, limit))
                if fuse:
                    prev["fused_shortcut"] = dict(from_abs=from_abs, activation=act)
                    self.blocks.append(dict(type="fused_passthrough"))
                else:
                    self.blocks.append(dict(type="shortcut", from_abs=from_abs,
                                            activation=act))
                self.params.append({})
                self.out_shape_at_block.append(self.out_shape_at_block[-1])

            elif name == "maxpool":
                _, cin, hin, win = self.out_shape_at_block[-1]
                s = p["stride"]
                self.blocks.append(dict(type="maxpool", size=p["size"], stride=s))
                self.params.append({})
                self.out_shape_at_block.append((None, cin, hin // s, win // s))

            elif name == "upsample":
                _, cin, hin, win = self.out_shape_at_block[-1]
                s = p["stride"]
                self.blocks.append(dict(type="upsample", stride=s))
                self.params.append({})
                self.out_shape_at_block.append((None, cin, hin * s, win * s))

            elif name == "yolo":
                classes = p["classes"]
                scale = float(p.get("scale_x_y", 1.0))
                box_sz = 5 + classes
                _, cin, _, _ = self.out_shape_at_block[-1]
                cp = _round_up(cin, _LANES)
                # Precomputed channel-class table (0=xy, 1=wh, 2=obj/cls).
                ch = np.arange(cp) % box_sz
                cls_map = np.where(ch < 2, 0, np.where(ch < 4, 1, 2)).astype(np.int32)
                cls_map = jnp.asarray(cls_map).reshape(1, cp)
                prev = self.blocks[-1] if self.blocks else None
                prev_prm = self.params[-1] if self.params else None
                fuse = (prev is not None and prev["type"] == "conv"
                        and prev["fused_shortcut"] is None
                        and prev["fused_yolo"] is None
                        and not _referenced_after(model_cfg, i - 1, i, limit))
                if fuse:
                    prev["fused_yolo"] = dict(scale_x_y=scale)
                    prev_prm["yolo_cls"] = cls_map
                    self.blocks.append(dict(type="fused_yolo_passthrough"))
                    self.params.append({})
                else:
                    self.blocks.append(dict(type="yolo", scale_x_y=scale))
                    self.params.append(dict(yolo_cls=cls_map))
                self.out_shape_at_block.append(self.out_shape_at_block[-1])

            else:
                raise NotImplementedError(f'layer "{name}" is not implemented')

        # Single compiled program for the whole forward pass.
        self._jitted = jax.jit(self._run)

    # --- traced forward over the padded-channel internal representation -----
    def _run(self, x_nchw, params):
        x = jnp.transpose(x_nchw, (0, 2, 3, 1)).astype(jnp.float32)  # NCHW -> NHWC
        c_in = x.shape[-1]
        x = _pad_lanes(x, _round_up(c_in, _LANES))
        ys = [(x, c_in)]                       # (padded tensor, real channel count)
        boxes = []

        for bi, blk in enumerate(self.blocks):
            prm = params[bi]
            t = blk["type"]
            if t == "conv":
                src, _ = ys[-1]
                residual = None
                if blk["fused_shortcut"] is not None:
                    residual = ys[blk["fused_shortcut"]["from_abs"] + 1][0]
                y = conv2d_fused(src, prm, blk, residual)
                ys.append((y, blk["cout"]))
            elif t in ("fused_passthrough", "fused_yolo_passthrough"):
                ys.append(ys[-1])
                if t == "fused_yolo_passthrough":
                    boxes.append(ys[-1])
            elif t == "maxpool":
                src, c = ys[-1]
                ys.append((maxpool2d(src, blk["size"], blk["stride"]), c))
            elif t == "route_slice":
                l = blk["layer"]
                idx = l if l < 0 else l + 1
                src, c = ys[idx]
                if blk["groups"] == 1:
                    ys.append((src, c))
                else:
                    cg = c // blk["groups"]
                    g = src[..., cg * blk["group_id"]: cg * (blk["group_id"] + 1)]
                    ys.append((_pad_lanes(g, _round_up(cg, _LANES)), cg))
            elif t == "route_concat":
                ids = [l if l < 0 else l + 1 for l in blk["layers"]]
                parts = [ys[j][0][..., :ys[j][1]] for j in ids]
                c = sum(ys[j][1] for j in ids)
                cat = jnp.concatenate(parts, axis=-1)
                ys.append((_pad_lanes(cat, _round_up(c, _LANES)), c))
            elif t == "shortcut":
                a, c = ys[-1]
                b, _ = ys[blk["from_abs"] + 1]
                ys.append((shortcut_add(a, b, blk["activation"]), c))
            elif t == "upsample":
                s = blk["stride"]
                src, c = ys[-1]
                ys.append((jnp.repeat(jnp.repeat(src, s, axis=1), s, axis=2), c))
            elif t == "yolo":
                src, c = ys[-1]
                y = yolo_activation(src, prm["yolo_cls"], blk["scale_x_y"])
                ys.append((y, c))
                boxes.append((y, c))
            else:
                raise NotImplementedError(t)

        def to_nchw(entry):
            tensor, c = entry
            return jnp.transpose(tensor[..., :c], (0, 3, 1, 2))

        if self.up_to_layer is None:
            return tuple(to_nchw(b) for b in boxes)
        return to_nchw(ys[-1])

    def forward(self, x_nchw):
        # TODO(synk): anchor/grid box decoding is a separate post-process in the
        # reference code (not part of Network.forward) and is intentionally omitted.
        return self._jitted(x_nchw, self.params)


# -----------------------------------------------------------------------------
# Synthetic darknet config (small YOLO-ish network exercising every layer type)
# -----------------------------------------------------------------------------
METADATA = {"channels": 4, "height": 16, "width": 16}

MODEL_CFG = [
    {"convolutional": dict(filters=8, size=3, stride=1, pad=1, activation="leaky")},   # 0: 4->8, 16x16
    {"convolutional": dict(filters=16, size=3, stride=2, pad=1, activation="leaky")},  # 1: 8->16, 8x8
    {"convolutional": dict(filters=16, size=1, stride=1, pad=1, activation="leaky")},  # 2: 16->16
    {"shortcut": dict(**{"from": -2}, activation="linear")},                           # 3: add(2, 1)
    {"route": dict(layers=[-1], groups=2, group_id=1)},                                # 4: slice -> 8ch
    {"convolutional": dict(filters=16, size=3, stride=1, pad=1, activation="leaky")},  # 5: 8->16
    {"route": dict(layers=[-1, -3], groups=1, group_id=0)},                            # 6: concat(5, 3) -> 32ch
    {"maxpool": dict(size=2, stride=2)},                                               # 7: 8x8 -> 4x4
    {"convolutional": dict(filters=32, size=1, stride=1, pad=1, activation="leaky")},  # 8: 32->32
    {"convolutional": dict(filters=18, size=1, stride=1, pad=1, activation="linear")}, # 9: head (2*(5+4))
    {"yolo": dict(classes=4, scale_x_y=1.05)},                                         # 10
    {"route": dict(layers=[-3], groups=1, group_id=0)},                                # 11: take block 8 out
    {"upsample": dict(stride=2)},                                                      # 12: 4x4 -> 8x8
    {"route": dict(layers=[-1, -8], groups=1, group_id=0)},                            # 13: concat(12, 5) -> 48ch
    {"convolutional": dict(filters=18, size=1, stride=1, pad=1, activation="linear")}, # 14: head
    {"yolo": dict(classes=4, scale_x_y=1.1)},                                          # 15
]


if __name__ == "__main__":
    net = PallasDarknetNetwork(METADATA, MODEL_CFG, up_to_layer=None,
                               key=jax.random.PRNGKey(42))

    x = jax.random.normal(
        jax.random.PRNGKey(0),
        (2, METADATA["channels"], METADATA["height"], METADATA["width"]),
        jnp.float32,
    )

    boxes = net.forward(x)
    jax.block_until_ready(boxes)

    # Sanity: two yolo heads, NCHW, 18 channels each.
    assert len(boxes) == 2
    assert boxes[0].shape == (2, 18, 4, 4)
    assert boxes[1].shape == (2, 18, 8, 8)
    assert all(bool(jnp.all(jnp.isfinite(b))) for b in boxes)

    print("KERNEL_OK")
</pallas_src>

<mosaic_0001>
module attributes {stable_mosaic.version = 11 : i64} {
  func.func @_conv_kernel(%arg0: i32, %arg1: memref<1x1x18x18x128xf32, #tpu.memory_space<vmem>>, %arg2: memref<9x128x128xf32, #tpu.memory_space<vmem>>, %arg3: memref<1x128xf32, #tpu.memory_space<vmem>>, %arg4: memref<1x16x16x128xf32, #tpu.memory_space<vmem>>) attributes {dimension_semantics = [#tpu.dimension_semantics<parallel>], iteration_bounds = array<i64: 2>, scalar_prefetch = 0 : i64, scratch_operands = 0 : i64, tpu.core_type = #tpu.core_type<tc>, window_params = [{transform_indices = @transform_0, window_bounds = array<i64: 1, 1, 18, 18, 128>}, {pipeline_mode = #tpu.pipeline_mode<synchronous>, transform_indices = @transform_1, window_bounds = array<i64: 9, 128, 128>}, {pipeline_mode = #tpu.pipeline_mode<synchronous>, transform_indices = @transform_2, window_bounds = array<i64: 1, 128>}, {transform_indices = @transform_3, window_bounds = array<i64: 1, 16, 16, 128>}]} {
    %cst = arith.constant 0.000000e+00 : f32
    %0 = vector.broadcast %cst : f32 to vector<256x128xf32>
    %c0 = arith.constant 0 : index
    %c0_0 = arith.constant 0 : index
    %c0_1 = arith.constant 0 : index
    %c0_2 = arith.constant 0 : index
    %c0_3 = arith.constant 0 : index
    %1 = vector.load %arg1[%c0, %c0_0, %c0_1, %c0_2, %c0_3] : memref<1x1x18x18x128xf32, #tpu.memory_space<vmem>>, vector<1x1x16x16x128xf32>
    %2 = vector.shape_cast %1 : vector<1x1x16x16x128xf32> to vector<16x16x128xf32>
    %3 = vector.shape_cast %2 : vector<16x16x128xf32> to vector<256x128xf32>
    %c0_4 = arith.constant 0 : index
    %c0_5 = arith.constant 0 : index
    %c0_6 = arith.constant 0 : index
    %4 = vector.load %arg2[%c0_4, %c0_5, %c0_6] : memref<9x128x128xf32, #tpu.memory_space<vmem>>, vector<1x128x128xf32>
    %5 = vector.shape_cast %4 : vector<1x128x128xf32> to vector<128x128xf32>
    %cst_7 = arith.constant dense<0.000000e+00> : vector<256x128xf32>
    %6 = tpu.matmul %3, %5, %cst_7 {dimension_numbers = #tpu.dot_dimension_numbers<[1], [0], [0], [1], [0, 0, 1, 1], [], []>} : vector<256x128xf32>, vector<128x128xf32>, vector<256x128xf32> -> vector<256x128xf32>
    %7 = arith.addf %0, %6 : vector<256x128xf32>
    %c0_8 = arith.constant 0 : index
    %c0_9 = arith.constant 0 : index
    %c0_10 = arith.constant 0 : index
    %c1 = arith.constant 1 : index
    %c0_11 = arith.constant 0 : index
    %8 = vector.load %arg1[%c0_8, %c0_9, %c0_10, %c1, %c0_11] : memref<1x1x18x18x128xf32, #tpu.memory_space<vmem>>, vector<1x1x16x16x128xf32>
    %9 = vector.shape_cast %8 : vector<1x1x16x16x128xf32> to vector<16x16x128xf32>
    %10 = vector.shape_cast %9 : vector<16x16x128xf32> to vector<256x128xf32>
    %c1_12 = arith.constant 1 : index
    %c0_13 = arith.constant 0 : index
    %c0_14 = arith.constant 0 : index
    %11 = vector.load %arg2[%c1_12, %c0_13, %c0_14] : memref<9x128x128xf32, #tpu.memory_space<vmem>>, vector<1x128x128xf32>
    %12 = vector.shape_cast %11 : vector<1x128x128xf32> to vector<128x128xf32>
    %cst_15 = arith.constant dense<0.000000e+00> : vector<256x128xf32>
    %13 = tpu.matmul %10, %12, %cst_15 {dimension_numbers = #tpu.dot_dimension_numbers<[1], [0], [0], [1], [0, 0, 1, 1], [], []>} : vector<256x128xf32>, vector<128x128xf32>, vector<256x128xf32> -> vector<256x128xf32>
    %14 = arith.addf %7, %13 : vector<256x128xf32>
    %c0_16 = arith.constant 0 : index
    %c0_17 = arith.constant 0 : index
    %c0_18 = arith.constant 0 : index
    %c2 = arith.constant 2 : index
    %c0_19 = arith.constant 0 : index
    %15 = vector.load %arg1[%c0_16, %c0_17, %c0_18, %c2, %c0_19] : memref<1x1x18x18x128xf32, #tpu.memory_space<vmem>>, vector<1x1x16x16x128xf32>
    %16 = vector.shape_cast %15 : vector<1x1x16x16x128xf32> to vector<16x16x128xf32>
    %17 = vector.shape_cast %16 : vector<16x16x128xf32> to vector<256x128xf32>
    %c2_20 = arith.constant 2 : index
    %c0_21 = arith.constant 0 : index
    %c0_22 = arith.constant 0 : index
    %18 = vector.load %arg2[%c2_20, %c0_21, %c0_22] : memref<9x128x128xf32, #tpu.memory_space<vmem>>, vector<1x128x128xf32>
    %19 = vector.shape_cast %18 : vector<1x128x128xf32> to vector<128x128xf32>
    %cst_23 = arith.constant dense<0.000000e+00> : vector<256x128xf32>
    %20 = tpu.matmul %17, %19, %cst_23 {dimension_numbers = #tpu.dot_dimension_numbers<[1], [0], [0], [1], [0, 0, 1, 1], [], []>} : vector<256x128xf32>, vector<128x128xf32>, vector<256x128xf32> -> vector<256x128xf32>
    %21 = arith.addf %14, %20 : vector<256x128xf32>
    %c0_24 = arith.constant 0 : index
    %c0_25 = arith.constant 0 : index
    %c1_26 = arith.constant 1 : index
    %c0_27 = arith.constant 0 : index
    %c0_28 = arith.constant 0 : index
    %22 = vector.load %arg1[%c0_24, %c0_25, %c1_26, %c0_27, %c0_28] : memref<1x1x18x18x128xf32, #tpu.memory_space<vmem>>, vector<1x1x16x16x128xf32>
    %23 = vector.shape_cast %22 : vector<1x1x16x16x128xf32> to vector<16x16x128xf32>
    %24 = vector.shape_cast %23 : vector<16x16x128xf32> to vector<256x128xf32>
    %c3 = arith.constant 3 : index
    %c0_29 = arith.constant 0 : index
    %c0_30 = arith.constant 0 : index
    %25 = vector.load %arg2[%c3, %c0_29, %c0_30] : memref<9x128x128xf32, #tpu.memory_space<vmem>>, vector<1x128x128xf32>
    %26 = vector.shape_cast %25 : vector<1x128x128xf32> to vector<128x128xf32>
    %cst_31 = arith.constant dense<0.000000e+00> : vector<256x128xf32>
    %27 = tpu.matmul %24, %26, %cst_31 {dimension_numbers = #tpu.dot_dimension_numbers<[1], [0], [0], [1], [0, 0, 1, 1], [], []>} : vector<256x128xf32>, vector<128x128xf32>, vector<256x128xf32> -> vector<256x128xf32>
    %28 = arith.addf %21, %27 : vector<256x128xf32>
    %c0_32 = arith.constant 0 : index
    %c0_33 = arith.constant 0 : index
    %c1_34 = arith.constant 1 : index
    %c1_35 = arith.constant 1 : index
    %c0_36 = arith.constant 0 : index
    %29 = vector.load %arg1[%c0_32, %c0_33, %c1_34, %c1_35, %c0_36] : memref<1x1x18x18x128xf32, #tpu.memory_space<vmem>>, vector<1x1x16x16x128xf32>
    %30 = vector.shape_cast %29 : vector<1x1x16x16x128xf32> to vector<16x16x128xf32>
    %31 = vector.shape_cast %30 : vector<16x16x128xf32> to vector<256x128xf32>
    %c4 = arith.constant 4 : index
    %c0_37 = arith.constant 0 : index
    %c0_38 = arith.constant 0 : index
    %32 = vector.load %arg2[%c4, %c0_37, %c0_38] : memref<9x128x128xf32, #tpu.memory_space<vmem>>, vector<1x128x128xf32>
    %33 = vector.shape_cast %32 : vector<1x128x128xf32> to vector<128x128xf32>
    %cst_39 = arith.constant dense<0.000000e+00> : vector<256x128xf32>
    %34 = tpu.matmul %31, %33, %cst_39 {dimension_numbers = #tpu.dot_dimension_numbers<[1], [0], [0], [1], [0, 0, 1, 1], [], []>} : vector<256x128xf32>, vector<128x128xf32>, vector<256x128xf32> -> vector<256x128xf32>
    %35 = arith.addf %28, %34 : vector<256x128xf32>
    %c0_40 = arith.constant 0 : index
    %c0_41 = arith.constant 0 : index
    %c1_42 = arith.constant 1 : index
    %c2_43 = arith.constant 2 : index
    %c0_44 = arith.constant 0 : index
    %36 = vector.load %arg1[%c0_40, %c0_41, %c1_42, %c2_43, %c0_44] : memref<1x1x18x18x128xf32, #tpu.memory_space<vmem>>, vector<1x1x16x16x128xf32>
    %37 = vector.shape_cast %36 : vector<1x1x16x16x128xf32> to vector<16x16x128xf32>
    %38 = vector.shape_cast %37 : vector<16x16x128xf32> to vector<256x128xf32>
    %c5 = arith.constant 5 : index
    %c0_45 = arith.constant 0 : index
    %c0_46 = arith.constant 0 : index
    %39 = vector.load %arg2[%c5, %c0_45, %c0_46] : memref<9x128x128xf32, #tpu.memory_space<vmem>>, vector<1x128x128xf32>
    %40 = vector.shape_cast %39 : vector<1x128x128xf32> to vector<128x128xf32>
    %cst_47 = arith.constant dense<0.000000e+00> : vector<256x128xf32>
    %41 = tpu.matmul %38, %40, %cst_47 {dimension_numbers = #tpu.dot_dimension_numbers<[1], [0], [0], [1], [0, 0, 1, 1], [], []>} : vector<256x128xf32>, vector<128x128xf32>, vector<256x128xf32> -> vector<256x128xf32>
    %42 = arith.addf %35, %41 : vector<256x128xf32>
    %c0_48 = arith.constant 0 : index
    %c0_49 = arith.constant 0 : index
    %c2_50 = arith.constant 2 : index
    %c0_51 = arith.constant 0 : index
    %c0_52 = arith.constant 0 : index
    %43 = vector.load %arg1[%c0_48, %c0_49, %c2_50, %c0_51, %c0_52] : memref<1x1x18x18x128xf32, #tpu.memory_space<vmem>>, vector<1x1x16x16x128xf32>
    %44 = vector.shape_cast %43 : vector<1x1x16x16x128xf32> to vector<16x16x128xf32>
    %45 = vector.shape_cast %44 : vector<16x16x128xf32> to vector<256x128xf32>
    %c6 = arith.constant 6 : index
    %c0_53 = arith.constant 0 : index
    %c0_54 = arith.constant 0 : index
    %46 = vector.load %arg2[%c6, %c0_53, %c0_54] : memref<9x128x128xf32, #tpu.memory_space<vmem>>, vector<1x128x128xf32>
    %47 = vector.shape_cast %46 : vector<1x128x128xf32> to vector<128x128xf32>
    %cst_55 = arith.constant dense<0.000000e+00> : vector<256x128xf32>
    %48 = tpu.matmul %45, %47, %cst_55 {dimension_numbers = #tpu.dot_dimension_numbers<[1], [0], [0], [1], [0, 0, 1, 1], [], []>} : vector<256x128xf32>, vector<128x128xf32>, vector<256x128xf32> -> vector<256x128xf32>
    %49 = arith.addf %42, %48 : vector<256x128xf32>
    %c0_56 = arith.constant 0 : index
    %c0_57 = arith.constant 0 : index
    %c2_58 = arith.constant 2 : index
    %c1_59 = arith.constant 1 : index
    %c0_60 = arith.constant 0 : index
    %50 = vector.load %arg1[%c0_56, %c0_57, %c2_58, %c1_59, %c0_60] : memref<1x1x18x18x128xf32, #tpu.memory_space<vmem>>, vector<1x1x16x16x128xf32>
    %51 = vector.shape_cast %50 : vector<1x1x16x16x128xf32> to vector<16x16x128xf32>
    %52 = vector.shape_cast %51 : vector<16x16x128xf32> to vector<256x128xf32>
    %c7 = arith.constant 7 : index
    %c0_61 = arith.constant 0 : index
    %c0_62 = arith.constant 0 : index
    %53 = vector.load %arg2[%c7, %c0_61, %c0_62] : memref<9x128x128xf32, #tpu.memory_space<vmem>>, vector<1x128x128xf32>
    %54 = vector.shape_cast %53 : vector<1x128x128xf32> to vector<128x128xf32>
    %cst_63 = arith.constant dense<0.000000e+00> : vector<256x128xf32>
    %55 = tpu.matmul %52, %54, %cst_63 {dimension_numbers = #tpu.dot_dimension_numbers<[1], [0], [0], [1], [0, 0, 1, 1], [], []>} : vector<256x128xf32>, vector<128x128xf32>, vector<256x128xf32> -> vector<256x128xf32>
    %56 = arith.addf %49, %55 : vector<256x128xf32>
    %c0_64 = arith.constant 0 : index
    %c0_65 = arith.constant 0 : index
    %c2_66 = arith.constant 2 : index
    %c2_67 = arith.constant 2 : index
    %c0_68 = arith.constant 0 : index
    %57 = vector.load %arg1[%c0_64, %c0_65, %c2_66, %c2_67, %c0_68] : memref<1x1x18x18x128xf32, #tpu.memory_space<vmem>>, vector<1x1x16x16x128xf32>
    %58 = vector.shape_cast %57 : vector<1x1x16x16x128xf32> to vector<16x16x128xf32>
    %59 = vector.shape_cast %58 : vector<16x16x128xf32> to vector<256x128xf32>
    %c8 = arith.constant 8 : index
    %c0_69 = arith.constant 0 : index
    %c0_70 = arith.constant 0 : index
    %60 = vector.load %arg2[%c8, %c0_69, %c0_70] : memref<9x128x128xf32, #tpu.memory_space<vmem>>, vector<1x128x128xf32>
    %61 = vector.shape_cast %60 : vector<1x128x128xf32> to vector<128x128xf32>
    %cst_71 = arith.constant dense<0.000000e+00> : vector<256x128xf32>
    %62 = tpu.matmul %59, %61, %cst_71 {dimension_numbers = #tpu.dot_dimension_numbers<[1], [0], [0], [1], [0, 0, 1, 1], [], []>} : vector<256x128xf32>, vector<128x128xf32>, vector<256x128xf32> -> vector<256x128xf32>
    %63 = arith.addf %56, %62 : vector<256x128xf32>
    %c0_72 = arith.constant 0 : index
    %c0_73 = arith.constant 0 : index
    %64 = vector.load %arg3[%c0_72, %c0_73] : memref<1x128xf32, #tpu.memory_space<vmem>>, vector<1x128xf32>
    %65 = vector.broadcast %64 : vector<1x128xf32> to vector<256x128xf32>
    %66 = arith.addf %63, %65 : vector<256x128xf32>
    %cst_74 = arith.constant 0.000000e+00 : f32
    %67 = vector.broadcast %cst_74 : f32 to vector<256x128xf32>
    %68 = arith.cmpf ogt, %66, %67 : vector<256x128xf32>
    %cst_75 = arith.constant 1.000000e-01 : f32
    %69 = vector.broadcast %cst_75 : f32 to vector<256x128xf32>
    %70 = arith.mulf %69, %66 : vector<256x128xf32>
    %71 = arith.select %68, %66, %70 : vector<256x128xi1>, vector<256x128xf32>
    %72 = vector.shape_cast %71 : vector<256x128xf32> to vector<1x16x16x128xf32>
    %c0_76 = arith.constant 0 : index
    %c0_77 = arith.constant 0 : index
    %c0_78 = arith.constant 0 : index
    %c0_79 = arith.constant 0 : index
    %73 = vector.load %arg4[%c0_76, %c0_77, %c0_78, %c0_79] : memref<1x16x16x128xf32, #tpu.memory_space<vmem>>, vector<1x16x16x128xf32>
    tpu.vector_store %arg4[%c0_76, %c0_77, %c0_78, %c0_79], %72 {strides = array<i32>} : memref<1x16x16x128xf32, #tpu.memory_space<vmem>>, vector<1x16x16x128xf32>,
    return
  }
  func.func @transform_0(%arg0: i32) -> (i32, i32, i32, i32, i32) {
    %c0_i32 = arith.constant 0 : i32
    %c0_i32_0 = arith.constant 0 : i32
    %c0_i32_1 = arith.constant 0 : i32
    %c0_i32_2 = arith.constant 0 : i32
    %c0_i32_3 = arith.constant 0 : i32
    return %arg0, %c0_i32, %c0_i32_0, %c0_i32_1, %c0_i32_2 : i32, i32, i32, i32, i32
  }
  func.func @transform_1(%arg0: i32) -> (i32, i32, i32) {
    %c0_i32 = arith.constant 0 : i32
    %c0_i32_0 = arith.constant 0 : i32
    %c0_i32_1 = arith.constant 0 : i32
    %c0_i32_2 = arith.constant 0 : i32
    return %c0_i32, %c0_i32_0, %c0_i32_1 : i32, i32, i32
  }
  func.func @transform_2(%arg0: i32) -> (i32, i32) {
    %c0_i32 = arith.constant 0 : i32
    %c0_i32_0 = arith.constant 0 : i32
    %c0_i32_1 = arith.constant 0 : i32
    return %c0_i32, %c0_i32_0 : i32, i32
  }
  func.func @transform_3(%arg0: i32) -> (i32, i32, i32, i32) {
    %c0_i32 = arith.constant 0 : i32
    %c0_i32_0 = arith.constant 0 : i32
    %c0_i32_1 = arith.constant 0 : i32
    %c0_i32_2 = arith.constant 0 : i32
    return %arg0, %c0_i32, %c0_i32_0, %c0_i32_1 : i32, i32, i32, i32
  }
}

module attributes {stable_mosaic.version = 11 : i64} {
  func.func @_conv_kernel(%arg0: i32, %arg1: memref<1x1x8x8x128xf32, #tpu.memory_space<vmem>>, %arg2: memref<1x128x128xf32, #tpu.memory_space<vmem>>, %arg3: memref<1x128xf32, #tpu.memory_space<vmem>>, %arg4: memref<1x8x8x128xf32, #tpu.memory_space<vmem>>, %arg5: memref<1x8x8x128xf32, #tpu.memory_space<vmem>>) attributes {dimension_semantics = [#tpu.dimension_semantics<parallel>], iteration_bounds = array<i64: 2>, scalar_prefetch = 0 : i64, scratch_operands = 0 : i64, tpu.core_type = #tpu.core_type<tc>, window_params = [{transform_indices = @transform_0, window_bounds = array<i64: 1, 1, 8, 8, 128>}, {pipeline_mode = #tpu.pipeline_mode<synchronous>, transform_indices = @transform_1, window_bounds = array<i64: 1, 128, 128>}, {pipeline_mode = #tpu.pipeline_mode<synchronous>, transform_indices = @transform_2, window_bounds = array<i64: 1, 128>}, {transform_indices = @transform_3, window_bounds = array<i64: 1, 8, 8, 128>}, {transform_indices = @transform_4, window_bounds = array<i64: 1, 8, 8, 128>}]} {
    %cst = arith.constant 0.000000e+00 : f32
    %0 = vector.broadcast %cst : f32 to vector<64x128xf32>
    %c0 = arith.constant 0 : index
    %c0_0 = arith.constant 0 : index
    %c0_1 = arith.constant 0 : index
    %c0_2 = arith.constant 0 : index
    %c0_3 = arith.constant 0 : index
    %1 = vector.load %arg1[%c0, %c0_0, %c0_1, %c0_2, %c0_3] : memref<1x1x8x8x128xf32, #tpu.memory_space<vmem>>, vector<1x1x8x8x128xf32>
    %2 = vector.shape_cast %1 : vector<1x1x8x8x128xf32> to vector<8x8x128xf32>
    %3 = vector.shape_cast %2 : vector<8x8x128xf32> to vector<64x128xf32>
    %c0_4 = arith.constant 0 : index
    %c0_5 = arith.constant 0 : index
    %c0_6 = arith.constant 0 : index
    %4 = vector.load %arg2[%c0_4, %c0_5, %c0_6] : memref<1x128x128xf32, #tpu.memory_space<vmem>>, vector<1x128x128xf32>
    %5 = vector.shape_cast %4 : vector<1x128x128xf32> to vector<128x128xf32>
    %cst_7 = arith.constant dense<0.000000e+00> : vector<64x128xf32>
    %6 = tpu.matmul %3, %5, %cst_7 {dimension_numbers = #tpu.dot_dimension_numbers<[1], [0], [0], [1], [0, 0, 1, 1], [], []>} : vector<64x128xf32>, vector<128x128xf32>, vector<64x128xf32> -> vector<64x128xf32>
    %7 = arith.addf %0, %6 : vector<64x128xf32>
    %c0_8 = arith.constant 0 : index
    %c0_9 = arith.constant 0 : index
    %8 = vector.load %arg3[%c0_8, %c0_9] : memref<1x128xf32, #tpu.memory_space<vmem>>, vector<1x128xf32>
    %9 = vector.broadcast %8 : vector<1x128xf32> to vector<64x128xf32>
    %10 = arith.addf %7, %9 : vector<64x128xf32>
    %cst_10 = arith.constant 0.000000e+00 : f32
    %11 = vector.broadcast %cst_10 : f32 to vector<64x128xf32>
    %12 = arith.cmpf ogt, %10, %11 : vector<64x128xf32>
    %cst_11 = arith.constant 1.000000e-01 : f32
    %13 = vector.broadcast %cst_11 : f32 to vector<64x128xf32>
    %14 = arith.mulf %13, %10 : vector<64x128xf32>
    %15 = arith.select %12, %10, %14 : vector<64x128xi1>, vector<64x128xf32>
    %c0_12 = arith.constant 0 : index
    %c0_13 = arith.constant 0 : index
    %c0_14 = arith.constant 0 : index
    %c0_15 = arith.constant 0 : index
    %16 = vector.load %arg4[%c0_12, %c0_13, %c0_14, %c0_15] : memref<1x8x8x128xf32, #tpu.memory_space<vmem>>, vector<1x8x8x128xf32>
    %17 = vector.shape_cast %16 : vector<1x8x8x128xf32> to vector<64x128xf32>
    %18 = arith.addf %15, %17 : vector<64x128xf32>
    %19 = vector.shape_cast %18 : vector<64x128xf32> to vector<1x8x8x128xf32>
    %c0_16 = arith.constant 0 : index
    %c0_17 = arith.constant 0 : index
    %c0_18 = arith.constant 0 : index
    %c0_19 = arith.constant 0 : index
    %20 = vector.load %arg5[%c0_16, %c0_17, %c0_18, %c0_19] : memref<1x8x8x128xf32, #tpu.memory_space<vmem>>, vector<1x8x8x128xf32>
    tpu.vector_store %arg5[%c0_16, %c0_17, %c0_18, %c0_19], %19 {strides = array<i32>} : memref<1x8x8x128xf32, #tpu.memory_space<vmem>>, vector<1x8x8x128xf32>,
    return
  }
  func.func @transform_0(%arg0: i32) -> (i32, i32, i32, i32, i32) {
    %c0_i32 = arith.constant 0 : i32
    %c0_i32_0 = arith.constant 0 : i32
    %c0_i32_1 = arith.constant 0 : i32
    %c0_i32_2 = arith.constant 0 : i32
    %c0_i32_3 = arith.constant 0 : i32
    return %arg0, %c0_i32, %c0_i32_0, %c0_i32_1, %c0_i32_2 : i32, i32, i32, i32, i32
  }
  func.func @transform_1(%arg0: i32) -> (i32, i32, i32) {
    %c0_i32 = arith.constant 0 : i32
    %c0_i32_0 = arith.constant 0 : i32
    %c0_i32_1 = arith.constant 0 : i32
    %c0_i32_2 = arith.constant 0 : i32
    return %c0_i32, %c0_i32_0, %c0_i32_1 : i32, i32, i32
  }
  func.func @transform_2(%arg0: i32) -> (i32, i32) {
    %c0_i32 = arith.constant 0 : i32
    %c0_i32_0 = arith.constant 0 : i32
    %c0_i32_1 = arith.constant 0 : i32
    return %c0_i32, %c0_i32_0 : i32, i32
  }
  func.func @transform_3(%arg0: i32) -> (i32, i32, i32, i32) {
    %c0_i32 = arith.constant 0 : i32
    %c0_i32_0 = arith.constant 0 : i32
    %c0_i32_1 = arith.constant 0 : i32
    %c0_i32_2 = arith.constant 0 : i32
    return %arg0, %c0_i32, %c0_i32_0, %c0_i32_1 : i32, i32, i32, i32
  }
  func.func @transform_4(%arg0: i32) -> (i32, i32, i32, i32) {
    %c0_i32 = arith.constant 0 : i32
    %c0_i32_0 = arith.constant 0 : i32
    %c0_i32_1 = arith.constant 0 : i32
    %c0_i32_2 = arith.constant 0 : i32
    return %arg0, %c0_i32, %c0_i32_0, %c0_i32_1 : i32, i32, i32, i32
  }
}

module attributes {stable_mosaic.version = 11 : i64} {
  func.func @_conv_kernel(%arg0: i32, %arg1: memref<1x4x9x9x128xf32, #tpu.memory_space<vmem>>, %arg2: memref<9x128x128xf32, #tpu.memory_space<vmem>>, %arg3: memref<1x128xf32, #tpu.memory_space<vmem>>, %arg4: memref<1x8x8x128xf32, #tpu.memory_space<vmem>>) attributes {dimension_semantics = [#tpu.dimension_semantics<parallel>], iteration_bounds = array<i64: 2>, scalar_prefetch = 0 : i64, scratch_operands = 0 : i64, tpu.core_type = #tpu.core_type<tc>, window_params = [{transform_indices = @transform_0, window_bounds = array<i64: 1, 4, 9, 9, 128>}, {pipeline_mode = #tpu.pipeline_mode<synchronous>, transform_indices = @transform_1, window_bounds = array<i64: 9, 128, 128>}, {pipeline_mode = #tpu.pipeline_mode<synchronous>, transform_indices = @transform_2, window_bounds = array<i64: 1, 128>}, {transform_indices = @transform_3, window_bounds = array<i64: 1, 8, 8, 128>}]} {
    %cst = arith.constant 0.000000e+00 : f32
    %0 = vector.broadcast %cst : f32 to vector<64x128xf32>
    %c0 = arith.constant 0 : index
    %c0_0 = arith.constant 0 : index
    %c0_1 = arith.constant 0 : index
    %c0_2 = arith.constant 0 : index
    %c0_3 = arith.constant 0 : index
    %1 = vector.load %arg1[%c0, %c0_0, %c0_1, %c0_2, %c0_3] : memref<1x4x9x9x128xf32, #tpu.memory_space<vmem>>, vector<1x1x8x8x128xf32>
    %2 = vector.shape_cast %1 : vector<1x1x8x8x128xf32> to vector<8x8x128xf32>
    %3 = vector.shape_cast %2 : vector<8x8x128xf32> to vector<64x128xf32>
    %c0_4 = arith.constant 0 : index
    %c0_5 = arith.constant 0 : index
    %c0_6 = arith.constant 0 : index
    %4 = vector.load %arg2[%c0_4, %c0_5, %c0_6] : memref<9x128x128xf32, #tpu.memory_space<vmem>>, vector<1x128x128xf32>
    %5 = vector.shape_cast %4 : vector<1x128x128xf32> to vector<128x128xf32>
    %cst_7 = arith.constant dense<0.000000e+00> : vector<64x128xf32>
    %6 = tpu.matmul %3, %5, %cst_7 {dimension_numbers = #tpu.dot_dimension_numbers<[1], [0], [0], [1], [0, 0, 1, 1], [], []>} : vector<64x128xf32>, vector<128x128xf32>, vector<64x128xf32> -> vector<64x128xf32>
    %7 = arith.addf %0, %6 : vector<64x128xf32>
    %c0_8 = arith.constant 0 : index
    %c1 = arith.constant 1 : index
    %c0_9 = arith.constant 0 : index
    %c0_10 = arith.constant 0 : index
    %c0_11 = arith.constant 0 : index
    %8 = vector.load %arg1[%c0_8, %c1, %c0_9, %c0_10, %c0_11] : memref<1x4x9x9x128xf32, #tpu.memory_space<vmem>>, vector<1x1x8x8x128xf32>
    %9 = vector.shape_cast %8 : vector<1x1x8x8x128xf32> to vector<8x8x128xf32>
    %10 = vector.shape_cast %9 : vector<8x8x128xf32> to vector<64x128xf32>
    %c1_12 = arith.constant 1 : index
    %c0_13 = arith.constant 0 : index
    %c0_14 = arith.constant 0 : index
    %11 = vector.load %arg2[%c1_12, %c0_13, %c0_14] : memref<9x128x128xf32, #tpu.memory_space<vmem>>, vector<1x128x128xf32>
    %12 = vector.shape_cast %11 : vector<1x128x128xf32> to vector<128x128xf32>
    %cst_15 = arith.constant dense<0.000000e+00> : vector<64x128xf32>
    %13 = tpu.matmul %10, %12, %cst_15 {dimension_numbers = #tpu.dot_dimension_numbers<[1], [0], [0], [1], [0, 0, 1, 1], [], []>} : vector<64x128xf32>, vector<128x128xf32>, vector<64x128xf32> -> vector<64x128xf32>
    %14 = arith.addf %7, %13 : vector<64x128xf32>
    %c0_16 = arith.constant 0 : index
    %c0_17 = arith.constant 0 : index
    %c0_18 = arith.constant 0 : index
    %c1_19 = arith.constant 1 : index
    %c0_20 = arith.constant 0 : index
    %15 = vector.load %arg1[%c0_16, %c0_17, %c0_18, %c1_19, %c0_20] : memref<1x4x9x9x128xf32, #tpu.memory_space<vmem>>, vector<1x1x8x8x128xf32>
    %16 = vector.shape_cast %15 : vector<1x1x8x8x128xf32> to vector<8x8x128xf32>
    %17 = vector.shape_cast %16 : vector<8x8x128xf32> to vector<64x128xf32>
    %c2 = arith.constant 2 : index
    %c0_21 = arith.constant 0 : index
    %c0_22 = arith.constant 0 : index
    %18 = vector.load %arg2[%c2, %c0_21, %c0_22] : memref<9x128x128xf32, #tpu.memory_space<vmem>>, vector<1x128x128xf32>
    %19 = vector.shape_cast %18 : vector<1x128x128xf32> to vector<128x128xf32>
    %cst_23 = arith.constant dense<0.000000e+00> : vector<64x128xf32>
    %20 = tpu.matmul %17, %19, %cst_23 {dimension_numbers = #tpu.dot_dimension_numbers<[1], [0], [0], [1], [0, 0, 1, 1], [], []>} : vector<64x128xf32>, vector<128x128xf32>, vector<64x128xf32> -> vector<64x128xf32>
    %21 = arith.addf %14, %20 : vector<64x128xf32>
    %c0_24 = arith.constant 0 : index
    %c2_25 = arith.constant 2 : index
    %c0_26 = arith.constant 0 : index
    %c0_27 = arith.constant 0 : index
    %c0_28 = arith.constant 0 : index
    %22 = vector.load %arg1[%c0_24, %c2_25, %c0_26, %c0_27, %c0_28] : memref<1x4x9x9x128xf32, #tpu.memory_space<vmem>>, vector<1x1x8x8x128xf32>
    %23 = vector.shape_cast %22 : vector<1x1x8x8x128xf32> to vector<8x8x128xf32>
    %24 = vector.shape_cast %23 : vector<8x8x128xf32> to vector<64x128xf32>
    %c3 = arith.constant 3 : index
    %c0_29 = arith.constant 0 : index
    %c0_30 = arith.constant 0 : index
    %25 = vector.load %arg2[%c3, %c0_29, %c0_30] : memref<9x128x128xf32, #tpu.memory_space<vmem>>, vector<1x128x128xf32>
    %26 = vector.shape_cast %25 : vector<1x128x128xf32> to vector<128x128xf32>
    %cst_31 = arith.constant dense<0.000000e+00> : vector<64x128xf32>
    %27 = tpu.matmul %24, %26, %cst_31 {dimension_numbers = #tpu.dot_dimension_numbers<[1], [0], [0], [1], [0, 0, 1, 1], [], []>} : vector<64x128xf32>, vector<128x128xf32>, vector<64x128xf32> -> vector<64x128xf32>
    %28 = arith.addf %21, %27 : vector<64x128xf32>
    %c0_32 = arith.constant 0 : index
    %c3_33 = arith.constant 3 : index
    %c0_34 = arith.constant 0 : index
    %c0_35 = arith.constant 0 : index
    %c0_36 = arith.constant 0 : index
    %29 = vector.load %arg1[%c0_32, %c3_33, %c0_34, %c0_35, %c0_36] : memref<1x4x9x9x128xf32, #tpu.memory_space<vmem>>, vector<1x1x8x8x128xf32>
    %30 = vector.shape_cast %29 : vector<1x1x8x8x128xf32> to vector<8x8x128xf32>
    %31 = vector.shape_cast %30 : vector<8x8x128xf32> to vector<64x128xf32>
    %c4 = arith.constant 4 : index
    %c0_37 = arith.constant 0 : index
    %c0_38 = arith.constant 0 : index
    %32 = vector.load %arg2[%c4, %c0_37, %c0_38] : memref<9x128x128xf32, #tpu.memory_space<vmem>>, vector<1x128x128xf32>
    %33 = vector.shape_cast %32 : vector<1x128x128xf32> to vector<128x128xf32>
    %cst_39 = arith.constant dense<0.000000e+00> : vector<64x128xf32>
    %34 = tpu.matmul %31, %33, %cst_39 {dimension_numbers = #tpu.dot_dimension_numbers<[1], [0], [0], [1], [0, 0, 1, 1], [], []>} : vector<64x128xf32>, vector<128x128xf32>, vector<64x128xf32> -> vector<64x128xf32>
    %35 = arith.addf %28, %34 : vector<64x128xf32>
    %c0_40 = arith.constant 0 : index
    %c2_41 = arith.constant 2 : index
    %c0_42 = arith.constant 0 : index
    %c1_43 = arith.constant 1 : index
    %c0_44 = arith.constant 0 : index
    %36 = vector.load %arg1[%c0_40, %c2_41, %c0_42, %c1_43, %c0_44] : memref<1x4x9x9x128xf32, #tpu.memory_space<vmem>>, vector<1x1x8x8x128xf32>
    %37 = vector.shape_cast %36 : vector<1x1x8x8x128xf32> to vector<8x8x128xf32>
    %38 = vector.shape_cast %37 : vector<8x8x128xf32> to vector<64x128xf32>
    %c5 = arith.constant 5 : index
    %c0_45 = arith.constant 0 : index
    %c0_46 = arith.constant 0 : index
    %39 = vector.load %arg2[%c5, %c0_45, %c0_46] : memref<9x128x128xf32, #tpu.memory_space<vmem>>, vector<1x128x128xf32>
    %40 = vector.shape_cast %39 : vector<1x128x128xf32> to vector<128x128xf32>
    %cst_47 = arith.constant dense<0.000000e+00> : vector<64x128xf32>
    %41 = tpu.matmul %38, %40, %cst_47 {dimension_numbers = #tpu.dot_dimension_numbers<[1], [0], [0], [1], [0, 0, 1, 1], [], []>} : vector<64x128xf32>, vector<128x128xf32>, vector<64x128xf32> -> vector<64x128xf32>
    %42 = arith.addf %35, %41 : vector<64x128xf32>
    %c0_48 = arith.constant 0 : index
    %c0_49 = arith.constant 0 : index
    %c1_50 = arith.constant 1 : index
    %c0_51 = arith.constant 0 : index
    %c0_52 = arith.constant 0 : index
    %43 = vector.load %arg1[%c0_48, %c0_49, %c1_50, %c0_51, %c0_52] : memref<1x4x9x9x128xf32, #tpu.memory_space<vmem>>, vector<1x1x8x8x128xf32>
    %44 = vector.shape_cast %43 : vector<1x1x8x8x128xf32> to vector<8x8x128xf32>
    %45 = vector.shape_cast %44 : vector<8x8x128xf32> to vector<64x128xf32>
    %c6 = arith.constant 6 : index
    %c0_53 = arith.constant 0 : index
    %c0_54 = arith.constant 0 : index
    %46 = vector.load %arg2[%c6, %c0_53, %c0_54] : memref<9x128x128xf32, #tpu.memory_space<vmem>>, vector<1x128x128xf32>
    %47 = vector.shape_cast %46 : vector<1x128x128xf32> to vector<128x128xf32>
    %cst_55 = arith.constant dense<0.000000e+00> : vector<64x128xf32>
    %48 = tpu.matmul %45, %47, %cst_55 {dimension_numbers = #tpu.dot_dimension_numbers<[1], [0], [0], [1], [0, 0, 1, 1], [], []>} : vector<64x128xf32>, vector<128x128xf32>, vector<64x128xf32> -> vector<64x128xf32>
    %49 = arith.addf %42, %48 : vector<64x128xf32>
    %c0_56 = arith.constant 0 : index
    %c1_57 = arith.constant 1 : index
    %c1_58 = arith.constant 1 : index
    %c0_59 = arith.constant 0 : index
    %c0_60 = arith.constant 0 : index
    %50 = vector.load %arg1[%c0_56, %c1_57, %c1_58, %c0_59, %c0_60] : memref<1x4x9x9x128xf32, #tpu.memory_space<vmem>>, vector<1x1x8x8x128xf32>
    %51 = vector.shape_cast %50 : vector<1x1x8x8x128xf32> to vector<8x8x128xf32>
    %52 = vector.shape_cast %51 : vector<8x8x128xf32> to vector<64x128xf32>
    %c7 = arith.constant 7 : index
    %c0_61 = arith.constant 0 : index
    %c0_62 = arith.constant 0 : index
    %53 = vector.load %arg2[%c7, %c0_61, %c0_62] : memref<9x128x128xf32, #tpu.memory_space<vmem>>, vector<1x128x128xf32>
    %54 = vector.shape_cast %53 : vector<1x128x128xf32> to vector<128x128xf32>
    %cst_63 = arith.constant dense<0.000000e+00> : vector<64x128xf32>
    %55 = tpu.matmul %52, %54, %cst_63 {dimension_numbers = #tpu.dot_dimension_numbers<[1], [0], [0], [1], [0, 0, 1, 1], [], []>} : vector<64x128xf32>, vector<128x128xf32>, vector<64x128xf32> -> vector<64x128xf32>
    %56 = arith.addf %49, %55 : vector<64x128xf32>
    %c0_64 = arith.constant 0 : index
    %c0_65 = arith.constant 0 : index
    %c1_66 = arith.constant 1 : index
    %c1_67 = arith.constant 1 : index
    %c0_68 = arith.constant 0 : index
    %57 = vector.load %arg1[%c0_64, %c0_65, %c1_66, %c1_67, %c0_68] : memref<1x4x9x9x128xf32, #tpu.memory_space<vmem>>, vector<1x1x8x8x128xf32>
    %58 = vector.shape_cast %57 : vector<1x1x8x8x128xf32> to vector<8x8x128xf32>
    %59 = vector.shape_cast %58 : vector<8x8x128xf32> to vector<64x128xf32>
    %c8 = arith.constant 8 : index
    %c0_69 = arith.constant 0 : index
    %c0_70 = arith.constant 0 : index
    %60 = vector.load %arg2[%c8, %c0_69, %c0_70] : memref<9x128x128xf32, #tpu.memory_space<vmem>>, vector<1x128x128xf32>
    %61 = vector.shape_cast %60 : vector<1x128x128xf32> to vector<128x128xf32>
    %cst_71 = arith.constant dense<0.000000e+00> : vector<64x128xf32>
    %62 = tpu.matmul %59, %61, %cst_71 {dimension_numbers = #tpu.dot_dimension_numbers<[1], [0], [0], [1], [0, 0, 1, 1], [], []>} : vector<64x128xf32>, vector<128x128xf32>, vector<64x128xf32> -> vector<64x128xf32>
    %63 = arith.addf %56, %62 : vector<64x128xf32>
    %c0_72 = arith.constant 0 : index
    %c0_73 = arith.constant 0 : index
    %64 = vector.load %arg3[%c0_72, %c0_73] : memref<1x128xf32, #tpu.memory_space<vmem>>, vector<1x128xf32>
    %65 = vector.broadcast %64 : vector<1x128xf32> to vector<64x128xf32>
    %66 = arith.addf %63, %65 : vector<64x128xf32>
    %cst_74 = arith.constant 0.000000e+00 : f32
    %67 = vector.broadcast %cst_74 : f32 to vector<64x128xf32>
    %68 = arith.cmpf ogt, %66, %67 : vector<64x128xf32>
    %cst_75 = arith.constant 1.000000e-01 : f32
    %69 = vector.broadcast %cst_75 : f32 to vector<64x128xf32>
    %70 = arith.mulf %69, %66 : vector<64x128xf32>
    %71 = arith.select %68, %66, %70 : vector<64x128xi1>, vector<64x128xf32>
    %72 = vector.shape_cast %71 : vector<64x128xf32> to vector<1x8x8x128xf32>
    %c0_76 = arith.constant 0 : index
    %c0_77 = arith.constant 0 : index
    %c0_78 = arith.constant 0 : index
    %c0_79 = arith.constant 0 : index
    %73 = vector.load %arg4[%c0_76, %c0_77, %c0_78, %c0_79] : memref<1x8x8x128xf32, #tpu.memory_space<vmem>>, vector<1x8x8x128xf32>
    tpu.vector_store %arg4[%c0_76, %c0_77, %c0_78, %c0_79], %72 {strides = array<i32>} : memref<1x8x8x128xf32, #tpu.memory_space<vmem>>, vector<1x8x8x128xf32>,
    return
  }
  func.func @transform_0(%arg0: i32) -> (i32, i32, i32, i32, i32) {
    %c0_i32 = arith.constant 0 : i32
    %c0_i32_0 = arith.constant 0 : i32
    %c0_i32_1 = arith.constant 0 : i32
    %c0_i32_2 = arith.constant 0 : i32
    %c0_i32_3 = arith.constant 0 : i32
    return %arg0, %c0_i32, %c0_i32_0, %c0_i32_1, %c0_i32_2 : i32, i32, i32, i32, i32
  }
  func.func @transform_1(%arg0: i32) -> (i32, i32, i32) {
    %c0_i32 = arith.constant 0 : i32
    %c0_i32_0 = arith.constant 0 : i32
    %c0_i32_1 = arith.constant 0 : i32
    %c0_i32_2 = arith.constant 0 : i32
    return %c0_i32, %c0_i32_0, %c0_i32_1 : i32, i32, i32
  }
  func.func @transform_2(%arg0: i32) -> (i32, i32) {
    %c0_i32 = arith.constant 0 : i32
    %c0_i32_0 = arith.constant 0 : i32
    %c0_i32_1 = arith.constant 0 : i32
    return %c0_i32, %c0_i32_0 : i32, i32
  }
  func.func @transform_3(%arg0: i32) -> (i32, i32, i32, i32) {
    %c0_i32 = arith.constant 0 : i32
    %c0_i32_0 = arith.constant 0 : i32
    %c0_i32_1 = arith.constant 0 : i32
    %c0_i32_2 = arith.constant 0 : i32
    return %arg0, %c0_i32, %c0_i32_0, %c0_i32_1 : i32, i32, i32, i32
  }
}

module attributes {stable_mosaic.version = 11 : i64} {
  func.func @_conv_kernel(%arg0: i32, %arg1: memref<1x1x10x10x128xf32, #tpu.memory_space<vmem>>, %arg2: memref<9x128x128xf32, #tpu.memory_space<vmem>>, %arg3: memref<1x128xf32, #tpu.memory_space<vmem>>, %arg4: memref<1x8x8x128xf32, #tpu.memory_space<vmem>>) attributes {dimension_semantics = [#tpu.dimension_semantics<parallel>], iteration_bounds = array<i64: 2>, scalar_prefetch = 0 : i64, scratch_operands = 0 : i64, tpu.core_type = #tpu.core_type<tc>, window_params = [{transform_indices = @transform_0, window_bounds = array<i64: 1, 1, 10, 10, 128>}, {pipeline_mode = #tpu.pipeline_mode<synchronous>, transform_indices = @transform_1, window_bounds = array<i64: 9, 128, 128>}, {pipeline_mode = #tpu.pipeline_mode<synchronous>, transform_indices = @transform_2, window_bounds = array<i64: 1, 128>}, {transform_indices = @transform_3, window_bounds = array<i64: 1, 8, 8, 128>}]} {
    %cst = arith.constant 0.000000e+00 : f32
    %0 = vector.broadcast %cst : f32 to vector<64x128xf32>
    %c0 = arith.constant 0 : index
    %c0_0 = arith.constant 0 : index
    %c0_1 = arith.constant 0 : index
    %c0_2 = arith.constant 0 : index
    %c0_3 = arith.constant 0 : index
    %1 = vector.load %arg1[%c0, %c0_0, %c0_1, %c0_2, %c0_3] : memref<1x1x10x10x128xf32, #tpu.memory_space<vmem>>, vector<1x1x8x8x128xf32>
    %2 = vector.shape_cast %1 : vector<1x1x8x8x128xf32> to vector<8x8x128xf32>
    %3 = vector.shape_cast %2 : vector<8x8x128xf32> to vector<64x128xf32>
    %c0_4 = arith.constant 0 : index
    %c0_5 = arith.constant 0 : index
    %c0_6 = arith.constant 0 : index
    %4 = vector.load %arg2[%c0_4, %c0_5, %c0_6] : memref<9x128x128xf32, #tpu.memory_space<vmem>>, vector<1x128x128xf32>
    %5 = vector.shape_cast %4 : vector<1x128x128xf32> to vector<128x128xf32>
    %cst_7 = arith.constant dense<0.000000e+00> : vector<64x128xf32>
    %6 = tpu.matmul %3, %5, %cst_7 {dimension_numbers = #tpu.dot_dimension_numbers<[1], [0], [0], [1], [0, 0, 1, 1], [], []>} : vector<64x128xf32>, vector<128x128xf32>, vector<64x128xf32> -> vector<64x128xf32>
    %7 = arith.addf %0, %6 : vector<64x128xf32>
    %c0_8 = arith.constant 0 : index
    %c0_9 = arith.constant 0 : index
    %c0_10 = arith.constant 0 : index
    %c1 = arith.constant 1 : index
    %c0_11 = arith.constant 0 : index
    %8 = vector.load %arg1[%c0_8, %c0_9, %c0_10, %c1, %c0_11] : memref<1x1x10x10x128xf32, #tpu.memory_space<vmem>>, vector<1x1x8x8x128xf32>
    %9 = vector.shape_cast %8 : vector<1x1x8x8x128xf32> to vector<8x8x128xf32>
    %10 = vector.shape_cast %9 : vector<8x8x128xf32> to vector<64x128xf32>
    %c1_12 = arith.constant 1 : index
    %c0_13 = arith.constant 0 : index
    %c0_14 = arith.constant 0 : index
    %11 = vector.load %arg2[%c1_12, %c0_13, %c0_14] : memref<9x128x128xf32, #tpu.memory_space<vmem>>, vector<1x128x128xf32>
    %12 = vector.shape_cast %11 : vector<1x128x128xf32> to vector<128x128xf32>
    %cst_15 = arith.constant dense<0.000000e+00> : vector<64x128xf32>
    %13 = tpu.matmul %10, %12, %cst_15 {dimension_numbers = #tpu.dot_dimension_numbers<[1], [0], [0], [1], [0, 0, 1, 1], [], []>} : vector<64x128xf32>, vector<128x128xf32>, vector<64x128xf32> -> vector<64x128xf32>
    %14 = arith.addf %7, %13 : vector<64x128xf32>
    %c0_16 = arith.constant 0 : index
    %c0_17 = arith.constant 0 : index
    %c0_18 = arith.constant 0 : index
    %c2 = arith.constant 2 : index
    %c0_19 = arith.constant 0 : index
    %15 = vector.load %arg1[%c0_16, %c0_17, %c0_18, %c2, %c0_19] : memref<1x1x10x10x128xf32, #tpu.memory_space<vmem>>, vector<1x1x8x8x128xf32>
    %16 = vector.shape_cast %15 : vector<1x1x8x8x128xf32> to vector<8x8x128xf32>
    %17 = vector.shape_cast %16 : vector<8x8x128xf32> to vector<64x128xf32>
    %c2_20 = arith.constant 2 : index
    %c0_21 = arith.constant 0 : index
    %c0_22 = arith.constant 0 : index
    %18 = vector.load %arg2[%c2_20, %c0_21, %c0_22] : memref<9x128x128xf32, #tpu.memory_space<vmem>>, vector<1x128x128xf32>
    %19 = vector.shape_cast %18 : vector<1x128x128xf32> to vector<128x128xf32>
    %cst_23 = arith.constant dense<0.000000e+00> : vector<64x128xf32>
    %20 = tpu.matmul %17, %19, %cst_23 {dimension_numbers = #tpu.dot_dimension_numbers<[1], [0], [0], [1], [0, 0, 1, 1], [], []>} : vector<64x128xf32>, vector<128x128xf32>, vector<64x128xf32> -> vector<64x128xf32>
    %21 = arith.addf %14, %20 : vector<64x128xf32>
    %c0_24 = arith.constant 0 : index
    %c0_25 = arith.constant 0 : index
    %c1_26 = arith.constant 1 : index
    %c0_27 = arith.constant 0 : index
    %c0_28 = arith.constant 0 : index
    %22 = vector.load %arg1[%c0_24, %c0_25, %c1_26, %c0_27, %c0_28] : memref<1x1x10x10x128xf32, #tpu.memory_space<vmem>>, vector<1x1x8x8x128xf32>
    %23 = vector.shape_cast %22 : vector<1x1x8x8x128xf32> to vector<8x8x128xf32>
    %24 = vector.shape_cast %23 : vector<8x8x128xf32> to vector<64x128xf32>
    %c3 = arith.constant 3 : index
    %c0_29 = arith.constant 0 : index
    %c0_30 = arith.constant 0 : index
    %25 = vector.load %arg2[%c3, %c0_29, %c0_30] : memref<9x128x128xf32, #tpu.memory_space<vmem>>, vector<1x128x128xf32>
    %26 = vector.shape_cast %25 : vector<1x128x128xf32> to vector<128x128xf32>
    %cst_31 = arith.constant dense<0.000000e+00> : vector<64x128xf32>
    %27 = tpu.matmul %24, %26, %cst_31 {dimension_numbers = #tpu.dot_dimension_numbers<[1], [0], [0], [1], [0, 0, 1, 1], [], []>} : vector<64x128xf32>, vector<128x128xf32>, vector<64x128xf32> -> vector<64x128xf32>
    %28 = arith.addf %21, %27 : vector<64x128xf32>
    %c0_32 = arith.constant 0 : index
    %c0_33 = arith.constant 0 : index
    %c1_34 = arith.constant 1 : index
    %c1_35 = arith.constant 1 : index
    %c0_36 = arith.constant 0 : index
    %29 = vector.load %arg1[%c0_32, %c0_33, %c1_34, %c1_35, %c0_36] : memref<1x1x10x10x128xf32, #tpu.memory_space<vmem>>, vector<1x1x8x8x128xf32>
    %30 = vector.shape_cast %29 : vector<1x1x8x8x128xf32> to vector<8x8x128xf32>
    %31 = vector.shape_cast %30 : vector<8x8x128xf32> to vector<64x128xf32>
    %c4 = arith.constant 4 : index
    %c0_37 = arith.constant 0 : index
    %c0_38 = arith.constant 0 : index
    %32 = vector.load %arg2[%c4, %c0_37, %c0_38] : memref<9x128x128xf32, #tpu.memory_space<vmem>>, vector<1x128x128xf32>
    %33 = vector.shape_cast %32 : vector<1x128x128xf32> to vector<128x128xf32>
    %cst_39 = arith.constant dense<0.000000e+00> : vector<64x128xf32>
    %34 = tpu.matmul %31, %33, %cst_39 {dimension_numbers = #tpu.dot_dimension_numbers<[1], [0], [0], [1], [0, 0, 1, 1], [], []>} : vector<64x128xf32>, vector<128x128xf32>, vector<64x128xf32> -> vector<64x128xf32>
    %35 = arith.addf %28, %34 : vector<64x128xf32>
    %c0_40 = arith.constant 0 : index
    %c0_41 = arith.constant 0 : index
    %c1_42 = arith.constant 1 : index
    %c2_43 = arith.constant 2 : index
    %c0_44 = arith.constant 0 : index
    %36 = vector.load %arg1[%c0_40, %c0_41, %c1_42, %c2_43, %c0_44] : memref<1x1x10x10x128xf32, #tpu.memory_space<vmem>>, vector<1x1x8x8x128xf32>
    %37 = vector.shape_cast %36 : vector<1x1x8x8x128xf32> to vector<8x8x128xf32>
    %38 = vector.shape_cast %37 : vector<8x8x128xf32> to vector<64x128xf32>
    %c5 = arith.constant 5 : index
    %c0_45 = arith.constant 0 : index
    %c0_46 = arith.constant 0 : index
    %39 = vector.load %arg2[%c5, %c0_45, %c0_46] : memref<9x128x128xf32, #tpu.memory_space<vmem>>, vector<1x128x128xf32>
    %40 = vector.shape_cast %39 : vector<1x128x128xf32> to vector<128x128xf32>
    %cst_47 = arith.constant dense<0.000000e+00> : vector<64x128xf32>
    %41 = tpu.matmul %38, %40, %cst_47 {dimension_numbers = #tpu.dot_dimension_numbers<[1], [0], [0], [1], [0, 0, 1, 1], [], []>} : vector<64x128xf32>, vector<128x128xf32>, vector<64x128xf32> -> vector<64x128xf32>
    %42 = arith.addf %35, %41 : vector<64x128xf32>
    %c0_48 = arith.constant 0 : index
    %c0_49 = arith.constant 0 : index
    %c2_50 = arith.constant 2 : index
    %c0_51 = arith.constant 0 : index
    %c0_52 = arith.constant 0 : index
    %43 = vector.load %arg1[%c0_48, %c0_49, %c2_50, %c0_51, %c0_52] : memref<1x1x10x10x128xf32, #tpu.memory_space<vmem>>, vector<1x1x8x8x128xf32>
    %44 = vector.shape_cast %43 : vector<1x1x8x8x128xf32> to vector<8x8x128xf32>
    %45 = vector.shape_cast %44 : vector<8x8x128xf32> to vector<64x128xf32>
    %c6 = arith.constant 6 : index
    %c0_53 = arith.constant 0 : index
    %c0_54 = arith.constant 0 : index
    %46 = vector.load %arg2[%c6, %c0_53, %c0_54] : memref<9x128x128xf32, #tpu.memory_space<vmem>>, vector<1x128x128xf32>
    %47 = vector.shape_cast %46 : vector<1x128x128xf32> to vector<128x128xf32>
    %cst_55 = arith.constant dense<0.000000e+00> : vector<64x128xf32>
    %48 = tpu.matmul %45, %47, %cst_55 {dimension_numbers = #tpu.dot_dimension_numbers<[1], [0], [0], [1], [0, 0, 1, 1], [], []>} : vector<64x128xf32>, vector<128x128xf32>, vector<64x128xf32> -> vector<64x128xf32>
    %49 = arith.addf %42, %48 : vector<64x128xf32>
    %c0_56 = arith.constant 0 : index
    %c0_57 = arith.constant 0 : index
    %c2_58 = arith.constant 2 : index
    %c1_59 = arith.constant 1 : index
    %c0_60 = arith.constant 0 : index
    %50 = vector.load %arg1[%c0_56, %c0_57, %c2_58, %c1_59, %c0_60] : memref<1x1x10x10x128xf32, #tpu.memory_space<vmem>>, vector<1x1x8x8x128xf32>
    %51 = vector.shape_cast %50 : vector<1x1x8x8x128xf32> to vector<8x8x128xf32>
    %52 = vector.shape_cast %51 : vector<8x8x128xf32> to vector<64x128xf32>
    %c7 = arith.constant 7 : index
    %c0_61 = arith.constant 0 : index
    %c0_62 = arith.constant 0 : index
    %53 = vector.load %arg2[%c7, %c0_61, %c0_62] : memref<9x128x128xf32, #tpu.memory_space<vmem>>, vector<1x128x128xf32>
    %54 = vector.shape_cast %53 : vector<1x128x128xf32> to vector<128x128xf32>
    %cst_63 = arith.constant dense<0.000000e+00> : vector<64x128xf32>
    %55 = tpu.matmul %52, %54, %cst_63 {dimension_numbers = #tpu.dot_dimension_numbers<[1], [0], [0], [1], [0, 0, 1, 1], [], []>} : vector<64x128xf32>, vector<128x128xf32>, vector<64x128xf32> -> vector<64x128xf32>
    %56 = arith.addf %49, %55 : vector<64x128xf32>
    %c0_64 = arith.constant 0 : index
    %c0_65 = arith.constant 0 : index
    %c2_66 = arith.constant 2 : index
    %c2_67 = arith.constant 2 : index
    %c0_68 = arith.constant 0 : index
    %57 = vector.load %arg1[%c0_64, %c0_65, %c2_66, %c2_67, %c0_68] : memref<1x1x10x10x128xf32, #tpu.memory_space<vmem>>, vector<1x1x8x8x128xf32>
    %58 = vector.shape_cast %57 : vector<1x1x8x8x128xf32> to vector<8x8x128xf32>
    %59 = vector.shape_cast %58 : vector<8x8x128xf32> to vector<64x128xf32>
    %c8 = arith.constant 8 : index
    %c0_69 = arith.constant 0 : index
    %c0_70 = arith.constant 0 : index
    %60 = vector.load %arg2[%c8, %c0_69, %c0_70] : memref<9x128x128xf32, #tpu.memory_space<vmem>>, vector<1x128x128xf32>
    %61 = vector.shape_cast %60 : vector<1x128x128xf32> to vector<128x128xf32>
    %cst_71 = arith.constant dense<0.000000e+00> : vector<64x128xf32>
    %62 = tpu.matmul %59, %61, %cst_71 {dimension_numbers = #tpu.dot_dimension_numbers<[1], [0], [0], [1], [0, 0, 1, 1], [], []>} : vector<64x128xf32>, vector<128x128xf32>, vector<64x128xf32> -> vector<64x128xf32>
    %63 = arith.addf %56, %62 : vector<64x128xf32>
    %c0_72 = arith.constant 0 : index
    %c0_73 = arith.constant 0 : index
    %64 = vector.load %arg3[%c0_72, %c0_73] : memref<1x128xf32, #tpu.memory_space<vmem>>, vector<1x128xf32>
    %65 = vector.broadcast %64 : vector<1x128xf32> to vector<64x128xf32>
    %66 = arith.addf %63, %65 : vector<64x128xf32>
    %cst_74 = arith.constant 0.000000e+00 : f32
    %67 = vector.broadcast %cst_74 : f32 to vector<64x128xf32>
    %68 = arith.cmpf ogt, %66, %67 : vector<64x128xf32>
    %cst_75 = arith.constant 1.000000e-01 : f32
    %69 = vector.broadcast %cst_75 : f32 to vector<64x128xf32>
    %70 = arith.mulf %69, %66 : vector<64x128xf32>
    %71 = arith.select %68, %66, %70 : vector<64x128xi1>, vector<64x128xf32>
    %72 = vector.shape_cast %71 : vector<64x128xf32> to vector<1x8x8x128xf32>
    %c0_76 = arith.constant 0 : index
    %c0_77 = arith.constant 0 : index
    %c0_78 = arith.constant 0 : index
    %c0_79 = arith.constant 0 : index
    %73 = vector.load %arg4[%c0_76, %c0_77, %c0_78, %c0_79] : memref<1x8x8x128xf32, #tpu.memory_space<vmem>>, vector<1x8x8x128xf32>
    tpu.vector_store %arg4[%c0_76, %c0_77, %c0_78, %c0_79], %72 {strides = array<i32>} : memref<1x8x8x128xf32, #tpu.memory_space<vmem>>, vector<1x8x8x128xf32>,
    return
  }
  func.func @transform_0(%arg0: i32) -> (i32, i32, i32, i32, i32) {
    %c0_i32 = arith.constant 0 : i32
    %c0_i32_0 = arith.constant 0 : i32
    %c0_i32_1 = arith.constant 0 : i32
    %c0_i32_2 = arith.constant 0 : i32
    %c0_i32_3 = arith.constant 0 : i32
    return %arg0, %c0_i32, %c0_i32_0, %c0_i32_1, %c0_i32_2 : i32, i32, i32, i32, i32
  }
  func.func @transform_1(%arg0: i32) -> (i32, i32, i32) {
    %c0_i32 = arith.constant 0 : i32
    %c0_i32_0 = arith.constant 0 : i32
    %c0_i32_1 = arith.constant 0 : i32
    %c0_i32_2 = arith.constant 0 : i32
    return %c0_i32, %c0_i32_0, %c0_i32_1 : i32, i32, i32
  }
  func.func @transform_2(%arg0: i32) -> (i32, i32) {
    %c0_i32 = arith.constant 0 : i32
    %c0_i32_0 = arith.constant 0 : i32
    %c0_i32_1 = arith.constant 0 : i32
    return %c0_i32, %c0_i32_0 : i32, i32
  }
  func.func @transform_3(%arg0: i32) -> (i32, i32, i32, i32) {
    %c0_i32 = arith.constant 0 : i32
    %c0_i32_0 = arith.constant 0 : i32
    %c0_i32_1 = arith.constant 0 : i32
    %c0_i32_2 = arith.constant 0 : i32
    return %arg0, %c0_i32, %c0_i32_0, %c0_i32_1 : i32, i32, i32, i32
  }
}

module attributes {stable_mosaic.version = 11 : i64} {
  func.func @_maxpool_kernel(%arg0: i32, %arg1: memref<1x4x4x4x128xf32, #tpu.memory_space<vmem>>, %arg2: memref<1x4x4x128xf32, #tpu.memory_space<vmem>>) attributes {dimension_semantics = [#tpu.dimension_semantics<parallel>], iteration_bounds = array<i64: 2>, scalar_prefetch = 0 : i64, scratch_operands = 0 : i64, tpu.core_type = #tpu.core_type<tc>, window_params = [{transform_indices = @transform_0, window_bounds = array<i64: 1, 4, 4, 4, 128>}, {transform_indices = @transform_1, window_bounds = array<i64: 1, 4, 4, 128>}]} {
    %c0 = arith.constant 0 : index
    %c0_0 = arith.constant 0 : index
    %c0_1 = arith.constant 0 : index
    %c0_2 = arith.constant 0 : index
    %c0_3 = arith.constant 0 : index
    %0 = vector.load %arg1[%c0, %c0_0, %c0_1, %c0_2, %c0_3] : memref<1x4x4x4x128xf32, #tpu.memory_space<vmem>>, vector<1x1x4x4x128xf32>
    %1 = vector.shape_cast %0 : vector<1x1x4x4x128xf32> to vector<4x4x128xf32>
    %c0_4 = arith.constant 0 : index
    %c1 = arith.constant 1 : index
    %c0_5 = arith.constant 0 : index
    %c0_6 = arith.constant 0 : index
    %c0_7 = arith.constant 0 : index
    %2 = vector.load %arg1[%c0_4, %c1, %c0_5, %c0_6, %c0_7] : memref<1x4x4x4x128xf32, #tpu.memory_space<vmem>>, vector<1x1x4x4x128xf32>
    %3 = vector.shape_cast %2 : vector<1x1x4x4x128xf32> to vector<4x4x128xf32>
    %4 = arith.maximumf %1, %3 : vector<4x4x128xf32>
    %c0_8 = arith.constant 0 : index
    %c2 = arith.constant 2 : index
    %c0_9 = arith.constant 0 : index
    %c0_10 = arith.constant 0 : index
    %c0_11 = arith.constant 0 : index
    %5 = vector.load %arg1[%c0_8, %c2, %c0_9, %c0_10, %c0_11] : memref<1x4x4x4x128xf32, #tpu.memory_space<vmem>>, vector<1x1x4x4x128xf32>
    %6 = vector.shape_cast %5 : vector<1x1x4x4x128xf32> to vector<4x4x128xf32>
    %7 = arith.maximumf %4, %6 : vector<4x4x128xf32>
    %c0_12 = arith.constant 0 : index
    %c3 = arith.constant 3 : index
    %c0_13 = arith.constant 0 : index
    %c0_14 = arith.constant 0 : index
    %c0_15 = arith.constant 0 : index
    %8 = vector.load %arg1[%c0_12, %c3, %c0_13, %c0_14, %c0_15] : memref<1x4x4x4x128xf32, #tpu.memory_space<vmem>>, vector<1x1x4x4x128xf32>
    %9 = vector.shape_cast %8 : vector<1x1x4x4x128xf32> to vector<4x4x128xf32>
    %10 = arith.maximumf %7, %9 : vector<4x4x128xf32>
    %11 = vector.shape_cast %10 : vector<4x4x128xf32> to vector<1x4x4x128xf32>
    %c0_16 = arith.constant 0 : index
    %c0_17 = arith.constant 0 : index
    %c0_18 = arith.constant 0 : index
    %c0_19 = arith.constant 0 : index
    %12 = vector.load %arg2[%c0_16, %c0_17, %c0_18, %c0_19] : memref<1x4x4x128xf32, #tpu.memory_space<vmem>>, vector<1x4x4x128xf32>
    tpu.vector_store %arg2[%c0_16, %c0_17, %c0_18, %c0_19], %11 {strides = array<i32>} : memref<1x4x4x128xf32, #tpu.memory_space<vmem>>, vector<1x4x4x128xf32>,
    return
  }
  func.func @transform_0(%arg0: i32) -> (i32, i32, i32, i32, i32) {
    %c0_i32 = arith.constant 0 : i32
    %c0_i32_0 = arith.constant 0 : i32
    %c0_i32_1 = arith.constant 0 : i32
    %c0_i32_2 = arith.constant 0 : i32
    %c0_i32_3 = arith.constant 0 : i32
    return %arg0, %c0_i32, %c0_i32_0, %c0_i32_1, %c0_i32_2 : i32, i32, i32, i32, i32
  }
  func.func @transform_1(%arg0: i32) -> (i32, i32, i32, i32) {
    %c0_i32 = arith.constant 0 : i32
    %c0_i32_0 = arith.constant 0 : i32
    %c0_i32_1 = arith.constant 0 : i32
    %c0_i32_2 = arith.constant 0 : i32
    return %arg0, %c0_i32, %c0_i32_0, %c0_i32_1 : i32, i32, i32, i32
  }
}

module attributes {stable_mosaic.version = 11 : i64} {
  func.func @_conv_kernel(%arg0: i32, %arg1: memref<1x1x4x4x128xf32, #tpu.memory_space<vmem>>, %arg2: memref<1x128x128xf32, #tpu.memory_space<vmem>>, %arg3: memref<1x128xf32, #tpu.memory_space<vmem>>, %arg4: memref<1x4x4x128xf32, #tpu.memory_space<vmem>>) attributes {dimension_semantics = [#tpu.dimension_semantics<parallel>], iteration_bounds = array<i64: 2>, scalar_prefetch = 0 : i64, scratch_operands = 0 : i64, tpu.core_type = #tpu.core_type<tc>, window_params = [{transform_indices = @transform_0, window_bounds = array<i64: 1, 1, 4, 4, 128>}, {pipeline_mode = #tpu.pipeline_mode<synchronous>, transform_indices = @transform_1, window_bounds = array<i64: 1, 128, 128>}, {pipeline_mode = #tpu.pipeline_mode<synchronous>, transform_indices = @transform_2, window_bounds = array<i64: 1, 128>}, {transform_indices = @transform_3, window_bounds = array<i64: 1, 4, 4, 128>}]} {
    %cst = arith.constant 0.000000e+00 : f32
    %0 = vector.broadcast %cst : f32 to vector<16x128xf32>
    %c0 = arith.constant 0 : index
    %c0_0 = arith.constant 0 : index
    %c0_1 = arith.constant 0 : index
    %c0_2 = arith.constant 0 : index
    %c0_3 = arith.constant 0 : index
    %1 = vector.load %arg1[%c0, %c0_0, %c0_1, %c0_2, %c0_3] : memref<1x1x4x4x128xf32, #tpu.memory_space<vmem>>, vector<1x1x4x4x128xf32>
    %2 = vector.shape_cast %1 : vector<1x1x4x4x128xf32> to vector<4x4x128xf32>
    %3 = vector.shape_cast %2 : vector<4x4x128xf32> to vector<16x128xf32>
    %c0_4 = arith.constant 0 : index
    %c0_5 = arith.constant 0 : index
    %c0_6 = arith.constant 0 : index
    %4 = vector.load %arg2[%c0_4, %c0_5, %c0_6] : memref<1x128x128xf32, #tpu.memory_space<vmem>>, vector<1x128x128xf32>
    %5 = vector.shape_cast %4 : vector<1x128x128xf32> to vector<128x128xf32>
    %cst_7 = arith.constant dense<0.000000e+00> : vector<16x128xf32>
    %6 = tpu.matmul %3, %5, %cst_7 {dimension_numbers = #tpu.dot_dimension_numbers<[1], [0], [0], [1], [0, 0, 1, 1], [], []>} : vector<16x128xf32>, vector<128x128xf32>, vector<16x128xf32> -> vector<16x128xf32>
    %7 = arith.addf %0, %6 : vector<16x128xf32>
    %c0_8 = arith.constant 0 : index
    %c0_9 = arith.constant 0 : index
    %8 = vector.load %arg3[%c0_8, %c0_9] : memref<1x128xf32, #tpu.memory_space<vmem>>, vector<1x128xf32>
    %9 = vector.broadcast %8 : vector<1x128xf32> to vector<16x128xf32>
    %10 = arith.addf %7, %9 : vector<16x128xf32>
    %cst_10 = arith.constant 0.000000e+00 : f32
    %11 = vector.broadcast %cst_10 : f32 to vector<16x128xf32>
    %12 = arith.cmpf ogt, %10, %11 : vector<16x128xf32>
    %cst_11 = arith.constant 1.000000e-01 : f32
    %13 = vector.broadcast %cst_11 : f32 to vector<16x128xf32>
    %14 = arith.mulf %13, %10 : vector<16x128xf32>
    %15 = arith.select %12, %10, %14 : vector<16x128xi1>, vector<16x128xf32>
    %16 = vector.shape_cast %15 : vector<16x128xf32> to vector<1x4x4x128xf32>
    %c0_12 = arith.constant 0 : index
    %c0_13 = arith.constant 0 : index
    %c0_14 = arith.constant 0 : index
    %c0_15 = arith.constant 0 : index
    %17 = vector.load %arg4[%c0_12, %c0_13, %c0_14, %c0_15] : memref<1x4x4x128xf32, #tpu.memory_space<vmem>>, vector<1x4x4x128xf32>
    tpu.vector_store %arg4[%c0_12, %c0_13, %c0_14, %c0_15], %16 {strides = array<i32>} : memref<1x4x4x128xf32, #tpu.memory_space<vmem>>, vector<1x4x4x128xf32>,
    return
  }
  func.func @transform_0(%arg0: i32) -> (i32, i32, i32, i32, i32) {
    %c0_i32 = arith.constant 0 : i32
    %c0_i32_0 = arith.constant 0 : i32
    %c0_i32_1 = arith.constant 0 : i32
    %c0_i32_2 = arith.constant 0 : i32
    %c0_i32_3 = arith.constant 0 : i32
    return %arg0, %c0_i32, %c0_i32_0, %c0_i32_1, %c0_i32_2 : i32, i32, i32, i32, i32
  }
  func.func @transform_1(%arg0: i32) -> (i32, i32, i32) {
    %c0_i32 = arith.constant 0 : i32
    %c0_i32_0 = arith.constant 0 : i32
    %c0_i32_1 = arith.constant 0 : i32
    %c0_i32_2 = arith.constant 0 : i32
    return %c0_i32, %c0_i32_0, %c0_i32_1 : i32, i32, i32
  }
  func.func @transform_2(%arg0: i32) -> (i32, i32) {
    %c0_i32 = arith.constant 0 : i32
    %c0_i32_0 = arith.constant 0 : i32
    %c0_i32_1 = arith.constant 0 : i32
    return %c0_i32, %c0_i32_0 : i32, i32
  }
  func.func @transform_3(%arg0: i32) -> (i32, i32, i32, i32) {
    %c0_i32 = arith.constant 0 : i32
    %c0_i32_0 = arith.constant 0 : i32
    %c0_i32_1 = arith.constant 0 : i32
    %c0_i32_2 = arith.constant 0 : i32
    return %arg0, %c0_i32, %c0_i32_0, %c0_i32_1 : i32, i32, i32, i32
  }
}

module attributes {stable_mosaic.version = 11 : i64} {
  func.func @_conv_kernel(%arg0: i32, %arg1: memref<1x1x4x4x128xf32, #tpu.memory_space<vmem>>, %arg2: memref<1x128x128xf32, #tpu.memory_space<vmem>>, %arg3: memref<1x128xf32, #tpu.memory_space<vmem>>, %arg4: memref<1x128xi32, #tpu.memory_space<vmem>>, %arg5: memref<1x4x4x128xf32, #tpu.memory_space<vmem>>) attributes {dimension_semantics = [#tpu.dimension_semantics<parallel>], iteration_bounds = array<i64: 2>, scalar_prefetch = 0 : i64, scratch_operands = 0 : i64, tpu.core_type = #tpu.core_type<tc>, window_params = [{transform_indices = @transform_0, window_bounds = array<i64: 1, 1, 4, 4, 128>}, {pipeline_mode = #tpu.pipeline_mode<synchronous>, transform_indices = @transform_1, window_bounds = array<i64: 1, 128, 128>}, {pipeline_mode = #tpu.pipeline_mode<synchronous>, transform_indices = @transform_2, window_bounds = array<i64: 1, 128>}, {pipeline_mode = #tpu.pipeline_mode<synchronous>, transform_indices = @transform_3, window_bounds = array<i64: 1, 128>}, {transform_indices = @transform_4, window_bounds = array<i64: 1, 4, 4, 128>}]} {
    %cst = arith.constant 0.000000e+00 : f32
    %0 = vector.broadcast %cst : f32 to vector<16x128xf32>
    %c0 = arith.constant 0 : index
    %c0_0 = arith.constant 0 : index
    %c0_1 = arith.constant 0 : index
    %c0_2 = arith.constant 0 : index
    %c0_3 = arith.constant 0 : index
    %1 = vector.load %arg1[%c0, %c0_0, %c0_1, %c0_2, %c0_3] : memref<1x1x4x4x128xf32, #tpu.memory_space<vmem>>, vector<1x1x4x4x128xf32>
    %2 = vector.shape_cast %1 : vector<1x1x4x4x128xf32> to vector<4x4x128xf32>
    %3 = vector.shape_cast %2 : vector<4x4x128xf32> to vector<16x128xf32>
    %c0_4 = arith.constant 0 : index
    %c0_5 = arith.constant 0 : index
    %c0_6 = arith.constant 0 : index
    %4 = vector.load %arg2[%c0_4, %c0_5, %c0_6] : memref<1x128x128xf32, #tpu.memory_space<vmem>>, vector<1x128x128xf32>
    %5 = vector.shape_cast %4 : vector<1x128x128xf32> to vector<128x128xf32>
    %cst_7 = arith.constant dense<0.000000e+00> : vector<16x128xf32>
    %6 = tpu.matmul %3, %5, %cst_7 {dimension_numbers = #tpu.dot_dimension_numbers<[1], [0], [0], [1], [0, 0, 1, 1], [], []>} : vector<16x128xf32>, vector<128x128xf32>, vector<16x128xf32> -> vector<16x128xf32>
    %7 = arith.addf %0, %6 : vector<16x128xf32>
    %c0_8 = arith.constant 0 : index
    %c0_9 = arith.constant 0 : index
    %8 = vector.load %arg3[%c0_8, %c0_9] : memref<1x128xf32, #tpu.memory_space<vmem>>, vector<1x128xf32>
    %9 = vector.broadcast %8 : vector<1x128xf32> to vector<16x128xf32>
    %10 = arith.addf %7, %9 : vector<16x128xf32>
    %c0_10 = arith.constant 0 : index
    %c0_11 = arith.constant 0 : index
    %11 = vector.load %arg4[%c0_10, %c0_11] : memref<1x128xi32, #tpu.memory_space<vmem>>, vector<1x128xi32>
    %12 = arith.negf %10 : vector<16x128xf32>
    %13 = math.exp %12 : vector<16x128xf32>
    %cst_12 = arith.constant 1.000000e+00 : f32
    %14 = vector.broadcast %cst_12 : f32 to vector<16x128xf32>
    %15 = arith.addf %14, %13 : vector<16x128xf32>
    %16 = arith.divf %14, %15 : vector<16x128xf32>
    %cst_13 = arith.constant 1.050000e+00 : f32
    %17 = vector.broadcast %cst_13 : f32 to vector<16x128xf32>
    %18 = arith.mulf %17, %16 : vector<16x128xf32>
    %cst_14 = arith.constant 2.500000e-02 : f32
    %19 = vector.broadcast %cst_14 : f32 to vector<16x128xf32>
    %20 = arith.subf %18, %19 : vector<16x128xf32>
    %c0_i32 = arith.constant 0 : i32
    %21 = vector.broadcast %c0_i32 : i32 to vector<1x128xi32>
    %22 = arith.cmpi eq, %11, %21 : vector<1x128xi32>
    %c1_i32 = arith.constant 1 : i32
    %23 = vector.broadcast %c1_i32 : i32 to vector<1x128xi32>
    %24 = arith.cmpi eq, %11, %23 : vector<1x128xi32>
    %25 = vector.shape_cast %24 : vector<1x128xi1> to vector<1x128xi1>
    %26 = vector.broadcast %25 : vector<1x128xi1> to vector<16x128xi1>
    %27 = arith.select %26, %10, %16 : vector<16x128xi1>, vector<16x128xf32>
    %28 = vector.shape_cast %22 : vector<1x128xi1> to vector<1x128xi1>
    %29 = vector.broadcast %28 : vector<1x128xi1> to vector<16x128xi1>
    %30 = arith.select %29, %20, %27 : vector<16x128xi1>, vector<16x128xf32>
    %31 = vector.shape_cast %30 : vector<16x128xf32> to vector<1x4x4x128xf32>
    %c0_15 = arith.constant 0 : index
    %c0_16 = arith.constant 0 : index
    %c0_17 = arith.constant 0 : index
    %c0_18 = arith.constant 0 : index
    %32 = vector.load %arg5[%c0_15, %c0_16, %c0_17, %c0_18] : memref<1x4x4x128xf32, #tpu.memory_space<vmem>>, vector<1x4x4x128xf32>
    tpu.vector_store %arg5[%c0_15, %c0_16, %c0_17, %c0_18], %31 {strides = array<i32>} : memref<1x4x4x128xf32, #tpu.memory_space<vmem>>, vector<1x4x4x128xf32>,
    return
  }
  func.func @transform_0(%arg0: i32) -> (i32, i32, i32, i32, i32) {
    %c0_i32 = arith.constant 0 : i32
    %c0_i32_0 = arith.constant 0 : i32
    %c0_i32_1 = arith.constant 0 : i32
    %c0_i32_2 = arith.constant 0 : i32
    %c0_i32_3 = arith.constant 0 : i32
    return %arg0, %c0_i32, %c0_i32_0, %c0_i32_1, %c0_i32_2 : i32, i32, i32, i32, i32
  }
  func.func @transform_1(%arg0: i32) -> (i32, i32, i32) {
    %c0_i32 = arith.constant 0 : i32
    %c0_i32_0 = arith.constant 0 : i32
    %c0_i32_1 = arith.constant 0 : i32
    %c0_i32_2 = arith.constant 0 : i32
    return %c0_i32, %c0_i32_0, %c0_i32_1 : i32, i32, i32
  }
  func.func @transform_2(%arg0: i32) -> (i32, i32) {
    %c0_i32 = arith.constant 0 : i32
    %c0_i32_0 = arith.constant 0 : i32
    %c0_i32_1 = arith.constant 0 : i32
    return %c0_i32, %c0_i32_0 : i32, i32
  }
  func.func @transform_3(%arg0: i32) -> (i32, i32) {
    %c0_i32 = arith.constant 0 : i32
    %c0_i32_0 = arith.constant 0 : i32
    %c0_i32_1 = arith.constant 0 : i32
    return %c0_i32, %c0_i32_0 : i32, i32
  }
  func.func @transform_4(%arg0: i32) -> (i32, i32, i32, i32) {
    %c0_i32 = arith.constant 0 : i32
    %c0_i32_0 = arith.constant 0 : i32
    %c0_i32_1 = arith.constant 0 : i32
    %c0_i32_2 = arith.constant 0 : i32
    return %arg0, %c0_i32, %c0_i32_0, %c0_i32_1 : i32, i32, i32, i32
  }
}

module attributes {stable_mosaic.version = 11 : i64} {
  func.func @_conv_kernel(%arg0: i32, %arg1: memref<1x1x8x8x128xf32, #tpu.memory_space<vmem>>, %arg2: memref<1x128x128xf32, #tpu.memory_space<vmem>>, %arg3: memref<1x128xf32, #tpu.memory_space<vmem>>, %arg4: memref<1x128xi32, #tpu.memory_space<vmem>>, %arg5: memref<1x8x8x128xf32, #tpu.memory_space<vmem>>) attributes {dimension_semantics = [#tpu.dimension_semantics<parallel>], iteration_bounds = array<i64: 2>, scalar_prefetch = 0 : i64, scratch_operands = 0 : i64, tpu.core_type = #tpu.core_type<tc>, window_params = [{transform_indices = @transform_0, window_bounds = array<i64: 1, 1, 8, 8, 128>}, {pipeline_mode = #tpu.pipeline_mode<synchronous>, transform_indices = @transform_1, window_bounds = array<i64: 1, 128, 128>}, {pipeline_mode = #tpu.pipeline_mode<synchronous>, transform_indices = @transform_2, window_bounds = array<i64: 1, 128>}, {pipeline_mode = #tpu.pipeline_mode<synchronous>, transform_indices = @transform_3, window_bounds = array<i64: 1, 128>}, {transform_indices = @transform_4, window_bounds = array<i64: 1, 8, 8, 128>}]} {
    %cst = arith.constant 0.000000e+00 : f32
    %0 = vector.broadcast %cst : f32 to vector<64x128xf32>
    %c0 = arith.constant 0 : index
    %c0_0 = arith.constant 0 : index
    %c0_1 = arith.constant 0 : index
    %c0_2 = arith.constant 0 : index
    %c0_3 = arith.constant 0 : index
    %1 = vector.load %arg1[%c0, %c0_0, %c0_1, %c0_2, %c0_3] : memref<1x1x8x8x128xf32, #tpu.memory_space<vmem>>, vector<1x1x8x8x128xf32>
    %2 = vector.shape_cast %1 : vector<1x1x8x8x128xf32> to vector<8x8x128xf32>
    %3 = vector.shape_cast %2 : vector<8x8x128xf32> to vector<64x128xf32>
    %c0_4 = arith.constant 0 : index
    %c0_5 = arith.constant 0 : index
    %c0_6 = arith.constant 0 : index
    %4 = vector.load %arg2[%c0_4, %c0_5, %c0_6] : memref<1x128x128xf32, #tpu.memory_space<vmem>>, vector<1x128x128xf32>
    %5 = vector.shape_cast %4 : vector<1x128x128xf32> to vector<128x128xf32>
    %cst_7 = arith.constant dense<0.000000e+00> : vector<64x128xf32>
    %6 = tpu.matmul %3, %5, %cst_7 {dimension_numbers = #tpu.dot_dimension_numbers<[1], [0], [0], [1], [0, 0, 1, 1], [], []>} : vector<64x128xf32>, vector<128x128xf32>, vector<64x128xf32> -> vector<64x128xf32>
    %7 = arith.addf %0, %6 : vector<64x128xf32>
    %c0_8 = arith.constant 0 : index
    %c0_9 = arith.constant 0 : index
    %8 = vector.load %arg3[%c0_8, %c0_9] : memref<1x128xf32, #tpu.memory_space<vmem>>, vector<1x128xf32>
    %9 = vector.broadcast %8 : vector<1x128xf32> to vector<64x128xf32>
    %10 = arith.addf %7, %9 : vector<64x128xf32>
    %c0_10 = arith.constant 0 : index
    %c0_11 = arith.constant 0 : index
    %11 = vector.load %arg4[%c0_10, %c0_11] : memref<1x128xi32, #tpu.memory_space<vmem>>, vector<1x128xi32>
    %12 = arith.negf %10 : vector<64x128xf32>
    %13 = math.exp %12 : vector<64x128xf32>
    %cst_12 = arith.constant 1.000000e+00 : f32
    %14 = vector.broadcast %cst_12 : f32 to vector<64x128xf32>
    %15 = arith.addf %14, %13 : vector<64x128xf32>
    %16 = arith.divf %14, %15 : vector<64x128xf32>
    %cst_13 = arith.constant 1.100000e+00 : f32
    %17 = vector.broadcast %cst_13 : f32 to vector<64x128xf32>
    %18 = arith.mulf %17, %16 : vector<64x128xf32>
    %cst_14 = arith.constant 5.000000e-02 : f32
    %19 = vector.broadcast %cst_14 : f32 to vector<64x128xf32>
    %20 = arith.subf %18, %19 : vector<64x128xf32>
    %c0_i32 = arith.constant 0 : i32
    %21 = vector.broadcast %c0_i32 : i32 to vector<1x128xi32>
    %22 = arith.cmpi eq, %11, %21 : vector<1x128xi32>
    %c1_i32 = arith.constant 1 : i32
    %23 = vector.broadcast %c1_i32 : i32 to vector<1x128xi32>
    %24 = arith.cmpi eq, %11, %23 : vector<1x128xi32>
    %25 = vector.shape_cast %24 : vector<1x128xi1> to vector<1x128xi1>
    %26 = vector.broadcast %25 : vector<1x128xi1> to vector<64x128xi1>
    %27 = arith.select %26, %10, %16 : vector<64x128xi1>, vector<64x128xf32>
    %28 = vector.shape_cast %22 : vector<1x128xi1> to vector<1x128xi1>
    %29 = vector.broadcast %28 : vector<1x128xi1> to vector<64x128xi1>
    %30 = arith.select %29, %20, %27 : vector<64x128xi1>, vector<64x128xf32>
    %31 = vector.shape_cast %30 : vector<64x128xf32> to vector<1x8x8x128xf32>
    %c0_15 = arith.constant 0 : index
    %c0_16 = arith.constant 0 : index
    %c0_17 = arith.constant 0 : index
    %c0_18 = arith.constant 0 : index
    %32 = vector.load %arg5[%c0_15, %c0_16, %c0_17, %c0_18] : memref<1x8x8x128xf32, #tpu.memory_space<vmem>>, vector<1x8x8x128xf32>
    tpu.vector_store %arg5[%c0_15, %c0_16, %c0_17, %c0_18], %31 {strides = array<i32>} : memref<1x8x8x128xf32, #tpu.memory_space<vmem>>, vector<1x8x8x128xf32>,
    return
  }
  func.func @transform_0(%arg0: i32) -> (i32, i32, i32, i32, i32) {
    %c0_i32 = arith.constant 0 : i32
    %c0_i32_0 = arith.constant 0 : i32
    %c0_i32_1 = arith.constant 0 : i32
    %c0_i32_2 = arith.constant 0 : i32
    %c0_i32_3 = arith.constant 0 : i32
    return %arg0, %c0_i32, %c0_i32_0, %c0_i32_1, %c0_i32_2 : i32, i32, i32, i32, i32
  }
  func.func @transform_1(%arg0: i32) -> (i32, i32, i32) {
    %c0_i32 = arith.constant 0 : i32
    %c0_i32_0 = arith.constant 0 : i32
    %c0_i32_1 = arith.constant 0 : i32
    %c0_i32_2 = arith.constant 0 : i32
    return %c0_i32, %c0_i32_0, %c0_i32_1 : i32, i32, i32
  }
  func.func @transform_2(%arg0: i32) -> (i32, i32) {
    %c0_i32 = arith.constant 0 : i32
    %c0_i32_0 = arith.constant 0 : i32
    %c0_i32_1 = arith.constant 0 : i32
    return %c0_i32, %c0_i32_0 : i32, i32
  }
  func.func @transform_3(%arg0: i32) -> (i32, i32) {
    %c0_i32 = arith.constant 0 : i32
    %c0_i32_0 = arith.constant 0 : i32
    %c0_i32_1 = arith.constant 0 : i32
    return %c0_i32, %c0_i32_0 : i32, i32
  }
  func.func @transform_4(%arg0: i32) -> (i32, i32, i32, i32) {
    %c0_i32 = arith.constant 0 : i32
    %c0_i32_0 = arith.constant 0 : i32
    %c0_i32_1 = arith.constant 0 : i32
    %c0_i32_2 = arith.constant 0 : i32
    return %arg0, %c0_i32, %c0_i32_0, %c0_i32_1 : i32, i32, i32, i32
  }
}

</mosaic_0001>

<bundles_post_ra>
// kernel: _run.10
= control target key start
LH: loop header
LB: loop body
LE: loop exit
PB: predicated region body
PF: predicated region fallthrough
CT: control target
= control target key end

     0   :  { %s643_s15 = smov 0   ;;  %s749_s0 = inlined_call_operand.vmem [shape: f32[2,1,8,8,128], index: 0, kind: input, shape index: {}, may-alias: {0,3}]   ;;  %s750_s1 = inlined_call_operand.vmem [shape: f32[1,128,128], index: 1, kind: input, shape index: {}]   ;;  %s751_s2 = inlined_call_operand.vmem [shape: f32[1,128], index: 2, kind: input, shape index: {}]   ;;  %s752_s3 = inlined_call_operand.vmem [shape: f32[2,8,8,128], index: 3, kind: input, shape index: {}, may-alias: {0,3}]   ;;  %s753_s4 = inlined_call_operand.vmem [shape: f32[2,8,8,128], index: 4, kind: output, shape index: {}]  }
   0x1 LB: > { %s469_s16 = sadd.s32 4294967295, %s616_s15   ;;  %p473_p0 = scmp.ge.s32.totalorder %s616_s15, 1  ;;  %s616_s15 = sphi %s643_s15, %s14_s15  }
   0x2   : > { %p172_p1 = scmp.lt.s32.totalorder %s616_s15, 3 }
   0x4   : > { %p173_p2 = pnand %p473_p0, %p172_p1 }
   0x5   : > { %v226_v0 = vld [vmem:[%s750_s1] sm:$0xff] (!%p173_p2)  ;;  %v227_v1 = vld [vmem:[%s750_s1 + $0x8] sm:$0xff] (!%p173_p2)  ;;  %v228_v2 = vld [vmem:[%s750_s1 + $0x10] sm:$0xff] (!%p173_p2)  ;;  %p203_p3 = scmp.lt.s32.totalorder (!%p173_p2), %s469_s16, 1 }
   0x6   : > { %176 = sbr.rel (%p173_p2) target bundleno = 268 (0x10c), region = 36  ;;  %v554_v3 = vpack.c.bf16 (!%p173_p2), %v227_v1, %v226_v0  ;;  %v229_v4 = vld [vmem:[%s750_s1 + $0x18] sm:$0xff] (!%p173_p2)  ;;  %v230_v6 = vld [vmem:[%s750_s1 + $0x20] sm:$0xff] (!%p173_p2)  ;;  %v231_v7 = vld [vmem:[%s750_s1 + $0x28] sm:$0xff] (!%p173_p2) }
   0x7   : > { %v558_v5 = vpack.c.bf16 (!%p173_p2), %v229_v4, %v228_v2  ;;  %v562_v8 = vpack.c.bf16 (!%p173_p2), %v231_v7, %v230_v6  ;;  %v232_v9 = vld [vmem:[%s750_s1 + $0x30] sm:$0xff] (!%p173_p2)  ;;  %v233_v10 = vld [vmem:[%s750_s1 + $0x38] sm:$0xff] (!%p173_p2)  ;;  %v234_v14 = vld [vmem:[%s750_s1 + $0x40] sm:$0xff] (!%p173_p2) }
   0x8   : > { %555 = vmatprep.subr.bf16.mxu0 (!%p173_p2), %v554_v3  ;;  %586 = vmatprep.subr.bf16.mxu1 (!%p173_p2), %v554_v3  ;;  %v566_v13 = vpack.c.bf16 (!%p173_p2), %v233_v10, %v232_v9  ;;  %v235_v15 = vld [vmem:[%s750_s1 + $0x48] sm:$0xff] (!%p173_p2)  ;;  %v236_v17 = vld [vmem:[%s750_s1 + $0x50] sm:$0xff] (!%p173_p2)  ;;  %v237_v18 = vld [vmem:[%s750_s1 + $0x58] sm:$0xff] (!%p173_p2) }
   0x9   : > { %557 = vmatpush3.bf16.msra.mxu0 (!%p173_p2), %v554_v3  ;;  %594 = vmatpush3.bf16.msra.mxu1 (!%p173_p2), %v554_v3  ;;  %v570_v16 = vpack.c.bf16 (!%p173_p2), %v235_v15, %v234_v14  ;;  %v574_v19 = vpack.c.bf16 (!%p173_p2), %v237_v18, %v236_v17  ;;  %v238_v20 = vld [vmem:[%s750_s1 + $0x60] sm:$0xff] (!%p173_p2)  ;;  %v239_v21 = vld [vmem:[%s750_s1 + $0x68] sm:$0xff] (!%p173_p2)  ;;  %v240_v23 = vld [vmem:[%s750_s1 + $0x70] sm:$0xff] (!%p173_p2) }
   0xa   : > { %559 = vmatprep.subr.bf16.mxu0 (!%p173_p2), %v558_v5  ;;  %587 = vmatprep.subr.bf16.mxu1 (!%p173_p2), %v558_v5  ;;  %v578_v22 = vpack.c.bf16 (!%p173_p2), %v239_v21, %v238_v20  ;;  %v241_v24 = vld [vmem:[%s750_s1 + $0x78] sm:$0xff] (!%p173_p2)  ;;  %v480_v32 = vld [vmem:[%s751_s2] ss:$0 sm:$0xff] (!%p173_p2) }
   0xb   : > { %v582_v25 = vpack.c.bf16 (!%p173_p2), %v241_v24, %v240_v23 }
   0xd   : > { %s755_s16 = smov (!%p203_p3, %s469_s16), 1  ;;  %561 = vmatpush3.bf16.msra.mxu0 %v558_v5  ;;  %595 = vmatpush3.bf16.msra.mxu1 %v558_v5 }
   0xe   : > { %s669_s29 = sshll.u32 %s755_s16, 6  ;;  %563 = vmatprep.subr.bf16.mxu0 %v562_v8  ;;  %588 = vmatprep.subr.bf16.mxu1 %v562_v8 }
   0xf   : > { %s678_s8 = scalar_lea.vmem %s749_s0, %s669_s29  ;;  %s719_s5 = scalar_lea.vmem %s752_s3, %s669_s29 }
  0x10   : > { %v218_v11 = vld [vmem:[%s678_s8] sm:$0xff]  ;;  %v219_v26 = vld [vmem:[%s678_s8 + $0x8] sm:$0xff]  ;;  %v220_v28 = vld [vmem:[%s678_s8 + $0x10] sm:$0xff]  ;;  %s732_s10 = scalar_lea.vmem %s753_s4, %s669_s29 }
  0x11   : > { %v222_v12 = vld [vmem:[%s678_s8 + $0x20] sm:$0xff]  ;;  %542 = vmatprep.mubr.f32.mxu0 %v218_v11  ;;  %565 = vmatpush3.bf16.msra.mxu0 %v562_v8  ;;  %v223_v27 = vld [vmem:[%s678_s8 + $0x28] sm:$0xff]  ;;  %v224_v29 = vld [vmem:[%s678_s8 + $0x30] sm:$0xff] }
  0x12   : > { %548 = vmatprep.mubr.f32.mxu1 %v222_v12  ;;  %596 = vmatpush3.bf16.msra.mxu1 %v562_v8  ;;  %v221_v30 = vld [vmem:[%s678_s8 + $0x18] sm:$0xff]  ;;  %v379_v36 = vld [vmem:[%s719_s5 + $0x8] sm:$0xff]  ;;  %v378_v42 = vld [vmem:[%s719_s5] sm:$0xff] }
  0x13   : > { %567 = vmatprep.subr.bf16.mxu0 %v566_v13  ;;  %589 = vmatprep.subr.bf16.mxu1 %v566_v13  ;;  %v225_v31 = vld [vmem:[%s678_s8 + $0x38] sm:$0xff]  ;;  %v383_v40 = vld [vmem:[%s719_s5 + $0x28] sm:$0xff]  ;;  %v382_v44 = vld [vmem:[%s719_s5 + $0x20] sm:$0xff] }
  0x14   : > { %v381_v62 = vld [vmem:[%s719_s5 + $0x18] sm:$0xff]  ;;  %v380_v2 = vld [vmem:[%s719_s5 + $0x10] sm:$0xff] }
  0x15   : > { %569 = vmatpush3.bf16.msra.mxu0 %v566_v13  ;;  %v385_v0 = vld [vmem:[%s719_s5 + $0x38] sm:$0xff]  ;;  %v384_v4 = vld [vmem:[%s719_s5 + $0x30] sm:$0xff] }
  0x16   : > { %597 = vmatpush3.bf16.msra.mxu1 %v566_v13  ;;  %571 = vmatprep.subr.bf16.mxu0 %v570_v16 }
  0x17   : > { %590 = vmatprep.subr.bf16.mxu1 %v570_v16 }
  0x19   : > { %573 = vmatpush3.bf16.msra.mxu0 %v570_v16 }
  0x1a   : > { %598 = vmatpush3.bf16.msra.mxu1 %v570_v16  ;;  %575 = vmatprep.subr.bf16.mxu0 %v574_v19 }
  0x1b   : > { %591 = vmatprep.subr.bf16.mxu1 %v574_v19 }
  0x1d   : > { %577 = vmatpush3.bf16.msra.mxu0 %v574_v19 }
  0x1e   : > { %599 = vmatpush3.bf16.msra.mxu1 %v574_v19  ;;  %579 = vmatprep.subr.bf16.mxu0 %v578_v22 }
  0x1f   : > { %592 = vmatprep.subr.bf16.mxu1 %v578_v22 }
  0x21   : > { %581 = vmatpush3.bf16.msra.mxu0 %v578_v22 }
  0x22   : > { %600 = vmatpush3.bf16.msra.mxu1 %v578_v22  ;;  %583 = vmatprep.subr.bf16.mxu0 %v582_v25 }
  0x23   : > { %593 = vmatprep.subr.bf16.mxu1 %v582_v25 }
  0x25   : > { %585 = vmatpush3.bf16.msra.mxu0 %v582_v25 }
  0x26   : > { %601 = vmatpush3.bf16.msra.mxu1 %v582_v25 }
  0x28   : > { %543 = vmatmul.mubr.f32.vlgmr.msra.gmra.mrb[0].mxu0 %v219_v26 }
  0x29   : > { %549 = vmatmul.mubr.f32.vlgmr.msra.gmra.mrb[0].mxu1 %v223_v27  ;;  %545 = vmatprep.mubr.f32.mxu0 %v220_v28 }
  0x2a   : > { %551 = vmatprep.mubr.f32.mxu1 %v224_v29 }
  0x2c   : > { %546 = vmatmul.mubr.f32.gmra.mrb[2].mxu0 %v221_v30 }
  0x2d   : > { %552 = vmatmul.mubr.f32.gmra.mrb[2].mxu1 %v225_v31 }
  0xfb   : > { %v544_v33 = vpop.f32.mrb[0].mxu0 }
  0xfc   : > { %v550_v34 = vpop.f32.mrb[0].mxu1  ;;  %v321_v35 = vadd.f32 %v544_v33, %v480_v32  ;;  %v315_v38 = vpop.f32.mrb[1].mxu0 }
  0xfd   : > { %v341_v37 = vadd.f32 %v550_v34, %v480_v32  ;;  %v335_v39 = vpop.f32.mrb[1].mxu1  ;;  %v316_v41 = vadd.f32 %v480_v32, %v315_v38 }
  0xfe   : > { %v336_v43 = vadd.f32 %v480_v32, %v335_v39  ;;  %vm355_vm0 = vcmp.gt.f32.partialorder %v321_v35, 0.0  ;;  %v363_v45 = vmul.f32 0.1, %v321_v35 }
  0xff   : > { %vm359_vm1 = vcmp.gt.f32.partialorder %v341_v37, 0.0  ;;  %v367_v46 = vmul.f32 0.1, %v341_v37  ;;  %vm354_vm2 = vcmp.gt.f32.partialorder %v316_v41, 0.0  ;;  %v362_v47 = vmul.f32 0.1, %v316_v41 }
 0x100   : > { %vm358_vm3 = vcmp.gt.f32.partialorder %v336_v43, 0.0  ;;  %v366_v48 = vmul.f32 0.1, %v336_v43  ;;  %v371_v49 = vsel %vm355_vm0, %v321_v35, %v363_v45  ;;  %v547_v51 = vpop.f32.mrb[2].mxu0  ;;  %v553_v52 = vpop.f32.mrb[2].mxu1 }
 0x101   : > { %v375_v50 = vsel %vm359_vm1, %v341_v37, %v367_v46  ;;  %v387_v53 = vadd.f32 %v379_v36, %v371_v49  ;;  %v370_v55 = vsel %vm354_vm2, %v316_v41, %v362_v47  ;;  %v325_v57 = vpop.f32.mrb[3].mxu0  ;;  %v345_v58 = vpop.f32.mrb[3].mxu1  ;;  %v331_v61 = vadd.f32 %v547_v51, %v480_v32 }
 0x102   : > { %v391_v54 = vadd.f32 %v383_v40, %v375_v50  ;;  %v374_v56 = vsel %vm358_vm3, %v336_v43, %v366_v48  ;;  %v386_v59 = vadd.f32 %v378_v42, %v370_v55  ;;  %v351_v63 = vadd.f32 %v553_v52, %v480_v32 }
 0x103   : > { %v390_v60 = vadd.f32 %v382_v44, %v374_v56  ;;  %395 = vst [vmem:[%s732_s10 + $0x8] sm:$0xff] %v387_v53  ;;  %v326_v1 = vadd.f32 %v480_v32, %v325_v57  ;;  %v346_v3 = vadd.f32 %v480_v32, %v345_v58  ;;  %vm357_vm4 = vcmp.gt.f32.partialorder %v331_v61, 0.0 }
 0x104   : > { %399 = vst [vmem:[%s732_s10 + $0x28] sm:$0xff] %v391_v54  ;;  %394 = vst [vmem:[%s732_s10] sm:$0xff] %v386_v59  ;;  %v365_v5 = vmul.f32 0.1, %v331_v61  ;;  %vm361_vm5 = vcmp.gt.f32.partialorder %v351_v63, 0.0  ;;  %v369_v6 = vmul.f32 0.1, %v351_v63 }
 0x105   : > { %398 = vst [vmem:[%s732_s10 + $0x20] sm:$0xff] %v390_v60  ;;  %vm356_vm6 = vcmp.gt.f32.partialorder %v326_v1, 0.0  ;;  %v364_v7 = vmul.f32 0.1, %v326_v1  ;;  %vm360_vm7 = vcmp.gt.f32.partialorder %v346_v3, 0.0 }
 0x106   : > { %v368_v8 = vmul.f32 0.1, %v346_v3  ;;  %v373_v9 = vsel %vm357_vm4, %v331_v61, %v365_v5  ;;  %v377_v10 = vsel %vm361_vm5, %v351_v63, %v369_v6 }
 0x107   : > { %v389_v11 = vadd.f32 %v381_v62, %v373_v9  ;;  %v393_v12 = vadd.f32 %v385_v0, %v377_v10  ;;  %v372_v13 = vsel %vm356_vm6, %v326_v1, %v364_v7 }
 0x108   : > { %v376_v14 = vsel %vm360_vm7, %v346_v3, %v368_v8  ;;  %v388_v15 = vadd.f32 %v380_v2, %v372_v13 }
 0x109   : > { %v392_v16 = vadd.f32 %v384_v4, %v376_v14  ;;  %397 = vst [vmem:[%s732_s10 + $0x18] sm:$0xff] %v389_v11  ;;  %401 = vst [vmem:[%s732_s10 + $0x38] sm:$0xff] %v393_v12 }
 0x10a   : > { %396 = vst [vmem:[%s732_s10 + $0x10] sm:$0xff] %v388_v15 }
 0x10b   : > { %400 = vst [vmem:[%s732_s10 + $0x30] sm:$0xff] %v392_v16 }
 0x10c PF: > { %s14_s15 = sadd.s32 1, %s616_s15  }
 0x10d   : > { %p11_p4 = scmp.ge.s32.totalorder %s14_s15, 4  }
 0x10f   :  { %13 = sbr.rel (!%p11_p4) target bundleno = 1 (0x1), region = 69 }

// kernel: _run.8
= control target key start
LH: loop header
LB: loop body
LE: loop exit
PB: predicated region body
PF: predicated region fallthrough
CT: control target
= control target key end

     0   :  { %s5165_s12 = smov 0   ;;  %s6298_s0 = inlined_call_operand.vmem [shape: f32[2,1,18,18,128], index: 0, kind: input, shape index: {}]   ;;  %s6299_s1 = inlined_call_operand.vmem [shape: f32[9,128,128], index: 1, kind: input, shape index: {}]   ;;  %s6300_s2 = inlined_call_operand.vmem [shape: f32[1,128], index: 2, kind: input, shape index: {}]   ;;  %s6301_s3 = inlined_call_operand.vmem [shape: f32[2,16,16,128], index: 3, kind: output, shape index: {}]  }
   0x1 LB: > { %s3084_s13 = sadd.s32 4294967295, %s5143_s12   ;;  %p3088_p0 = scmp.ge.s32.totalorder %s5143_s12, 1  ;;  %s5143_s12 = sphi %s5165_s12, %s13_s12  }
   0x2   : > { %p137_p1 = scmp.lt.s32.totalorder %s5143_s12, 3 }
   0x4   : > { %p138_p2 = pnand %p3088_p0, %p137_p1 }
   0x6   : > { %141 = sbr.rel (%p138_p2) target bundleno = 554 (0x22a), region = 32 }
   0xd   : > { %v3092_v0 = vld [vmem:[%s6299_s1 + $0x80] sm:$0xff]  ;;  %v3093_v1 = vld [vmem:[%s6299_s1 + $0x88] sm:$0xff]  ;;  %p161_p3 = scmp.lt.s32.totalorder %s3084_s13, 1  ;;  %v3094_v5 = vld [vmem:[%s6299_s1 + $0x90] sm:$0xff] }
   0xe   : > { %v3204_v2 = vld [vmem:[%s6299_s1 + $0x200] sm:$0xff]  ;;  %v4568_v3 = vpack.c.bf16 %v3093_v1, %v3092_v0  ;;  %v3205_v4 = vld [vmem:[%s6299_s1 + $0x208] sm:$0xff]  ;;  %v3095_v6 = vld [vmem:[%s6299_s1 + $0x98] sm:$0xff] }
   0xf   : > { %v5191_v7 = vpack.c.bf16 %v3205_v4, %v3204_v2  ;;  %v4572_v8 = vpack.c.bf16 %v3095_v6, %v3094_v5  ;;  %v3206_v9 = vld [vmem:[%s6299_s1 + $0x210] sm:$0xff]  ;;  %v3207_v10 = vld [vmem:[%s6299_s1 + $0x218] sm:$0xff]  ;;  %v3096_v11 = vld [vmem:[%s6299_s1 + $0xa0] sm:$0xff]  ;;  %s6403_s13 = smov (!%p161_p3, %s3084_s13), 1 }
  0x10   : > { %4569 = vmatprep.subr.bf16.mxu1 %v4568_v3  ;;  %v5204_v12 = vpack.c.bf16 %v3207_v10, %v3206_v9  ;;  %v3097_v13 = vld [vmem:[%s6299_s1 + $0xa8] sm:$0xff]  ;;  %v3208_v14 = vld [vmem:[%s6299_s1 + $0x220] sm:$0xff]  ;;  %s5128_s11 = smul.u32 432, %s6403_s13  ;;  %v3098_v18 = vld [vmem:[%s6299_s1 + $0xb0] sm:$0xff]  ;;  %s3415_s17 = sshll.u32 %s6403_s13, 8 }
  0x11   : > { %v3209_v15 = vld [vmem:[%s6299_s1 + $0x228] sm:$0xff]  ;;  %4697 = vmatprep.subr.bf16.mxu0 %v5191_v7  ;;  %4571 = vmatpush3.bf16.msra.mxu1 %v4568_v3  ;;  %v4576_v16 = vpack.c.bf16 %v3097_v13, %v3096_v11  ;;  %v3099_v19 = vld [vmem:[%s6299_s1 + $0xb8] sm:$0xff]  ;;  %v3210_v20 = vld [vmem:[%s6299_s1 + $0x230] sm:$0xff]  ;;  %s6224_s20 = scalar_lea.vmem %s6301_s3, %s3415_s17 }
  0x12   : > { %6340 = vst [vmem:[#allocation2_spill] sm:$0xff] %v5204_v12  ;;  %4699 = vmatpush3.bf16.msra.mxu0 %v5191_v7  ;;  %4573 = vmatprep.subr.bf16.mxu1 %v4572_v8  ;;  %v5219_v17 = vpack.c.bf16 %v3209_v15, %v3208_v14  ;;  %v3211_v21 = vld [vmem:[%s6299_s1 + $0x238] sm:$0xff]  ;;  %s5236_s24 = scalar_lea.vmem %s6298_s0, %s5128_s11  ;;  %v4580_v22 = vpack.c.bf16 %v3099_v19, %v3098_v18  ;;  %v3100_v24 = vld [vmem:[%s6299_s1 + $0xc0] sm:$0xff]  ;;  %v3101_v25 = vld [vmem:[%s6299_s1 + $0xc8] sm:$0xff] }
  0x13   : > { %4701 = vmatprep.subr.bf16.mxu0 %v5204_v12  ;;  %v5240_v23 = vpack.c.bf16 %v3211_v21, %v3210_v20  ;;  %v219_v26 = vld [vmem:[%s5236_s24 + $0x1] sm:$0xff]  ;;  %v5256_v29 = vld [vmem:[%s5236_s24 + $0x19] sm:$0xff]  ;;  %v4584_v30 = vpack.c.bf16 %v3101_v25, %v3100_v24  ;;  %v3102_v32 = vld [vmem:[%s6299_s1 + $0xd0] sm:$0xff] }
  0x14   : > { %6341 = vst [vmem:[#allocation3_spill] sm:$0xff] %v5219_v17  ;;  %v3212_v27 = vld [vmem:[%s6299_s1 + $0x240] sm:$0xff]  ;;  %v3213_v28 = vld [vmem:[%s6299_s1 + $0x248] sm:$0xff]  ;;  %3880 = vmatprep.mubr.f32.mxu1 %v219_v26  ;;  %4200 = vmatprep.mubr.f32.mxu0 %v5256_v29  ;;  %v3103_v33 = vld [vmem:[%s6299_s1 + $0xd8] sm:$0xff] }
  0x15   : > { %4575 = vmatpush3.bf16.msra.mxu1 %v4572_v8  ;;  %6342 = vst [vmem:[#allocation4_spill] sm:$0xff] %v5240_v23  ;;  %v5261_v31 = vpack.c.bf16 %v3213_v28, %v3212_v27  ;;  %v3214_v34 = vld [vmem:[%s6299_s1 + $0x250] sm:$0xff]  ;;  %v3215_v35 = vld [vmem:[%s6299_s1 + $0x258] sm:$0xff]  ;;  %v4588_v36 = vpack.c.bf16 %v3103_v33, %v3102_v32  ;;  %v3104_v38 = vld [vmem:[%s6299_s1 + $0xe0] sm:$0xff] }
  0x16   : > { %4703 = vmatpush3.bf16.msra.mxu0 %v5204_v12  ;;  %4577 = vmatprep.subr.bf16.mxu1 %v4576_v16  ;;  %v5277_v37 = vpack.c.bf16 %v3215_v35, %v3214_v34  ;;  %v3105_v39 = vld [vmem:[%s6299_s1 + $0xe8] sm:$0xff]  ;;  %v3216_v40 = vld [vmem:[%s6299_s1 + $0x260] sm:$0xff]  ;;  %v3106_v44 = vld [vmem:[%s6299_s1 + $0xf0] sm:$0xff] }
  0x17   : > { %4705 = vmatprep.subr.bf16.mxu0 %v5219_v17  ;;  %6343 = vst [vmem:[#allocation5_spill] sm:$0xff] %v5261_v31  ;;  %v3217_v41 = vld [vmem:[%s6299_s1 + $0x268] sm:$0xff]  ;;  %v4592_v42 = vpack.c.bf16 %v3105_v39, %v3104_v38  ;;  %v3107_v45 = vld [vmem:[%s6299_s1 + $0xf8] sm:$0xff]  ;;  %v3218_v46 = vld [vmem:[%s6299_s1 + $0x270] sm:$0xff] }
  0x18   : > { %6344 = vst [vmem:[#allocation6_spill] sm:$0xff] %v5277_v37  ;;  %v5293_v43 = vpack.c.bf16 %v3217_v41, %v3216_v40  ;;  %v3219_v47 = vld [vmem:[%s6299_s1 + $0x278] sm:$0xff]  ;;  %v4596_v48 = vpack.c.bf16 %v3107_v45, %v3106_v44  ;;  %v203_v50 = vld [vmem:[%s6299_s1] sm:$0xff]  ;;  %v204_v51 = vld [vmem:[%s6299_s1 + $0x8] sm:$0xff] }
  0x19   : > { %4579 = vmatpush3.bf16.msra.mxu1 %v4576_v16  ;;  %v5309_v49 = vpack.c.bf16 %v3219_v47, %v3218_v46  ;;  %v3252_v52 = vld [vmem:[%s6299_s1 + $0x280] sm:$0xff]  ;;  %v3253_v53 = vld [vmem:[%s6299_s1 + $0x288] sm:$0xff]  ;;  %v4600_v54 = vpack.c.bf16 %v204_v51, %v203_v50  ;;  %v3254_v56 = vld [vmem:[%s6299_s1 + $0x290] sm:$0xff] }
  0x1a   : > { %4707 = vmatpush3.bf16.msra.mxu0 %v5219_v17  ;;  %4581 = vmatprep.subr.bf16.mxu1 %v4580_v22  ;;  %6345 = vst [vmem:[#allocation7_spill] sm:$0xff] %v5293_v43  ;;  %v4728_v55 = vpack.c.bf16 %v3253_v53, %v3252_v52  ;;  %v3255_v57 = vld [vmem:[%s6299_s1 + $0x298] sm:$0xff]  ;;  %v220_v58 = vld [vmem:[%s5236_s24 + $0x9] sm:$0xff]  ;;  %v3173_v61 = vld [vmem:[%s5236_s24 + $0x21] sm:$0xff] }
  0x1b   : > { %4709 = vmatprep.subr.bf16.mxu0 %v5240_v23  ;;  %6346 = vst [vmem:[#allocation8_spill] sm:$0xff] %v5309_v49  ;;  %v205_v59 = vld [vmem:[%s6299_s1 + $0x10] sm:$0xff]  ;;  %v206_v60 = vld [vmem:[%s6299_s1 + $0x18] sm:$0xff]  ;;  %v4732_v62 = vpack.c.bf16 %v3255_v57, %v3254_v56  ;;  %v3256_v1 = vld [vmem:[%s6299_s1 + $0x2a0] sm:$0xff] }
  0x1c   : > { %v3174_v63 = vld [vmem:[%s5236_s24 + $0x31] sm:$0xff]  ;;  %v4604_v0 = vpack.c.bf16 %v206_v60, %v205_v59  ;;  %v3257_v2 = vld [vmem:[%s6299_s1 + $0x2a8] sm:$0xff]  ;;  %v207_v3 = vld [vmem:[%s6299_s1 + $0x20] sm:$0xff] }
  0x1d   : > { %4583 = vmatpush3.bf16.msra.mxu1 %v4580_v22  ;;  %v208_v4 = vld [vmem:[%s6299_s1 + $0x28] sm:$0xff]  ;;  %v3175_v5 = vld [vmem:[%s5236_s24 + $0x39] sm:$0xff]  ;;  %v4736_v8 = vpack.c.bf16 %v3257_v2, %v3256_v1  ;;  %v3258_v9 = vld [vmem:[%s6299_s1 + $0x2b0] sm:$0xff] }
  0x1e   : > { %4711 = vmatpush3.bf16.msra.mxu0 %v5240_v23  ;;  %4585 = vmatprep.subr.bf16.mxu1 %v4584_v30  ;;  %v3176_v6 = vld [vmem:[%s5236_s24 + $0x49] sm:$0xff]  ;;  %v3259_v10 = vld [vmem:[%s6299_s1 + $0x2b8] sm:$0xff]  ;;  %v4608_v11 = vpack.c.bf16 %v208_v4, %v207_v3  ;;  %v3178_v16 = vld [vmem:[%s5236_s24 + $0x61] sm:$0xff] }
  0x1f   : > { %4713 = vmatprep.subr.bf16.mxu0 %v5261_v31  ;;  %v209_v13 = vld [vmem:[%s6299_s1 + $0x30] sm:$0xff]  ;;  %v210_v14 = vld [vmem:[%s6299_s1 + $0x38] sm:$0xff]  ;;  %v4740_v18 = vpack.c.bf16 %v3259_v10, %v3258_v9  ;;  %v3260_v19 = vld [vmem:[%s6299_s1 + $0x2c0] sm:$0xff] }
  0x20   : > { %v3177_v15 = vld [vmem:[%s5236_s24 + $0x51] sm:$0xff]  ;;  %v3261_v20 = vld [vmem:[%s6299_s1 + $0x2c8] sm:$0xff]  ;;  %v4612_v21 = vpack.c.bf16 %v210_v14, %v209_v13  ;;  %v211_v22 = vld [vmem:[%s6299_s1 + $0x40] sm:$0xff] }
  0x21   : > { %4587 = vmatpush3.bf16.msra.mxu1 %v4584_v30  ;;  %v212_v24 = vld [vmem:[%s6299_s1 + $0x48] sm:$0xff]  ;;  %v3180_v26 = vld [vmem:[%s5236_s24 + $0x79] sm:$0xff]  ;;  %v4744_v27 = vpack.c.bf16 %v3261_v20, %v3260_v19  ;;  %v3262_v28 = vld [vmem:[%s6299_s1 + $0x2d0] sm:$0xff] }
  0x22   : > { %4715 = vmatpush3.bf16.msra.mxu0 %v5261_v31  ;;  %4589 = vmatprep.subr.bf16.mxu1 %v4588_v36  ;;  %v3179_v25 = vld [vmem:[%s5236_s24 + $0x69] sm:$0xff]  ;;  %v4616_v30 = vpack.c.bf16 %v212_v24, %v211_v22  ;;  %v214_v33 = vld [vmem:[%s6299_s1 + $0x58] sm:$0xff]  ;;  %v3181_v34 = vld [vmem:[%s5236_s24 + $0x81] sm:$0xff] }
  0x23   : > { %4717 = vmatprep.subr.bf16.mxu0 %v5277_v37  ;;  %v213_v32 = vld [vmem:[%s6299_s1 + $0x50] sm:$0xff]  ;;  %v3264_v38 = vld [vmem:[%s6299_s1 + $0x2e0] sm:$0xff]  ;;  %v3265_v39 = vld [vmem:[%s6299_s1 + $0x2e8] sm:$0xff] }
  0x24   : > { %v5398_v35 = vld [vmem:[%s5236_s24 + $0x91] sm:$0xff]  ;;  %v4620_v40 = vpack.c.bf16 %v214_v33, %v213_v32  ;;  %v215_v41 = vld [vmem:[%s6299_s1 + $0x60] sm:$0xff]  ;;  %v3184_v45 = vld [vmem:[%s5236_s24 + $0xa9] sm:$0xff]  ;;  %v4752_v46 = vpack.c.bf16 %v3265_v39, %v3264_v38 }
  0x25   : > { %4591 = vmatpush3.bf16.msra.mxu1 %v4588_v36  ;;  %v3183_v44 = vld [vmem:[%s5236_s24 + $0x99] sm:$0xff]  ;;  %v3266_v47 = vld [vmem:[%s6299_s1 + $0x2f0] sm:$0xff]  ;;  %v3301_v57 = vld [vmem:[%s6299_s1 + $0x308] sm:$0xff] }
  0x26   : > { %4719 = vmatpush3.bf16.msra.mxu0 %v5277_v37  ;;  %4593 = vmatprep.subr.bf16.mxu1 %v4592_v42  ;;  %v217_v51 = vld [vmem:[%s6299_s1 + $0x70] sm:$0xff]  ;;  %v218_v52 = vld [vmem:[%s6299_s1 + $0x78] sm:$0xff]  ;;  %v3300_v56 = vld [vmem:[%s6299_s1 + $0x300] sm:$0xff] }
  0x27   : > { %4721 = vmatprep.subr.bf16.mxu0 %v5293_v43  ;;  %v3185_v53 = vld [vmem:[%s5236_s24 + $0xb1] sm:$0xff]  ;;  %v3108_v59 = vld [vmem:[%s6299_s1 + $0x100] sm:$0xff]  ;;  %v3109_v60 = vld [vmem:[%s6299_s1 + $0x108] sm:$0xff] }
  0x28   : > { %v3303_v1 = vld [vmem:[%s6299_s1 + $0x318] sm:$0xff]  ;;  %v5457_v2 = vpack.c.bf16 %v3109_v60, %v3108_v59  ;;  %v5463_v3 = vld [vmem:[%s5236_s24 + $0x22] sm:$0xff]  ;;  %v5492_v14 = vld [vmem:[%s5236_s24 + $0x4a] sm:$0xff] }
  0x29   : > { %4595 = vmatpush3.bf16.msra.mxu1 %v4592_v42  ;;  %v216_v42 = vld [vmem:[%s6299_s1 + $0x68] sm:$0xff]  ;;  %v5466_v4 = vld [vmem:[%s5236_s24 + $0xd9] sm:$0xff]  ;;  %v5489_v13 = vld [vmem:[%s5236_s24 + $0xf1] sm:$0xff] }
  0x2a   : > { %4723 = vmatpush3.bf16.msra.mxu0 %v5293_v43  ;;  %4597 = vmatprep.subr.bf16.mxu1 %v4596_v48  ;;  %v4624_v50 = vpack.c.bf16 %v216_v42, %v215_v41  ;;  %v3305_v9 = vld [vmem:[%s6299_s1 + $0x328] sm:$0xff]  ;;  %v5504_v19 = vld [vmem:[%s5236_s24 + $0xf9] sm:$0xff]  ;;  %v3310_v33 = vld [vmem:[%s6299_s1 + $0x350] sm:$0xff] }
  0x2b   : > { %4725 = vmatprep.subr.bf16.mxu0 %v5309_v49  ;;  %v5482_v10 = vld [vmem:[%s5236_s24 + $0xe1] sm:$0xff]  ;;  %v5508_v20 = vld [vmem:[%s5236_s24 + $0x52] sm:$0xff] }
  0x2c   : > { %v5514_v22 = vld [vmem:[%s5236_s24 + $0x62] sm:$0xff]  ;;  %v5555_v39 = vld [vmem:[%s5236_s24 + $0x139] sm:$0xff] }
  0x2d   : > { %4599 = vmatpush3.bf16.msra.mxu1 %v4596_v48  ;;  %v3267_v48 = vld [vmem:[%s6299_s1 + $0x2f8] sm:$0xff]  ;;  %v5552_v38 = vld [vmem:[%s5236_s24 + $0x82] sm:$0xff]  ;;  %6351 = vst [vmem:[#allocation13_spill] sm:$0xff] %v5555_v39 }
  0x2e   : > { %4727 = vmatpush3.bf16.msra.mxu0 %v5309_v49  ;;  %4601 = vmatprep.subr.bf16.mxu1 %v4600_v54  ;;  %v3312_v42 = vld [vmem:[%s6299_s1 + $0x360] sm:$0xff]  ;;  %v3349_v60 = vld [vmem:[%s6299_s1 + $0x388] sm:$0xff]  ;;  %v3119_v49 = vld [vmem:[%s6299_s1 + $0x158] sm:$0xff] }
  0x2f   : > { %4729 = vmatprep.subr.bf16.mxu0 %v4728_v55  ;;  %v3348_v59 = vld [vmem:[%s6299_s1 + $0x380] sm:$0xff]  ;;  %v5732_v43 = vld [vmem:[%s5236_s24 + $0x152] sm:$0xff]  ;;  %v3157_v17 = vld [vmem:[%s6299_s1 + $0x188] sm:$0xff] }
  0x30   : > { %3881 = vmatmul.mubr.f32.vlgmr.msra.gmra.mrb[0].mxu1 %v220_v58  ;;  %v4628_v58 = vpack.c.bf16 %v218_v52, %v217_v51  ;;  %v3314_v51 = vld [vmem:[%s6299_s1 + $0x370] sm:$0xff]  ;;  %v3315_v52 = vld [vmem:[%s6299_s1 + $0x378] sm:$0xff]  ;;  %v3120_v37 = vld [vmem:[%s6299_s1 + $0x160] sm:$0xff] }
  0x31   : > { %4201 = vmatmul.mubr.f32.vlgmr.msra.gmra.mrb[0].mxu0 %v3173_v61  ;;  %4603 = vmatpush3.bf16.msra.mxu1 %v4600_v54  ;;  %v5430_v54 = vld [vmem:[%s5236_s24 + $0xc1] sm:$0xff]  ;;  %v3351_v12 = vld [vmem:[%s6299_s1 + $0x398] sm:$0xff] }
  0x32   : > { %4731 = vmatpush3.bf16.msra.mxu0 %v4728_v55  ;;  %3883 = vmatprep.mubr.f32.mxu1 %v5256_v29  ;;  %v3263_v29 = vld [vmem:[%s6299_s1 + $0x2d8] sm:$0xff]  ;;  %v4756_v55 = vpack.c.bf16 %v3267_v48, %v3266_v47  ;;  %v5580_v48 = vld [vmem:[%s5236_s24 + $0xaa] sm:$0xff]  ;;  %v3250_v23 = vld [vmem:[%s5236_s24 + $0x182] sm:$0xff] }
  0x33   : > { %4203 = vmatprep.mubr.f32.mxu0 %v3174_v63  ;;  %4733 = vmatprep.subr.bf16.mxu0 %v4732_v62  ;;  %v4748_v36 = vpack.c.bf16 %v3263_v29, %v3262_v28  ;;  %v5530_v28 = vld [vmem:[%s5236_s24 + $0x6a] sm:$0xff]  ;;  %v5533_v29 = vld [vmem:[%s5236_s24 + $0x121] sm:$0xff] }
  0x34   : > { %3884 = vmatmul.mubr.f32.gmra.mrb[2].mxu1 %v3173_v61  ;;  %4605 = vmatprep.subr.bf16.mxu1 %v4604_v0  ;;  %v5446_v61 = vld [vmem:[%s5236_s24 + $0xc9] sm:$0xff]  ;;  %6349 = vst [vmem:[#allocation11_spill] sm:$0xff] %v5533_v29  ;;  %v5577_v47 = vld [vmem:[%s5236_s24 + $0x151] sm:$0xff] }
  0x35   : > { %4204 = vmatmul.mubr.f32.gmra.mrb[2].mxu0 %v3175_v5  ;;  %3886 = vmatprep.mubr.f32.mxu1 %v3174_v63  ;;  %v4760_v63 = vpack.c.bf16 %v3301_v57, %v3300_v56  ;;  %6353 = vst [vmem:[#allocation15_spill] sm:$0xff] %v5577_v47  ;;  %v5599_v56 = vld [vmem:[%s5236_s24 + $0x169] sm:$0xff] }
  0x36   : > { %4735 = vmatpush3.bf16.msra.mxu0 %v4732_v62  ;;  %4206 = vmatprep.mubr.f32.mxu0 %v3176_v6  ;;  %v5449_v62 = vld [vmem:[%s5236_s24 + $0x1a] sm:$0xff]  ;;  %6355 = vst [vmem:[#allocation17_spill] sm:$0xff] %v5599_v56  ;;  %v5602_v57 = vld [vmem:[%s5236_s24 + $0xc2] sm:$0xff] }
  0x37   : > { %4737 = vmatprep.subr.bf16.mxu0 %v4736_v8  ;;  %4607 = vmatpush3.bf16.msra.mxu1 %v4604_v0  ;;  %v3302_v0 = vld [vmem:[%s6299_s1 + $0x310] sm:$0xff] }
  0x38   : > { %3887 = vmatmul.mubr.f32.gmra.mrb[4].mxu1 %v3175_v5  ;;  %4609 = vmatprep.subr.bf16.mxu1 %v4608_v11  ;;  %v5469_v5 = vld [vmem:[%s5236_s24 + $0x32] sm:$0xff] }
  0x39   : > { %4207 = vmatmul.mubr.f32.gmra.mrb[4].mxu0 %v3177_v15  ;;  %3889 = vmatprep.mubr.f32.mxu1 %v3176_v6  ;;  %v4764_v6 = vpack.c.bf16 %v3303_v1, %v3302_v0  ;;  %v5618_v0 = vld [vmem:[%s5236_s24 + $0xca] sm:$0xff]  ;;  %v171_v1 = vld [vmem:[%s5236_s24] sm:$0xff] }
  0x3a   : > { %4739 = vmatpush3.bf16.msra.mxu0 %v4736_v8  ;;  %4209 = vmatprep.mubr.f32.mxu0 %v3178_v16  ;;  %v3304_v8 = vld [vmem:[%s6299_s1 + $0x320] sm:$0xff] }
  0x3b   : > { %4741 = vmatprep.subr.bf16.mxu0 %v4740_v18  ;;  %4611 = vmatpush3.bf16.msra.mxu1 %v4608_v11  ;;  %v5486_v11 = vld [vmem:[%s5236_s24 + $0x3a] sm:$0xff] }
  0x3c   : > { %3890 = vmatmul.mubr.f32.gmra.mrb[6].mxu1 %v3177_v15  ;;  %4613 = vmatprep.subr.bf16.mxu1 %v4612_v21  ;;  %v4768_v15 = vpack.c.bf16 %v3305_v9, %v3304_v8  ;;  %v5624_v8 = vpack.c.bf16 %v3349_v60, %v3348_v59  ;;  %v3110_v9 = vld [vmem:[%s6299_s1 + $0x110] sm:$0xff]  ;;  %v5685_v59 = vld [vmem:[%s5236_s24 + $0x48] sm:$0xff] }
  0x3d   : > { %4210 = vmatmul.mubr.f32.gmra.mrb[6].mxu0 %v3179_v25  ;;  %3892 = vmatprep.mubr.f32.mxu1 %v3178_v16  ;;  %v3306_v16 = vld [vmem:[%s6299_s1 + $0x330] sm:$0xff]  ;;  %6359 = vst [vmem:[#allocation21_spill] sm:$0xff] %v5685_v59  ;;  %v5688_v60 = vld [vmem:[%s5236_s24 + $0x122] sm:$0xff] }
  0x3e   : > { %4743 = vmatpush3.bf16.msra.mxu0 %v4740_v18  ;;  %4212 = vmatprep.mubr.f32.mxu0 %v3180_v26  ;;  %v3307_v18 = vld [vmem:[%s6299_s1 + $0x338] sm:$0xff] }
  0x3f   : > { %4745 = vmatprep.subr.bf16.mxu0 %v4744_v27  ;;  %4615 = vmatpush3.bf16.msra.mxu1 %v4612_v21  ;;  %v5511_v21 = vld [vmem:[%s5236_s24 + $0x109] sm:$0xff]  ;;  %v4772_v24 = vpack.c.bf16 %v3307_v18, %v3306_v16 }
  0x40   : > { %3893 = vmatmul.mubr.f32.gmra.mrb[8].mxu1 %v3179_v25  ;;  %4617 = vmatprep.subr.bf16.mxu1 %v4616_v30  ;;  %6347 = vst [vmem:[#allocation9_spill] sm:$0xff] %v5511_v21  ;;  %v3308_v25 = vld [vmem:[%s6299_s1 + $0x340] sm:$0xff]  ;;  %v172_v16 = vld [vmem:[%s5236_s24 + $0x8] sm:$0xff] }
  0x41   : > { %4213 = vmatmul.mubr.f32.gmra.mrb[8].mxu0 %v3181_v34  ;;  %3895 = vmatprep.mubr.f32.mxu1 %v3180_v26  ;;  %v3309_v26 = vld [vmem:[%s6299_s1 + $0x348] sm:$0xff] }
  0x42   : > { %4747 = vmatpush3.bf16.msra.mxu0 %v4744_v27  ;;  %4215 = vmatprep.mubr.f32.mxu0 %v5398_v35  ;;  %v5526_v27 = vld [vmem:[%s5236_s24 + $0x111] sm:$0xff]  ;;  %v4776_v32 = vpack.c.bf16 %v3309_v26, %v3308_v25  ;;  %v5637_v18 = vld [vmem:[%s5236_s24 + $0xe2] sm:$0xff] }
  0x43   : > { %4749 = vmatprep.subr.bf16.mxu0 %v4748_v36  ;;  %4619 = vmatpush3.bf16.msra.mxu1 %v4616_v30  ;;  %6348 = vst [vmem:[#allocation10_spill] sm:$0xff] %v5526_v27  ;;  %v5536_v30 = vld [vmem:[%s5236_s24 + $0x7a] sm:$0xff]  ;;  %v5643_v25 = vld [vmem:[%s5236_s24 + $0xf2] sm:$0xff] }
  0x44   : > { %3896 = vmatmul.mubr.f32.gmra.mrb[10].mxu1 %v3181_v34  ;;  %4621 = vmatprep.subr.bf16.mxu1 %v4620_v40  ;;  %v3311_v34 = vld [vmem:[%s6299_s1 + $0x358] sm:$0xff] }
  0x45   : > { %4216 = vmatmul.mubr.f32.gmra.mrb[10].mxu0 %v3183_v44  ;;  %3898 = vmatprep.mubr.f32.mxu1 %v5398_v35  ;;  %v4780_v41 = vpack.c.bf16 %v3311_v34, %v3310_v33  ;;  %v3113_v33 = vld [vmem:[%s6299_s1 + $0x128] sm:$0xff]  ;;  %v5655_v34 = vld [vmem:[%s5236_s24 + $0x20] sm:$0xff] }
  0x46   : > { %4751 = vmatpush3.bf16.msra.mxu0 %v4748_v36  ;;  %4218 = vmatprep.mubr.f32.mxu0 %v3184_v45  ;;  %v5548_v36 = vld [vmem:[%s5236_s24 + $0x129] sm:$0xff] }
  0x47   : > { %4753 = vmatprep.subr.bf16.mxu0 %v4752_v46  ;;  %4623 = vmatpush3.bf16.msra.mxu1 %v4620_v40  ;;  %6350 = vst [vmem:[#allocation12_spill] sm:$0xff] %v5548_v36  ;;  %v5558_v40 = vld [vmem:[%s5236_s24 + $0x92] sm:$0xff] }
  0x48   : > { %3899 = vmatmul.mubr.f32.gmra.mrb[12].mxu1 %v3183_v44  ;;  %4625 = vmatprep.subr.bf16.mxu1 %v4624_v50  ;;  %v3313_v44 = vld [vmem:[%s6299_s1 + $0x368] sm:$0xff] }
  0x49   : > { %4219 = vmatmul.mubr.f32.gmra.mrb[12].mxu0 %v3185_v53  ;;  %3901 = vmatprep.mubr.f32.mxu1 %v3184_v45  ;;  %v5570_v45 = vld [vmem:[%s5236_s24 + $0x141] sm:$0xff] }
  0x4a   : > { %4755 = vmatpush3.bf16.msra.mxu0 %v4752_v46  ;;  %4221 = vmatprep.mubr.f32.mxu0 %v5430_v54  ;;  %6352 = vst [vmem:[#allocation14_spill] sm:$0xff] %v5570_v45  ;;  %v5574_v46 = vld [vmem:[%s5236_s24 + $0x9a] sm:$0xff] }
  0x4b   : > { %4757 = vmatprep.subr.bf16.mxu0 %v4756_v55  ;;  %4627 = vmatpush3.bf16.msra.mxu1 %v4624_v50  ;;  %v4784_v50 = vpack.c.bf16 %v3313_v44, %v3312_v42  ;;  %v5663_v42 = vld [vmem:[%s5236_s24 + $0x30] sm:$0xff] }
  0x4c   : > { %3902 = vmatmul.mubr.f32.gmra.mrb[14].mxu1 %v3185_v53  ;;  %4629 = vmatprep.subr.bf16.mxu1 %v4628_v58  ;;  %v5592_v53 = vld [vmem:[%s5236_s24 + $0x159] sm:$0xff]  ;;  %6357 = vst [vmem:[#allocation19_spill] sm:$0xff] %v5663_v42  ;;  %v5666_v44 = vld [vmem:[%s5236_s24 + $0x10a] sm:$0xff] }
  0x4d   : > { %4222 = vmatmul.mubr.f32.gmra.mrb[14].mxu0 %v5446_v61  ;;  %3904 = vmatprep.mubr.f32.mxu1 %v5430_v54  ;;  %6354 = vst [vmem:[#allocation16_spill] sm:$0xff] %v5592_v53 }
  0x4e   : > { %4759 = vmatpush3.bf16.msra.mxu0 %v4756_v55  ;;  %4280 = vmatprep.mubr.f32.mxu0 %v5449_v62  ;;  %v5596_v55 = vld [vmem:[%s5236_s24 + $0xb2] sm:$0xff] }
  0x4f   : > { %4761 = vmatprep.subr.bf16.mxu0 %v4760_v63  ;;  %4631 = vmatpush3.bf16.msra.mxu1 %v4628_v58  ;;  %v4788_v58 = vpack.c.bf16 %v3315_v52, %v3314_v51  ;;  %v3115_v51 = vld [vmem:[%s6299_s1 + $0x138] sm:$0xff] }
  0x50   : > { %3905 = vmatmul.mubr.f32.gmra.mrb[16].mxu1 %v5446_v61  ;;  %4633 = vmatprep.subr.bf16.mxu1 %v5457_v2  ;;  %v5678_v52 = vld [vmem:[%s5236_s24 + $0x38] sm:$0xff] }
  0x51   : > { %4281 = vmatmul.mubr.f32.vlgmr.msra.gmra.mrb[0].mxu0 %v5463_v3  ;;  %3907 = vmatprep.mubr.f32.mxu1 %v5466_v4  ;;  %6358 = vst [vmem:[#allocation20_spill] sm:$0xff] %v5678_v52 }
  0x52   : > { %4763 = vmatpush3.bf16.msra.mxu0 %v4760_v63  ;;  %4283 = vmatprep.mubr.f32.mxu0 %v5469_v5  ;;  %v5614_v63 = vld [vmem:[%s5236_s24 + $0x171] sm:$0xff] }
  0x53   : > { %4765 = vmatprep.subr.bf16.mxu0 %v4764_v6  ;;  %6356 = vst [vmem:[#allocation18_spill] sm:$0xff] %v5614_v63 }
  0x54   : > { %3908 = vmatmul.mubr.f32.gmra.mrb[18].mxu1 %v5482_v10 }
  0x55   : > { %4284 = vmatmul.mubr.f32.gmra.mrb[2].mxu0 %v5486_v11  ;;  %3910 = vmatprep.mubr.f32.mxu1 %v5489_v13 }
  0x56   : > { %4286 = vmatprep.mubr.f32.mxu0 %v5492_v14  ;;  %4767 = vmatpush3.bf16.msra.mxu0 %v4764_v6  ;;  %v5622_v6 = vld [vmem:[%s5236_s24 + $0xda] sm:$0xff] }
  0x57   : > { %4769 = vmatprep.subr.bf16.mxu0 %v4768_v15 }
  0x58   : > { %3911 = vmatmul.mubr.f32.gmra.mrb[20].mxu1 %v5504_v19 }
  0x59   : > { %4287 = vmatmul.mubr.f32.gmra.mrb[4].mxu0 %v5508_v20  ;;  %3913 = vmatprep.mubr.f32.mxu1 %v5511_v21  ;;  %v3355_v21 = vld [vmem:[%s6299_s1 + $0x3b8] sm:$0xff] }
  0x5a   : > { %4289 = vmatprep.mubr.f32.mxu0 %v5514_v22  ;;  %4771 = vmatpush3.bf16.msra.mxu0 %v4768_v15  ;;  %v3111_v15 = vld [vmem:[%s6299_s1 + $0x118] sm:$0xff] }
  0x5b   : > { %4773 = vmatprep.subr.bf16.mxu0 %v4772_v24  ;;  %v4636_v26 = vpack.c.bf16 %v3111_v15, %v3110_v9  ;;  %v3116_v9 = vld [vmem:[%s6299_s1 + $0x140] sm:$0xff]  ;;  %v3117_v15 = vld [vmem:[%s6299_s1 + $0x148] sm:$0xff] }
  0x5c   : > { %3914 = vmatmul.mubr.f32.gmra.mrb[22].mxu1 %v5526_v27  ;;  %v3350_v27 = vld [vmem:[%s6299_s1 + $0x390] sm:$0xff] }
  0x5d   : > { %4290 = vmatmul.mubr.f32.gmra.mrb[6].mxu0 %v5530_v28  ;;  %3916 = vmatprep.mubr.f32.mxu1 %v5533_v29 }
  0x5e   : > { %4292 = vmatprep.mubr.f32.mxu0 %v5536_v30  ;;  %4775 = vmatpush3.bf16.msra.mxu0 %v4772_v24  ;;  %v5640_v24 = vld [vmem:[%s5236_s24 + $0x18] sm:$0xff] }
  0x5f   : > { %4777 = vmatprep.subr.bf16.mxu0 %v4776_v32 }
  0x60   : > { %3917 = vmatmul.mubr.f32.gmra.mrb[24].mxu1 %v5548_v36  ;;  %v3156_v36 = vld [vmem:[%s6299_s1 + $0x180] sm:$0xff] }
  0x61   : > { %4293 = vmatmul.mubr.f32.gmra.mrb[8].mxu0 %v5552_v38  ;;  %3919 = vmatprep.mubr.f32.mxu1 %v5555_v39  ;;  %v5792_v29 = vpack.c.bf16 %v3157_v17, %v3156_v36  ;;  %v5807_v17 = vld [vmem:[%s5236_s24 + $0xd8] sm:$0xff]  ;;  %v3352_v36 = vld [vmem:[%s6299_s1 + $0x3a0] sm:$0xff] }
  0x62   : > { %4295 = vmatprep.mubr.f32.mxu0 %v5558_v40  ;;  %4779 = vmatpush3.bf16.msra.mxu0 %v4776_v32  ;;  %v3112_v32 = vld [vmem:[%s6299_s1 + $0x120] sm:$0xff] }
  0x63   : > { %4781 = vmatprep.subr.bf16.mxu0 %v4780_v41 }
  0x64   : > { %3920 = vmatmul.mubr.f32.gmra.mrb[26].mxu1 %v5570_v45  ;;  %v3123_v45 = vld [vmem:[%s6299_s1 + $0x178] sm:$0xff] }
  0x65   : > { %4296 = vmatmul.mubr.f32.gmra.mrb[10].mxu0 %v5574_v46  ;;  %3922 = vmatprep.mubr.f32.mxu1 %v5577_v47  ;;  %v3122_v47 = vld [vmem:[%s6299_s1 + $0x170] sm:$0xff] }
  0x66   : > { %4298 = vmatprep.mubr.f32.mxu0 %v5580_v48  ;;  %4783 = vmatpush3.bf16.msra.mxu0 %v4780_v41  ;;  %v5660_v41 = vld [vmem:[%s5236_s24 + $0xfa] sm:$0xff]  ;;  %v4660_v39 = vpack.c.bf16 %v3123_v45, %v3122_v47  ;;  %v3251_v45 = vld [vmem:[%s5236_s24 + $0x18a] sm:$0xff] }
  0x67   : > { %4785 = vmatprep.subr.bf16.mxu0 %v4784_v50  ;;  %v5790_v47 = vld [vmem:[%s5236_s24 + $0xc0] sm:$0xff] }
  0x68   : > { %3923 = vmatmul.mubr.f32.gmra.mrb[28].mxu1 %v5592_v53  ;;  %v5754_v53 = vld [vmem:[%s5236_s24 + $0x16a] sm:$0xff]  ;;  %6369 = vst [vmem:[#allocation31_spill] sm:$0xff] %v5790_v47 }
  0x69   : > { %4299 = vmatmul.mubr.f32.gmra.mrb[12].mxu0 %v5596_v55  ;;  %3925 = vmatprep.mubr.f32.mxu1 %v5599_v56  ;;  %v3121_v56 = vld [vmem:[%s6299_s1 + $0x168] sm:$0xff] }
  0x6a   : > { %4301 = vmatprep.mubr.f32.mxu0 %v5602_v57  ;;  %4787 = vmatpush3.bf16.msra.mxu0 %v4784_v50  ;;  %v4640_v50 = vpack.c.bf16 %v3113_v33, %v3112_v32  ;;  %v5707_v32 = vld [vmem:[%s5236_s24 + $0x60] sm:$0xff]  ;;  %v4656_v31 = vpack.c.bf16 %v3121_v56, %v3120_v37  ;;  %v5770_v37 = vld [vmem:[%s5236_s24 + $0x172] sm:$0xff]  ;;  %v5773_v56 = vld [vmem:[%s5236_s24 + $0xa8] sm:$0xff] }
  0x6b   : > { %4789 = vmatprep.subr.bf16.mxu0 %v4788_v58  ;;  %6361 = vst [vmem:[#allocation23_spill] sm:$0xff] %v5707_v32  ;;  %v5710_v33 = vld [vmem:[%s5236_s24 + $0x13a] sm:$0xff]  ;;  %6367 = vst [vmem:[#allocation29_spill] sm:$0xff] %v5773_v56 }
  0x6c   : > { %3926 = vmatmul.mubr.f32.gmra.mrb[30].mxu1 %v5614_v63 }
  0x6d   : > { %4302 = vmatmul.mubr.f32.gmra.mrb[14].mxu0 %v5618_v0  ;;  %3960 = vmatprep.mubr.f32.mxu1 %v171_v1 }
  0x6e   : > { %4304 = vmatprep.mubr.f32.mxu0 %v5622_v6  ;;  %4791 = vmatpush3.bf16.msra.mxu0 %v4788_v58  ;;  %v5682_v58 = vld [vmem:[%s5236_s24 + $0x112] sm:$0xff] }
  0x6f   : > { %4793 = vmatprep.subr.bf16.mxu0 %v5624_v8 }
  0x70   : > { %3961 = vmatmul.mubr.f32.vlgmr.msra.gmra.mrb[0].mxu1 %v172_v16  ;;  %v5700_v16 = vld [vmem:[%s5236_s24 + $0x50] sm:$0xff] }
  0x71   : > { %4305 = vmatmul.mubr.f32.gmra.mrb[16].mxu0 %v5637_v18  ;;  %4635 = vmatpush3.bf16.msra.mxu1 %v5457_v2  ;;  %v3114_v2 = vld [vmem:[%s6299_s1 + $0x130] sm:$0xff]  ;;  %6360 = vst [vmem:[#allocation22_spill] sm:$0xff] %v5700_v16 }
  0x72   : > { %3963 = vmatprep.mubr.f32.mxu1 %v5640_v24  ;;  %4307 = vmatprep.mubr.f32.mxu0 %v5643_v25  ;;  %v4644_v1 = vpack.c.bf16 %v3115_v51, %v3114_v2  ;;  %v4648_v2 = vpack.c.bf16 %v3117_v15, %v3116_v9  ;;  %v3118_v51 = vld [vmem:[%s6299_s1 + $0x150] sm:$0xff]  ;;  %v5726_v9 = vld [vmem:[%s5236_s24 + $0x142] sm:$0xff]  ;;  %v5729_v15 = vld [vmem:[%s5236_s24 + $0x78] sm:$0xff] }
  0x73   : > { %4637 = vmatprep.subr.bf16.mxu1 %v4636_v26  ;;  %6363 = vst [vmem:[#allocation25_spill] sm:$0xff] %v5729_v15  ;;  %v4652_v63 = vpack.c.bf16 %v3119_v49, %v3118_v51  ;;  %v5748_v49 = vld [vmem:[%s5236_s24 + $0x15a] sm:$0xff]  ;;  %v5751_v51 = vld [vmem:[%s5236_s24 + $0x90] sm:$0xff] }
  0x74   : > { %3964 = vmatmul.mubr.f32.gmra.mrb[2].mxu1 %v5655_v34  ;;  %6365 = vst [vmem:[#allocation27_spill] sm:$0xff] %v5751_v51 }
  0x75   : > { %4308 = vmatmul.mubr.f32.gmra.mrb[18].mxu0 %v5660_v41  ;;  %3966 = vmatprep.mubr.f32.mxu1 %v5663_v42 }
  0x76   : > { %4310 = vmatprep.mubr.f32.mxu0 %v5666_v44  ;;  %4639 = vmatpush3.bf16.msra.mxu1 %v4636_v26  ;;  %v5704_v26 = vld [vmem:[%s5236_s24 + $0x12a] sm:$0xff] }
  0x77   : > { %4641 = vmatprep.subr.bf16.mxu1 %v4640_v50 }
  0x78   : > { %3967 = vmatmul.mubr.f32.gmra.mrb[4].mxu1 %v5678_v52 }
  0x79   : > { %4311 = vmatmul.mubr.f32.gmra.mrb[20].mxu0 %v5682_v58  ;;  %3969 = vmatprep.mubr.f32.mxu1 %v5685_v59 }
  0x7a   : > { %4313 = vmatprep.mubr.f32.mxu0 %v5688_v60  ;;  %4643 = vmatpush3.bf16.msra.mxu1 %v4640_v50  ;;  %v5722_v50 = vld [vmem:[%s5236_s24 + $0x68] sm:$0xff] }
  0x7b   : > { %4645 = vmatprep.subr.bf16.mxu1 %v4644_v1  ;;  %6362 = vst [vmem:[#allocation24_spill] sm:$0xff] %v5722_v50 }
  0x7c   : > { %3970 = vmatmul.mubr.f32.gmra.mrb[6].mxu1 %v5700_v16 }
  0x7d   : > { %4314 = vmatmul.mubr.f32.gmra.mrb[22].mxu0 %v5704_v26  ;;  %3972 = vmatprep.mubr.f32.mxu1 %v5707_v32 }
  0x7e   : > { %4316 = vmatprep.mubr.f32.mxu0 %v5710_v33  ;;  %4647 = vmatpush3.bf16.msra.mxu1 %v4644_v1  ;;  %v5744_v1 = vld [vmem:[%s5236_s24 + $0x80] sm:$0xff] }
  0x7f   : > { %4649 = vmatprep.subr.bf16.mxu1 %v4648_v2  ;;  %6364 = vst [vmem:[#allocation26_spill] sm:$0xff] %v5744_v1 }
  0x80   : > { %3973 = vmatmul.mubr.f32.gmra.mrb[8].mxu1 %v5722_v50 }
  0x81   : > { %4317 = vmatmul.mubr.f32.gmra.mrb[24].mxu0 %v5726_v9  ;;  %3975 = vmatprep.mubr.f32.mxu1 %v5729_v15 }
  0x82   : > { %4319 = vmatprep.mubr.f32.mxu0 %v5732_v43  ;;  %4651 = vmatpush3.bf16.msra.mxu1 %v4648_v2  ;;  %v5766_v2 = vld [vmem:[%s5236_s24 + $0x98] sm:$0xff] }
  0x83   : > { %4653 = vmatprep.subr.bf16.mxu1 %v4652_v63  ;;  %6366 = vst [vmem:[#allocation28_spill] sm:$0xff] %v5766_v2 }
  0x84   : > { %3976 = vmatmul.mubr.f32.gmra.mrb[10].mxu1 %v5744_v1 }
  0x85   : > { %4320 = vmatmul.mubr.f32.gmra.mrb[26].mxu0 %v5748_v49  ;;  %3978 = vmatprep.mubr.f32.mxu1 %v5751_v51 }
  0x86   : > { %4322 = vmatprep.mubr.f32.mxu0 %v5754_v53  ;;  %4655 = vmatpush3.bf16.msra.mxu1 %v4652_v63  ;;  %v5786_v63 = vld [vmem:[%s5236_s24 + $0xb0] sm:$0xff] }
  0x87   : > { %4657 = vmatprep.subr.bf16.mxu1 %v4656_v31  ;;  %6368 = vst [vmem:[#allocation30_spill] sm:$0xff] %v5786_v63 }
  0x88   : > { %3979 = vmatmul.mubr.f32.gmra.mrb[12].mxu1 %v5766_v2 }
  0x89   : > { %4323 = vmatmul.mubr.f32.gmra.mrb[28].mxu0 %v5770_v37  ;;  %3981 = vmatprep.mubr.f32.mxu1 %v5773_v56 }
  0x8a   : > { %4325 = vmatprep.mubr.f32.mxu0 %v3250_v23  ;;  %4659 = vmatpush3.bf16.msra.mxu1 %v4656_v31  ;;  %v5803_v23 = vld [vmem:[%s5236_s24 + $0xc8] sm:$0xff]  ;;  %v4796_v31 = vpack.c.bf16 %v3351_v12, %v3350_v27  ;;  %v5825_v12 = vld [vmem:[%s5236_s24 + $0xf0] sm:$0xff] }
  0x8b   : > { %4661 = vmatprep.subr.bf16.mxu1 %v4660_v39  ;;  %6370 = vst [vmem:[#allocation32_spill] sm:$0xff] %v5803_v23 }
  0x8c   : > { %3982 = vmatmul.mubr.f32.gmra.mrb[14].mxu1 %v5786_v63 }
  0x8d   : > { %4326 = vmatmul.mubr.f32.gmra.mrb[30].mxu0 %v3251_v45  ;;  %3984 = vmatprep.mubr.f32.mxu1 %v5790_v47  ;;  %v3353_v45 = vld [vmem:[%s6299_s1 + $0x3a8] sm:$0xff] }
  0x8e   : > { %4360 = vmatprep.mubr.f32.mxu0 %v5663_v42  ;;  %4663 = vmatpush3.bf16.msra.mxu1 %v4660_v39  ;;  %v5820_v39 = vld [vmem:[%s5236_s24 + $0xe0] sm:$0xff]  ;;  %v4800_v27 = vpack.c.bf16 %v3353_v45, %v3352_v36  ;;  %v5841_v36 = vld [vmem:[%s5236_s24 + $0x108] sm:$0xff] }
  0x8f   : > { %4665 = vmatprep.subr.bf16.mxu1 %v5792_v29  ;;  %v719_v42 = vld [vmem:[%s5236_s24 + $0xa] sm:$0xff] }
  0x90   : > { %3985 = vmatmul.mubr.f32.gmra.mrb[16].mxu1 %v5803_v23 }
  0x91   : > { %4361 = vmatmul.mubr.f32.vlgmr.msra.gmra.mrb[0].mxu0 %v5678_v52  ;;  %3987 = vmatprep.mubr.f32.mxu1 %v5807_v17  ;;  %v3354_v52 = vld [vmem:[%s6299_s1 + $0x3b0] sm:$0xff] }
  0x92   : > { %4795 = vmatpush3.bf16.msra.mxu0 %v5624_v8  ;;  %4363 = vmatprep.mubr.f32.mxu0 %v5685_v59  ;;  %v5837_v8 = vld [vmem:[%s5236_s24 + $0xf8] sm:$0xff]  ;;  %v4804_v45 = vpack.c.bf16 %v3355_v21, %v3354_v52  ;;  %v3356_v59 = vld [vmem:[%s6299_s1 + $0x3c0] sm:$0xff] }
  0x93   : > { %4797 = vmatprep.subr.bf16.mxu0 %v4796_v31  ;;  %v5857_v21 = vld [vmem:[%s5236_s24 + $0x120] sm:$0xff] }
  0x94   : > { %3988 = vmatmul.mubr.f32.gmra.mrb[18].mxu1 %v5820_v39 }
  0x95   : > { %4364 = vmatmul.mubr.f32.gmra.mrb[2].mxu0 %v5700_v16  ;;  %3990 = vmatprep.mubr.f32.mxu1 %v5825_v12  ;;  %v3357_v16 = vld [vmem:[%s6299_s1 + $0x3c8] sm:$0xff] }
  0x96   : > { %4366 = vmatprep.mubr.f32.mxu0 %v5707_v32  ;;  %4799 = vmatpush3.bf16.msra.mxu0 %v4796_v31  ;;  %v5853_v31 = vld [vmem:[%s5236_s24 + $0x110] sm:$0xff]  ;;  %v4808_v52 = vpack.c.bf16 %v3357_v16, %v3356_v59  ;;  %v5873_v59 = vld [vmem:[%s5236_s24 + $0x138] sm:$0xff] }
  0x97   : > { %4801 = vmatprep.subr.bf16.mxu0 %v4800_v27  ;;  %v3358_v32 = vld [vmem:[%s6299_s1 + $0x3d0] sm:$0xff] }
  0x98   : > { %3991 = vmatmul.mubr.f32.gmra.mrb[20].mxu1 %v5837_v8 }
  0x99   : > { %4367 = vmatmul.mubr.f32.gmra.mrb[4].mxu0 %v5722_v50  ;;  %3993 = vmatprep.mubr.f32.mxu1 %v5841_v36  ;;  %v3359_v50 = vld [vmem:[%s6299_s1 + $0x3d8] sm:$0xff] }
  0x9a   : > { %4369 = vmatprep.mubr.f32.mxu0 %v5729_v15  ;;  %4803 = vmatpush3.bf16.msra.mxu0 %v4800_v27  ;;  %v5869_v15 = vld [vmem:[%s5236_s24 + $0x128] sm:$0xff]  ;;  %v4812_v16 = vpack.c.bf16 %v3359_v50, %v3358_v32  ;;  %v3360_v27 = vld [vmem:[%s6299_s1 + $0x3e0] sm:$0xff]  ;;  %v5889_v32 = vld [vmem:[%s5236_s24 + $0x150] sm:$0xff] }
  0x9b   : > { %4805 = vmatprep.subr.bf16.mxu0 %v4804_v45 }
  0x9c   : > { %3994 = vmatmul.mubr.f32.gmra.mrb[22].mxu1 %v5853_v31 }
  0x9d   : > { %4370 = vmatmul.mubr.f32.gmra.mrb[6].mxu0 %v5744_v1  ;;  %3996 = vmatprep.mubr.f32.mxu1 %v5857_v21  ;;  %v3361_v1 = vld [vmem:[%s6299_s1 + $0x3e8] sm:$0xff] }
  0x9e   : > { %4372 = vmatprep.mubr.f32.mxu0 %v5751_v51  ;;  %4807 = vmatpush3.bf16.msra.mxu0 %v4804_v45  ;;  %v5885_v51 = vld [vmem:[%s5236_s24 + $0x140] sm:$0xff]  ;;  %v4816_v50 = vpack.c.bf16 %v3361_v1, %v3360_v27  ;;  %v3362_v45 = vld [vmem:[%s6299_s1 + $0x3f0] sm:$0xff]  ;;  %v5905_v1 = vld [vmem:[%s5236_s24 + $0x168] sm:$0xff] }
  0x9f   : > { %4809 = vmatprep.subr.bf16.mxu0 %v4808_v52  ;;  %v3396_v27 = vld [vmem:[%s6299_s1 + $0x400] sm:$0xff] }
  0xa0   : > { %3997 = vmatmul.mubr.f32.gmra.mrb[24].mxu1 %v5869_v15 }
  0xa1   : > { %4373 = vmatmul.mubr.f32.gmra.mrb[8].mxu0 %v5766_v2  ;;  %3999 = vmatprep.mubr.f32.mxu1 %v5873_v59  ;;  %v3363_v2 = vld [vmem:[%s6299_s1 + $0x3f8] sm:$0xff] }
  0xa2   : > { %4375 = vmatprep.mubr.f32.mxu0 %v5773_v56  ;;  %4811 = vmatpush3.bf16.msra.mxu0 %v4808_v52  ;;  %v5901_v56 = vld [vmem:[%s5236_s24 + $0x158] sm:$0xff]  ;;  %v4820_v52 = vpack.c.bf16 %v3363_v2, %v3362_v45  ;;  %v718_v2 = vld [vmem:[%s5236_s24 + $0x2] sm:$0xff]  ;;  %v3158_v45 = vld [vmem:[%s6299_s1 + $0x190] sm:$0xff] }
  0xa3   : > { %4813 = vmatprep.subr.bf16.mxu0 %v4812_v16 }
  0xa4   : > { %4000 = vmatmul.mubr.f32.gmra.mrb[26].mxu1 %v5885_v51 }
  0xa5   : > { %4376 = vmatmul.mubr.f32.gmra.mrb[10].mxu0 %v5786_v63  ;;  %4002 = vmatprep.mubr.f32.mxu1 %v5889_v32  ;;  %v3397_v63 = vld [vmem:[%s6299_s1 + $0x408] sm:$0xff] }
  0xa6   : > { %4378 = vmatprep.mubr.f32.mxu0 %v5790_v47  ;;  %4815 = vmatpush3.bf16.msra.mxu0 %v4812_v16  ;;  %v5917_v47 = vld [vmem:[%s5236_s24 + $0x170] sm:$0xff]  ;;  %v5921_v16 = vpack.c.bf16 %v3397_v63, %v3396_v27  ;;  %v3160_v63 = vld [vmem:[%s6299_s1 + $0x1a0] sm:$0xff]  ;;  %v3161_v27 = vld [vmem:[%s6299_s1 + $0x1a8] sm:$0xff] }
  0xa7   : > { %4817 = vmatprep.subr.bf16.mxu0 %v4816_v50 }
  0xa8   : > { %4003 = vmatmul.mubr.f32.gmra.mrb[28].mxu1 %v5901_v56 }
  0xa9   : > { %4379 = vmatmul.mubr.f32.gmra.mrb[12].mxu0 %v5803_v23  ;;  %4005 = vmatprep.mubr.f32.mxu1 %v5905_v1  ;;  %v3159_v23 = vld [vmem:[%s6299_s1 + $0x198] sm:$0xff] }
  0xaa   : > { %4381 = vmatprep.mubr.f32.mxu0 %v5807_v17  ;;  %4819 = vmatpush3.bf16.msra.mxu0 %v4816_v50  ;;  %v4668_v50 = vpack.c.bf16 %v3159_v23, %v3158_v45  ;;  %v4672_v23 = vpack.c.bf16 %v3161_v27, %v3160_v63  ;;  %v3169_v45 = vld [vmem:[%s6299_s1 + $0x1e8] sm:$0xff]  ;;  %v3171_v63 = vld [vmem:[%s6299_s1 + $0x1f8] sm:$0xff] }
  0xab   : > { %4821 = vmatprep.subr.bf16.mxu0 %v4820_v52  ;;  %v3298_v27 = vld [vmem:[%s5236_s24 + $0x198] sm:$0xff] }
  0xac   : > { %4006 = vmatmul.mubr.f32.gmra.mrb[30].mxu1 %v5917_v47 }
  0xad   : > { %4382 = vmatmul.mubr.f32.gmra.mrb[14].mxu0 %v5820_v39  ;;  %4040 = vmatprep.mubr.f32.mxu1 %v718_v2  ;;  %v3167_v2 = vld [vmem:[%s6299_s1 + $0x1d8] sm:$0xff] }
  0xae   : > { %4384 = vmatprep.mubr.f32.mxu0 %v5825_v12  ;;  %4823 = vmatpush3.bf16.msra.mxu0 %v4820_v52  ;;  %v3163_v52 = vld [vmem:[%s6299_s1 + $0x1b8] sm:$0xff] }
  0xaf   : > { %4825 = vmatprep.subr.bf16.mxu0 %v5921_v16 }
  0xb0   : > { %4041 = vmatmul.mubr.f32.vlgmr.msra.gmra.mrb[0].mxu1 %v719_v42  ;;  %v3162_v42 = vld [vmem:[%s6299_s1 + $0x1b0] sm:$0xff] }
  0xb1   : > { %4385 = vmatmul.mubr.f32.gmra.mrb[16].mxu0 %v5837_v8  ;;  %4667 = vmatpush3.bf16.msra.mxu1 %v5792_v29  ;;  %v3165_v29 = vld [vmem:[%s6299_s1 + $0x1c8] sm:$0xff] }
  0xb2   : > { %4043 = vmatprep.mubr.f32.mxu1 %v5449_v62  ;;  %4387 = vmatprep.mubr.f32.mxu0 %v5841_v36  ;;  %v4676_v62 = vpack.c.bf16 %v3163_v52, %v3162_v42  ;;  %v3398_v42 = vld [vmem:[%s6299_s1 + $0x410] sm:$0xff] }
  0xb3   : > { %4669 = vmatprep.subr.bf16.mxu1 %v4668_v50  ;;  %v3318_v52 = vld [vmem:[%s5236_s24 + $0x49] sm:$0xff] }
  0xb4   : > { %4044 = vmatmul.mubr.f32.gmra.mrb[2].mxu1 %v5463_v3  ;;  %v3164_v3 = vld [vmem:[%s6299_s1 + $0x1c0] sm:$0xff] }
  0xb5   : > { %4388 = vmatmul.mubr.f32.gmra.mrb[18].mxu0 %v5853_v31  ;;  %4046 = vmatprep.mubr.f32.mxu1 %v5469_v5  ;;  %v4680_v5 = vpack.c.bf16 %v3165_v29, %v3164_v3  ;;  %v3401_v3 = vld [vmem:[%s6299_s1 + $0x428] sm:$0xff] }
  0xb6   : > { %4390 = vmatprep.mubr.f32.mxu0 %v5857_v21  ;;  %4671 = vmatpush3.bf16.msra.mxu1 %v4668_v50  ;;  %v3170_v50 = vld [vmem:[%s6299_s1 + $0x1f0] sm:$0xff]  ;;  %v3320_v29 = vld [vmem:[%s5236_s24 + $0x61] sm:$0xff] }
  0xb7   : > { %4673 = vmatprep.subr.bf16.mxu1 %v4672_v23 }
  0xb8   : > { %4047 = vmatmul.mubr.f32.gmra.mrb[4].mxu1 %v5486_v11  ;;  %v3166_v11 = vld [vmem:[%s6299_s1 + $0x1d0] sm:$0xff] }
  0xb9   : > { %4391 = vmatmul.mubr.f32.gmra.mrb[20].mxu0 %v5869_v15  ;;  %4049 = vmatprep.mubr.f32.mxu1 %v5492_v14  ;;  %v4684_v14 = vpack.c.bf16 %v3167_v2, %v3166_v11  ;;  %v3403_v11 = vld [vmem:[%s6299_s1 + $0x438] sm:$0xff] }
  0xba   : > { %4393 = vmatprep.mubr.f32.mxu0 %v5873_v59  ;;  %4675 = vmatpush3.bf16.msra.mxu1 %v4672_v23  ;;  %v3299_v23 = vld [vmem:[%s5236_s24 + $0x1a0] sm:$0xff] }
  0xbb   : > { %4677 = vmatprep.subr.bf16.mxu1 %v4676_v62 }
  0xbc   : > { %4050 = vmatmul.mubr.f32.gmra.mrb[6].mxu1 %v5508_v20  ;;  %v3168_v20 = vld [vmem:[%s6299_s1 + $0x1e0] sm:$0xff] }
  0xbd   : > { %4394 = vmatmul.mubr.f32.gmra.mrb[22].mxu0 %v5885_v51  ;;  %4052 = vmatprep.mubr.f32.mxu1 %v5514_v22  ;;  %v5985_v22 = vld [vmem:[%s5236_s24 + $0x180] sm:$0xff] }
  0xbe   : > { %4396 = vmatprep.mubr.f32.mxu0 %v5889_v32  ;;  %4679 = vmatpush3.bf16.msra.mxu1 %v4676_v62 }
  0xbf   : > { %4681 = vmatprep.subr.bf16.mxu1 %v4680_v5 }
  0xc0   : > { %4053 = vmatmul.mubr.f32.gmra.mrb[8].mxu1 %v5530_v28  ;;  %v4688_v28 = vpack.c.bf16 %v3169_v45, %v3168_v20  ;;  %v3407_v45 = vld [vmem:[%s6299_s1 + $0x458] sm:$0xff] }
  0xc1   : > { %4397 = vmatmul.mubr.f32.gmra.mrb[24].mxu0 %v5901_v56  ;;  %4055 = vmatprep.mubr.f32.mxu1 %v5536_v30  ;;  %v5998_v30 = vld [vmem:[%s5236_s24 + $0x188] sm:$0xff] }
  0xc2   : > { %4399 = vmatprep.mubr.f32.mxu0 %v5905_v1  ;;  %4683 = vmatpush3.bf16.msra.mxu1 %v4680_v5  ;;  %v3402_v5 = vld [vmem:[%s6299_s1 + $0x430] sm:$0xff] }
  0xc3   : > { %4685 = vmatprep.subr.bf16.mxu1 %v4684_v14  ;;  %v4836_v2 = vpack.c.bf16 %v3403_v11, %v3402_v5  ;;  %v6122_v5 = vld [vmem:[%s5236_s24 + $0x189] sm:$0xff]  ;;  %v3346_v11 = vld [vmem:[%s5236_s24 + $0x199] sm:$0xff] }
  0xc4   : > { %4056 = vmatmul.mubr.f32.gmra.mrb[10].mxu1 %v5552_v38  ;;  %v4692_v38 = vpack.c.bf16 %v3171_v63, %v3170_v50  ;;  %v3409_v63 = vld [vmem:[%s6299_s1 + $0x468] sm:$0xff] }
  0xc5   : > { %4400 = vmatmul.mubr.f32.gmra.mrb[26].mxu0 %v5917_v47  ;;  %4058 = vmatprep.mubr.f32.mxu1 %v5558_v40  ;;  %v3316_v40 = vld [vmem:[%s5236_s24 + $0x31] sm:$0xff] }
  0xc6   : > { %4402 = vmatprep.mubr.f32.mxu0 %v5985_v22  ;;  %4687 = vmatpush3.bf16.msra.mxu1 %v4684_v14  ;;  %v3405_v14 = vld [vmem:[%s6299_s1 + $0x448] sm:$0xff] }
  0xc7   : > { %4689 = vmatprep.subr.bf16.mxu1 %v4688_v28 }
  0xc8   : > { %4059 = vmatmul.mubr.f32.gmra.mrb[12].mxu1 %v5574_v46  ;;  %v3399_v46 = vld [vmem:[%s6299_s1 + $0x418] sm:$0xff] }
  0xc9   : > { %4403 = vmatmul.mubr.f32.gmra.mrb[28].mxu0 %v5998_v30  ;;  %4061 = vmatprep.mubr.f32.mxu1 %v5580_v48  ;;  %v3317_v48 = vld [vmem:[%s5236_s24 + $0x39] sm:$0xff]  ;;  %v4828_v62 = vpack.c.bf16 %v3399_v46, %v3398_v42 }
  0xca   : > { %4405 = vmatprep.mubr.f32.mxu0 %v3298_v27  ;;  %4691 = vmatpush3.bf16.msra.mxu1 %v4688_v28  ;;  %v3326_v28 = vld [vmem:[%s5236_s24 + $0xa9] sm:$0xff]  ;;  %v3411_v27 = vld [vmem:[%s6299_s1 + $0x478] sm:$0xff]  ;;  %v6389_v46 = vld [vmem:[#allocation26_spill] sm:$0xff] }
  0xcb   : > { %4693 = vmatprep.subr.bf16.mxu1 %v4692_v38  ;;  %v6388_v42 = vld [vmem:[#allocation5_spill] sm:$0xff] }
  0xcc   : > { %4062 = vmatmul.mubr.f32.gmra.mrb[14].mxu1 %v5596_v55  ;;  %v3400_v55 = vld [vmem:[%s6299_s1 + $0x420] sm:$0xff] }
  0xcd   : > { %4406 = vmatmul.mubr.f32.gmra.mrb[30].mxu0 %v3299_v23  ;;  %4064 = vmatprep.mubr.f32.mxu1 %v5602_v57  ;;  %v3319_v57 = vld [vmem:[%s5236_s24 + $0x51] sm:$0xff] }
  0xce   : > { %4440 = vmatprep.mubr.f32.mxu0 %v3316_v40  ;;  %4695 = vmatpush3.bf16.msra.mxu1 %v4692_v38  ;;  %v6385_v38 = vld [vmem:[#allocation14_spill] sm:$0xff]  ;;  %v6386_v23 = vld [vmem:[#allocation25_spill] sm:$0xff]  ;;  %v6387_v40 = vld [vmem:[#allocation15_spill] sm:$0xff] }
  0xcf   : > { %4856 = vmatprep.subr.bf16.mxu1 %v5191_v7 }
  0xd0   : > { %4065 = vmatmul.mubr.f32.gmra.mrb[16].mxu1 %v5618_v0  ;;  %v4832_v0 = vpack.c.bf16 %v3401_v3, %v3400_v55  ;;  %v6114_v55 = vld [vmem:[%s5236_s24 + $0x181] sm:$0xff] }
  0xd1   : > { %4441 = vmatmul.mubr.f32.vlgmr.msra.gmra.mrb[0].mxu0 %v3317_v48  ;;  %4067 = vmatprep.mubr.f32.mxu1 %v5622_v6  ;;  %v3321_v6 = vld [vmem:[%s5236_s24 + $0x69] sm:$0xff]  ;;  %v6393_v3 = vld [vmem:[#allocation6_spill] sm:$0xff] }
  0xd2   : > { %4827 = vmatpush3.bf16.msra.mxu0 %v5921_v16  ;;  %4443 = vmatprep.mubr.f32.mxu0 %v3318_v52  ;;  %v3322_v16 = vld [vmem:[%s5236_s24 + $0x79] sm:$0xff]  ;;  %v6390_v48 = vld [vmem:[#allocation16_spill] sm:$0xff]  ;;  %v6391_v52 = vld [vmem:[#allocation27_spill] sm:$0xff] }
  0xd3   : > { %4829 = vmatprep.subr.bf16.mxu0 %v4828_v62 }
  0xd4   : > { %4068 = vmatmul.mubr.f32.gmra.mrb[18].mxu1 %v5637_v18  ;;  %v3404_v18 = vld [vmem:[%s6299_s1 + $0x440] sm:$0xff] }
  0xd5   : > { %4444 = vmatmul.mubr.f32.gmra.mrb[2].mxu0 %v3319_v57  ;;  %4070 = vmatprep.mubr.f32.mxu1 %v5643_v25  ;;  %v3323_v25 = vld [vmem:[%s5236_s24 + $0x81] sm:$0xff]  ;;  %v4840_v20 = vpack.c.bf16 %v3405_v14, %v3404_v18  ;;  %v6394_v57 = vld [vmem:[#allocation28_spill] sm:$0xff] }
  0xd6   : > { %4446 = vmatprep.mubr.f32.mxu0 %v3320_v29  ;;  %4831 = vmatpush3.bf16.msra.mxu0 %v4828_v62  ;;  %v6392_v62 = vld [vmem:[#allocation17_spill] sm:$0xff]  ;;  %v6395_v29 = vld [vmem:[#allocation18_spill] sm:$0xff] }
  0xd7   : > { %4833 = vmatprep.subr.bf16.mxu0 %v4832_v0  ;;  %v3347_v18 = vld [vmem:[%s5236_s24 + $0x1a1] sm:$0xff]  ;;  %v3364_v14 = vld [vmem:[%s5236_s24 + $0x32] sm:$0xff] }
  0xd8   : > { %4071 = vmatmul.mubr.f32.gmra.mrb[20].mxu1 %v5660_v41  ;;  %v3406_v41 = vld [vmem:[%s6299_s1 + $0x450] sm:$0xff] }
  0xd9   : > { %4447 = vmatmul.mubr.f32.gmra.mrb[4].mxu0 %v3321_v6  ;;  %4073 = vmatprep.mubr.f32.mxu1 %v5666_v44  ;;  %v3325_v44 = vld [vmem:[%s5236_s24 + $0x99] sm:$0xff]  ;;  %v4844_v50 = vpack.c.bf16 %v3407_v45, %v3406_v41  ;;  %v6397_v6 = vld [vmem:[#allocation7_spill] sm:$0xff] }
  0xda   : > { %4449 = vmatprep.mubr.f32.mxu0 %v3322_v16  ;;  %4835 = vmatpush3.bf16.msra.mxu0 %v4832_v0  ;;  %v6396_v0 = vld [vmem:[#allocation29_spill] sm:$0xff]  ;;  %v6398_v16 = vld [vmem:[#allocation30_spill] sm:$0xff]  ;;  %v3366_v45 = vld [vmem:[%s5236_s24 + $0x4a] sm:$0xff] }
  0xdb   : > { %4837 = vmatprep.subr.bf16.mxu0 %v4836_v2  ;;  %v3365_v41 = vld [vmem:[%s5236_s24 + $0x3a] sm:$0xff] }
  0xdc   : > { %4074 = vmatmul.mubr.f32.gmra.mrb[22].mxu1 %v5682_v58  ;;  %v3408_v58 = vld [vmem:[%s6299_s1 + $0x460] sm:$0xff] }
  0xdd   : > { %4450 = vmatmul.mubr.f32.gmra.mrb[6].mxu0 %v3323_v25  ;;  %4076 = vmatprep.mubr.f32.mxu1 %v5688_v60  ;;  %v4848_v60 = vpack.c.bf16 %v3409_v63, %v3408_v58  ;;  %v6400_v25 = vld [vmem:[#allocation8_spill] sm:$0xff]  ;;  %v3381_v58 = vld [vmem:[%s5236_s24 + $0xfa] sm:$0xff] }
  0xde   : > { %4452 = vmatprep.mubr.f32.mxu0 %v5398_v35  ;;  %4839 = vmatpush3.bf16.msra.mxu0 %v4836_v2  ;;  %v3327_v35 = vld [vmem:[%s5236_s24 + $0xb1] sm:$0xff]  ;;  %v6399_v2 = vld [vmem:[#allocation31_spill] sm:$0xff]  ;;  %v3191_v63 = vld [vmem:[%s5236_s24 + $0xf9] sm:$0xff] }
  0xdf   : > { %4841 = vmatprep.subr.bf16.mxu0 %v4840_v20 }
  0xe0   : > { %4077 = vmatmul.mubr.f32.gmra.mrb[24].mxu1 %v5704_v26  ;;  %v3410_v26 = vld [vmem:[%s6299_s1 + $0x470] sm:$0xff] }
  0xe1   : > { %4453 = vmatmul.mubr.f32.gmra.mrb[8].mxu0 %v3325_v44  ;;  %4079 = vmatprep.mubr.f32.mxu1 %v5710_v33  ;;  %v4852_v33 = vpack.c.bf16 %v3411_v27, %v3410_v26  ;;  %v3367_v44 = vld [vmem:[%s5236_s24 + $0x52] sm:$0xff]  ;;  %v3385_v27 = vld [vmem:[%s5236_s24 + $0x12a] sm:$0xff] }
  0xe2   : > { %4455 = vmatprep.mubr.f32.mxu0 %v3326_v28  ;;  %4843 = vmatpush3.bf16.msra.mxu0 %v4840_v20  ;;  %v6401_v20 = vld [vmem:[#allocation32_spill] sm:$0xff]  ;;  %v3368_v28 = vld [vmem:[%s5236_s24 + $0x62] sm:$0xff] }
  0xe3   : > { %4845 = vmatprep.subr.bf16.mxu0 %v4844_v50  ;;  %v3193_v26 = vld [vmem:[%s5236_s24 + $0x111] sm:$0xff] }
  0xe4   : > { %4080 = vmatmul.mubr.f32.gmra.mrb[26].mxu1 %v5726_v9  ;;  %v6382_v9 = vld [vmem:[#allocation13_spill] sm:$0xff] }
  0xe5   : > { %4456 = vmatmul.mubr.f32.gmra.mrb[10].mxu0 %v3327_v35  ;;  %4082 = vmatprep.mubr.f32.mxu1 %v5732_v43  ;;  %v6371_v43 = vld [vmem:[#allocation19_spill] sm:$0xff]  ;;  %v3383_v35 = vld [vmem:[%s5236_s24 + $0x112] sm:$0xff] }
  0xe6   : > { %4458 = vmatprep.mubr.f32.mxu0 %v5430_v54  ;;  %4847 = vmatpush3.bf16.msra.mxu0 %v4844_v50  ;;  %v6372_v54 = vld [vmem:[#allocation9_spill] sm:$0xff] }
  0xe7   : > { %4849 = vmatprep.subr.bf16.mxu0 %v4848_v60  ;;  %v3370_v50 = vld [vmem:[%s5236_s24 + $0x7a] sm:$0xff] }
  0xe8   : > { %4083 = vmatmul.mubr.f32.gmra.mrb[28].mxu1 %v5748_v49  ;;  %v6383_v49 = vld [vmem:[#allocation4_spill] sm:$0xff] }
  0xe9   : > { %4459 = vmatmul.mubr.f32.gmra.mrb[12].mxu0 %v5446_v61  ;;  %4085 = vmatprep.mubr.f32.mxu1 %v5754_v53  ;;  %v6373_v61 = vld [vmem:[#allocation2_spill] sm:$0xff]  ;;  %v6376_v53 = vld [vmem:[#allocation21_spill] sm:$0xff] }
  0xea   : > { %4461 = vmatprep.mubr.f32.mxu0 %v5466_v4  ;;  %4851 = vmatpush3.bf16.msra.mxu0 %v4848_v60  ;;  %v6374_v4 = vld [vmem:[#allocation20_spill] sm:$0xff]  ;;  %v3384_v60 = vld [vmem:[%s5236_s24 + $0x122] sm:$0xff] }
  0xeb   : > { %4853 = vmatprep.subr.bf16.mxu0 %v4852_v33 }
  0xec   : > { %4086 = vmatmul.mubr.f32.gmra.mrb[30].mxu1 %v5770_v37  ;;  %v6384_v37 = vld [vmem:[#allocation24_spill] sm:$0xff] }
  0xed   : > { %4462 = vmatmul.mubr.f32.gmra.mrb[14].mxu0 %v5482_v10  ;;  %4120 = vmatprep.mubr.f32.mxu1 %v5640_v24  ;;  %v6375_v10 = vld [vmem:[#allocation10_spill] sm:$0xff]  ;;  %v6378_v24 = vld [vmem:[#allocation3_spill] sm:$0xff] }
  0xee   : > { %4464 = vmatprep.mubr.f32.mxu0 %v5489_v13  ;;  %4855 = vmatpush3.bf16.msra.mxu0 %v4852_v33  ;;  %v6377_v13 = vld [vmem:[#allocation11_spill] sm:$0xff] }
  0xef   : > { %v3194_v33 = vld [vmem:[%s5236_s24 + $0x121] sm:$0xff] }
  0xf0   : > { %4121 = vmatmul.mubr.f32.vlgmr.msra.gmra.mrb[0].mxu1 %v5655_v34  ;;  %v6381_v34 = vld [vmem:[#allocation23_spill] sm:$0xff] }
  0xf1   : > { %4465 = vmatmul.mubr.f32.gmra.mrb[16].mxu0 %v5504_v19  ;;  %4864 = vmatpush3.bf16.msra.mxu1 %v5191_v7  ;;  %v6379_v19 = vld [vmem:[#allocation22_spill] sm:$0xff]  ;;  %v6380_v7 = vld [vmem:[#allocation12_spill] sm:$0xff] }
  0xf2   : > { %4123 = vmatprep.mubr.f32.mxu1 %v6371_v43  ;;  %4467 = vmatprep.mubr.f32.mxu0 %v6372_v54  ;;  %v3386_v43 = vld [vmem:[%s5236_s24 + $0x13a] sm:$0xff]  ;;  %v3195_v54 = vld [vmem:[%s5236_s24 + $0x129] sm:$0xff] }
  0xf3   : > { %4857 = vmatprep.subr.bf16.mxu1 %v6373_v61 }
  0xf4   : > { %4124 = vmatmul.mubr.f32.gmra.mrb[2].mxu1 %v6374_v4  ;;  %v3196_v4 = vld [vmem:[%s5236_s24 + $0x139] sm:$0xff] }
  0xf5   : > { %4468 = vmatmul.mubr.f32.gmra.mrb[18].mxu0 %v6375_v10  ;;  %4126 = vmatprep.mubr.f32.mxu1 %v6376_v53  ;;  %v3388_v10 = vld [vmem:[%s5236_s24 + $0x152] sm:$0xff]  ;;  %v3197_v53 = vld [vmem:[%s5236_s24 + $0x141] sm:$0xff] }
  0xf6   : > { %4470 = vmatprep.mubr.f32.mxu0 %v6377_v13  ;;  %4865 = vmatpush3.bf16.msra.mxu1 %v6373_v61  ;;  %v3387_v61 = vld [vmem:[%s5236_s24 + $0x142] sm:$0xff]  ;;  %v3389_v13 = vld [vmem:[%s5236_s24 + $0x15a] sm:$0xff] }
  0xf7   : > { %4858 = vmatprep.subr.bf16.mxu1 %v6378_v24 }
  0xf8   : > { %4127 = vmatmul.mubr.f32.gmra.mrb[4].mxu1 %v6379_v19  ;;  %v3390_v19 = vld [vmem:[%s5236_s24 + $0x16a] sm:$0xff] }
  0xf9   : > { %4471 = vmatmul.mubr.f32.gmra.mrb[20].mxu0 %v6380_v7  ;;  %4129 = vmatprep.mubr.f32.mxu1 %v6381_v34  ;;  %v3199_v7 = vld [vmem:[%s5236_s24 + $0x159] sm:$0xff] }
  0xfa   : > { %4473 = vmatprep.mubr.f32.mxu0 %v6382_v9  ;;  %4866 = vmatpush3.bf16.msra.mxu1 %v6378_v24  ;;  %v3198_v24 = vld [vmem:[%s5236_s24 + $0x151] sm:$0xff]  ;;  %v3200_v9 = vld [vmem:[%s5236_s24 + $0x169] sm:$0xff] }
  0xfb   : > { %4859 = vmatprep.subr.bf16.mxu1 %v6383_v49  ;;  %v3391_v34 = vld [vmem:[%s5236_s24 + $0x172] sm:$0xff] }
  0xfc   : > { %4130 = vmatmul.mubr.f32.gmra.mrb[6].mxu1 %v6384_v37  ;;  %v3201_v37 = vld [vmem:[%s5236_s24 + $0x171] sm:$0xff] }
  0xfd   : > { %4474 = vmatmul.mubr.f32.gmra.mrb[22].mxu0 %v6385_v38  ;;  %4132 = vmatprep.mubr.f32.mxu1 %v6386_v23  ;;  %v3393_v38 = vld [vmem:[%s5236_s24 + $0x18a] sm:$0xff]  ;;  %v3394_v23 = vld [vmem:[%s5236_s24 + $0x19a] sm:$0xff] }
  0xfe   : > { %4476 = vmatprep.mubr.f32.mxu0 %v6387_v40  ;;  %4867 = vmatpush3.bf16.msra.mxu1 %v6383_v49  ;;  %v3392_v49 = vld [vmem:[%s5236_s24 + $0x182] sm:$0xff] }
  0xff   : > { %4860 = vmatprep.subr.bf16.mxu1 %v6388_v42  ;;  %v3395_v40 = vld [vmem:[%s5236_s24 + $0x1a2] sm:$0xff] }
 0x100   : > { %4133 = vmatmul.mubr.f32.gmra.mrb[8].mxu1 %v6389_v46 }
 0x101   : > { %4477 = vmatmul.mubr.f32.gmra.mrb[24].mxu0 %v6390_v48  ;;  %4135 = vmatprep.mubr.f32.mxu1 %v6391_v52 }
 0x102   : > { %4479 = vmatprep.mubr.f32.mxu0 %v6392_v62  ;;  %4868 = vmatpush3.bf16.msra.mxu1 %v6388_v42 }
 0x103   : > { %4861 = vmatprep.subr.bf16.mxu1 %v6393_v3 }
 0x104   : > { %4136 = vmatmul.mubr.f32.gmra.mrb[10].mxu1 %v6394_v57 }
 0x105   : > { %4480 = vmatmul.mubr.f32.gmra.mrb[26].mxu0 %v6395_v29  ;;  %4138 = vmatprep.mubr.f32.mxu1 %v6396_v0 }
 0x106   : > { %4482 = vmatprep.mubr.f32.mxu0 %v6114_v55  ;;  %4869 = vmatpush3.bf16.msra.mxu1 %v6393_v3 }
 0x107   : > { %4862 = vmatprep.subr.bf16.mxu1 %v6397_v6 }
 0x108   : > { %4139 = vmatmul.mubr.f32.gmra.mrb[12].mxu1 %v6398_v16 }
 0x109   : > { %4483 = vmatmul.mubr.f32.gmra.mrb[28].mxu0 %v6122_v5  ;;  %4141 = vmatprep.mubr.f32.mxu1 %v6399_v2 }
 0x10a   : > { %4485 = vmatprep.mubr.f32.mxu0 %v3346_v11  ;;  %4870 = vmatpush3.bf16.msra.mxu1 %v6397_v6 }
 0x10b   : > { %4863 = vmatprep.subr.bf16.mxu1 %v6400_v25 }
 0x10c   : > { %4142 = vmatmul.mubr.f32.gmra.mrb[14].mxu1 %v6401_v20 }
 0x10d   : > { %4486 = vmatmul.mubr.f32.gmra.mrb[30].mxu0 %v3347_v18  ;;  %4144 = vmatprep.mubr.f32.mxu1 %v5807_v17  ;;  %v3369_v17 = vld [vmem:[%s5236_s24 + $0x6a] sm:$0xff] }
 0x10e   : > { %4520 = vmatprep.mubr.f32.mxu0 %v3364_v14  ;;  %4871 = vmatpush3.bf16.msra.mxu1 %v6400_v25  ;;  %v6216_v25 = vld [vmem:[%s6300_s2] ss:$0 sm:$0xff] }
 0x110   : > { %4145 = vmatmul.mubr.f32.gmra.mrb[16].mxu1 %v5820_v39  ;;  %v3371_v39 = vld [vmem:[%s5236_s24 + $0x82] sm:$0xff] }
 0x111   : > { %4521 = vmatmul.mubr.f32.vlgmr.msra.gmra.mrb[0].mxu0 %v3365_v41  ;;  %4147 = vmatprep.mubr.f32.mxu1 %v5825_v12  ;;  %v3372_v12 = vld [vmem:[%s5236_s24 + $0x92] sm:$0xff] }
 0x112   : > { %4523 = vmatprep.mubr.f32.mxu0 %v3366_v45 }
 0x114   : > { %4148 = vmatmul.mubr.f32.gmra.mrb[18].mxu1 %v5837_v8  ;;  %v3373_v8 = vld [vmem:[%s5236_s24 + $0x9a] sm:$0xff] }
 0x115   : > { %4524 = vmatmul.mubr.f32.gmra.mrb[2].mxu0 %v3367_v44  ;;  %4150 = vmatprep.mubr.f32.mxu1 %v5841_v36  ;;  %v3374_v36 = vld [vmem:[%s5236_s24 + $0xaa] sm:$0xff] }
 0x116   : > { %4526 = vmatprep.mubr.f32.mxu0 %v3368_v28 }
 0x118   : > { %4151 = vmatmul.mubr.f32.gmra.mrb[20].mxu1 %v5853_v31  ;;  %v3375_v31 = vld [vmem:[%s5236_s24 + $0xb2] sm:$0xff] }
 0x119   : > { %4527 = vmatmul.mubr.f32.gmra.mrb[4].mxu0 %v3369_v17  ;;  %4153 = vmatprep.mubr.f32.mxu1 %v5857_v21  ;;  %v3376_v21 = vld [vmem:[%s5236_s24 + $0xc2] sm:$0xff] }
 0x11a   : > { %4529 = vmatprep.mubr.f32.mxu0 %v3370_v50 }
 0x11c   : > { %4154 = vmatmul.mubr.f32.gmra.mrb[22].mxu1 %v5869_v15  ;;  %v3377_v15 = vld [vmem:[%s5236_s24 + $0xca] sm:$0xff] }
 0x11d   : > { %4530 = vmatmul.mubr.f32.gmra.mrb[6].mxu0 %v3371_v39  ;;  %4156 = vmatprep.mubr.f32.mxu1 %v5873_v59  ;;  %v3379_v59 = vld [vmem:[%s5236_s24 + $0xe2] sm:$0xff] }
 0x11e   : > { %4532 = vmatprep.mubr.f32.mxu0 %v3372_v12 }
 0x120   : > { %4157 = vmatmul.mubr.f32.gmra.mrb[24].mxu1 %v5885_v51  ;;  %v3378_v51 = vld [vmem:[%s5236_s24 + $0xda] sm:$0xff] }
 0x121   : > { %4533 = vmatmul.mubr.f32.gmra.mrb[8].mxu0 %v3373_v8  ;;  %4159 = vmatprep.mubr.f32.mxu1 %v5889_v32  ;;  %v3380_v32 = vld [vmem:[%s5236_s24 + $0xf2] sm:$0xff] }
 0x122   : > { %4535 = vmatprep.mubr.f32.mxu0 %v3374_v36 }
 0x124   : > { %4160 = vmatmul.mubr.f32.gmra.mrb[26].mxu1 %v5901_v56  ;;  %v3188_v56 = vld [vmem:[%s5236_s24 + $0xd9] sm:$0xff] }
 0x125   : > { %4536 = vmatmul.mubr.f32.gmra.mrb[10].mxu0 %v3375_v31  ;;  %4162 = vmatprep.mubr.f32.mxu1 %v5905_v1  ;;  %v3189_v1 = vld [vmem:[%s5236_s24 + $0xe1] sm:$0xff] }
 0x126   : > { %4538 = vmatprep.mubr.f32.mxu0 %v3376_v21 }
 0x128   : > { %4163 = vmatmul.mubr.f32.gmra.mrb[28].mxu1 %v5917_v47  ;;  %v3190_v47 = vld [vmem:[%s5236_s24 + $0xf1] sm:$0xff] }
 0x129   : > { %4539 = vmatmul.mubr.f32.gmra.mrb[12].mxu0 %v3377_v15  ;;  %4165 = vmatprep.mubr.f32.mxu1 %v5985_v22  ;;  %v3382_v22 = vld [vmem:[%s5236_s24 + $0x10a] sm:$0xff] }
 0x12a   : > { %4541 = vmatprep.mubr.f32.mxu0 %v3378_v51 }
 0x12c   : > { %4166 = vmatmul.mubr.f32.gmra.mrb[30].mxu1 %v5998_v30  ;;  %v3192_v30 = vld [vmem:[%s5236_s24 + $0x109] sm:$0xff] }
 0x12d   : > { %4542 = vmatmul.mubr.f32.gmra.mrb[14].mxu0 %v3379_v59  ;;  %4224 = vmatprep.mubr.f32.mxu1 %v3188_v56 }
 0x12e   : > { %4544 = vmatprep.mubr.f32.mxu0 %v3380_v32 }
 0x130   : > { %4225 = vmatmul.mubr.f32.vlgmr.msra.gmra.mrb[16].mxu1 %v3189_v1 }
 0x131   : > { %4545 = vmatmul.mubr.f32.gmra.mrb[16].mxu0 %v3381_v58  ;;  %4227 = vmatprep.mubr.f32.mxu1 %v3190_v47 }
 0x132   : > { %4547 = vmatprep.mubr.f32.mxu0 %v3382_v22 }
 0x134   : > { %4228 = vmatmul.mubr.f32.gmra.mrb[18].mxu1 %v3191_v63 }
 0x135   : > { %4548 = vmatmul.mubr.f32.gmra.mrb[18].mxu0 %v3383_v35  ;;  %4230 = vmatprep.mubr.f32.mxu1 %v3192_v30 }
 0x136   : > { %4550 = vmatprep.mubr.f32.mxu0 %v3384_v60 }
 0x138   : > { %4231 = vmatmul.mubr.f32.gmra.mrb[20].mxu1 %v3193_v26 }
 0x139   : > { %4551 = vmatmul.mubr.f32.gmra.mrb[20].mxu0 %v3385_v27  ;;  %4233 = vmatprep.mubr.f32.mxu1 %v3194_v33 }
 0x13a   : > { %4553 = vmatprep.mubr.f32.mxu0 %v3386_v43 }
 0x13c   : > { %4234 = vmatmul.mubr.f32.gmra.mrb[22].mxu1 %v3195_v54 }
 0x13d   : > { %4554 = vmatmul.mubr.f32.gmra.mrb[22].mxu0 %v3387_v61  ;;  %4236 = vmatprep.mubr.f32.mxu1 %v3196_v4 }
 0x13e   : > { %4556 = vmatprep.mubr.f32.mxu0 %v3388_v10 }
 0x140   : > { %4237 = vmatmul.mubr.f32.gmra.mrb[24].mxu1 %v3197_v53 }
 0x141   : > { %4557 = vmatmul.mubr.f32.gmra.mrb[24].mxu0 %v3389_v13  ;;  %4239 = vmatprep.mubr.f32.mxu1 %v3198_v24 }
 0x142   : > { %4559 = vmatprep.mubr.f32.mxu0 %v3390_v19 }
 0x144   : > { %4240 = vmatmul.mubr.f32.gmra.mrb[26].mxu1 %v3199_v7 }
 0x145   : > { %4560 = vmatmul.mubr.f32.gmra.mrb[26].mxu0 %v3391_v34  ;;  %4242 = vmatprep.mubr.f32.mxu1 %v3200_v9 }
 0x146   : > { %4562 = vmatprep.mubr.f32.mxu0 %v3392_v49 }
 0x148   : > { %4243 = vmatmul.mubr.f32.gmra.mrb[28].mxu1 %v3201_v37 }
 0x149   : > { %4563 = vmatmul.mubr.f32.gmra.mrb[28].mxu0 %v3393_v38  ;;  %4245 = vmatprep.mubr.f32.mxu1 %v6114_v55 }
 0x14a   : > { %4565 = vmatprep.mubr.f32.mxu0 %v3394_v23 }
 0x14c   : > { %4246 = vmatmul.mubr.f32.gmra.mrb[30].mxu1 %v6122_v5 }
 0x14d   : > { %4566 = vmatmul.mubr.f32.gmra.mrb[30].mxu0 %v3395_v40 }
 0x1c3   : > { %v4122_v42 = vpop.f32.mrb[0].mxu1 }
 0x1c4   : > { %v1140_v46 = vpop.f32.mrb[1].mxu1 }
 0x1c7   : > { %v4125_v48 = vpop.f32.mrb[2].mxu1 }
 0x1c8   : > { %v1150_v52 = vpop.f32.mrb[3].mxu1 }
 0x1cb   : > { %v4128_v62 = vpop.f32.mrb[4].mxu1 }
 0x1cc   : > { %v1160_v3 = vpop.f32.mrb[5].mxu1 }
 0x1cf   : > { %v4131_v57 = vpop.f32.mrb[6].mxu1 }
 0x1d0   : > { %v1170_v29 = vpop.f32.mrb[7].mxu1 }
 0x1d3   : > { %v4134_v0 = vpop.f32.mrb[8].mxu1 }
 0x1d4   : > { %v6199_v11 = vpop.f32.mrb[9].mxu1 }
 0x1d7   : > { %v6201_v6 = vpop.f32.mrb[10].mxu1 }
 0x1d8   : > { %v6203_v55 = vpop.f32.mrb[11].mxu1 }
 0x1db   : > { %v6205_v16 = vpop.f32.mrb[12].mxu1 }
 0x1dc   : > { %v6207_v5 = vpop.f32.mrb[13].mxu1 }
 0x1df   : > { %v6209_v2 = vpop.f32.mrb[14].mxu1 }
 0x1e0   : > { %v6211_v18 = vpop.f32.mrb[15].mxu1 }
 0x1e4   : > { %v4522_v14 = vpop.f32.mrb[0].mxu0 }
 0x1e5   : > { %v4872_v20 = vadd.f32 %v4522_v14, %v4122_v42  ;;  %v2671_v41 = vpop.f32.mrb[1].mxu0 }
 0x1e6   : > { %v4873_v45 = vadd.f32 %v2671_v41, %v1140_v46 }
 0x1e7   : > { %v2870_v44 = vadd.f32 %v4872_v20, %v6216_v25 }
 0x1e8   : > { %v2869_v28 = vadd.f32 %v4873_v45, %v6216_v25  ;;  %v4525_v17 = vpop.f32.mrb[2].mxu0 }
 0x1e9   : > { %vm2902_vm0 = vcmp.gt.f32.partialorder %v2870_v44, 0.0  ;;  %v2934_v50 = vmul.f32 0.1, %v2870_v44  ;;  %v4874_v39 = vadd.f32 %v4525_v17, %v4125_v48  ;;  %v2681_v12 = vpop.f32.mrb[3].mxu0 }
 0x1ea   : > { %vm2901_vm1 = vcmp.gt.f32.partialorder %v2869_v28, 0.0  ;;  %v2933_v8 = vmul.f32 0.1, %v2869_v28  ;;  %v4875_v36 = vadd.f32 %v2681_v12, %v1150_v52 }
 0x1eb   : > { %v2966_v31 = vsel %vm2902_vm0, %v2870_v44, %v2934_v50  ;;  %v2872_v21 = vadd.f32 %v4874_v39, %v6216_v25 }
 0x1ec   : > { %2998 = vst [vmem:[%s6224_s20 + $0x8] sm:$0xff] %v2966_v31  ;;  %v2965_v15 = vsel %vm2901_vm1, %v2869_v28, %v2933_v8  ;;  %v2871_v51 = vadd.f32 %v4875_v36, %v6216_v25  ;;  %v4528_v59 = vpop.f32.mrb[4].mxu0 }
 0x1ed   : > { %2997 = vst [vmem:[%s6224_s20] sm:$0xff] %v2965_v15  ;;  %vm2904_vm2 = vcmp.gt.f32.partialorder %v2872_v21, 0.0  ;;  %v2936_v56 = vmul.f32 0.1, %v2872_v21  ;;  %v4876_v32 = vadd.f32 %v4528_v59, %v4128_v62  ;;  %v2691_v1 = vpop.f32.mrb[5].mxu0 }
 0x1ee   : > { %vm2903_vm3 = vcmp.gt.f32.partialorder %v2871_v51, 0.0  ;;  %v2935_v58 = vmul.f32 0.1, %v2871_v51  ;;  %v4877_v47 = vadd.f32 %v2691_v1, %v1160_v3 }
 0x1ef   : > { %v2968_v22 = vsel %vm2904_vm2, %v2872_v21, %v2936_v56  ;;  %v2874_v63 = vadd.f32 %v4876_v32, %v6216_v25 }
 0x1f0   : > { %3000 = vst [vmem:[%s6224_s20 + $0x18] sm:$0xff] %v2968_v22  ;;  %v2967_v35 = vsel %vm2903_vm3, %v2871_v51, %v2935_v58  ;;  %v2873_v30 = vadd.f32 %v4877_v47, %v6216_v25  ;;  %v4531_v60 = vpop.f32.mrb[6].mxu0 }
 0x1f1   : > { %2999 = vst [vmem:[%s6224_s20 + $0x10] sm:$0xff] %v2967_v35  ;;  %vm2906_vm4 = vcmp.gt.f32.partialorder %v2874_v63, 0.0  ;;  %v2938_v26 = vmul.f32 0.1, %v2874_v63  ;;  %v4878_v27 = vadd.f32 %v4531_v60, %v4131_v57  ;;  %v2701_v33 = vpop.f32.mrb[7].mxu0 }
 0x1f2   : > { %vm2905_vm5 = vcmp.gt.f32.partialorder %v2873_v30, 0.0  ;;  %v2937_v43 = vmul.f32 0.1, %v2873_v30  ;;  %v4879_v54 = vadd.f32 %v2701_v33, %v1170_v29 }
 0x1f3   : > { %v2970_v61 = vsel %vm2906_vm4, %v2874_v63, %v2938_v26  ;;  %v2876_v4 = vadd.f32 %v4878_v27, %v6216_v25 }
 0x1f4   : > { %3002 = vst [vmem:[%s6224_s20 + $0x28] sm:$0xff] %v2970_v61  ;;  %v2969_v10 = vsel %vm2905_vm5, %v2873_v30, %v2937_v43  ;;  %v2875_v53 = vadd.f32 %v4879_v54, %v6216_v25  ;;  %v4534_v13 = vpop.f32.mrb[8].mxu0 }
 0x1f5   : > { %3001 = vst [vmem:[%s6224_s20 + $0x20] sm:$0xff] %v2969_v10  ;;  %vm2908_vm6 = vcmp.gt.f32.partialorder %v2876_v4, 0.0  ;;  %v2940_v24 = vmul.f32 0.1, %v2876_v4  ;;  %v4880_v19 = vadd.f32 %v4534_v13, %v4134_v0  ;;  %v2711_v7 = vpop.f32.mrb[9].mxu0 }
 0x1f6   : > { %vm2907_vm7 = vcmp.gt.f32.partialorder %v2875_v53, 0.0  ;;  %v2939_v34 = vmul.f32 0.1, %v2875_v53  ;;  %v4881_v9 = vadd.f32 %v2711_v7, %v6199_v11 }
 0x1f7   : > { %v2972_v49 = vsel %vm2908_vm6, %v2876_v4, %v2940_v24  ;;  %v2878_v37 = vadd.f32 %v4880_v19, %v6216_v25 }
 0x1f8   : > { %3004 = vst [vmem:[%s6224_s20 + $0x38] sm:$0xff] %v2972_v49  ;;  %v2971_v38 = vsel %vm2907_vm7, %v2875_v53, %v2939_v34  ;;  %v2877_v23 = vadd.f32 %v4881_v9, %v6216_v25  ;;  %v4537_v40 = vpop.f32.mrb[10].mxu0 }
 0x1f9   : > { %3003 = vst [vmem:[%s6224_s20 + $0x30] sm:$0xff] %v2971_v38  ;;  %vm2910_vm8 = vcmp.gt.f32.partialorder %v2878_v37, 0.0  ;;  %v2942_v42 = vmul.f32 0.1, %v2878_v37  ;;  %v4882_v46 = vadd.f32 %v4537_v40, %v6201_v6  ;;  %v2721_v48 = vpop.f32.mrb[11].mxu0 }
 0x1fa   : > { %vm2909_vm9 = vcmp.gt.f32.partialorder %v2877_v23, 0.0  ;;  %v2941_v52 = vmul.f32 0.1, %v2877_v23  ;;  %v4883_v62 = vadd.f32 %v2721_v48, %v6203_v55 }
 0x1fb   : > { %v2974_v3 = vsel %vm2910_vm8, %v2878_v37, %v2942_v42  ;;  %v2880_v57 = vadd.f32 %v4882_v46, %v6216_v25 }
 0x1fc   : > { %3006 = vst [vmem:[%s6224_s20 + $0x48] sm:$0xff] %v2974_v3  ;;  %v2973_v29 = vsel %vm2909_vm9, %v2877_v23, %v2941_v52  ;;  %v2879_v0 = vadd.f32 %v4883_v62, %v6216_v25  ;;  %v4540_v11 = vpop.f32.mrb[12].mxu0 }
 0x1fd   : > { %3005 = vst [vmem:[%s6224_s20 + $0x40] sm:$0xff] %v2973_v29  ;;  %vm2912_vm10 = vcmp.gt.f32.partialorder %v2880_v57, 0.0  ;;  %v2944_v14 = vmul.f32 0.1, %v2880_v57  ;;  %v4884_v6 = vadd.f32 %v4540_v11, %v6205_v16  ;;  %v2731_v20 = vpop.f32.mrb[13].mxu0 }
 0x1fe   : > { %vm2911_vm11 = vcmp.gt.f32.partialorder %v2879_v0, 0.0  ;;  %v2943_v41 = vmul.f32 0.1, %v2879_v0  ;;  %v4885_v55 = vadd.f32 %v2731_v20, %v6207_v5 }
 0x1ff   : > { %v2976_v45 = vsel %vm2912_vm10, %v2880_v57, %v2944_v14  ;;  %v2882_v44 = vadd.f32 %v4884_v6, %v6216_v25 }
 0x200   : > { %3008 = vst [vmem:[%s6224_s20 + $0x58] sm:$0xff] %v2976_v45  ;;  %v2975_v28 = vsel %vm2911_vm11, %v2879_v0, %v2943_v41  ;;  %v2881_v17 = vadd.f32 %v4885_v55, %v6216_v25  ;;  %v4543_v50 = vpop.f32.mrb[14].mxu0 }
 0x201   : > { %3007 = vst [vmem:[%s6224_s20 + $0x50] sm:$0xff] %v2975_v28  ;;  %vm2914_vm12 = vcmp.gt.f32.partialorder %v2882_v44, 0.0  ;;  %v2946_v39 = vmul.f32 0.1, %v2882_v44  ;;  %v4886_v16 = vadd.f32 %v4543_v50, %v6209_v2  ;;  %v2741_v12 = vpop.f32.mrb[15].mxu0 }
 0x202   : > { %vm2913_vm13 = vcmp.gt.f32.partialorder %v2881_v17, 0.0  ;;  %v2945_v8 = vmul.f32 0.1, %v2881_v17  ;;  %v4887_v5 = vadd.f32 %v2741_v12, %v6211_v18 }
 0x203   : > { %v2978_v36 = vsel %vm2914_vm12, %v2882_v44, %v2946_v39  ;;  %v2884_v31 = vadd.f32 %v4886_v16, %v6216_v25  ;;  %v4226_v21 = vpop.f32.mrb[16].mxu1 }
 0x204   : > { %3010 = vst [vmem:[%s6224_s20 + $0x68] sm:$0xff] %v2978_v36  ;;  %v2977_v15 = vsel %vm2913_vm13, %v2881_v17, %v2945_v8  ;;  %v2883_v51 = vadd.f32 %v4887_v5, %v6216_v25  ;;  %v4546_v59 = vpop.f32.mrb[16].mxu0  ;;  %v1526_v56 = vpop.f32.mrb[17].mxu1 }
 0x205   : > { %3009 = vst [vmem:[%s6224_s20 + $0x60] sm:$0xff] %v2977_v15  ;;  %vm2916_vm14 = vcmp.gt.f32.partialorder %v2884_v31, 0.0  ;;  %v2948_v2 = vmul.f32 0.1, %v2884_v31  ;;  %v4888_v32 = vadd.f32 %v4546_v59, %v4226_v21  ;;  %v2751_v1 = vpop.f32.mrb[17].mxu0 }
 0x206   : > { %vm2915_vm15 = vcmp.gt.f32.partialorder %v2883_v51, 0.0  ;;  %v2947_v58 = vmul.f32 0.1, %v2883_v51  ;;  %v4889_v18 = vadd.f32 %v2751_v1, %v1526_v56 }
 0x207   : > { %v2980_v47 = vsel %vm2916_vm14, %v2884_v31, %v2948_v2  ;;  %v2886_v22 = vadd.f32 %v4888_v32, %v6216_v25  ;;  %v4229_v63 = vpop.f32.mrb[18].mxu1 }
 0x208   : > { %3012 = vst [vmem:[%s6224_s20 + $0x78] sm:$0xff] %v2980_v47  ;;  %v2979_v35 = vsel %vm2915_vm15, %v2883_v51, %v2947_v58  ;;  %v2885_v30 = vadd.f32 %v4889_v18, %v6216_v25  ;;  %v4549_v60 = vpop.f32.mrb[18].mxu0  ;;  %v1536_v26 = vpop.f32.mrb[19].mxu1 }
 0x209   : > { %3011 = vst [vmem:[%s6224_s20 + $0x70] sm:$0xff] %v2979_v35  ;;  %vm2918_vm0 = vcmp.gt.f32.partialorder %v2886_v22, 0.0  ;;  %v2950_v27 = vmul.f32 0.1, %v2886_v22  ;;  %v4890_v33 = vadd.f32 %v4549_v60, %v4229_v63  ;;  %v2761_v43 = vpop.f32.mrb[19].mxu0 }
 0x20a   : > { %vm2917_vm1 = vcmp.gt.f32.partialorder %v2885_v30, 0.0  ;;  %v2949_v54 = vmul.f32 0.1, %v2885_v30  ;;  %v4891_v61 = vadd.f32 %v2761_v43, %v1536_v26 }
 0x20b   : > { %v2982_v4 = vsel %vm2918_vm0, %v2886_v22, %v2950_v27  ;;  %v2888_v10 = vadd.f32 %v4890_v33, %v6216_v25  ;;  %v4232_v53 = vpop.f32.mrb[20].mxu1 }
 0x20c   : > { %3014 = vst [vmem:[%s6224_s20 + $0x88] sm:$0xff] %v2982_v4  ;;  %v2981_v13 = vsel %vm2917_vm1, %v2885_v30, %v2949_v54  ;;  %v2887_v24 = vadd.f32 %v4891_v61, %v6216_v25  ;;  %v4552_v19 = vpop.f32.mrb[20].mxu0  ;;  %v1546_v7 = vpop.f32.mrb[21].mxu1 }
 0x20d   : > { %3013 = vst [vmem:[%s6224_s20 + $0x80] sm:$0xff] %v2981_v13  ;;  %vm2920_vm2 = vcmp.gt.f32.partialorder %v2888_v10, 0.0  ;;  %v2952_v34 = vmul.f32 0.1, %v2888_v10  ;;  %v4892_v9 = vadd.f32 %v4552_v19, %v4232_v53  ;;  %v2771_v49 = vpop.f32.mrb[21].mxu0 }
 0x20e   : > { %vm2919_vm3 = vcmp.gt.f32.partialorder %v2887_v24, 0.0  ;;  %v2951_v37 = vmul.f32 0.1, %v2887_v24  ;;  %v4893_v38 = vadd.f32 %v2771_v49, %v1546_v7 }
 0x20f   : > { %v2984_v23 = vsel %vm2920_vm2, %v2888_v10, %v2952_v34  ;;  %v2890_v40 = vadd.f32 %v4892_v9, %v6216_v25  ;;  %v4235_v42 = vpop.f32.mrb[22].mxu1 }
 0x210   : > { %3016 = vst [vmem:[%s6224_s20 + $0x98] sm:$0xff] %v2984_v23  ;;  %v2983_v46 = vsel %vm2919_vm3, %v2887_v24, %v2951_v37  ;;  %v2889_v48 = vadd.f32 %v4893_v38, %v6216_v25  ;;  %v4555_v52 = vpop.f32.mrb[22].mxu0  ;;  %v1556_v62 = vpop.f32.mrb[23].mxu1 }
 0x211   : > { %3015 = vst [vmem:[%s6224_s20 + $0x90] sm:$0xff] %v2983_v46  ;;  %vm2922_vm4 = vcmp.gt.f32.partialorder %v2890_v40, 0.0  ;;  %v2954_v3 = vmul.f32 0.1, %v2890_v40  ;;  %v4894_v57 = vadd.f32 %v4555_v52, %v4235_v42  ;;  %v2781_v29 = vpop.f32.mrb[23].mxu0 }
 0x212   : > { %vm2921_vm5 = vcmp.gt.f32.partialorder %v2889_v48, 0.0  ;;  %v2953_v0 = vmul.f32 0.1, %v2889_v48  ;;  %v4895_v11 = vadd.f32 %v2781_v29, %v1556_v62 }
 0x213   : > { %v2986_v14 = vsel %vm2922_vm4, %v2890_v40, %v2954_v3  ;;  %v2892_v6 = vadd.f32 %v4894_v57, %v6216_v25  ;;  %v4238_v20 = vpop.f32.mrb[24].mxu1 }
 0x214   : > { %3018 = vst [vmem:[%s6224_s20 + $0xa8] sm:$0xff] %v2986_v14  ;;  %v2985_v41 = vsel %vm2921_vm5, %v2889_v48, %v2953_v0  ;;  %v2891_v55 = vadd.f32 %v4895_v11, %v6216_v25  ;;  %v4558_v45 = vpop.f32.mrb[24].mxu0  ;;  %v1566_v44 = vpop.f32.mrb[25].mxu1 }
 0x215   : > { %3017 = vst [vmem:[%s6224_s20 + $0xa0] sm:$0xff] %v2985_v41  ;;  %vm2924_vm6 = vcmp.gt.f32.partialorder %v2892_v6, 0.0  ;;  %v2956_v28 = vmul.f32 0.1, %v2892_v6  ;;  %v4896_v17 = vadd.f32 %v4558_v45, %v4238_v20  ;;  %v2791_v50 = vpop.f32.mrb[25].mxu0 }
 0x216   : > { %vm2923_vm7 = vcmp.gt.f32.partialorder %v2891_v55, 0.0  ;;  %v2955_v39 = vmul.f32 0.1, %v2891_v55  ;;  %v4897_v16 = vadd.f32 %v2791_v50, %v1566_v44 }
 0x217   : > { %v2988_v12 = vsel %vm2924_vm6, %v2892_v6, %v2956_v28  ;;  %v2894_v8 = vadd.f32 %v4896_v17, %v6216_v25  ;;  %v4241_v5 = vpop.f32.mrb[26].mxu1 }
 0x218   : > { %3020 = vst [vmem:[%s6224_s20 + $0xb8] sm:$0xff] %v2988_v12  ;;  %v2987_v36 = vsel %vm2923_vm7, %v2891_v55, %v2955_v39  ;;  %v2893_v31 = vadd.f32 %v4897_v16, %v6216_v25  ;;  %v4561_v21 = vpop.f32.mrb[26].mxu0  ;;  %v1576_v15 = vpop.f32.mrb[27].mxu1 }
 0x219   : > { %3019 = vst [vmem:[%s6224_s20 + $0xb0] sm:$0xff] %v2987_v36  ;;  %vm2926_vm8 = vcmp.gt.f32.partialorder %v2894_v8, 0.0  ;;  %v2958_v51 = vmul.f32 0.1, %v2894_v8  ;;  %v4898_v59 = vadd.f32 %v4561_v21, %v4241_v5  ;;  %v2801_v56 = vpop.f32.mrb[27].mxu0 }
 0x21a   : > { %vm2925_vm9 = vcmp.gt.f32.partialorder %v2893_v31, 0.0  ;;  %v2957_v2 = vmul.f32 0.1, %v2893_v31  ;;  %v4899_v32 = vadd.f32 %v2801_v56, %v1576_v15 }
 0x21b   : > { %v2990_v1 = vsel %vm2926_vm8, %v2894_v8, %v2958_v51  ;;  %v2896_v58 = vadd.f32 %v4898_v59, %v6216_v25  ;;  %v4244_v18 = vpop.f32.mrb[28].mxu1 }
 0x21c   : > { %3022 = vst [vmem:[%s6224_s20 + $0xc8] sm:$0xff] %v2990_v1  ;;  %v2989_v47 = vsel %vm2925_vm9, %v2893_v31, %v2957_v2  ;;  %v2895_v22 = vadd.f32 %v4899_v32, %v6216_v25  ;;  %v4564_v63 = vpop.f32.mrb[28].mxu0  ;;  %v1586_v35 = vpop.f32.mrb[29].mxu1 }
 0x21d   : > { %3021 = vst [vmem:[%s6224_s20 + $0xc0] sm:$0xff] %v2989_v47  ;;  %vm2928_vm10 = vcmp.gt.f32.partialorder %v2896_v58, 0.0  ;;  %v2960_v30 = vmul.f32 0.1, %v2896_v58  ;;  %v4900_v60 = vadd.f32 %v4564_v63, %v4244_v18  ;;  %v2811_v26 = vpop.f32.mrb[29].mxu0 }
 0x21e   : > { %vm2927_vm11 = vcmp.gt.f32.partialorder %v2895_v22, 0.0  ;;  %v2959_v27 = vmul.f32 0.1, %v2895_v22  ;;  %v4901_v33 = vadd.f32 %v2811_v26, %v1586_v35 }
 0x21f   : > { %v2992_v43 = vsel %vm2928_vm10, %v2896_v58, %v2960_v30  ;;  %v2898_v54 = vadd.f32 %v4900_v60, %v6216_v25  ;;  %v4247_v61 = vpop.f32.mrb[30].mxu1 }
 0x220   : > { %3024 = vst [vmem:[%s6224_s20 + $0xd8] sm:$0xff] %v2992_v43  ;;  %v2991_v4 = vsel %vm2927_vm11, %v2895_v22, %v2959_v27  ;;  %v2897_v10 = vadd.f32 %v4901_v33, %v6216_v25  ;;  %v4567_v53 = vpop.f32.mrb[30].mxu0  ;;  %v1596_v13 = vpop.f32.mrb[31].mxu1 }
 0x221   : > { %3023 = vst [vmem:[%s6224_s20 + $0xd0] sm:$0xff] %v2991_v4  ;;  %vm2930_vm12 = vcmp.gt.f32.partialorder %v2898_v54, 0.0  ;;  %v2962_v24 = vmul.f32 0.1, %v2898_v54  ;;  %v4902_v19 = vadd.f32 %v4567_v53, %v4247_v61  ;;  %v2821_v7 = vpop.f32.mrb[31].mxu0 }
 0x222   : > { %vm2929_vm13 = vcmp.gt.f32.partialorder %v2897_v10, 0.0  ;;  %v2961_v34 = vmul.f32 0.1, %v2897_v10  ;;  %v4903_v9 = vadd.f32 %v2821_v7, %v1596_v13 }
 0x223   : > { %v2994_v49 = vsel %vm2930_vm12, %v2898_v54, %v2962_v24  ;;  %v2900_v37 = vadd.f32 %v4902_v19, %v6216_v25 }
 0x224   : > { %3026 = vst [vmem:[%s6224_s20 + $0xe8] sm:$0xff] %v2994_v49  ;;  %v2993_v38 = vsel %vm2929_vm13, %v2897_v10, %v2961_v34  ;;  %v2899_v23 = vadd.f32 %v4903_v9, %v6216_v25 }
 0x225   : > { %3025 = vst [vmem:[%s6224_s20 + $0xe0] sm:$0xff] %v2993_v38  ;;  %vm2932_vm14 = vcmp.gt.f32.partialorder %v2900_v37, 0.0  ;;  %v2964_v40 = vmul.f32 0.1, %v2900_v37 }
 0x226   : > { %vm2931_vm15 = vcmp.gt.f32.partialorder %v2899_v23, 0.0  ;;  %v2963_v42 = vmul.f32 0.1, %v2899_v23 }
 0x227   : > { %v2996_v46 = vsel %vm2932_vm14, %v2900_v37, %v2964_v40 }
 0x228   : > { %3028 = vst [vmem:[%s6224_s20 + $0xf8] sm:$0xff] %v2996_v46  ;;  %v2995_v48 = vsel %vm2931_vm15, %v2899_v23, %v2963_v42 }
 0x229   : > { %3027 = vst [vmem:[%s6224_s20 + $0xf0] sm:$0xff] %v2995_v48 }
 0x22a PF: > { %s13_s12 = sadd.s32 1, %s5143_s12  }
 0x22b   : > { %p10_p4 = scmp.ge.s32.totalorder %s13_s12, 4  }
 0x22d   :  { %12 = sbr.rel (!%p10_p4) target bundleno = 1 (0x1), region = 72 }

// kernel: _run.9
= control target key start
LH: loop header
LB: loop body
LE: loop exit
PB: predicated region body
PF: predicated region fallthrough
CT: control target
= control target key end

     0   :  { %s2716_s12 = smov 0   ;;  %s3319_s0 = inlined_call_operand.vmem [shape: f32[2,4,9,9,128], index: 0, kind: input, shape index: {}]   ;;  %s3320_s1 = inlined_call_operand.vmem [shape: f32[9,128,128], index: 1, kind: input, shape index: {}]   ;;  %s3321_s2 = inlined_call_operand.vmem [shape: f32[1,128], index: 2, kind: input, shape index: {}]   ;;  %s3322_s3 = inlined_call_operand.vmem [shape: f32[2,8,8,128], index: 3, kind: output, shape index: {}]  }
   0x1 LB: > { %s1503_s13 = sadd.s32 4294967295, %s2694_s12   ;;  %p1507_p0 = scmp.ge.s32.totalorder %s2694_s12, 1  ;;  %s2694_s12 = sphi %s2716_s12, %s13_s12  }
   0x2   : > { %p137_p1 = scmp.lt.s32.totalorder %s2694_s12, 3 }
   0x4   : > { %p138_p2 = pnand %p1507_p0, %p137_p1 }
   0x5   : > { %v1519_v0 = vld [vmem:[%s3320_s1 + $0x80] sm:$0xff] (!%p138_p2)  ;;  %v1520_v1 = vld [vmem:[%s3320_s1 + $0x88] sm:$0xff] (!%p138_p2)  ;;  %p161_p3 = scmp.lt.s32.totalorder (!%p138_p2), %s1503_s13, 1  ;;  %v1521_v5 = vld [vmem:[%s3320_s1 + $0x90] sm:$0xff] (!%p138_p2) }
   0x6   : > { %141 = sbr.rel (%p138_p2) target bundleno = 396 (0x18c), region = 32  ;;  %v1583_v2 = vld [vmem:[%s3320_s1 + $0x200] sm:$0xff] (!%p138_p2)  ;;  %v2311_v3 = vpack.c.bf16 (!%p138_p2), %v1520_v1, %v1519_v0  ;;  %v1584_v4 = vld [vmem:[%s3320_s1 + $0x208] sm:$0xff] (!%p138_p2)  ;;  %v1522_v6 = vld [vmem:[%s3320_s1 + $0x98] sm:$0xff] (!%p138_p2) }
   0x7   : > { %v2439_v7 = vpack.c.bf16 (!%p138_p2), %v1584_v4, %v1583_v2  ;;  %v2315_v8 = vpack.c.bf16 (!%p138_p2), %v1522_v6, %v1521_v5  ;;  %v1585_v9 = vld [vmem:[%s3320_s1 + $0x210] sm:$0xff] (!%p138_p2)  ;;  %v1586_v10 = vld [vmem:[%s3320_s1 + $0x218] sm:$0xff] (!%p138_p2)  ;;  %v1523_v11 = vld [vmem:[%s3320_s1 + $0xa0] sm:$0xff] (!%p138_p2) }
   0x8   : > { %2312 = vmatprep.subr.bf16.mxu1 (!%p138_p2), %v2311_v3  ;;  %v2443_v12 = vpack.c.bf16 (!%p138_p2), %v1586_v10, %v1585_v9  ;;  %v1524_v13 = vld [vmem:[%s3320_s1 + $0xa8] sm:$0xff] (!%p138_p2)  ;;  %v1587_v14 = vld [vmem:[%s3320_s1 + $0x220] sm:$0xff] (!%p138_p2)  ;;  %v1525_v18 = vld [vmem:[%s3320_s1 + $0xb0] sm:$0xff] (!%p138_p2) }
   0x9   : > { %v1588_v15 = vld [vmem:[%s3320_s1 + $0x228] sm:$0xff] (!%p138_p2)  ;;  %2440 = vmatprep.subr.bf16.mxu0 (!%p138_p2), %v2439_v7  ;;  %2314 = vmatpush3.bf16.msra.mxu1 (!%p138_p2), %v2311_v3  ;;  %v2319_v16 = vpack.c.bf16 (!%p138_p2), %v1524_v13, %v1523_v11  ;;  %v1526_v19 = vld [vmem:[%s3320_s1 + $0xb8] sm:$0xff] (!%p138_p2)  ;;  %v1589_v20 = vld [vmem:[%s3320_s1 + $0x230] sm:$0xff] (!%p138_p2) }
   0xa   : > { %2442 = vmatpush3.bf16.msra.mxu0 (!%p138_p2), %v2439_v7  ;;  %2316 = vmatprep.subr.bf16.mxu1 (!%p138_p2), %v2315_v8  ;;  %v2447_v17 = vpack.c.bf16 (!%p138_p2), %v1588_v15, %v1587_v14  ;;  %v1590_v21 = vld [vmem:[%s3320_s1 + $0x238] sm:$0xff] (!%p138_p2)  ;;  %v2323_v22 = vpack.c.bf16 (!%p138_p2), %v1526_v19, %v1525_v18  ;;  %v1527_v24 = vld [vmem:[%s3320_s1 + $0xc0] sm:$0xff] (!%p138_p2)  ;;  %v1528_v25 = vld [vmem:[%s3320_s1 + $0xc8] sm:$0xff] (!%p138_p2) }
   0xb   : > { %2444 = vmatprep.subr.bf16.mxu0 (!%p138_p2), %v2443_v12  ;;  %v2451_v23 = vpack.c.bf16 (!%p138_p2), %v1590_v21, %v1589_v20  ;;  %v1591_v27 = vld [vmem:[%s3320_s1 + $0x240] sm:$0xff] (!%p138_p2)  ;;  %v1592_v28 = vld [vmem:[%s3320_s1 + $0x248] sm:$0xff] (!%p138_p2)  ;;  %v2327_v30 = vpack.c.bf16 (!%p138_p2), %v1528_v25, %v1527_v24  ;;  %v1529_v32 = vld [vmem:[%s3320_s1 + $0xd0] sm:$0xff] (!%p138_p2) }
   0xc   : > { %v2455_v31 = vpack.c.bf16 (!%p138_p2), %v1592_v28, %v1591_v27  ;;  %v1530_v33 = vld [vmem:[%s3320_s1 + $0xd8] sm:$0xff] (!%p138_p2)  ;;  %v1593_v34 = vld [vmem:[%s3320_s1 + $0x250] sm:$0xff] (!%p138_p2)  ;;  %v1531_v38 = vld [vmem:[%s3320_s1 + $0xe0] sm:$0xff] (!%p138_p2) }
   0xd   : > { %s3324_s13 = smov (!%p161_p3, %s1503_s13), 1  ;;  %2318 = vmatpush3.bf16.msra.mxu1 %v2315_v8  ;;  %v1594_v35 = vld [vmem:[%s3320_s1 + $0x258] sm:$0xff]  ;;  %v2331_v36 = vpack.c.bf16 %v1530_v33, %v1529_v32  ;;  %v1532_v39 = vld [vmem:[%s3320_s1 + $0xe8] sm:$0xff]  ;;  %v1595_v40 = vld [vmem:[%s3320_s1 + $0x260] sm:$0xff] }
   0xe   : > { %s2679_s11 = smul.u32 576, %s3324_s13  ;;  %2446 = vmatpush3.bf16.msra.mxu0 %v2443_v12  ;;  %2320 = vmatprep.subr.bf16.mxu1 %v2319_v16  ;;  %v2459_v37 = vpack.c.bf16 %v1594_v35, %v1593_v34  ;;  %v1596_v41 = vld [vmem:[%s3320_s1 + $0x268] sm:$0xff]  ;;  %v2335_v42 = vpack.c.bf16 %v1532_v39, %v1531_v38  ;;  %v1533_v44 = vld [vmem:[%s3320_s1 + $0xf0] sm:$0xff]  ;;  %v1534_v45 = vld [vmem:[%s3320_s1 + $0xf8] sm:$0xff]  ;;  %s1698_s17 = sshll.u32 %s3324_s13, 6 }
   0xf   : > { %2448 = vmatprep.subr.bf16.mxu0 %v2447_v17  ;;  %v2463_v43 = vpack.c.bf16 %v1596_v41, %v1595_v40  ;;  %v1597_v46 = vld [vmem:[%s3320_s1 + $0x270] sm:$0xff]  ;;  %v1598_v47 = vld [vmem:[%s3320_s1 + $0x278] sm:$0xff]  ;;  %v2339_v48 = vpack.c.bf16 %v1534_v45, %v1533_v44  ;;  %v179_v50 = vld [vmem:[%s3320_s1] sm:$0xff]  ;;  %s3306_s20 = scalar_lea.vmem %s3322_s3, %s1698_s17 }
  0x10   : > { %s2778_s24 = scalar_lea.vmem %s3319_s0, %s2679_s11  ;;  %v2467_v49 = vpack.c.bf16 %v1598_v47, %v1597_v46  ;;  %v180_v51 = vld [vmem:[%s3320_s1 + $0x8] sm:$0xff]  ;;  %v1607_v52 = vld [vmem:[%s3320_s1 + $0x280] sm:$0xff]  ;;  %v181_v56 = vld [vmem:[%s3320_s1 + $0x10] sm:$0xff] }
  0x11   : > { %v1511_v26 = vld [vmem:[%s2778_s24 + $0x90] sm:$0xff]  ;;  %2322 = vmatpush3.bf16.msra.mxu1 %v2319_v16  ;;  %v1608_v53 = vld [vmem:[%s3320_s1 + $0x288] sm:$0xff]  ;;  %v2343_v54 = vpack.c.bf16 %v180_v51, %v179_v50  ;;  %v182_v57 = vld [vmem:[%s3320_s1 + $0x18] sm:$0xff] }
  0x12   : > { %1947 = vmatprep.mubr.f32.mxu1 %v1511_v26  ;;  %v1575_v29 = vld [vmem:[%s2778_s24 + $0x1b0] sm:$0xff]  ;;  %2450 = vmatpush3.bf16.msra.mxu0 %v2447_v17  ;;  %v2471_v55 = vpack.c.bf16 %v1608_v53, %v1607_v52  ;;  %v1610_v59 = vld [vmem:[%s3320_s1 + $0x298] sm:$0xff]  ;;  %v2855_v60 = vld [vmem:[%s2778_s24 + $0xa0] sm:$0xff]  ;;  %v2347_v62 = vpack.c.bf16 %v182_v57, %v181_v56 }
  0x13   : > { %2123 = vmatprep.mubr.f32.mxu0 %v1575_v29  ;;  %2324 = vmatprep.subr.bf16.mxu1 %v2323_v22  ;;  %v1609_v58 = vld [vmem:[%s3320_s1 + $0x290] sm:$0xff]  ;;  %v1576_v61 = vld [vmem:[%s2778_s24 + $0x1c0] sm:$0xff]  ;;  %v184_v1 = vld [vmem:[%s3320_s1 + $0x28] sm:$0xff] }
  0x14   : > { %2452 = vmatprep.subr.bf16.mxu0 %v2451_v23  ;;  %v2475_v63 = vpack.c.bf16 %v1610_v59, %v1609_v58  ;;  %v183_v0 = vld [vmem:[%s3320_s1 + $0x20] sm:$0xff]  ;;  %v1612_v3 = vld [vmem:[%s3320_s1 + $0x2a8] sm:$0xff]  ;;  %v2872_v4 = vld [vmem:[%s2778_s24 + $0xb0] sm:$0xff] }
  0x15   : > { %2326 = vmatpush3.bf16.msra.mxu1 %v2323_v22  ;;  %v1611_v2 = vld [vmem:[%s3320_s1 + $0x2a0] sm:$0xff]  ;;  %v1577_v5 = vld [vmem:[%s2778_s24 + $0x1d0] sm:$0xff]  ;;  %v2351_v7 = vpack.c.bf16 %v184_v1, %v183_v0  ;;  %v186_v11 = vld [vmem:[%s3320_s1 + $0x38] sm:$0xff] }
  0x16   : > { %2454 = vmatpush3.bf16.msra.mxu0 %v2451_v23  ;;  %2328 = vmatprep.subr.bf16.mxu1 %v2327_v30  ;;  %v2876_v6 = vld [vmem:[%s2778_s24 + $0xc0] sm:$0xff]  ;;  %v2479_v9 = vpack.c.bf16 %v1612_v3, %v1611_v2  ;;  %v185_v10 = vld [vmem:[%s3320_s1 + $0x30] sm:$0xff]  ;;  %v1614_v13 = vld [vmem:[%s3320_s1 + $0x2b8] sm:$0xff] }
  0x17   : > { %2456 = vmatprep.subr.bf16.mxu0 %v2455_v31  ;;  %v1578_v8 = vld [vmem:[%s2778_s24 + $0x1e0] sm:$0xff]  ;;  %v1613_v12 = vld [vmem:[%s3320_s1 + $0x2b0] sm:$0xff]  ;;  %v2355_v17 = vpack.c.bf16 %v186_v11, %v185_v10  ;;  %v188_v21 = vld [vmem:[%s3320_s1 + $0x48] sm:$0xff] }
  0x18   : > { %v2894_v14 = vld [vmem:[%s2778_s24 + $0xd0] sm:$0xff]  ;;  %v2898_v16 = vld [vmem:[%s2778_s24 + $0xe0] sm:$0xff]  ;;  %v2483_v19 = vpack.c.bf16 %v1614_v13, %v1613_v12  ;;  %v1616_v23 = vld [vmem:[%s3320_s1 + $0x2c8] sm:$0xff] }
  0x19   : > { %2330 = vmatpush3.bf16.msra.mxu1 %v2327_v30  ;;  %v1579_v15 = vld [vmem:[%s2778_s24 + $0x1f0] sm:$0xff]  ;;  %v1580_v18 = vld [vmem:[%s2778_s24 + $0x200] sm:$0xff]  ;;  %v1618_v33 = vld [vmem:[%s3320_s1 + $0x2d8] sm:$0xff] }
  0x1a   : > { %2458 = vmatpush3.bf16.msra.mxu0 %v2455_v31  ;;  %2332 = vmatprep.subr.bf16.mxu1 %v2331_v36  ;;  %v187_v20 = vld [vmem:[%s3320_s1 + $0x40] sm:$0xff]  ;;  %v2916_v24 = vld [vmem:[%s2778_s24 + $0xf0] sm:$0xff]  ;;  %v190_v31 = vld [vmem:[%s3320_s1 + $0x58] sm:$0xff] }
  0x1b   : > { %2460 = vmatprep.subr.bf16.mxu0 %v2459_v37  ;;  %v1615_v22 = vld [vmem:[%s3320_s1 + $0x2c0] sm:$0xff]  ;;  %v1581_v25 = vld [vmem:[%s2778_s24 + $0x210] sm:$0xff]  ;;  %v2359_v27 = vpack.c.bf16 %v188_v21, %v187_v20  ;;  %v192_v39 = vld [vmem:[%s3320_s1 + $0x68] sm:$0xff] }
  0x1c   : > { %v2920_v26 = vld [vmem:[%s2778_s24 + $0x100] sm:$0xff]  ;;  %v2487_v29 = vpack.c.bf16 %v1616_v23, %v1615_v22  ;;  %v189_v30 = vld [vmem:[%s3320_s1 + $0x50] sm:$0xff]  ;;  %v1620_v41 = vld [vmem:[%s3320_s1 + $0x2e8] sm:$0xff] }
  0x1d   : > { %2334 = vmatpush3.bf16.msra.mxu1 %v2331_v36  ;;  %v1582_v28 = vld [vmem:[%s2778_s24 + $0x220] sm:$0xff]  ;;  %v1617_v32 = vld [vmem:[%s3320_s1 + $0x2d0] sm:$0xff]  ;;  %v2363_v36 = vpack.c.bf16 %v190_v31, %v189_v30  ;;  %v194_v45 = vld [vmem:[%s3320_s1 + $0x78] sm:$0xff] }
  0x1e   : > { %2462 = vmatpush3.bf16.msra.mxu0 %v2459_v37  ;;  %2336 = vmatprep.subr.bf16.mxu1 %v2335_v42  ;;  %v171_v34 = vld [vmem:[%s2778_s24] sm:$0xff]  ;;  %v2491_v37 = vpack.c.bf16 %v1618_v33, %v1617_v32  ;;  %v193_v44 = vld [vmem:[%s3320_s1 + $0x70] sm:$0xff]  ;;  %v1622_v47 = vld [vmem:[%s3320_s1 + $0x2f8] sm:$0xff] }
  0x1f   : > { %2464 = vmatprep.subr.bf16.mxu0 %v2463_v43  ;;  %v1599_v35 = vld [vmem:[%s2778_s24 + $0x121] sm:$0xff]  ;;  %v1621_v46 = vld [vmem:[%s3320_s1 + $0x2f0] sm:$0xff]  ;;  %v1538_v57 = vld [vmem:[%s3320_s1 + $0x118] sm:$0xff] }
  0x20   : > { %v191_v38 = vld [vmem:[%s3320_s1 + $0x60] sm:$0xff]  ;;  %v1536_v51 = vld [vmem:[%s3320_s1 + $0x108] sm:$0xff]  ;;  %v1537_v56 = vld [vmem:[%s3320_s1 + $0x110] sm:$0xff] }
  0x21   : > { %2338 = vmatpush3.bf16.msra.mxu1 %v2335_v42  ;;  %v1619_v40 = vld [vmem:[%s3320_s1 + $0x2e0] sm:$0xff]  ;;  %v2367_v42 = vpack.c.bf16 %v192_v39, %v191_v38  ;;  %v1632_v53 = vld [vmem:[%s3320_s1 + $0x308] sm:$0xff]  ;;  %v1633_v58 = vld [vmem:[%s3320_s1 + $0x310] sm:$0xff] }
  0x22   : > { %2466 = vmatpush3.bf16.msra.mxu0 %v2463_v43  ;;  %2340 = vmatprep.subr.bf16.mxu1 %v2339_v48  ;;  %v2495_v43 = vpack.c.bf16 %v1620_v41, %v1619_v40  ;;  %v1535_v50 = vld [vmem:[%s3320_s1 + $0x100] sm:$0xff]  ;;  %v1634_v59 = vld [vmem:[%s3320_s1 + $0x318] sm:$0xff]  ;;  %v1540_v2 = vld [vmem:[%s3320_s1 + $0x128] sm:$0xff] }
  0x23   : > { %2468 = vmatprep.subr.bf16.mxu0 %v2467_v49  ;;  %v1631_v52 = vld [vmem:[%s3320_s1 + $0x300] sm:$0xff]  ;;  %v2507_v0 = vpack.c.bf16 %v1634_v59, %v1633_v58  ;;  %v1602_v11 = vld [vmem:[%s2778_s24 + $0x151] sm:$0xff]  ;;  %v1640_v30 = vld [vmem:[%s3320_s1 + $0x348] sm:$0xff] }
  0x24   : > { %v1539_v1 = vld [vmem:[%s3320_s1 + $0x120] sm:$0xff]  ;;  %v1541_v13 = vld [vmem:[%s3320_s1 + $0x130] sm:$0xff]  ;;  %v1546_v38 = vld [vmem:[%s3320_s1 + $0x158] sm:$0xff] }
  0x25   : > { %2342 = vmatpush3.bf16.msra.mxu1 %v2339_v48  ;;  %v2371_v48 = vpack.c.bf16 %v194_v45, %v193_v44  ;;  %v1635_v3 = vld [vmem:[%s3320_s1 + $0x320] sm:$0xff]  ;;  %v2383_v10 = vpack.c.bf16 %v1540_v2, %v1539_v1  ;;  %v3031_v21 = vld [vmem:[%s2778_s24 + $0x50] sm:$0xff]  ;;  %v1642_v40 = vld [vmem:[%s3320_s1 + $0x358] sm:$0xff] }
  0x26   : > { %2470 = vmatpush3.bf16.msra.mxu0 %v2467_v49  ;;  %2344 = vmatprep.subr.bf16.mxu1 %v2343_v54  ;;  %v2499_v49 = vpack.c.bf16 %v1622_v47, %v1621_v46  ;;  %v1603_v20 = vld [vmem:[%s2778_s24 + $0x161] sm:$0xff]  ;;  %v1604_v23 = vld [vmem:[%s2778_s24 + $0x171] sm:$0xff] }
  0x27   : > { %2472 = vmatprep.subr.bf16.mxu0 %v2471_v55  ;;  %v3049_v31 = vld [vmem:[%s2778_s24 + $0x60] sm:$0xff]  ;;  %v3053_v33 = vld [vmem:[%s2778_s24 + $0x70] sm:$0xff]  ;;  %v1548_v45 = vld [vmem:[%s3320_s1 + $0x168] sm:$0xff] }
  0x28   : > { %1948 = vmatmul.mubr.f32.vlgmr.msra.gmra.mrb[0].mxu1 %v2855_v60  ;;  %v1605_v32 = vld [vmem:[%s2778_s24 + $0x181] sm:$0xff]  ;;  %v1641_v39 = vld [vmem:[%s3320_s1 + $0x350] sm:$0xff]  ;;  %v1658_v2 = vld [vmem:[%s3320_s1 + $0x398] sm:$0xff] }
  0x29   : > { %2346 = vmatpush3.bf16.msra.mxu1 %v2343_v54  ;;  %2124 = vmatmul.mubr.f32.vlgmr.msra.gmra.mrb[0].mxu0 %v1576_v61  ;;  %v2375_v54 = vpack.c.bf16 %v1536_v51, %v1535_v50  ;;  %v2988_v61 = vld [vmem:[%s2778_s24 + $0x10] sm:$0xff]  ;;  %v431_v41 = vld [vmem:[%s2778_s24 + $0x1] sm:$0xff]  ;;  %v1550_v51 = vld [vmem:[%s3320_s1 + $0x178] sm:$0xff] }
  0x2a   : > { %2474 = vmatpush3.bf16.msra.mxu0 %v2471_v55  ;;  %2348 = vmatprep.subr.bf16.mxu1 %v2347_v62  ;;  %v2503_v55 = vpack.c.bf16 %v1632_v53, %v1631_v52  ;;  %v1547_v44 = vld [vmem:[%s3320_s1 + $0x160] sm:$0xff]  ;;  %v1644_v47 = vld [vmem:[%s3320_s1 + $0x368] sm:$0xff]  ;;  %v1549_v50 = vld [vmem:[%s3320_s1 + $0x170] sm:$0xff] }
  0x2b   : > { %2476 = vmatprep.subr.bf16.mxu0 %v2475_v63  ;;  %1950 = vmatprep.mubr.f32.mxu1 %v2872_v4  ;;  %v1643_v46 = vld [vmem:[%s3320_s1 + $0x360] sm:$0xff]  ;;  %v1645_v52 = vld [vmem:[%s3320_s1 + $0x370] sm:$0xff]  ;;  %v1646_v53 = vld [vmem:[%s3320_s1 + $0x378] sm:$0xff] }
  0x2c   : > { %2126 = vmatprep.mubr.f32.mxu0 %v1577_v5  ;;  %1951 = vmatmul.mubr.f32.gmra.mrb[2].mxu1 %v2876_v6  ;;  %v1636_v5 = vld [vmem:[%s3320_s1 + $0x328] sm:$0xff]  ;;  %v1655_v58 = vld [vmem:[%s3320_s1 + $0x380] sm:$0xff]  ;;  %v1657_v1 = vld [vmem:[%s3320_s1 + $0x390] sm:$0xff] }
  0x2d   : > { %2350 = vmatpush3.bf16.msra.mxu1 %v2347_v62  ;;  %2127 = vmatmul.mubr.f32.gmra.mrb[2].mxu0 %v1578_v8  ;;  %v1600_v62 = vld [vmem:[%s2778_s24 + $0x131] sm:$0xff]  ;;  %v1601_v8 = vld [vmem:[%s2778_s24 + $0x141] sm:$0xff]  ;;  %v2511_v12 = vpack.c.bf16 %v1636_v5, %v1635_v3 }
  0x2e   : > { %2478 = vmatpush3.bf16.msra.mxu0 %v2475_v63  ;;  %2352 = vmatprep.subr.bf16.mxu1 %v2351_v7  ;;  %v2379_v63 = vpack.c.bf16 %v1538_v57, %v1537_v56  ;;  %v1559_v56 = vld [vmem:[%s3320_s1 + $0x180] sm:$0xff]  ;;  %v1560_v57 = vld [vmem:[%s3320_s1 + $0x188] sm:$0xff]  ;;  %v3121_v3 = vld [vmem:[%s2778_s24 + $0x11] sm:$0xff] }
  0x2f   : > { %2480 = vmatprep.subr.bf16.mxu0 %v2479_v9  ;;  %1953 = vmatprep.mubr.f32.mxu1 %v2894_v14  ;;  %v1656_v59 = vld [vmem:[%s3320_s1 + $0x388] sm:$0xff] }
  0x30   : > { %2129 = vmatprep.mubr.f32.mxu0 %v1579_v15  ;;  %1954 = vmatmul.mubr.f32.gmra.mrb[4].mxu1 %v2898_v16  ;;  %v1542_v15 = vld [vmem:[%s3320_s1 + $0x138] sm:$0xff] }
  0x31   : > { %2354 = vmatpush3.bf16.msra.mxu1 %v2351_v7  ;;  %2130 = vmatmul.mubr.f32.gmra.mrb[4].mxu0 %v1580_v18  ;;  %v3005_v7 = vld [vmem:[%s2778_s24 + $0x20] sm:$0xff]  ;;  %v1638_v18 = vld [vmem:[%s3320_s1 + $0x338] sm:$0xff]  ;;  %v2387_v22 = vpack.c.bf16 %v1542_v15, %v1541_v13  ;;  %v1660_v13 = vld [vmem:[%s3320_s1 + $0x3a8] sm:$0xff] }
  0x32   : > { %2482 = vmatpush3.bf16.msra.mxu0 %v2479_v9  ;;  %2356 = vmatprep.subr.bf16.mxu1 %v2355_v17  ;;  %v3009_v9 = vld [vmem:[%s2778_s24 + $0x30] sm:$0xff]  ;;  %v3137_v15 = vld [vmem:[%s2778_s24 + $0x21] sm:$0xff] }
  0x33   : > { %2484 = vmatprep.subr.bf16.mxu0 %v2483_v19  ;;  %1956 = vmatprep.mubr.f32.mxu1 %v2916_v24 }
  0x34   : > { %2132 = vmatprep.mubr.f32.mxu0 %v1581_v25  ;;  %1957 = vmatmul.mubr.f32.gmra.mrb[6].mxu1 %v2920_v26 }
  0x35   : > { %2358 = vmatpush3.bf16.msra.mxu1 %v2355_v17  ;;  %2133 = vmatmul.mubr.f32.gmra.mrb[6].mxu0 %v1582_v28  ;;  %v1637_v17 = vld [vmem:[%s3320_s1 + $0x330] sm:$0xff]  ;;  %v1544_v28 = vld [vmem:[%s3320_s1 + $0x148] sm:$0xff] }
  0x36   : > { %2486 = vmatpush3.bf16.msra.mxu0 %v2483_v19  ;;  %2360 = vmatprep.subr.bf16.mxu1 %v2359_v27  ;;  %v3027_v19 = vld [vmem:[%s2778_s24 + $0x40] sm:$0xff]  ;;  %v2515_v25 = vpack.c.bf16 %v1638_v18, %v1637_v17  ;;  %v3141_v17 = vld [vmem:[%s2778_s24 + $0x31] sm:$0xff] }
  0x37   : > { %2488 = vmatprep.subr.bf16.mxu0 %v2487_v29  ;;  %1991 = vmatprep.mubr.f32.mxu1 %v171_v34 }
  0x38   : > { %2167 = vmatprep.mubr.f32.mxu0 %v1599_v35  ;;  %v1606_v35 = vld [vmem:[%s2778_s24 + $0x191] sm:$0xff] }
  0x39   : > { %2362 = vmatpush3.bf16.msra.mxu1 %v2359_v27  ;;  %v1543_v27 = vld [vmem:[%s3320_s1 + $0x140] sm:$0xff] }
  0x3a   : > { %2490 = vmatpush3.bf16.msra.mxu0 %v2487_v29  ;;  %2364 = vmatprep.subr.bf16.mxu1 %v2363_v36  ;;  %v1639_v29 = vld [vmem:[%s3320_s1 + $0x340] sm:$0xff]  ;;  %v2391_v34 = vpack.c.bf16 %v1544_v28, %v1543_v27  ;;  %v3163_v28 = vld [vmem:[%s2778_s24 + $0x51] sm:$0xff] }
  0x3b   : > { %2492 = vmatprep.subr.bf16.mxu0 %v2491_v37  ;;  %v3159_v27 = vld [vmem:[%s2778_s24 + $0x41] sm:$0xff] }
  0x3d   : > { %2366 = vmatpush3.bf16.msra.mxu1 %v2363_v36  ;;  %v2519_v36 = vpack.c.bf16 %v1640_v30, %v1639_v29 }
  0x3e   : > { %2494 = vmatpush3.bf16.msra.mxu0 %v2491_v37  ;;  %2368 = vmatprep.subr.bf16.mxu1 %v2367_v42  ;;  %v1545_v37 = vld [vmem:[%s3320_s1 + $0x150] sm:$0xff] }
  0x3f   : > { %2496 = vmatprep.subr.bf16.mxu0 %v2495_v43 }
  0x41   : > { %2370 = vmatpush3.bf16.msra.mxu1 %v2367_v42  ;;  %v2395_v42 = vpack.c.bf16 %v1546_v38, %v1545_v37  ;;  %v1630_v38 = vld [vmem:[%s2778_s24 + $0x80] sm:$0xff] }
  0x42   : > { %2498 = vmatpush3.bf16.msra.mxu0 %v2495_v43  ;;  %2372 = vmatprep.subr.bf16.mxu1 %v2371_v48  ;;  %v2523_v43 = vpack.c.bf16 %v1642_v40, %v1641_v39  ;;  %v1570_v40 = vld [vmem:[%s3320_s1 + $0x1d8] sm:$0xff] }
  0x43   : > { %2500 = vmatprep.subr.bf16.mxu0 %v2499_v49 }
  0x45   : > { %2374 = vmatpush3.bf16.msra.mxu1 %v2371_v48  ;;  %v2399_v48 = vpack.c.bf16 %v1548_v45, %v1547_v44  ;;  %v1571_v45 = vld [vmem:[%s3320_s1 + $0x1e0] sm:$0xff] }
  0x46   : > { %2502 = vmatpush3.bf16.msra.mxu0 %v2499_v49  ;;  %2376 = vmatprep.subr.bf16.mxu1 %v2375_v54  ;;  %v2527_v49 = vpack.c.bf16 %v1644_v47, %v1643_v46  ;;  %v1572_v46 = vld [vmem:[%s3320_s1 + $0x1e8] sm:$0xff] }
  0x47   : > { %2504 = vmatprep.subr.bf16.mxu0 %v2503_v55  ;;  %v1668_v47 = vld [vmem:[%s3320_s1 + $0x3e8] sm:$0xff] }
  0x48   : > { %1992 = vmatmul.mubr.f32.vlgmr.msra.gmra.mrb[0].mxu1 %v2988_v61 }
  0x49   : > { %2378 = vmatpush3.bf16.msra.mxu1 %v2375_v54  ;;  %2168 = vmatmul.mubr.f32.vlgmr.msra.gmra.mrb[0].mxu0 %v1600_v62  ;;  %v2403_v54 = vpack.c.bf16 %v1550_v51, %v1549_v50  ;;  %v2535_v62 = vpack.c.bf16 %v1656_v59, %v1655_v58  ;;  %v1573_v50 = vld [vmem:[%s3320_s1 + $0x1f0] sm:$0xff]  ;;  %v1574_v51 = vld [vmem:[%s3320_s1 + $0x1f8] sm:$0xff] }
  0x4a   : > { %2506 = vmatpush3.bf16.msra.mxu0 %v2503_v55  ;;  %2380 = vmatprep.subr.bf16.mxu1 %v2379_v63  ;;  %v2531_v55 = vpack.c.bf16 %v1646_v53, %v1645_v52  ;;  %v1669_v52 = vld [vmem:[%s3320_s1 + $0x3f0] sm:$0xff]  ;;  %v2435_v53 = vpack.c.bf16 %v1574_v51, %v1573_v50  ;;  %v1682_v59 = vld [vmem:[%s3320_s1 + $0x418] sm:$0xff] }
  0x4b   : > { %2508 = vmatprep.subr.bf16.mxu0 %v2507_v0  ;;  %1994 = vmatprep.mubr.f32.mxu1 %v3005_v7  ;;  %v1681_v58 = vld [vmem:[%s3320_s1 + $0x410] sm:$0xff] }
  0x4c   : > { %2170 = vmatprep.mubr.f32.mxu0 %v1601_v8  ;;  %1995 = vmatmul.mubr.f32.gmra.mrb[2].mxu1 %v3009_v9  ;;  %v2539_v8 = vpack.c.bf16 %v1658_v2, %v1657_v1  ;;  %v1684_v1 = vld [vmem:[%s3320_s1 + $0x428] sm:$0xff]  ;;  %v1554_v2 = vld [vmem:[%s2778_s24 + $0x150] sm:$0xff] }
  0x4d   : > { %2382 = vmatpush3.bf16.msra.mxu1 %v2379_v63  ;;  %2171 = vmatmul.mubr.f32.gmra.mrb[2].mxu0 %v1602_v11  ;;  %v1561_v63 = vld [vmem:[%s3320_s1 + $0x190] sm:$0xff]  ;;  %v1564_v11 = vld [vmem:[%s3320_s1 + $0x1a8] sm:$0xff] }
  0x4e   : > { %2510 = vmatpush3.bf16.msra.mxu0 %v2507_v0  ;;  %2384 = vmatprep.subr.bf16.mxu1 %v2383_v10  ;;  %v1562_v0 = vld [vmem:[%s3320_s1 + $0x198] sm:$0xff] }
  0x4f   : > { %2512 = vmatprep.subr.bf16.mxu0 %v2511_v12  ;;  %1997 = vmatprep.mubr.f32.mxu1 %v3027_v19  ;;  %v2411_v5 = vpack.c.bf16 %v1562_v0, %v1561_v63  ;;  %v2571_v63 = vpack.c.bf16 %v1682_v59, %v1681_v58  ;;  %v1683_v0 = vld [vmem:[%s3320_s1 + $0x420] sm:$0xff] }
  0x50   : > { %2173 = vmatprep.mubr.f32.mxu0 %v1603_v20  ;;  %1998 = vmatmul.mubr.f32.gmra.mrb[4].mxu1 %v3031_v21 }
  0x51   : > { %2386 = vmatpush3.bf16.msra.mxu1 %v2383_v10  ;;  %2174 = vmatmul.mubr.f32.gmra.mrb[4].mxu0 %v1604_v23  ;;  %v1563_v10 = vld [vmem:[%s3320_s1 + $0x1a0] sm:$0xff]  ;;  %v1566_v23 = vld [vmem:[%s3320_s1 + $0x1b8] sm:$0xff] }
  0x52   : > { %2514 = vmatpush3.bf16.msra.mxu0 %v2511_v12  ;;  %2388 = vmatprep.subr.bf16.mxu1 %v2387_v22  ;;  %v1659_v12 = vld [vmem:[%s3320_s1 + $0x3a0] sm:$0xff]  ;;  %v2415_v18 = vpack.c.bf16 %v1564_v11, %v1563_v10  ;;  %v1685_v10 = vld [vmem:[%s3320_s1 + $0x430] sm:$0xff] }
  0x53   : > { %2516 = vmatprep.subr.bf16.mxu0 %v2515_v25  ;;  %2000 = vmatprep.mubr.f32.mxu1 %v3049_v31  ;;  %v2543_v20 = vpack.c.bf16 %v1660_v13, %v1659_v12  ;;  %v1556_v11 = vld [vmem:[%s2778_s24 + $0x170] sm:$0xff]  ;;  %v1687_v13 = vld [vmem:[%s3320_s1 + $0x440] sm:$0xff] }
  0x54   : > { %2176 = vmatprep.mubr.f32.mxu0 %v1605_v32  ;;  %2001 = vmatmul.mubr.f32.gmra.mrb[6].mxu1 %v3053_v33  ;;  %v1568_v32 = vld [vmem:[%s3320_s1 + $0x1c8] sm:$0xff] }
  0x55   : > { %2390 = vmatpush3.bf16.msra.mxu1 %v2387_v22  ;;  %2177 = vmatmul.mubr.f32.gmra.mrb[6].mxu0 %v1606_v35  ;;  %v1565_v22 = vld [vmem:[%s3320_s1 + $0x1b0] sm:$0xff]  ;;  %v3181_v35 = vld [vmem:[%s2778_s24 + $0x61] sm:$0xff] }
  0x56   : > { %2518 = vmatpush3.bf16.msra.mxu0 %v2515_v25  ;;  %2392 = vmatprep.subr.bf16.mxu1 %v2391_v34  ;;  %v1662_v25 = vld [vmem:[%s3320_s1 + $0x3b8] sm:$0xff]  ;;  %v2419_v29 = vpack.c.bf16 %v1566_v23, %v1565_v22  ;;  %v1689_v22 = vld [vmem:[%s3320_s1 + $0x450] sm:$0xff] }
  0x57   : > { %2520 = vmatprep.subr.bf16.mxu0 %v2519_v36  ;;  %2035 = vmatprep.mubr.f32.mxu1 %v431_v41  ;;  %v1666_v41 = vld [vmem:[%s3320_s1 + $0x3d8] sm:$0xff] }
  0x58   : > { %2211 = vmatprep.mubr.f32.mxu0 %v2988_v61  ;;  %v2407_v61 = vpack.c.bf16 %v1560_v57, %v1559_v56  ;;  %v1680_v56 = vld [vmem:[%s3320_s1 + $0x408] sm:$0xff]  ;;  %v1690_v23 = vld [vmem:[%s3320_s1 + $0x458] sm:$0xff] }
  0x59   : > { %2394 = vmatpush3.bf16.msra.mxu1 %v2391_v34  ;;  %v1664_v34 = vld [vmem:[%s3320_s1 + $0x3c8] sm:$0xff] }
  0x5a   : > { %2522 = vmatpush3.bf16.msra.mxu0 %v2519_v36  ;;  %2396 = vmatprep.subr.bf16.mxu1 %v2395_v42  ;;  %v3185_v36 = vld [vmem:[%s2778_s24 + $0x71] sm:$0xff] }
  0x5b   : > { %2524 = vmatprep.subr.bf16.mxu0 %v2523_v43 }
  0x5d   : > { %2398 = vmatpush3.bf16.msra.mxu1 %v2395_v42  ;;  %v1551_v42 = vld [vmem:[%s2778_s24 + $0x120] sm:$0xff] }
  0x5e   : > { %2526 = vmatpush3.bf16.msra.mxu0 %v2523_v43  ;;  %2400 = vmatprep.subr.bf16.mxu1 %v2399_v48 }
  0x5f   : > { %2528 = vmatprep.subr.bf16.mxu0 %v2527_v49 }
  0x61   : > { %2402 = vmatpush3.bf16.msra.mxu1 %v2399_v48  ;;  %v2431_v48 = vpack.c.bf16 %v1572_v46, %v1571_v45 }
  0x62   : > { %2530 = vmatpush3.bf16.msra.mxu0 %v2527_v49  ;;  %2404 = vmatprep.subr.bf16.mxu1 %v2403_v54 }
  0x63   : > { %2532 = vmatprep.subr.bf16.mxu0 %v2531_v55 }
  0x65   : > { %2406 = vmatpush3.bf16.msra.mxu1 %v2403_v54 }
  0x66   : > { %2534 = vmatpush3.bf16.msra.mxu0 %v2531_v55  ;;  %2408 = vmatprep.subr.bf16.mxu1 %v2407_v61  ;;  %v1679_v55 = vld [vmem:[%s3320_s1 + $0x400] sm:$0xff] }
  0x67   : > { %2536 = vmatprep.subr.bf16.mxu0 %v2535_v62  ;;  %v2567_v57 = vpack.c.bf16 %v1680_v56, %v1679_v55 }
  0x68   : > { %2036 = vmatmul.mubr.f32.vlgmr.msra.gmra.mrb[0].mxu1 %v3121_v3 }
  0x69   : > { %2410 = vmatpush3.bf16.msra.mxu1 %v2407_v61  ;;  %2212 = vmatmul.mubr.f32.vlgmr.msra.gmra.mrb[0].mxu0 %v3005_v7  ;;  %v1661_v7 = vld [vmem:[%s3320_s1 + $0x3b0] sm:$0xff] }
  0x6a   : > { %2538 = vmatpush3.bf16.msra.mxu0 %v2535_v62  ;;  %2412 = vmatprep.subr.bf16.mxu1 %v2411_v5  ;;  %v2547_v30 = vpack.c.bf16 %v1662_v25, %v1661_v7  ;;  %v1552_v61 = vld [vmem:[%s2778_s24 + $0x130] sm:$0xff]  ;;  %v1553_v62 = vld [vmem:[%s2778_s24 + $0x140] sm:$0xff]  ;;  %v1692_v7 = vld [vmem:[%s3320_s1 + $0x468] sm:$0xff] }
  0x6b   : > { %2540 = vmatprep.subr.bf16.mxu0 %v2539_v8  ;;  %2038 = vmatprep.mubr.f32.mxu1 %v3137_v15 }
  0x6c   : > { %2214 = vmatprep.mubr.f32.mxu0 %v3009_v9  ;;  %2039 = vmatmul.mubr.f32.gmra.mrb[2].mxu1 %v3141_v17  ;;  %v1567_v9 = vld [vmem:[%s3320_s1 + $0x1c0] sm:$0xff] }
  0x6d   : > { %2414 = vmatpush3.bf16.msra.mxu1 %v2411_v5  ;;  %2215 = vmatmul.mubr.f32.gmra.mrb[2].mxu0 %v3027_v19  ;;  %v1663_v19 = vld [vmem:[%s3320_s1 + $0x3c0] sm:$0xff]  ;;  %v2423_v37 = vpack.c.bf16 %v1568_v32, %v1567_v9 }
  0x6e   : > { %2542 = vmatpush3.bf16.msra.mxu0 %v2539_v8  ;;  %2416 = vmatprep.subr.bf16.mxu1 %v2415_v18  ;;  %v2551_v39 = vpack.c.bf16 %v1664_v34, %v1663_v19  ;;  %v1555_v5 = vld [vmem:[%s2778_s24 + $0x160] sm:$0xff]  ;;  %v2575_v8 = vpack.c.bf16 %v1684_v1, %v1683_v0 }
  0x6f   : > { %2544 = vmatprep.subr.bf16.mxu0 %v2543_v20  ;;  %2041 = vmatprep.mubr.f32.mxu1 %v3159_v27 }
  0x70   : > { %2217 = vmatprep.mubr.f32.mxu0 %v3031_v21  ;;  %2042 = vmatmul.mubr.f32.gmra.mrb[4].mxu1 %v3163_v28  ;;  %v1569_v21 = vld [vmem:[%s3320_s1 + $0x1d0] sm:$0xff] }
  0x71   : > { %2418 = vmatpush3.bf16.msra.mxu1 %v2415_v18  ;;  %2218 = vmatmul.mubr.f32.gmra.mrb[4].mxu0 %v3049_v31  ;;  %v1665_v31 = vld [vmem:[%s3320_s1 + $0x3d0] sm:$0xff]  ;;  %v2427_v43 = vpack.c.bf16 %v1570_v40, %v1569_v21  ;;  %v1688_v18 = vld [vmem:[%s3320_s1 + $0x448] sm:$0xff] }
  0x72   : > { %2546 = vmatpush3.bf16.msra.mxu0 %v2543_v20  ;;  %2420 = vmatprep.subr.bf16.mxu1 %v2419_v29  ;;  %v2555_v44 = vpack.c.bf16 %v1666_v41, %v1665_v31  ;;  %v2583_v20 = vpack.c.bf16 %v1688_v18, %v1687_v13 }
  0x73   : > { %2548 = vmatprep.subr.bf16.mxu0 %v2547_v30  ;;  %2044 = vmatprep.mubr.f32.mxu1 %v3181_v35 }
  0x74   : > { %2220 = vmatprep.mubr.f32.mxu0 %v3053_v33  ;;  %2045 = vmatmul.mubr.f32.gmra.mrb[6].mxu1 %v3185_v36  ;;  %v1667_v33 = vld [vmem:[%s3320_s1 + $0x3e0] sm:$0xff] }
  0x75   : > { %2422 = vmatpush3.bf16.msra.mxu1 %v2419_v29  ;;  %2221 = vmatmul.mubr.f32.gmra.mrb[6].mxu0 %v1630_v38  ;;  %v2559_v49 = vpack.c.bf16 %v1668_v47, %v1667_v33  ;;  %v1693_v29 = vld [vmem:[%s3320_s1 + $0x470] sm:$0xff] }
  0x76   : > { %2550 = vmatpush3.bf16.msra.mxu0 %v2547_v30  ;;  %2424 = vmatprep.subr.bf16.mxu1 %v2423_v37  ;;  %v1694_v30 = vld [vmem:[%s3320_s1 + $0x478] sm:$0xff] }
  0x77   : > { %2552 = vmatprep.subr.bf16.mxu0 %v2551_v39  ;;  %2079 = vmatprep.mubr.f32.mxu1 %v1551_v42 }
  0x78   : > { %2255 = vmatprep.mubr.f32.mxu0 %v2855_v60  ;;  %v1670_v60 = vld [vmem:[%s3320_s1 + $0x3f8] sm:$0xff] }
  0x79   : > { %2426 = vmatpush3.bf16.msra.mxu1 %v2423_v37  ;;  %v2563_v54 = vpack.c.bf16 %v1670_v60, %v1669_v52 }
  0x7a   : > { %2554 = vmatpush3.bf16.msra.mxu0 %v2551_v39  ;;  %2428 = vmatprep.subr.bf16.mxu1 %v2427_v43 }
  0x7b   : > { %2556 = vmatprep.subr.bf16.mxu0 %v2555_v44 }
  0x7d   : > { %2430 = vmatpush3.bf16.msra.mxu1 %v2427_v43 }
  0x7e   : > { %2558 = vmatpush3.bf16.msra.mxu0 %v2555_v44  ;;  %2432 = vmatprep.subr.bf16.mxu1 %v2431_v48 }
  0x7f   : > { %2560 = vmatprep.subr.bf16.mxu0 %v2559_v49 }
  0x81   : > { %2434 = vmatpush3.bf16.msra.mxu1 %v2431_v48 }
  0x82   : > { %2562 = vmatpush3.bf16.msra.mxu0 %v2559_v49  ;;  %2436 = vmatprep.subr.bf16.mxu1 %v2435_v53 }
  0x83   : > { %2564 = vmatprep.subr.bf16.mxu0 %v2563_v54 }
  0x85   : > { %2438 = vmatpush3.bf16.msra.mxu1 %v2435_v53 }
  0x86   : > { %2566 = vmatpush3.bf16.msra.mxu0 %v2563_v54  ;;  %2599 = vmatprep.subr.bf16.mxu1 %v2567_v57 }
  0x87   : > { %2568 = vmatprep.subr.bf16.mxu0 %v2567_v57 }
  0x88   : > { %2080 = vmatmul.mubr.f32.vlgmr.msra.gmra.mrb[0].mxu1 %v1552_v61 }
  0x89   : > { %2256 = vmatmul.mubr.f32.vlgmr.msra.gmra.mrb[0].mxu0 %v2872_v4  ;;  %2607 = vmatpush3.bf16.msra.mxu1 %v2567_v57  ;;  %v1686_v4 = vld [vmem:[%s3320_s1 + $0x438] sm:$0xff] }
  0x8a   : > { %2570 = vmatpush3.bf16.msra.mxu0 %v2567_v57  ;;  %2082 = vmatprep.mubr.f32.mxu1 %v1553_v62  ;;  %v2579_v12 = vpack.c.bf16 %v1686_v4, %v1685_v10 }
  0x8b   : > { %2258 = vmatprep.mubr.f32.mxu0 %v2876_v6  ;;  %2572 = vmatprep.subr.bf16.mxu0 %v2571_v63  ;;  %v1557_v6 = vld [vmem:[%s2778_s24 + $0x180] sm:$0xff] }
  0x8c   : > { %2083 = vmatmul.mubr.f32.gmra.mrb[2].mxu1 %v1554_v2  ;;  %2600 = vmatprep.subr.bf16.mxu1 %v2571_v63 }
  0x8d   : > { %2259 = vmatmul.mubr.f32.gmra.mrb[2].mxu0 %v2894_v14  ;;  %2608 = vmatpush3.bf16.msra.mxu1 %v2571_v63  ;;  %v1558_v14 = vld [vmem:[%s2778_s24 + $0x190] sm:$0xff] }
  0x8e   : > { %2574 = vmatpush3.bf16.msra.mxu0 %v2571_v63  ;;  %2085 = vmatprep.mubr.f32.mxu1 %v1555_v5 }
  0x8f   : > { %2261 = vmatprep.mubr.f32.mxu0 %v2898_v16  ;;  %2576 = vmatprep.subr.bf16.mxu0 %v2575_v8  ;;  %v1654_v16 = vld [vmem:[%s2778_s24 + $0x110] sm:$0xff] }
  0x90   : > { %2086 = vmatmul.mubr.f32.gmra.mrb[4].mxu1 %v1556_v11  ;;  %2601 = vmatprep.subr.bf16.mxu1 %v2575_v8 }
  0x91   : > { %2262 = vmatmul.mubr.f32.gmra.mrb[4].mxu0 %v2916_v24  ;;  %2609 = vmatpush3.bf16.msra.mxu1 %v2575_v8  ;;  %v2587_v24 = vpack.c.bf16 %v1690_v23, %v1689_v22 }
  0x92   : > { %2578 = vmatpush3.bf16.msra.mxu0 %v2575_v8  ;;  %2088 = vmatprep.mubr.f32.mxu1 %v1557_v6 }
  0x93   : > { %2264 = vmatprep.mubr.f32.mxu0 %v2920_v26  ;;  %2580 = vmatprep.subr.bf16.mxu0 %v2579_v12  ;;  %v1691_v26 = vld [vmem:[%s3320_s1 + $0x460] sm:$0xff] }
  0x94   : > { %2089 = vmatmul.mubr.f32.gmra.mrb[6].mxu1 %v1558_v14  ;;  %2602 = vmatprep.subr.bf16.mxu1 %v2579_v12  ;;  %v2591_v25 = vpack.c.bf16 %v1692_v7, %v1691_v26 }
  0x95   : > { %2265 = vmatmul.mubr.f32.gmra.mrb[6].mxu0 %v1654_v16  ;;  %2610 = vmatpush3.bf16.msra.mxu1 %v2579_v12 }
  0x96   : > { %2582 = vmatpush3.bf16.msra.mxu0 %v2579_v12  ;;  %2603 = vmatprep.subr.bf16.mxu1 %v2583_v20 }
  0x97   : > { %2584 = vmatprep.subr.bf16.mxu0 %v2583_v20  ;;  %2299 = vmatprep.mubr.f32.mxu0 %v3121_v3  ;;  %v2595_v3 = vpack.c.bf16 %v1694_v30, %v1693_v29 }
  0x98   : > { %2305 = vmatprep.mubr.f32.mxu1 %v3163_v28  ;;  %v1678_v28 = vld [vmem:[%s2778_s24 + $0x81] sm:$0xff] }
  0x99   : > { %2611 = vmatpush3.bf16.msra.mxu1 %v2583_v20 }
  0x9a   : > { %2586 = vmatpush3.bf16.msra.mxu0 %v2583_v20  ;;  %2604 = vmatprep.subr.bf16.mxu1 %v2587_v24 }
  0x9b   : > { %2588 = vmatprep.subr.bf16.mxu0 %v2587_v24 }
  0x9d   : > { %2612 = vmatpush3.bf16.msra.mxu1 %v2587_v24 }
  0x9e   : > { %2590 = vmatpush3.bf16.msra.mxu0 %v2587_v24  ;;  %2605 = vmatprep.subr.bf16.mxu1 %v2591_v25 }
  0x9f   : > { %2592 = vmatprep.subr.bf16.mxu0 %v2591_v25 }
  0xa1   : > { %2613 = vmatpush3.bf16.msra.mxu1 %v2591_v25 }
  0xa2   : > { %2594 = vmatpush3.bf16.msra.mxu0 %v2591_v25  ;;  %2606 = vmatprep.subr.bf16.mxu1 %v2595_v3 }
  0xa3   : > { %2596 = vmatprep.subr.bf16.mxu0 %v2595_v3 }
  0xa5   : > { %2614 = vmatpush3.bf16.msra.mxu1 %v2595_v3 }
  0xa6   : > { %2598 = vmatpush3.bf16.msra.mxu0 %v2595_v3 }
  0xa8   : > { %2306 = vmatmul.mubr.f32.vlgmr.msra.gmra.mrb[8].mxu1 %v3181_v35 }
  0xa9   : > { %2300 = vmatmul.mubr.f32.vlgmr.msra.gmra.mrb[0].mxu0 %v3137_v15  ;;  %2308 = vmatprep.mubr.f32.mxu1 %v3185_v36 }
  0xaa   : > { %2302 = vmatprep.mubr.f32.mxu0 %v3141_v17 }
  0xac   : > { %2309 = vmatmul.mubr.f32.gmra.mrb[10].mxu1 %v1678_v28 }
  0xad   : > { %2303 = vmatmul.mubr.f32.gmra.mrb[2].mxu0 %v3159_v27  ;;  %v1695_v27 = vld [vmem:[%s3321_s2] ss:$0 sm:$0xff] }
 0x15b   : > { %v2081_v9 = vpop.f32.mrb[0].mxu1 }
 0x15c   : > { %v661_v32 = vpop.f32.mrb[1].mxu1 }
 0x15f   : > { %v2084_v19 = vpop.f32.mrb[2].mxu1 }
 0x160   : > { %v671_v34 = vpop.f32.mrb[3].mxu1 }
 0x163   : > { %v2087_v37 = vpop.f32.mrb[4].mxu1 }
 0x164   : > { %v2263_v38 = vpop.f32.mrb[4].mxu0  ;;  %v681_v39 = vpop.f32.mrb[5].mxu1 }
 0x165   : > { %v2619_v21 = vadd.f32 %v2263_v38, %v2087_v37  ;;  %v1236_v35 = vpop.f32.mrb[5].mxu0 }
 0x166   : > { %v2621_v40 = vadd.f32 %v1236_v35, %v681_v39 }
 0x167   : > { %v2090_v15 = vpop.f32.mrb[6].mxu1 }
 0x168   : > { %v2266_v31 = vpop.f32.mrb[6].mxu0  ;;  %v691_v36 = vpop.f32.mrb[7].mxu1 }
 0x169   : > { %v2623_v41 = vadd.f32 %v2266_v31, %v2090_v15  ;;  %v1246_v42 = vpop.f32.mrb[7].mxu0 }
 0x16a   : > { %v2625_v17 = vadd.f32 %v1246_v42, %v691_v36 }
 0x17b   : > { %v2307_v43 = vpop.f32.mrb[8].mxu1 }
 0x17c   : > { %v2301_v44 = vpop.f32.mrb[0].mxu0  ;;  %v2620_v45 = vadd.f32 %v2619_v21, %v2307_v43  ;;  %v1374_v46 = vpop.f32.mrb[9].mxu1 }
 0x17d   : > { %v2615_v33 = vadd.f32 %v2301_v44, %v2081_v9  ;;  %v1354_v47 = vpop.f32.mrb[1].mxu0  ;;  %v2622_v48 = vadd.f32 %v2621_v40, %v1374_v46 }
 0x17e   : > { %v1413_v49 = vadd.f32 %v2620_v45, %v1695_v27  ;;  %v2616_v50 = vadd.f32 %v1354_v47, %v661_v32 }
 0x17f   : > { %v1409_v51 = vadd.f32 %v2615_v33, %v1695_v27  ;;  %v1412_v52 = vadd.f32 %v2622_v48, %v1695_v27  ;;  %v2310_v60 = vpop.f32.mrb[10].mxu1 }
 0x180   : > { %vm1421_vm0 = vcmp.gt.f32.partialorder %v1413_v49, 0.0  ;;  %v1429_v53 = vmul.f32 0.1, %v1413_v49  ;;  %v1408_v54 = vadd.f32 %v2616_v50, %v1695_v27  ;;  %v2304_v55 = vpop.f32.mrb[2].mxu0  ;;  %v2624_v56 = vadd.f32 %v2623_v41, %v2310_v60  ;;  %v1384_v57 = vpop.f32.mrb[11].mxu1 }
 0x181   : > { %vm1417_vm1 = vcmp.gt.f32.partialorder %v1409_v51, 0.0  ;;  %v1425_v58 = vmul.f32 0.1, %v1409_v51  ;;  %vm1420_vm2 = vcmp.gt.f32.partialorder %v1412_v52, 0.0  ;;  %v1428_v59 = vmul.f32 0.1, %v1412_v52 }
 0x182   : > { %v1437_v61 = vsel %vm1421_vm0, %v1413_v49, %v1429_v53  ;;  %vm1416_vm3 = vcmp.gt.f32.partialorder %v1408_v54, 0.0  ;;  %v1424_v62 = vmul.f32 0.1, %v1408_v54  ;;  %v2617_v63 = vadd.f32 %v2304_v55, %v2084_v19  ;;  %v1364_v0 = vpop.f32.mrb[3].mxu0 }
 0x183   : > { %v1433_v1 = vsel %vm1417_vm1, %v1409_v51, %v1425_v58  ;;  %1445 = vst [vmem:[%s3306_s20 + $0x28] sm:$0xff] %v1437_v61  ;;  %v1436_v2 = vsel %vm1420_vm2, %v1412_v52, %v1428_v59  ;;  %v1415_v5 = vadd.f32 %v2624_v56, %v1695_v27  ;;  %v2618_v8 = vadd.f32 %v1364_v0, %v671_v34 }
 0x184   : > { %1441 = vst [vmem:[%s3306_s20 + $0x8] sm:$0xff] %v1433_v1  ;;  %v1432_v10 = vsel %vm1416_vm3, %v1408_v54, %v1424_v62  ;;  %1444 = vst [vmem:[%s3306_s20 + $0x20] sm:$0xff] %v1436_v2  ;;  %v1411_v4 = vadd.f32 %v2617_v63, %v1695_v27  ;;  %v2626_v11 = vadd.f32 %v2625_v17, %v1384_v57 }
 0x185   : > { %1440 = vst [vmem:[%s3306_s20] sm:$0xff] %v1432_v10  ;;  %vm1423_vm4 = vcmp.gt.f32.partialorder %v1415_v5, 0.0  ;;  %v1431_v6 = vmul.f32 0.1, %v1415_v5  ;;  %v1410_v12 = vadd.f32 %v2618_v8, %v1695_v27 }
 0x186   : > { %vm1419_vm5 = vcmp.gt.f32.partialorder %v1411_v4, 0.0  ;;  %v1427_v13 = vmul.f32 0.1, %v1411_v4  ;;  %v1414_v18 = vadd.f32 %v2626_v11, %v1695_v27 }
 0x187   : > { %v1439_v14 = vsel %vm1423_vm4, %v1415_v5, %v1431_v6  ;;  %vm1418_vm6 = vcmp.gt.f32.partialorder %v1410_v12, 0.0  ;;  %v1426_v16 = vmul.f32 0.1, %v1410_v12 }
 0x188   : > { %v1435_v20 = vsel %vm1419_vm5, %v1411_v4, %v1427_v13  ;;  %1447 = vst [vmem:[%s3306_s20 + $0x38] sm:$0xff] %v1439_v14  ;;  %vm1422_vm7 = vcmp.gt.f32.partialorder %v1414_v18, 0.0  ;;  %v1430_v22 = vmul.f32 0.1, %v1414_v18 }
 0x189   : > { %1443 = vst [vmem:[%s3306_s20 + $0x18] sm:$0xff] %v1435_v20  ;;  %v1434_v23 = vsel %vm1418_vm6, %v1410_v12, %v1426_v16 }
 0x18a   : > { %1442 = vst [vmem:[%s3306_s20 + $0x10] sm:$0xff] %v1434_v23  ;;  %v1438_v24 = vsel %vm1422_vm7, %v1414_v18, %v1430_v22 }
 0x18b   : > { %1446 = vst [vmem:[%s3306_s20 + $0x30] sm:$0xff] %v1438_v24 }
 0x18c PF: > { %s13_s12 = sadd.s32 1, %s2694_s12  }
 0x18d   : > { %p10_p4 = scmp.ge.s32.totalorder %s13_s12, 4  }
 0x18f   :  { %12 = sbr.rel (!%p10_p4) target bundleno = 1 (0x1), region = 75 }

// kernel: _run.12
= control target key start
LH: loop header
LB: loop body
LE: loop exit
PB: predicated region body
PF: predicated region fallthrough
CT: control target
= control target key end

     0   :  { %s258_s6 = smov 0   ;;  %s275_s0 = inlined_call_operand.vmem [shape: f32[2,4,4,4,128], index: 0, kind: input, shape index: {}]   ;;  %s276_s1 = inlined_call_operand.vmem [shape: f32[2,4,4,128], index: 1, kind: output, shape index: {}]  }
   0x1 LB: > { %s207_s7 = sadd.s32 4294967295, %s246_s6   ;;  %p211_p0 = scmp.ge.s32.totalorder %s246_s6, 1  ;;  %s246_s6 = sphi %s258_s6, %s11_s6  }
   0x2   : > { %p87_p1 = scmp.lt.s32.totalorder %s246_s6, 3 }
   0x4   : > { %p88_p2 = pnand %p211_p0, %p87_p1 }
   0x5   : > { %p107_p3 = scmp.lt.s32.totalorder (!%p88_p2), %s207_s7, 1 }
   0x6   : > { %91 = sbr.rel (%p88_p2) target bundleno = 28 (0x1c), region = 24 }
   0xd   : > { %s278_s7 = smov (!%p107_p3, %s207_s7), 1 }
   0xe   : > { %s230_s8 = sshll.u32 %s278_s7, 6  ;;  %s231_s12 = sshll.u32 %s278_s7, 4 }
   0xf   : > { %s111_s11 = scalar_lea.vmem %s275_s0, %s230_s8  ;;  %s116_s15 = scalar_lea.vmem %s276_s1, %s231_s12 }
  0x10   : > { %v117_v0 = vld [vmem:[%s111_s11] sm:$0xf]  ;;  %v216_v1 = vld [vmem:[%s111_s11 + $0x10] sm:$0xf]  ;;  %v118_v4 = vld [vmem:[%s111_s11 + $0x4] sm:$0xf] }
  0x11   : > { %v220_v2 = vld [vmem:[%s111_s11 + $0x20] sm:$0xf]  ;;  %v126_v3 = vmax.f32 %v117_v0, %v216_v1  ;;  %v217_v5 = vld [vmem:[%s111_s11 + $0x14] sm:$0xf]  ;;  %v224_v6 = vld [vmem:[%s111_s11 + $0x30] sm:$0xf] }
  0x12   : > { %v127_v7 = vmax.f32 %v118_v4, %v217_v5  ;;  %v221_v8 = vld [vmem:[%s111_s11 + $0x24] sm:$0xf]  ;;  %v119_v9 = vld [vmem:[%s111_s11 + $0x8] sm:$0xf]  ;;  %v225_v11 = vld [vmem:[%s111_s11 + $0x34] sm:$0xf] }
  0x13   : > { %v135_v10 = vmax.f32 %v126_v3, %v220_v2  ;;  %v218_v12 = vld [vmem:[%s111_s11 + $0x18] sm:$0xf]  ;;  %v222_v13 = vld [vmem:[%s111_s11 + $0x28] sm:$0xf]  ;;  %v120_v16 = vld [vmem:[%s111_s11 + $0xc] sm:$0xf] }
  0x14   : > { %v136_v14 = vmax.f32 %v127_v7, %v221_v8  ;;  %v128_v15 = vmax.f32 %v119_v9, %v218_v12  ;;  %v219_v17 = vld [vmem:[%s111_s11 + $0x1c] sm:$0xf]  ;;  %v223_v18 = vld [vmem:[%s111_s11 + $0x2c] sm:$0xf]  ;;  %v226_v20 = vld [vmem:[%s111_s11 + $0x38] sm:$0xf] }
  0x15   : > { %v144_v19 = vmax.f32 %v135_v10, %v224_v6  ;;  %v129_v21 = vmax.f32 %v120_v16, %v219_v17  ;;  %v227_v24 = vld [vmem:[%s111_s11 + $0x3c] sm:$0xf] }
  0x16   : > { %v145_v22 = vmax.f32 %v136_v14, %v225_v11  ;;  %v137_v23 = vmax.f32 %v128_v15, %v222_v13 }
  0x17   : > { %148 = vst [vmem:[%s116_s15] sm:$0xf] %v144_v19  ;;  %v138_v25 = vmax.f32 %v129_v21, %v223_v18 }
  0x18   : > { %149 = vst [vmem:[%s116_s15 + $0x4] sm:$0xf] %v145_v22  ;;  %v146_v26 = vmax.f32 %v137_v23, %v226_v20 }
  0x19   : > { %v147_v27 = vmax.f32 %v138_v25, %v227_v24 }
  0x1a   : > { %150 = vst [vmem:[%s116_s15 + $0x8] sm:$0xf] %v146_v26 }
  0x1b   : > { %151 = vst [vmem:[%s116_s15 + $0xc] sm:$0xf] %v147_v27 }
  0x1c PF: > { %s11_s6 = sadd.s32 1, %s246_s6  }
  0x1d   : > { %p8_p4 = scmp.ge.s32.totalorder %s11_s6, 4  }
  0x1f   :  { %10 = sbr.rel (!%p8_p4) target bundleno = 1 (0x1), region = 57 }

// kernel: _run.11
= control target key start
LH: loop header
LB: loop body
LE: loop exit
PB: predicated region body
PF: predicated region fallthrough
CT: control target
= control target key end

     0   :  { %s2705_s12 = smov 0   ;;  %s3313_s0 = inlined_call_operand.vmem [shape: f32[2,1,10,10,128], index: 0, kind: input, shape index: {}]   ;;  %s3314_s1 = inlined_call_operand.vmem [shape: f32[9,128,128], index: 1, kind: input, shape index: {}]   ;;  %s3315_s2 = inlined_call_operand.vmem [shape: f32[1,128], index: 2, kind: input, shape index: {}]   ;;  %s3316_s3 = inlined_call_operand.vmem [shape: f32[2,8,8,128], index: 3, kind: output, shape index: {}]  }
   0x1 LB: > { %s1500_s13 = sadd.s32 4294967295, %s2683_s12   ;;  %p1504_p0 = scmp.ge.s32.totalorder %s2683_s12, 1  ;;  %s2683_s12 = sphi %s2705_s12, %s13_s12  }
   0x2   : > { %p137_p1 = scmp.lt.s32.totalorder %s2683_s12, 3 }
   0x4   : > { %p138_p2 = pnand %p1504_p0, %p137_p1 }
   0x5   : > { %v1508_v0 = vld [vmem:[%s3314_s1 + $0x80] sm:$0xff] (!%p138_p2)  ;;  %v1509_v1 = vld [vmem:[%s3314_s1 + $0x88] sm:$0xff] (!%p138_p2)  ;;  %p161_p3 = scmp.lt.s32.totalorder (!%p138_p2), %s1500_s13, 1  ;;  %v1510_v5 = vld [vmem:[%s3314_s1 + $0x90] sm:$0xff] (!%p138_p2) }
   0x6   : > { %141 = sbr.rel (%p138_p2) target bundleno = 396 (0x18c), region = 32  ;;  %v1572_v2 = vld [vmem:[%s3314_s1 + $0x200] sm:$0xff] (!%p138_p2)  ;;  %v2300_v3 = vpack.c.bf16 (!%p138_p2), %v1509_v1, %v1508_v0  ;;  %v1573_v4 = vld [vmem:[%s3314_s1 + $0x208] sm:$0xff] (!%p138_p2)  ;;  %v1511_v6 = vld [vmem:[%s3314_s1 + $0x98] sm:$0xff] (!%p138_p2) }
   0x7   : > { %v2428_v7 = vpack.c.bf16 (!%p138_p2), %v1573_v4, %v1572_v2  ;;  %v2304_v8 = vpack.c.bf16 (!%p138_p2), %v1511_v6, %v1510_v5  ;;  %v1574_v9 = vld [vmem:[%s3314_s1 + $0x210] sm:$0xff] (!%p138_p2)  ;;  %v1575_v10 = vld [vmem:[%s3314_s1 + $0x218] sm:$0xff] (!%p138_p2)  ;;  %v1512_v11 = vld [vmem:[%s3314_s1 + $0xa0] sm:$0xff] (!%p138_p2) }
   0x8   : > { %2301 = vmatprep.subr.bf16.mxu1 (!%p138_p2), %v2300_v3  ;;  %v2432_v12 = vpack.c.bf16 (!%p138_p2), %v1575_v10, %v1574_v9  ;;  %v1513_v13 = vld [vmem:[%s3314_s1 + $0xa8] sm:$0xff] (!%p138_p2)  ;;  %v1576_v14 = vld [vmem:[%s3314_s1 + $0x220] sm:$0xff] (!%p138_p2)  ;;  %v1514_v18 = vld [vmem:[%s3314_s1 + $0xb0] sm:$0xff] (!%p138_p2) }
   0x9   : > { %v1577_v15 = vld [vmem:[%s3314_s1 + $0x228] sm:$0xff] (!%p138_p2)  ;;  %2429 = vmatprep.subr.bf16.mxu0 (!%p138_p2), %v2428_v7  ;;  %2303 = vmatpush3.bf16.msra.mxu1 (!%p138_p2), %v2300_v3  ;;  %v2308_v16 = vpack.c.bf16 (!%p138_p2), %v1513_v13, %v1512_v11  ;;  %v1515_v19 = vld [vmem:[%s3314_s1 + $0xb8] sm:$0xff] (!%p138_p2)  ;;  %v1578_v20 = vld [vmem:[%s3314_s1 + $0x230] sm:$0xff] (!%p138_p2) }
   0xa   : > { %2431 = vmatpush3.bf16.msra.mxu0 (!%p138_p2), %v2428_v7  ;;  %2305 = vmatprep.subr.bf16.mxu1 (!%p138_p2), %v2304_v8  ;;  %v2436_v17 = vpack.c.bf16 (!%p138_p2), %v1577_v15, %v1576_v14  ;;  %v1579_v21 = vld [vmem:[%s3314_s1 + $0x238] sm:$0xff] (!%p138_p2)  ;;  %v2312_v22 = vpack.c.bf16 (!%p138_p2), %v1515_v19, %v1514_v18  ;;  %v1516_v24 = vld [vmem:[%s3314_s1 + $0xc0] sm:$0xff] (!%p138_p2)  ;;  %v1517_v25 = vld [vmem:[%s3314_s1 + $0xc8] sm:$0xff] (!%p138_p2) }
   0xb   : > { %2433 = vmatprep.subr.bf16.mxu0 (!%p138_p2), %v2432_v12  ;;  %v2440_v23 = vpack.c.bf16 (!%p138_p2), %v1579_v21, %v1578_v20  ;;  %v1580_v27 = vld [vmem:[%s3314_s1 + $0x240] sm:$0xff] (!%p138_p2)  ;;  %v1581_v28 = vld [vmem:[%s3314_s1 + $0x248] sm:$0xff] (!%p138_p2)  ;;  %v2316_v30 = vpack.c.bf16 (!%p138_p2), %v1517_v25, %v1516_v24  ;;  %v1518_v32 = vld [vmem:[%s3314_s1 + $0xd0] sm:$0xff] (!%p138_p2) }
   0xc   : > { %v2444_v31 = vpack.c.bf16 (!%p138_p2), %v1581_v28, %v1580_v27  ;;  %v1519_v33 = vld [vmem:[%s3314_s1 + $0xd8] sm:$0xff] (!%p138_p2)  ;;  %v1582_v34 = vld [vmem:[%s3314_s1 + $0x250] sm:$0xff] (!%p138_p2)  ;;  %v1520_v38 = vld [vmem:[%s3314_s1 + $0xe0] sm:$0xff] (!%p138_p2) }
   0xd   : > { %s3318_s13 = smov (!%p161_p3, %s1500_s13), 1  ;;  %2307 = vmatpush3.bf16.msra.mxu1 %v2304_v8  ;;  %v1583_v35 = vld [vmem:[%s3314_s1 + $0x258] sm:$0xff]  ;;  %v2320_v36 = vpack.c.bf16 %v1519_v33, %v1518_v32  ;;  %v1521_v39 = vld [vmem:[%s3314_s1 + $0xe8] sm:$0xff]  ;;  %v1584_v40 = vld [vmem:[%s3314_s1 + $0x260] sm:$0xff] }
   0xe   : > { %s2668_s11 = smul.u32 160, %s3318_s13  ;;  %2435 = vmatpush3.bf16.msra.mxu0 %v2432_v12  ;;  %2309 = vmatprep.subr.bf16.mxu1 %v2308_v16  ;;  %v2448_v37 = vpack.c.bf16 %v1583_v35, %v1582_v34  ;;  %v1585_v41 = vld [vmem:[%s3314_s1 + $0x268] sm:$0xff]  ;;  %v2324_v42 = vpack.c.bf16 %v1521_v39, %v1520_v38  ;;  %v1522_v44 = vld [vmem:[%s3314_s1 + $0xf0] sm:$0xff]  ;;  %v1523_v45 = vld [vmem:[%s3314_s1 + $0xf8] sm:$0xff]  ;;  %s1687_s17 = sshll.u32 %s3318_s13, 6 }
   0xf   : > { %2437 = vmatprep.subr.bf16.mxu0 %v2436_v17  ;;  %v2452_v43 = vpack.c.bf16 %v1585_v41, %v1584_v40  ;;  %v1586_v46 = vld [vmem:[%s3314_s1 + $0x270] sm:$0xff]  ;;  %v1587_v47 = vld [vmem:[%s3314_s1 + $0x278] sm:$0xff]  ;;  %v2328_v48 = vpack.c.bf16 %v1523_v45, %v1522_v44  ;;  %v179_v50 = vld [vmem:[%s3314_s1] sm:$0xff]  ;;  %s3300_s20 = scalar_lea.vmem %s3316_s3, %s1687_s17 }
  0x10   : > { %s2767_s24 = scalar_lea.vmem %s3313_s0, %s2668_s11  ;;  %v2456_v49 = vpack.c.bf16 %v1587_v47, %v1586_v46  ;;  %v180_v51 = vld [vmem:[%s3314_s1 + $0x8] sm:$0xff]  ;;  %v1596_v52 = vld [vmem:[%s3314_s1 + $0x280] sm:$0xff]  ;;  %v181_v56 = vld [vmem:[%s3314_s1 + $0x10] sm:$0xff] }
  0x11   : > { %v195_v26 = vld [vmem:[%s2767_s24 + $0x1] sm:$0xff]  ;;  %v1564_v29 = vld [vmem:[%s2767_s24 + $0x11] sm:$0xff]  ;;  %2311 = vmatpush3.bf16.msra.mxu1 %v2308_v16  ;;  %v2332_v54 = vpack.c.bf16 %v180_v51, %v179_v50 }
  0x12   : > { %1936 = vmatprep.mubr.f32.mxu1 %v195_v26  ;;  %2112 = vmatprep.mubr.f32.mxu0 %v1564_v29  ;;  %v1597_v53 = vld [vmem:[%s3314_s1 + $0x288] sm:$0xff]  ;;  %v182_v57 = vld [vmem:[%s3314_s1 + $0x18] sm:$0xff]  ;;  %v1598_v58 = vld [vmem:[%s3314_s1 + $0x290] sm:$0xff] }
  0x13   : > { %2439 = vmatpush3.bf16.msra.mxu0 %v2436_v17  ;;  %2313 = vmatprep.subr.bf16.mxu1 %v2312_v22  ;;  %v2460_v55 = vpack.c.bf16 %v1597_v53, %v1596_v52  ;;  %v1599_v59 = vld [vmem:[%s3314_s1 + $0x298] sm:$0xff]  ;;  %v2844_v60 = vld [vmem:[%s2767_s24 + $0x21] sm:$0xff]  ;;  %v2336_v61 = vpack.c.bf16 %v182_v57, %v181_v56  ;;  %v185_v7 = vld [vmem:[%s3314_s1 + $0x30] sm:$0xff] }
  0x14   : > { %2441 = vmatprep.subr.bf16.mxu0 %v2440_v23  ;;  %v2464_v62 = vpack.c.bf16 %v1599_v59, %v1598_v58  ;;  %v183_v63 = vld [vmem:[%s3314_s1 + $0x20] sm:$0xff]  ;;  %v184_v0 = vld [vmem:[%s3314_s1 + $0x28] sm:$0xff]  ;;  %v2860_v3 = vld [vmem:[%s2767_s24 + $0x31] sm:$0xff] }
  0x15   : > { %2315 = vmatpush3.bf16.msra.mxu1 %v2312_v22  ;;  %v1600_v1 = vld [vmem:[%s3314_s1 + $0x2a0] sm:$0xff]  ;;  %v1601_v2 = vld [vmem:[%s3314_s1 + $0x2a8] sm:$0xff]  ;;  %v2340_v4 = vpack.c.bf16 %v184_v0, %v183_v63  ;;  %v186_v8 = vld [vmem:[%s3314_s1 + $0x38] sm:$0xff] }
  0x16   : > { %2317 = vmatprep.subr.bf16.mxu1 %v2316_v30  ;;  %v2863_v5 = vld [vmem:[%s2767_s24 + $0x41] sm:$0xff]  ;;  %v2468_v6 = vpack.c.bf16 %v1601_v2, %v1600_v1  ;;  %v1602_v9 = vld [vmem:[%s3314_s1 + $0x2b0] sm:$0xff]  ;;  %v1603_v10 = vld [vmem:[%s3314_s1 + $0x2b8] sm:$0xff]  ;;  %v2344_v12 = vpack.c.bf16 %v186_v8, %v185_v7 }
  0x17   : > { %2443 = vmatpush3.bf16.msra.mxu0 %v2440_v23  ;;  %v2882_v11 = vld [vmem:[%s2767_s24 + $0x51] sm:$0xff]  ;;  %v2885_v13 = vld [vmem:[%s2767_s24 + $0x61] sm:$0xff]  ;;  %v2472_v14 = vpack.c.bf16 %v1603_v10, %v1602_v9 }
  0x18   : > { %2445 = vmatprep.subr.bf16.mxu0 %v2444_v31  ;;  %v187_v15 = vld [vmem:[%s3314_s1 + $0x40] sm:$0xff]  ;;  %v188_v16 = vld [vmem:[%s3314_s1 + $0x48] sm:$0xff]  ;;  %v2904_v19 = vld [vmem:[%s2767_s24 + $0x71] sm:$0xff] }
  0x19   : > { %2319 = vmatpush3.bf16.msra.mxu1 %v2316_v30  ;;  %v1604_v17 = vld [vmem:[%s3314_s1 + $0x2c0] sm:$0xff]  ;;  %v1605_v18 = vld [vmem:[%s3314_s1 + $0x2c8] sm:$0xff]  ;;  %v2348_v20 = vpack.c.bf16 %v188_v16, %v187_v15  ;;  %v189_v23 = vld [vmem:[%s3314_s1 + $0x50] sm:$0xff] }
  0x1a   : > { %2321 = vmatprep.subr.bf16.mxu1 %v2320_v36  ;;  %v2907_v21 = vld [vmem:[%s2767_s24 + $0x81] sm:$0xff]  ;;  %v2476_v22 = vpack.c.bf16 %v1605_v18, %v1604_v17  ;;  %v190_v24 = vld [vmem:[%s3314_s1 + $0x58] sm:$0xff]  ;;  %v1606_v25 = vld [vmem:[%s3314_s1 + $0x2d0] sm:$0xff] }
  0x1b   : > { %2447 = vmatpush3.bf16.msra.mxu0 %v2444_v31  ;;  %v1607_v26 = vld [vmem:[%s3314_s1 + $0x2d8] sm:$0xff]  ;;  %v171_v27 = vld [vmem:[%s2767_s24] sm:$0xff]  ;;  %v192_v32 = vld [vmem:[%s3314_s1 + $0x68] sm:$0xff] }
  0x1c   : > { %2449 = vmatprep.subr.bf16.mxu0 %v2448_v37  ;;  %v2927_v28 = vld [vmem:[%s2767_s24 + $0x12] sm:$0xff]  ;;  %v2480_v30 = vpack.c.bf16 %v1607_v26, %v1606_v25  ;;  %v191_v31 = vld [vmem:[%s3314_s1 + $0x60] sm:$0xff]  ;;  %v1609_v34 = vld [vmem:[%s3314_s1 + $0x2e8] sm:$0xff] }
  0x1d   : > { %2323 = vmatpush3.bf16.msra.mxu1 %v2320_v36  ;;  %v1608_v33 = vld [vmem:[%s3314_s1 + $0x2e0] sm:$0xff]  ;;  %v2356_v35 = vpack.c.bf16 %v192_v32, %v191_v31  ;;  %v194_v38 = vld [vmem:[%s3314_s1 + $0x78] sm:$0xff]  ;;  %v1610_v39 = vld [vmem:[%s3314_s1 + $0x2f0] sm:$0xff] }
  0x1e   : > { %2325 = vmatprep.subr.bf16.mxu1 %v2324_v42  ;;  %v2484_v36 = vpack.c.bf16 %v1609_v34, %v1608_v33  ;;  %v1611_v40 = vld [vmem:[%s3314_s1 + $0x2f8] sm:$0xff]  ;;  %v1525_v44 = vld [vmem:[%s3314_s1 + $0x108] sm:$0xff]  ;;  %v1620_v45 = vld [vmem:[%s3314_s1 + $0x300] sm:$0xff] }
  0x1f   : > { %2451 = vmatpush3.bf16.msra.mxu0 %v2448_v37  ;;  %v193_v37 = vld [vmem:[%s3314_s1 + $0x70] sm:$0xff]  ;;  %v1621_v46 = vld [vmem:[%s3314_s1 + $0x308] sm:$0xff]  ;;  %v1527_v50 = vld [vmem:[%s3314_s1 + $0x118] sm:$0xff] }
  0x20   : > { %2453 = vmatprep.subr.bf16.mxu0 %v2452_v43  ;;  %v2360_v41 = vpack.c.bf16 %v194_v38, %v193_v37  ;;  %v1622_v51 = vld [vmem:[%s3314_s1 + $0x310] sm:$0xff]  ;;  %v1623_v52 = vld [vmem:[%s3314_s1 + $0x318] sm:$0xff]  ;;  %v1528_v57 = vld [vmem:[%s3314_s1 + $0x120] sm:$0xff] }
  0x21   : > { %2327 = vmatpush3.bf16.msra.mxu1 %v2324_v42  ;;  %v2488_v42 = vpack.c.bf16 %v1611_v40, %v1610_v39  ;;  %v2979_v53 = vld [vmem:[%s2767_s24 + $0x10] sm:$0xff]  ;;  %v2496_v56 = vpack.c.bf16 %v1623_v52, %v1622_v51  ;;  %v1529_v58 = vld [vmem:[%s3314_s1 + $0x128] sm:$0xff]  ;;  %v1624_v59 = vld [vmem:[%s3314_s1 + $0x320] sm:$0xff] }
  0x22   : > { %2329 = vmatprep.subr.bf16.mxu1 %v2328_v48  ;;  %v3002_v63 = vld [vmem:[%s2767_s24 + $0x32] sm:$0xff]  ;;  %v2372_v1 = vpack.c.bf16 %v1529_v58, %v1528_v57  ;;  %v3008_v2 = vld [vmem:[%s2767_s24 + $0x42] sm:$0xff] }
  0x23   : > { %2455 = vmatpush3.bf16.msra.mxu0 %v2452_v43  ;;  %v1524_v43 = vld [vmem:[%s3314_s1 + $0x100] sm:$0xff]  ;;  %v3005_v0 = vld [vmem:[%s2767_s24 + $0x30] sm:$0xff]  ;;  %v1531_v7 = vld [vmem:[%s3314_s1 + $0x138] sm:$0xff] }
  0x24   : > { %2457 = vmatprep.subr.bf16.mxu0 %v2456_v49  ;;  %v2364_v47 = vpack.c.bf16 %v1525_v44, %v1524_v43  ;;  %v1626_v8 = vld [vmem:[%s3314_s1 + $0x330] sm:$0xff]  ;;  %v1627_v9 = vld [vmem:[%s3314_s1 + $0x338] sm:$0xff]  ;;  %v3026_v10 = vld [vmem:[%s2767_s24 + $0x40] sm:$0xff] }
  0x25   : > { %2331 = vmatpush3.bf16.msra.mxu1 %v2328_v48  ;;  %v2492_v48 = vpack.c.bf16 %v1621_v46, %v1620_v45  ;;  %v3036_v16 = vld [vmem:[%s2767_s24 + $0x62] sm:$0xff]  ;;  %v2504_v17 = vpack.c.bf16 %v1627_v9, %v1626_v8  ;;  %v3058_v25 = vld [vmem:[%s2767_s24 + $0x72] sm:$0xff] }
  0x26   : > { %2333 = vmatprep.subr.bf16.mxu1 %v2332_v54  ;;  %v1532_v18 = vld [vmem:[%s3314_s1 + $0x140] sm:$0xff]  ;;  %v3061_v26 = vld [vmem:[%s2767_s24 + $0x70] sm:$0xff]  ;;  %v1535_v32 = vld [vmem:[%s3314_s1 + $0x158] sm:$0xff] }
  0x27   : > { %2459 = vmatpush3.bf16.msra.mxu0 %v2456_v49  ;;  %v1526_v49 = vld [vmem:[%s3314_s1 + $0x110] sm:$0xff]  ;;  %v1631_v34 = vld [vmem:[%s3314_s1 + $0x358] sm:$0xff]  ;;  %v1536_v38 = vld [vmem:[%s3314_s1 + $0x160] sm:$0xff] }
  0x28   : > { %2461 = vmatprep.subr.bf16.mxu0 %v2460_v55  ;;  %1937 = vmatmul.mubr.f32.vlgmr.msra.gmra.mrb[0].mxu1 %v1564_v29  ;;  %v2352_v29 = vpack.c.bf16 %v190_v24, %v189_v23  ;;  %v1629_v23 = vld [vmem:[%s3314_s1 + $0x348] sm:$0xff]  ;;  %v3054_v24 = vld [vmem:[%s2767_s24 + $0x60] sm:$0xff]  ;;  %v1534_v31 = vld [vmem:[%s3314_s1 + $0x150] sm:$0xff] }
  0x29   : > { %2335 = vmatpush3.bf16.msra.mxu1 %v2332_v54  ;;  %1939 = vmatprep.mubr.f32.mxu1 %v2844_v60  ;;  %v2982_v54 = vld [vmem:[%s2767_s24 + $0x22] sm:$0xff]  ;;  %v1630_v33 = vld [vmem:[%s3314_s1 + $0x350] sm:$0xff]  ;;  %v1539_v45 = vld [vmem:[%s3314_s1 + $0x178] sm:$0xff] }
  0x2a   : > { %2113 = vmatmul.mubr.f32.vlgmr.msra.gmra.mrb[0].mxu0 %v2844_v60  ;;  %2337 = vmatprep.subr.bf16.mxu1 %v2336_v61  ;;  %v2512_v37 = vpack.c.bf16 %v1631_v34, %v1630_v33  ;;  %v1537_v39 = vld [vmem:[%s3314_s1 + $0x168] sm:$0xff]  ;;  %v1632_v40 = vld [vmem:[%s3314_s1 + $0x360] sm:$0xff]  ;;  %v1538_v44 = vld [vmem:[%s3314_s1 + $0x170] sm:$0xff] }
  0x2b   : > { %2463 = vmatpush3.bf16.msra.mxu0 %v2460_v55  ;;  %2115 = vmatprep.mubr.f32.mxu0 %v2860_v3  ;;  %v2368_v55 = vpack.c.bf16 %v1527_v50, %v1526_v49  ;;  %v1634_v46 = vld [vmem:[%s3314_s1 + $0x370] sm:$0xff]  ;;  %v1548_v50 = vld [vmem:[%s3314_s1 + $0x180] sm:$0xff]  ;;  %v1549_v51 = vld [vmem:[%s3314_s1 + $0x188] sm:$0xff] }
  0x2c   : > { %2465 = vmatprep.subr.bf16.mxu0 %v2464_v62  ;;  %1940 = vmatmul.mubr.f32.gmra.mrb[2].mxu1 %v2860_v3  ;;  %v1644_v52 = vld [vmem:[%s3314_s1 + $0x380] sm:$0xff]  ;;  %v1550_v58 = vld [vmem:[%s3314_s1 + $0x190] sm:$0xff]  ;;  %v1553_v8 = vld [vmem:[%s3314_s1 + $0x1a8] sm:$0xff] }
  0x2d   : > { %2339 = vmatpush3.bf16.msra.mxu1 %v2336_v61  ;;  %1942 = vmatprep.mubr.f32.mxu1 %v2863_v5  ;;  %v1625_v61 = vld [vmem:[%s3314_s1 + $0x328] sm:$0xff]  ;;  %v1648_v9 = vld [vmem:[%s3314_s1 + $0x3a0] sm:$0xff] }
  0x2e   : > { %2116 = vmatmul.mubr.f32.gmra.mrb[2].mxu0 %v2863_v5  ;;  %2341 = vmatprep.subr.bf16.mxu1 %v2340_v4  ;;  %v1652_v33 = vld [vmem:[%s3314_s1 + $0x3c0] sm:$0xff]  ;;  %v1653_v34 = vld [vmem:[%s3314_s1 + $0x3c8] sm:$0xff] }
  0x2f   : > { %2467 = vmatpush3.bf16.msra.mxu0 %v2464_v62  ;;  %2118 = vmatprep.mubr.f32.mxu0 %v2882_v11  ;;  %v2998_v62 = vld [vmem:[%s2767_s24 + $0x20] sm:$0xff] }
  0x30   : > { %2469 = vmatprep.subr.bf16.mxu0 %v2468_v6  ;;  %1943 = vmatmul.mubr.f32.gmra.mrb[4].mxu1 %v2882_v11 }
  0x31   : > { %2343 = vmatpush3.bf16.msra.mxu1 %v2340_v4  ;;  %1945 = vmatprep.mubr.f32.mxu1 %v2885_v13  ;;  %v2500_v4 = vpack.c.bf16 %v1625_v61, %v1624_v59  ;;  %v1551_v59 = vld [vmem:[%s3314_s1 + $0x198] sm:$0xff]  ;;  %v1646_v61 = vld [vmem:[%s3314_s1 + $0x390] sm:$0xff] }
  0x32   : > { %2119 = vmatmul.mubr.f32.gmra.mrb[4].mxu0 %v2885_v13  ;;  %2345 = vmatprep.subr.bf16.mxu1 %v2344_v12 }
  0x33   : > { %2471 = vmatpush3.bf16.msra.mxu0 %v2468_v6  ;;  %2121 = vmatprep.mubr.f32.mxu0 %v2904_v19  ;;  %v1530_v6 = vld [vmem:[%s3314_s1 + $0x130] sm:$0xff] }
  0x34   : > { %2473 = vmatprep.subr.bf16.mxu0 %v2472_v14  ;;  %1946 = vmatmul.mubr.f32.gmra.mrb[6].mxu1 %v2904_v19  ;;  %v2376_v15 = vpack.c.bf16 %v1531_v7, %v1530_v6  ;;  %v1552_v7 = vld [vmem:[%s3314_s1 + $0x1a0] sm:$0xff] }
  0x35   : > { %2347 = vmatpush3.bf16.msra.mxu1 %v2344_v12  ;;  %1980 = vmatprep.mubr.f32.mxu1 %v171_v27  ;;  %v3030_v12 = vld [vmem:[%s2767_s24 + $0x52] sm:$0xff] }
  0x36   : > { %2122 = vmatmul.mubr.f32.gmra.mrb[6].mxu0 %v2907_v21  ;;  %2349 = vmatprep.subr.bf16.mxu1 %v2348_v20 }
  0x37   : > { %2475 = vmatpush3.bf16.msra.mxu0 %v2472_v14  ;;  %2156 = vmatprep.mubr.f32.mxu0 %v2927_v28  ;;  %v3033_v14 = vld [vmem:[%s2767_s24 + $0x50] sm:$0xff] }
  0x38   : > { %2477 = vmatprep.subr.bf16.mxu0 %v2476_v22 }
  0x39   : > { %2351 = vmatpush3.bf16.msra.mxu1 %v2348_v20  ;;  %v1533_v20 = vld [vmem:[%s3314_s1 + $0x148] sm:$0xff] }
  0x3a   : > { %2353 = vmatprep.subr.bf16.mxu1 %v2352_v29  ;;  %v2380_v27 = vpack.c.bf16 %v1533_v20, %v1532_v18  ;;  %v1555_v20 = vld [vmem:[%s3314_s1 + $0x1b8] sm:$0xff] }
  0x3b   : > { %2479 = vmatpush3.bf16.msra.mxu0 %v2476_v22  ;;  %v1628_v22 = vld [vmem:[%s3314_s1 + $0x340] sm:$0xff] }
  0x3c   : > { %2481 = vmatprep.subr.bf16.mxu0 %v2480_v30 }
  0x3d   : > { %2355 = vmatpush3.bf16.msra.mxu1 %v2352_v29  ;;  %v3064_v29 = vld [vmem:[%s2767_s24 + $0x82] sm:$0xff] }
  0x3e   : > { %2357 = vmatprep.subr.bf16.mxu1 %v2356_v35 }
  0x3f   : > { %2483 = vmatpush3.bf16.msra.mxu0 %v2480_v30  ;;  %v2508_v30 = vpack.c.bf16 %v1629_v23, %v1628_v22  ;;  %v1650_v22 = vld [vmem:[%s3314_s1 + $0x3b0] sm:$0xff]  ;;  %v1651_v23 = vld [vmem:[%s3314_s1 + $0x3b8] sm:$0xff] }
  0x40   : > { %2485 = vmatprep.subr.bf16.mxu0 %v2484_v36 }
  0x41   : > { %2359 = vmatpush3.bf16.msra.mxu1 %v2356_v35  ;;  %v430_v35 = vld [vmem:[%s2767_s24 + $0x2] sm:$0xff] }
  0x42   : > { %2361 = vmatprep.subr.bf16.mxu1 %v2360_v41 }
  0x43   : > { %2487 = vmatpush3.bf16.msra.mxu0 %v2484_v36  ;;  %v2384_v36 = vpack.c.bf16 %v1535_v32, %v1534_v31  ;;  %v1556_v31 = vld [vmem:[%s3314_s1 + $0x1c0] sm:$0xff]  ;;  %v1557_v32 = vld [vmem:[%s3314_s1 + $0x1c8] sm:$0xff] }
  0x44   : > { %2489 = vmatprep.subr.bf16.mxu0 %v2488_v42 }
  0x45   : > { %2363 = vmatpush3.bf16.msra.mxu1 %v2360_v41  ;;  %v1633_v41 = vld [vmem:[%s3314_s1 + $0x368] sm:$0xff] }
  0x46   : > { %2365 = vmatprep.subr.bf16.mxu1 %v2364_v47  ;;  %v2516_v43 = vpack.c.bf16 %v1633_v41, %v1632_v40  ;;  %v1559_v40 = vld [vmem:[%s3314_s1 + $0x1d8] sm:$0xff]  ;;  %v1654_v41 = vld [vmem:[%s3314_s1 + $0x3d0] sm:$0xff] }
  0x47   : > { %2491 = vmatpush3.bf16.msra.mxu0 %v2488_v42  ;;  %v2388_v42 = vpack.c.bf16 %v1537_v39, %v1536_v38  ;;  %v2540_v38 = vpack.c.bf16 %v1653_v34, %v1652_v33  ;;  %v1558_v39 = vld [vmem:[%s3314_s1 + $0x1d0] sm:$0xff] }
  0x48   : > { %2493 = vmatprep.subr.bf16.mxu0 %v2492_v48  ;;  %1981 = vmatmul.mubr.f32.vlgmr.msra.gmra.mrb[0].mxu1 %v2979_v53 }
  0x49   : > { %2367 = vmatpush3.bf16.msra.mxu1 %v2364_v47  ;;  %1983 = vmatprep.mubr.f32.mxu1 %v2998_v62  ;;  %v1635_v47 = vld [vmem:[%s3314_s1 + $0x378] sm:$0xff] }
  0x4a   : > { %2157 = vmatmul.mubr.f32.vlgmr.msra.gmra.mrb[0].mxu0 %v2982_v54  ;;  %2369 = vmatprep.subr.bf16.mxu1 %v2368_v55  ;;  %v2520_v49 = vpack.c.bf16 %v1635_v47, %v1634_v46  ;;  %v1561_v46 = vld [vmem:[%s3314_s1 + $0x1e8] sm:$0xff]  ;;  %v1656_v47 = vld [vmem:[%s3314_s1 + $0x3e0] sm:$0xff] }
  0x4b   : > { %2495 = vmatpush3.bf16.msra.mxu0 %v2492_v48  ;;  %2159 = vmatprep.mubr.f32.mxu0 %v3002_v63  ;;  %v2392_v48 = vpack.c.bf16 %v1539_v45, %v1538_v44  ;;  %v1560_v45 = vld [vmem:[%s3314_s1 + $0x1e0] sm:$0xff] }
  0x4c   : > { %2497 = vmatprep.subr.bf16.mxu0 %v2496_v56  ;;  %1984 = vmatmul.mubr.f32.gmra.mrb[2].mxu1 %v3005_v0 }
  0x4d   : > { %2371 = vmatpush3.bf16.msra.mxu1 %v2368_v55  ;;  %1986 = vmatprep.mubr.f32.mxu1 %v3026_v10  ;;  %v1645_v55 = vld [vmem:[%s3314_s1 + $0x388] sm:$0xff] }
  0x4e   : > { %2160 = vmatmul.mubr.f32.gmra.mrb[2].mxu0 %v3008_v2  ;;  %2373 = vmatprep.subr.bf16.mxu1 %v2372_v1  ;;  %v2524_v57 = vpack.c.bf16 %v1645_v55, %v1644_v52  ;;  %v1658_v52 = vld [vmem:[%s3314_s1 + $0x3f0] sm:$0xff] }
  0x4f   : > { %2499 = vmatpush3.bf16.msra.mxu0 %v2496_v56  ;;  %2162 = vmatprep.mubr.f32.mxu0 %v3030_v12  ;;  %v2396_v56 = vpack.c.bf16 %v1549_v51, %v1548_v50  ;;  %v1563_v51 = vld [vmem:[%s3314_s1 + $0x1f8] sm:$0xff] }
  0x50   : > { %2501 = vmatprep.subr.bf16.mxu0 %v2500_v4  ;;  %1987 = vmatmul.mubr.f32.gmra.mrb[4].mxu1 %v3033_v14 }
  0x51   : > { %2375 = vmatpush3.bf16.msra.mxu1 %v2372_v1  ;;  %1989 = vmatprep.mubr.f32.mxu1 %v3054_v24  ;;  %v1647_v1 = vld [vmem:[%s3314_s1 + $0x398] sm:$0xff] }
  0x52   : > { %2163 = vmatmul.mubr.f32.gmra.mrb[4].mxu0 %v3036_v16  ;;  %2377 = vmatprep.subr.bf16.mxu1 %v2376_v15  ;;  %v2528_v6 = vpack.c.bf16 %v1647_v1, %v1646_v61  ;;  %v1670_v61 = vld [vmem:[%s3314_s1 + $0x410] sm:$0xff]  ;;  %v1671_v1 = vld [vmem:[%s3314_s1 + $0x418] sm:$0xff] }
  0x53   : > { %2503 = vmatpush3.bf16.msra.mxu0 %v2500_v4  ;;  %2165 = vmatprep.mubr.f32.mxu0 %v3058_v25  ;;  %v2400_v4 = vpack.c.bf16 %v1551_v59, %v1550_v58  ;;  %v1669_v58 = vld [vmem:[%s3314_s1 + $0x408] sm:$0xff] }
  0x54   : > { %2505 = vmatprep.subr.bf16.mxu0 %v2504_v17  ;;  %1990 = vmatmul.mubr.f32.gmra.mrb[6].mxu1 %v3061_v26 }
  0x55   : > { %2379 = vmatpush3.bf16.msra.mxu1 %v2376_v15  ;;  %2024 = vmatprep.mubr.f32.mxu1 %v430_v35  ;;  %v1649_v15 = vld [vmem:[%s3314_s1 + $0x3a8] sm:$0xff]  ;;  %v3179_v35 = vld [vmem:[%s2767_s24 + $0x80] sm:$0xff] }
  0x56   : > { %2166 = vmatmul.mubr.f32.gmra.mrb[6].mxu0 %v3064_v29  ;;  %2381 = vmatprep.subr.bf16.mxu1 %v2380_v27  ;;  %v2532_v18 = vpack.c.bf16 %v1649_v15, %v1648_v9  ;;  %v1675_v9 = vld [vmem:[%s3314_s1 + $0x438] sm:$0xff]  ;;  %v1682_v15 = vld [vmem:[%s3314_s1 + $0x470] sm:$0xff] }
  0x57   : > { %2507 = vmatpush3.bf16.msra.mxu0 %v2504_v17  ;;  %2200 = vmatprep.mubr.f32.mxu0 %v2998_v62  ;;  %v2404_v17 = vpack.c.bf16 %v1553_v8, %v1552_v7  ;;  %v1673_v7 = vld [vmem:[%s3314_s1 + $0x428] sm:$0xff] }
  0x58   : > { %2509 = vmatprep.subr.bf16.mxu0 %v2508_v30 }
  0x59   : > { %2383 = vmatpush3.bf16.msra.mxu1 %v2380_v27 }
  0x5a   : > { %2385 = vmatprep.subr.bf16.mxu1 %v2384_v36 }
  0x5b   : > { %2511 = vmatpush3.bf16.msra.mxu0 %v2508_v30  ;;  %v2536_v30 = vpack.c.bf16 %v1651_v23, %v1650_v22 }
  0x5c   : > { %2513 = vmatprep.subr.bf16.mxu0 %v2512_v37 }
  0x5d   : > { %2387 = vmatpush3.bf16.msra.mxu1 %v2384_v36  ;;  %v2412_v36 = vpack.c.bf16 %v1557_v32, %v1556_v31 }
  0x5e   : > { %2389 = vmatprep.subr.bf16.mxu1 %v2388_v42 }
  0x5f   : > { %2515 = vmatpush3.bf16.msra.mxu0 %v2512_v37  ;;  %v1619_v37 = vld [vmem:[%s2767_s24 + $0x90] sm:$0xff] }
  0x60   : > { %2517 = vmatprep.subr.bf16.mxu0 %v2516_v43 }
  0x61   : > { %2391 = vmatpush3.bf16.msra.mxu1 %v2388_v42  ;;  %v1655_v42 = vld [vmem:[%s3314_s1 + $0x3d8] sm:$0xff] }
  0x62   : > { %2393 = vmatprep.subr.bf16.mxu1 %v2392_v48  ;;  %v2544_v44 = vpack.c.bf16 %v1655_v42, %v1654_v41 }
  0x63   : > { %2519 = vmatpush3.bf16.msra.mxu0 %v2516_v43  ;;  %v2416_v43 = vpack.c.bf16 %v1559_v40, %v1558_v39 }
  0x64   : > { %2521 = vmatprep.subr.bf16.mxu0 %v2520_v49 }
  0x65   : > { %2395 = vmatpush3.bf16.msra.mxu1 %v2392_v48  ;;  %v1657_v48 = vld [vmem:[%s3314_s1 + $0x3e8] sm:$0xff] }
  0x66   : > { %2397 = vmatprep.subr.bf16.mxu1 %v2396_v56  ;;  %v2548_v50 = vpack.c.bf16 %v1657_v48, %v1656_v47 }
  0x67   : > { %2523 = vmatpush3.bf16.msra.mxu0 %v2520_v49  ;;  %v2420_v49 = vpack.c.bf16 %v1561_v46, %v1560_v45 }
  0x68   : > { %2525 = vmatprep.subr.bf16.mxu0 %v2524_v57  ;;  %2025 = vmatmul.mubr.f32.vlgmr.msra.gmra.mrb[0].mxu1 %v2927_v28  ;;  %v1554_v28 = vld [vmem:[%s3314_s1 + $0x1b0] sm:$0xff] }
  0x69   : > { %2399 = vmatpush3.bf16.msra.mxu1 %v2396_v56  ;;  %2027 = vmatprep.mubr.f32.mxu1 %v2982_v54  ;;  %v2408_v27 = vpack.c.bf16 %v1555_v20, %v1554_v28 }
  0x6a   : > { %2201 = vmatmul.mubr.f32.vlgmr.msra.gmra.mrb[0].mxu0 %v3005_v0  ;;  %2401 = vmatprep.subr.bf16.mxu1 %v2400_v4 }
  0x6b   : > { %2527 = vmatpush3.bf16.msra.mxu0 %v2524_v57  ;;  %2203 = vmatprep.mubr.f32.mxu0 %v3026_v10  ;;  %v1668_v57 = vld [vmem:[%s3314_s1 + $0x400] sm:$0xff] }
  0x6c   : > { %2529 = vmatprep.subr.bf16.mxu0 %v2528_v6  ;;  %2028 = vmatmul.mubr.f32.gmra.mrb[2].mxu1 %v3002_v63  ;;  %v2556_v59 = vpack.c.bf16 %v1669_v58, %v1668_v57 }
  0x6d   : > { %2403 = vmatpush3.bf16.msra.mxu1 %v2400_v4  ;;  %2030 = vmatprep.mubr.f32.mxu1 %v3008_v2  ;;  %v2560_v4 = vpack.c.bf16 %v1671_v1, %v1670_v61 }
  0x6e   : > { %2204 = vmatmul.mubr.f32.gmra.mrb[2].mxu0 %v3033_v14  ;;  %2405 = vmatprep.subr.bf16.mxu1 %v2404_v17 }
  0x6f   : > { %2531 = vmatpush3.bf16.msra.mxu0 %v2528_v6  ;;  %2206 = vmatprep.mubr.f32.mxu0 %v3054_v24  ;;  %v1672_v6 = vld [vmem:[%s3314_s1 + $0x420] sm:$0xff] }
  0x70   : > { %2533 = vmatprep.subr.bf16.mxu0 %v2532_v18  ;;  %2031 = vmatmul.mubr.f32.gmra.mrb[4].mxu1 %v3030_v12  ;;  %v2564_v8 = vpack.c.bf16 %v1673_v7, %v1672_v6 }
  0x71   : > { %2407 = vmatpush3.bf16.msra.mxu1 %v2404_v17  ;;  %2033 = vmatprep.mubr.f32.mxu1 %v3036_v16  ;;  %v1683_v17 = vld [vmem:[%s3314_s1 + $0x478] sm:$0xff] }
  0x72   : > { %2207 = vmatmul.mubr.f32.gmra.mrb[4].mxu0 %v3061_v26  ;;  %2409 = vmatprep.subr.bf16.mxu1 %v2408_v27 }
  0x73   : > { %2535 = vmatpush3.bf16.msra.mxu0 %v2532_v18  ;;  %2209 = vmatprep.mubr.f32.mxu0 %v3179_v35 }
  0x74   : > { %2537 = vmatprep.subr.bf16.mxu0 %v2536_v30  ;;  %2034 = vmatmul.mubr.f32.gmra.mrb[6].mxu1 %v3058_v25 }
  0x75   : > { %2411 = vmatpush3.bf16.msra.mxu1 %v2408_v27  ;;  %2068 = vmatprep.mubr.f32.mxu1 %v2979_v53  ;;  %v1562_v53 = vld [vmem:[%s3314_s1 + $0x1f0] sm:$0xff] }
  0x76   : > { %2210 = vmatmul.mubr.f32.gmra.mrb[6].mxu0 %v1619_v37  ;;  %2413 = vmatprep.subr.bf16.mxu1 %v2412_v36  ;;  %v2424_v55 = vpack.c.bf16 %v1563_v51, %v1562_v53 }
  0x77   : > { %2539 = vmatpush3.bf16.msra.mxu0 %v2536_v30  ;;  %2244 = vmatprep.mubr.f32.mxu0 %v2844_v60  ;;  %v1659_v60 = vld [vmem:[%s3314_s1 + $0x3f8] sm:$0xff] }
  0x78   : > { %2541 = vmatprep.subr.bf16.mxu0 %v2540_v38  ;;  %v2552_v56 = vpack.c.bf16 %v1659_v60, %v1658_v52 }
  0x79   : > { %2415 = vmatpush3.bf16.msra.mxu1 %v2412_v36 }
  0x7a   : > { %2417 = vmatprep.subr.bf16.mxu1 %v2416_v43 }
  0x7b   : > { %2543 = vmatpush3.bf16.msra.mxu0 %v2540_v38 }
  0x7c   : > { %2545 = vmatprep.subr.bf16.mxu0 %v2544_v44 }
  0x7d   : > { %2419 = vmatpush3.bf16.msra.mxu1 %v2416_v43 }
  0x7e   : > { %2421 = vmatprep.subr.bf16.mxu1 %v2420_v49 }
  0x7f   : > { %2547 = vmatpush3.bf16.msra.mxu0 %v2544_v44 }
  0x80   : > { %2549 = vmatprep.subr.bf16.mxu0 %v2548_v50 }
  0x81   : > { %2423 = vmatpush3.bf16.msra.mxu1 %v2420_v49 }
  0x82   : > { %2425 = vmatprep.subr.bf16.mxu1 %v2424_v55 }
  0x83   : > { %2551 = vmatpush3.bf16.msra.mxu0 %v2548_v50 }
  0x84   : > { %2553 = vmatprep.subr.bf16.mxu0 %v2552_v56 }
  0x85   : > { %2427 = vmatpush3.bf16.msra.mxu1 %v2424_v55 }
  0x86   : > { %2588 = vmatprep.subr.bf16.mxu1 %v2556_v59 }
  0x87   : > { %2555 = vmatpush3.bf16.msra.mxu0 %v2552_v56 }
  0x88   : > { %2557 = vmatprep.subr.bf16.mxu0 %v2556_v59  ;;  %2069 = vmatmul.mubr.f32.vlgmr.msra.gmra.mrb[0].mxu1 %v2998_v62  ;;  %v1674_v62 = vld [vmem:[%s3314_s1 + $0x430] sm:$0xff] }
  0x89   : > { %2596 = vmatpush3.bf16.msra.mxu1 %v2556_v59  ;;  %2071 = vmatprep.mubr.f32.mxu1 %v3005_v0  ;;  %v1677_v0 = vld [vmem:[%s3314_s1 + $0x448] sm:$0xff] }
  0x8a   : > { %2245 = vmatmul.mubr.f32.vlgmr.msra.gmra.mrb[0].mxu0 %v2860_v3  ;;  %2589 = vmatprep.subr.bf16.mxu1 %v2560_v4  ;;  %v2568_v3 = vpack.c.bf16 %v1675_v9, %v1674_v62 }
  0x8b   : > { %2559 = vmatpush3.bf16.msra.mxu0 %v2556_v59  ;;  %2247 = vmatprep.mubr.f32.mxu0 %v2863_v5  ;;  %v1676_v5 = vld [vmem:[%s3314_s1 + $0x440] sm:$0xff] }
  0x8c   : > { %2561 = vmatprep.subr.bf16.mxu0 %v2560_v4  ;;  %2072 = vmatmul.mubr.f32.gmra.mrb[2].mxu1 %v3026_v10  ;;  %v1678_v10 = vld [vmem:[%s3314_s1 + $0x450] sm:$0xff] }
  0x8d   : > { %2597 = vmatpush3.bf16.msra.mxu1 %v2560_v4  ;;  %2074 = vmatprep.mubr.f32.mxu1 %v3033_v14  ;;  %v1679_v14 = vld [vmem:[%s3314_s1 + $0x458] sm:$0xff] }
  0x8e   : > { %2248 = vmatmul.mubr.f32.gmra.mrb[2].mxu0 %v2882_v11  ;;  %2590 = vmatprep.subr.bf16.mxu1 %v2564_v8  ;;  %v1643_v11 = vld [vmem:[%s2767_s24 + $0x91] sm:$0xff] }
  0x8f   : > { %2563 = vmatpush3.bf16.msra.mxu0 %v2560_v4  ;;  %2250 = vmatprep.mubr.f32.mxu0 %v2885_v13  ;;  %v2572_v13 = vpack.c.bf16 %v1677_v0, %v1676_v5 }
  0x90   : > { %2565 = vmatprep.subr.bf16.mxu0 %v2564_v8  ;;  %2075 = vmatmul.mubr.f32.gmra.mrb[4].mxu1 %v3054_v24  ;;  %v1681_v24 = vld [vmem:[%s3314_s1 + $0x468] sm:$0xff] }
  0x91   : > { %2598 = vmatpush3.bf16.msra.mxu1 %v2564_v8  ;;  %2077 = vmatprep.mubr.f32.mxu1 %v3061_v26 }
  0x92   : > { %2251 = vmatmul.mubr.f32.gmra.mrb[4].mxu0 %v2904_v19  ;;  %2591 = vmatprep.subr.bf16.mxu1 %v2568_v3  ;;  %v2576_v19 = vpack.c.bf16 %v1679_v14, %v1678_v10 }
  0x93   : > { %2567 = vmatpush3.bf16.msra.mxu0 %v2564_v8  ;;  %2253 = vmatprep.mubr.f32.mxu0 %v2907_v21  ;;  %v1680_v21 = vld [vmem:[%s3314_s1 + $0x460] sm:$0xff] }
  0x94   : > { %2569 = vmatprep.subr.bf16.mxu0 %v2568_v3  ;;  %2078 = vmatmul.mubr.f32.gmra.mrb[6].mxu1 %v3179_v35  ;;  %v2580_v26 = vpack.c.bf16 %v1681_v24, %v1680_v21 }
  0x95   : > { %2599 = vmatpush3.bf16.msra.mxu1 %v2568_v3  ;;  %2294 = vmatprep.mubr.f32.mxu1 %v3036_v16  ;;  %v1667_v16 = vld [vmem:[%s2767_s24 + $0x92] sm:$0xff] }
  0x96   : > { %2254 = vmatmul.mubr.f32.gmra.mrb[6].mxu0 %v1643_v11  ;;  %2592 = vmatprep.subr.bf16.mxu1 %v2572_v13 }
  0x97   : > { %2571 = vmatpush3.bf16.msra.mxu0 %v2568_v3  ;;  %2288 = vmatprep.mubr.f32.mxu0 %v2982_v54  ;;  %v2584_v54 = vpack.c.bf16 %v1683_v17, %v1682_v15 }
  0x98   : > { %2573 = vmatprep.subr.bf16.mxu0 %v2572_v13 }
  0x99   : > { %2600 = vmatpush3.bf16.msra.mxu1 %v2572_v13 }
  0x9a   : > { %2593 = vmatprep.subr.bf16.mxu1 %v2576_v19 }
  0x9b   : > { %2575 = vmatpush3.bf16.msra.mxu0 %v2572_v13 }
  0x9c   : > { %2577 = vmatprep.subr.bf16.mxu0 %v2576_v19 }
  0x9d   : > { %2601 = vmatpush3.bf16.msra.mxu1 %v2576_v19 }
  0x9e   : > { %2594 = vmatprep.subr.bf16.mxu1 %v2580_v26 }
  0x9f   : > { %2579 = vmatpush3.bf16.msra.mxu0 %v2576_v19 }
  0xa0   : > { %2581 = vmatprep.subr.bf16.mxu0 %v2580_v26 }
  0xa1   : > { %2602 = vmatpush3.bf16.msra.mxu1 %v2580_v26 }
  0xa2   : > { %2595 = vmatprep.subr.bf16.mxu1 %v2584_v54 }
  0xa3   : > { %2583 = vmatpush3.bf16.msra.mxu0 %v2580_v26 }
  0xa4   : > { %2585 = vmatprep.subr.bf16.mxu0 %v2584_v54 }
  0xa5   : > { %2603 = vmatpush3.bf16.msra.mxu1 %v2584_v54 }
  0xa7   : > { %2587 = vmatpush3.bf16.msra.mxu0 %v2584_v54 }
  0xa8   : > { %2295 = vmatmul.mubr.f32.vlgmr.msra.gmra.mrb[8].mxu1 %v3058_v25 }
  0xa9   : > { %2297 = vmatprep.mubr.f32.mxu1 %v3064_v29 }
  0xaa   : > { %2289 = vmatmul.mubr.f32.vlgmr.msra.gmra.mrb[0].mxu0 %v3002_v63 }
  0xab   : > { %2291 = vmatprep.mubr.f32.mxu0 %v3008_v2 }
  0xac   : > { %2298 = vmatmul.mubr.f32.gmra.mrb[10].mxu1 %v1667_v16 }
  0xae   : > { %2292 = vmatmul.mubr.f32.gmra.mrb[2].mxu0 %v3030_v12  ;;  %v1684_v12 = vld [vmem:[%s3315_s2] ss:$0 sm:$0xff] }
 0x15b   : > { %v2070_v18 = vpop.f32.mrb[0].mxu1 }
 0x15c   : > { %v660_v28 = vpop.f32.mrb[1].mxu1 }
 0x15f   : > { %v2073_v20 = vpop.f32.mrb[2].mxu1 }
 0x160   : > { %v670_v22 = vpop.f32.mrb[3].mxu1 }
 0x163   : > { %v2076_v23 = vpop.f32.mrb[4].mxu1 }
 0x164   : > { %v680_v30 = vpop.f32.mrb[5].mxu1 }
 0x165   : > { %v2252_v27 = vpop.f32.mrb[4].mxu0 }
 0x166   : > { %v2608_v31 = vadd.f32 %v2252_v27, %v2076_v23  ;;  %v1233_v25 = vpop.f32.mrb[5].mxu0 }
 0x167   : > { %v2610_v32 = vadd.f32 %v1233_v25, %v680_v30  ;;  %v2079_v63 = vpop.f32.mrb[6].mxu1 }
 0x168   : > { %v690_v29 = vpop.f32.mrb[7].mxu1 }
 0x169   : > { %v2255_v33 = vpop.f32.mrb[6].mxu0 }
 0x16a   : > { %v2612_v34 = vadd.f32 %v2255_v33, %v2079_v63  ;;  %v1243_v35 = vpop.f32.mrb[7].mxu0 }
 0x16b   : > { %v2614_v2 = vadd.f32 %v1243_v35, %v690_v29 }
 0x17b   : > { %v2296_v36 = vpop.f32.mrb[8].mxu1 }
 0x17c   : > { %v2609_v38 = vadd.f32 %v2608_v31, %v2296_v36  ;;  %v1371_v39 = vpop.f32.mrb[9].mxu1 }
 0x17d   : > { %v2290_v37 = vpop.f32.mrb[0].mxu0  ;;  %v2611_v42 = vadd.f32 %v2610_v32, %v1371_v39 }
 0x17e   : > { %v2604_v40 = vadd.f32 %v2290_v37, %v2070_v18  ;;  %v1351_v41 = vpop.f32.mrb[1].mxu0  ;;  %v1410_v43 = vadd.f32 %v2609_v38, %v1684_v12 }
 0x17f   : > { %v2605_v44 = vadd.f32 %v1351_v41, %v660_v28  ;;  %v1409_v46 = vadd.f32 %v2611_v42, %v1684_v12  ;;  %v2299_v47 = vpop.f32.mrb[10].mxu1 }
 0x180   : > { %v1406_v45 = vadd.f32 %v2604_v40, %v1684_v12  ;;  %vm1418_vm0 = vcmp.gt.f32.partialorder %v1410_v43, 0.0  ;;  %v1426_v48 = vmul.f32 0.1, %v1410_v43  ;;  %v2613_v53 = vadd.f32 %v2612_v34, %v2299_v47  ;;  %v1381_v51 = vpop.f32.mrb[11].mxu1 }
 0x181   : > { %v1405_v49 = vadd.f32 %v2605_v44, %v1684_v12  ;;  %v2293_v50 = vpop.f32.mrb[2].mxu0  ;;  %vm1417_vm2 = vcmp.gt.f32.partialorder %v1409_v46, 0.0  ;;  %v1425_v60 = vmul.f32 0.1, %v1409_v46  ;;  %v2615_v8 = vadd.f32 %v2614_v2, %v1381_v51 }
 0x182   : > { %vm1414_vm1 = vcmp.gt.f32.partialorder %v1406_v45, 0.0  ;;  %v1422_v52 = vmul.f32 0.1, %v1406_v45  ;;  %v1434_v55 = vsel %vm1418_vm0, %v1410_v43, %v1426_v48  ;;  %v2606_v57 = vadd.f32 %v2293_v50, %v2073_v20  ;;  %v1361_v58 = vpop.f32.mrb[3].mxu0 }
 0x183   : > { %vm1413_vm3 = vcmp.gt.f32.partialorder %v1405_v49, 0.0  ;;  %v1421_v56 = vmul.f32 0.1, %v1405_v49  ;;  %1442 = vst [vmem:[%s3300_s20 + $0x28] sm:$0xff] %v1434_v55  ;;  %v1433_v61 = vsel %vm1417_vm2, %v1409_v46, %v1425_v60  ;;  %v1412_v1 = vadd.f32 %v2613_v53, %v1684_v12 }
 0x184   : > { %v1430_v59 = vsel %vm1414_vm1, %v1406_v45, %v1422_v52  ;;  %v2607_v4 = vadd.f32 %v1361_v58, %v670_v22  ;;  %1441 = vst [vmem:[%s3300_s20 + $0x20] sm:$0xff] %v1433_v61  ;;  %v1408_v7 = vadd.f32 %v2606_v57, %v1684_v12  ;;  %v1411_v5 = vadd.f32 %v2615_v8, %v1684_v12 }
 0x185   : > { %1438 = vst [vmem:[%s3300_s20 + $0x8] sm:$0xff] %v1430_v59  ;;  %v1429_v6 = vsel %vm1413_vm3, %v1405_v49, %v1421_v56  ;;  %vm1420_vm4 = vcmp.gt.f32.partialorder %v1412_v1, 0.0  ;;  %v1428_v62 = vmul.f32 0.1, %v1412_v1 }
 0x186   : > { %1437 = vst [vmem:[%s3300_s20] sm:$0xff] %v1429_v6  ;;  %v1407_v9 = vadd.f32 %v2607_v4, %v1684_v12  ;;  %vm1416_vm5 = vcmp.gt.f32.partialorder %v1408_v7, 0.0  ;;  %v1424_v3 = vmul.f32 0.1, %v1408_v7  ;;  %vm1419_vm7 = vcmp.gt.f32.partialorder %v1411_v5, 0.0 }
 0x187   : > { %v1436_v0 = vsel %vm1420_vm4, %v1412_v1, %v1428_v62  ;;  %v1427_v10 = vmul.f32 0.1, %v1411_v5 }
 0x188   : > { %vm1415_vm6 = vcmp.gt.f32.partialorder %v1407_v9, 0.0  ;;  %v1423_v11 = vmul.f32 0.1, %v1407_v9  ;;  %v1432_v13 = vsel %vm1416_vm5, %v1408_v7, %v1424_v3  ;;  %1444 = vst [vmem:[%s3300_s20 + $0x38] sm:$0xff] %v1436_v0 }
 0x189   : > { %1440 = vst [vmem:[%s3300_s20 + $0x18] sm:$0xff] %v1432_v13  ;;  %v1435_v19 = vsel %vm1419_vm7, %v1411_v5, %v1427_v10 }
 0x18a   : > { %v1431_v14 = vsel %vm1415_vm6, %v1407_v9, %v1423_v11  ;;  %1443 = vst [vmem:[%s3300_s20 + $0x30] sm:$0xff] %v1435_v19 }
 0x18b   : > { %1439 = vst [vmem:[%s3300_s20 + $0x10] sm:$0xff] %v1431_v14 }
 0x18c PF: > { %s13_s12 = sadd.s32 1, %s2683_s12  }
 0x18d   : > { %p10_p4 = scmp.ge.s32.totalorder %s13_s12, 4  }
 0x18f   :  { %12 = sbr.rel (!%p10_p4) target bundleno = 1 (0x1), region = 72 }

// kernel: _run.13
= control target key start
LH: loop header
LB: loop body
LE: loop exit
PB: predicated region body
PF: predicated region fallthrough
CT: control target
= control target key end

     0   :  { %s489_s12 = smov 0   ;;  %s564_s0 = inlined_call_operand.vmem [shape: f32[2,1,4,4,128], index: 0, kind: input, shape index: {}]   ;;  %s565_s1 = inlined_call_operand.vmem [shape: f32[1,128,128], index: 1, kind: input, shape index: {}]   ;;  %s566_s2 = inlined_call_operand.vmem [shape: f32[1,128], index: 2, kind: input, shape index: {}]   ;;  %s567_s3 = inlined_call_operand.vmem [shape: f32[2,4,4,128], index: 3, kind: output, shape index: {}]  }
   0x1 LB: > { %s352_s13 = sadd.s32 4294967295, %s467_s12   ;;  %p356_p0 = scmp.ge.s32.totalorder %s467_s12, 1  ;;  %s467_s12 = sphi %s489_s12, %s13_s12  }
   0x2   : > { %p137_p1 = scmp.lt.s32.totalorder %s467_s12, 3 }
   0x4   : > { %p138_p2 = pnand %p356_p0, %p137_p1 }
   0x5   : > { %v175_v0 = vld [vmem:[%s565_s1] sm:$0xff] (!%p138_p2)  ;;  %v176_v1 = vld [vmem:[%s565_s1 + $0x8] sm:$0xff] (!%p138_p2)  ;;  %v177_v2 = vld [vmem:[%s565_s1 + $0x10] sm:$0xff] (!%p138_p2)  ;;  %p161_p3 = scmp.lt.s32.totalorder (!%p138_p2), %s352_s13, 1 }
   0x6   : > { %141 = sbr.rel (%p138_p2) target bundleno = 261 (0x105), region = 32  ;;  %v419_v3 = vpack.c.bf16 (!%p138_p2), %v176_v1, %v175_v0  ;;  %v178_v4 = vld [vmem:[%s565_s1 + $0x18] sm:$0xff] (!%p138_p2)  ;;  %v179_v6 = vld [vmem:[%s565_s1 + $0x20] sm:$0xff] (!%p138_p2)  ;;  %v180_v7 = vld [vmem:[%s565_s1 + $0x28] sm:$0xff] (!%p138_p2) }
   0x7   : > { %v423_v5 = vpack.c.bf16 (!%p138_p2), %v178_v4, %v177_v2  ;;  %v427_v8 = vpack.c.bf16 (!%p138_p2), %v180_v7, %v179_v6  ;;  %v181_v9 = vld [vmem:[%s565_s1 + $0x30] sm:$0xff] (!%p138_p2)  ;;  %v182_v10 = vld [vmem:[%s565_s1 + $0x38] sm:$0xff] (!%p138_p2)  ;;  %v183_v13 = vld [vmem:[%s565_s1 + $0x40] sm:$0xff] (!%p138_p2) }
   0x8   : > { %420 = vmatprep.subr.bf16.mxu0 (!%p138_p2), %v419_v3  ;;  %v431_v12 = vpack.c.bf16 (!%p138_p2), %v182_v10, %v181_v9  ;;  %v184_v14 = vld [vmem:[%s565_s1 + $0x48] sm:$0xff] (!%p138_p2)  ;;  %v185_v16 = vld [vmem:[%s565_s1 + $0x50] sm:$0xff] (!%p138_p2)  ;;  %v186_v17 = vld [vmem:[%s565_s1 + $0x58] sm:$0xff] (!%p138_p2) }
   0x9   : > { %422 = vmatpush3.bf16.msra.mxu0 (!%p138_p2), %v419_v3  ;;  %v435_v15 = vpack.c.bf16 (!%p138_p2), %v184_v14, %v183_v13  ;;  %v439_v18 = vpack.c.bf16 (!%p138_p2), %v186_v17, %v185_v16  ;;  %v187_v19 = vld [vmem:[%s565_s1 + $0x60] sm:$0xff] (!%p138_p2)  ;;  %v188_v20 = vld [vmem:[%s565_s1 + $0x68] sm:$0xff] (!%p138_p2)  ;;  %v189_v22 = vld [vmem:[%s565_s1 + $0x70] sm:$0xff] (!%p138_p2) }
   0xa   : > { %424 = vmatprep.subr.bf16.mxu0 (!%p138_p2), %v423_v5  ;;  %v443_v21 = vpack.c.bf16 (!%p138_p2), %v188_v20, %v187_v19  ;;  %v190_v23 = vld [vmem:[%s565_s1 + $0x78] sm:$0xff] (!%p138_p2)  ;;  %v361_v26 = vld [vmem:[%s566_s2] ss:$0 sm:$0xff] (!%p138_p2) }
   0xb   : > { %v447_v24 = vpack.c.bf16 (!%p138_p2), %v190_v23, %v189_v22 }
   0xd   : > { %s569_s13 = smov (!%p161_p3, %s352_s13), 1  ;;  %426 = vmatpush3.bf16.msra.mxu0 %v423_v5 }
   0xe   : > { %s364_s26 = sshll.u32 %s569_s13, 4  ;;  %428 = vmatprep.subr.bf16.mxu0 %v427_v8 }
   0xf   : > { %s165_s6 = scalar_lea.vmem %s564_s0, %s364_s26  ;;  %s170_s30 = scalar_lea.vmem %s567_s3, %s364_s26 }
  0x10   : > { %v459_v11 = vld [vmem:[%s165_s6] sm:$0xff]   ;;  %v460_v25 = vld [vmem:[%s165_s6 + $0x8] sm:$0xff]  }
  0x11   : > { %416 = vmatprep.mubr.f32.mxu0 %v459_v11  ;;  %430 = vmatpush3.bf16.msra.mxu0 %v427_v8 }
  0x12   : > { %432 = vmatprep.subr.bf16.mxu0 %v431_v12 }
  0x15   : > { %434 = vmatpush3.bf16.msra.mxu0 %v431_v12 }
  0x16   : > { %436 = vmatprep.subr.bf16.mxu0 %v435_v15 }
  0x19   : > { %438 = vmatpush3.bf16.msra.mxu0 %v435_v15 }
  0x1a   : > { %440 = vmatprep.subr.bf16.mxu0 %v439_v18 }
  0x1d   : > { %442 = vmatpush3.bf16.msra.mxu0 %v439_v18 }
  0x1e   : > { %444 = vmatprep.subr.bf16.mxu0 %v443_v21 }
  0x21   : > { %446 = vmatpush3.bf16.msra.mxu0 %v443_v21 }
  0x22   : > { %448 = vmatprep.subr.bf16.mxu0 %v447_v24 }
  0x25   : > { %450 = vmatpush3.bf16.msra.mxu0 %v447_v24 }
  0x28   : > { %417 = vmatmul.mubr.f32.vlgmr.msra.gmra.mrb[0].mxu0 %v460_v25 }
  0xfb   : > { %v418_v27 = vpop.f32.mrb[0].mxu0 }
  0xfc   : > { %v278_v28 = vadd.f32 %v418_v27, %v361_v26  ;;  %v272_v29 = vpop.f32.mrb[1].mxu0 }
  0xfd   : > { %v273_v30 = vadd.f32 %v361_v26, %v272_v29 }
  0xfe   : > { %vm282_vm0 = vcmp.gt.f32.partialorder %v278_v28, 0.0  ;;  %v284_v31 = vmul.f32 0.1, %v278_v28 }
  0xff   : > { %vm281_vm1 = vcmp.gt.f32.partialorder %v273_v30, 0.0  ;;  %v283_v32 = vmul.f32 0.1, %v273_v30 }
 0x100   : > { %v286_v33 = vsel %vm282_vm0, %v278_v28, %v284_v31 }
 0x101   : > { %v290_v34 = vcombine.high %v286_v33, %v286_v33  ;;  %295 = vst [vmem:[%s170_s30 + $0x8] sm:$0xf] %v286_v33  ;;  %v285_v35 = vsel %vm281_vm1, %v273_v30, %v283_v32 }
 0x102   : > { %v289_v36 = vcombine.high %v285_v35, %v285_v35  ;;  %293 = vst [vmem:[%s170_s30] sm:$0xf] %v285_v35 }
 0x103   : > { %296 = vst [vmem:[%s170_s30 + $0xc] sm:$0xf] %v290_v34 }
 0x104   : > { %294 = vst [vmem:[%s170_s30 + $0x4] sm:$0xf] %v289_v36 }
 0x105 PF: > { %s13_s12 = sadd.s32 1, %s467_s12  }
 0x106   : > { %p10_p4 = scmp.ge.s32.totalorder %s13_s12, 4  }
 0x108   :  { %12 = sbr.rel (!%p10_p4) target bundleno = 1 (0x1), region = 62 }

// kernel: _run.14
= control target key start
LH: loop header
LB: loop body
LE: loop exit
PB: predicated region body
PF: predicated region fallthrough
CT: control target
= control target key end

     0   :  { %s564_s15 = smov 0   ;;  %s642_s0 = inlined_call_operand.vmem [shape: f32[2,1,4,4,128], index: 0, kind: input, shape index: {}]   ;;  %s643_s1 = inlined_call_operand.vmem [shape: f32[1,128,128], index: 1, kind: input, shape index: {}]   ;;  %s644_s2 = inlined_call_operand.vmem [shape: f32[1,128], index: 2, kind: input, shape index: {}]   ;;  %s645_s3 = inlined_call_operand.vmem [shape: s32[1,128], index: 3, kind: input, shape index: {}]   ;;  %s646_s4 = inlined_call_operand.vmem [shape: f32[2,4,4,128], index: 4, kind: output, shape index: {}]  }
   0x1 LB: > { %s408_s16 = sadd.s32 4294967295, %s536_s15   ;;  %p412_p0 = scmp.ge.s32.totalorder %s536_s15, 1  ;;  %s536_s15 = sphi %s564_s15, %s14_s15  }
   0x2   : > { %p162_p1 = scmp.lt.s32.totalorder %s536_s15, 3 }
   0x4   : > { %p163_p2 = pnand %p412_p0, %p162_p1 }
   0x5   : > { %v202_v0 = vld [vmem:[%s643_s1] sm:$0xff] (!%p163_p2)  ;;  %v203_v1 = vld [vmem:[%s643_s1 + $0x8] sm:$0xff] (!%p163_p2)  ;;  %v204_v2 = vld [vmem:[%s643_s1 + $0x10] sm:$0xff] (!%p163_p2)  ;;  %p188_p3 = scmp.lt.s32.totalorder (!%p163_p2), %s408_s16, 1  ;;  %v328_v33 = vlaneseq (!%p163_p2)  ;;  %v538_v41 = vmov (!%p163_p2), 0  }
   0x6   : > { %166 = sbr.rel (%p163_p2) target bundleno = 289 (0x121), region = 36  ;;  %v479_v3 = vpack.c.bf16 (!%p163_p2), %v203_v1, %v202_v0  ;;  %v205_v4 = vld [vmem:[%s643_s1 + $0x18] sm:$0xff] (!%p163_p2)  ;;  %v206_v6 = vld [vmem:[%s643_s1 + $0x20] sm:$0xff] (!%p163_p2)  ;;  %v207_v7 = vld [vmem:[%s643_s1 + $0x28] sm:$0xff] (!%p163_p2) }
   0x7   : > { %v483_v5 = vpack.c.bf16 (!%p163_p2), %v205_v4, %v204_v2  ;;  %v487_v8 = vpack.c.bf16 (!%p163_p2), %v207_v7, %v206_v6  ;;  %v208_v9 = vld [vmem:[%s643_s1 + $0x30] sm:$0xff] (!%p163_p2)  ;;  %v209_v10 = vld [vmem:[%s643_s1 + $0x38] sm:$0xff] (!%p163_p2)  ;;  %v210_v13 = vld [vmem:[%s643_s1 + $0x40] sm:$0xff] (!%p163_p2)  ;;  %v329_v38 = vshrl.u32 (!%p163_p2), %v328_v33, 7 }
   0x8   : > { %480 = vmatprep.subr.bf16.mxu0 (!%p163_p2), %v479_v3  ;;  %v491_v12 = vpack.c.bf16 (!%p163_p2), %v209_v10, %v208_v9  ;;  %v211_v14 = vld [vmem:[%s643_s1 + $0x48] sm:$0xff] (!%p163_p2)  ;;  %v212_v16 = vld [vmem:[%s643_s1 + $0x50] sm:$0xff] (!%p163_p2)  ;;  %v213_v17 = vld [vmem:[%s643_s1 + $0x58] sm:$0xff] (!%p163_p2) }
   0x9   : > { %482 = vmatpush3.bf16.msra.mxu0 (!%p163_p2), %v479_v3  ;;  %v495_v15 = vpack.c.bf16 (!%p163_p2), %v211_v14, %v210_v13  ;;  %v499_v18 = vpack.c.bf16 (!%p163_p2), %v213_v17, %v212_v16  ;;  %v214_v19 = vld [vmem:[%s643_s1 + $0x60] sm:$0xff] (!%p163_p2)  ;;  %v215_v20 = vld [vmem:[%s643_s1 + $0x68] sm:$0xff] (!%p163_p2)  ;;  %v216_v22 = vld [vmem:[%s643_s1 + $0x70] sm:$0xff] (!%p163_p2)  ;;  %v330_v40 = vsub.s32 (!%p163_p2), 0, %v329_v38 }
   0xa   : > { %484 = vmatprep.subr.bf16.mxu0 (!%p163_p2), %v483_v5  ;;  %v503_v21 = vpack.c.bf16 (!%p163_p2), %v215_v20, %v214_v19  ;;  %v217_v23 = vld [vmem:[%s643_s1 + $0x78] sm:$0xff] (!%p163_p2)  ;;  %v417_v26 = vld [vmem:[%s644_s2] ss:$0 sm:$0xff] (!%p163_p2) }
   0xb   : > { %v507_v24 = vpack.c.bf16 (!%p163_p2), %v217_v23, %v216_v22  ;;  %v308_v36 = vld [vmem:[%s645_s3] sm:$0x1] (!%p163_p2) }
   0xc   : > { %vm326_vm0 = vcmp.eq.s32.totalorder (!%p163_p2), %v308_v36, 1  ;;  %vm325_vm1 = vcmp.eq.s32.totalorder (!%p163_p2), %v308_v36, 0 }
   0xd   : > { %s648_s16 = smov (!%p188_p3, %s408_s16), 1  ;;  %486 = vmatpush3.bf16.msra.mxu0 %v483_v5  ;;  %v327_v42 = vsel %vm326_vm0, 1, %v538_v41  ;;  %v335_v43 = vsel %vm325_vm1, 1, %v538_v41 }
   0xe   : > { %s424_s29 = sshll.u32 %s648_s16, 4  ;;  %488 = vmatprep.subr.bf16.mxu0 %v487_v8  ;;  %v331_v44 = vrot.slane %v327_v42, %v330_v40  ;;  %v339_v45 = vrot.slane %v335_v43, %v330_v40 }
   0xf   : > { %s192_s10 = scalar_lea.vmem %s642_s0, %s424_s29 }
  0x10   : > { %v520_v11 = vld [vmem:[%s192_s10] sm:$0xff]   ;;  %v521_v25 = vld [vmem:[%s192_s10 + $0x8] sm:$0xff]   ;;  %vm332_vm2 = vcmp.eq.s32.totalorder %v331_v44, 1  ;;  %vm340_vm3 = vcmp.eq.s32.totalorder %v339_v45, 1  ;;  %s197_s10 = scalar_lea.vmem %s646_s4, %s424_s29 }
  0x11   : > { %476 = vmatprep.mubr.f32.mxu0 %v520_v11  ;;  %490 = vmatpush3.bf16.msra.mxu0 %v487_v8 }
  0x12   : > { %492 = vmatprep.subr.bf16.mxu0 %v491_v12 }
  0x15   : > { %494 = vmatpush3.bf16.msra.mxu0 %v491_v12 }
  0x16   : > { %496 = vmatprep.subr.bf16.mxu0 %v495_v15 }
  0x19   : > { %498 = vmatpush3.bf16.msra.mxu0 %v495_v15 }
  0x1a   : > { %500 = vmatprep.subr.bf16.mxu0 %v499_v18 }
  0x1d   : > { %502 = vmatpush3.bf16.msra.mxu0 %v499_v18 }
  0x1e   : > { %504 = vmatprep.subr.bf16.mxu0 %v503_v21 }
  0x21   : > { %506 = vmatpush3.bf16.msra.mxu0 %v503_v21 }
  0x22   : > { %508 = vmatprep.subr.bf16.mxu0 %v507_v24 }
  0x25   : > { %510 = vmatpush3.bf16.msra.mxu0 %v507_v24 }
  0x28   : > { %477 = vmatmul.mubr.f32.vlgmr.msra.gmra.mrb[0].mxu0 %v521_v25 }
  0xfb   : > { %v478_v27 = vpop.f32.mrb[0].mxu0 }
  0xfc   : > { %v305_v28 = vadd.f32 %v478_v27, %v417_v26  ;;  %v299_v29 = vpop.f32.mrb[1].mxu0 }
  0xfd   : > { %v300_v30 = vadd.f32 %v417_v26, %v299_v29 }
  0xfe   : > { %v419_v31 = vmul.f32 -1.442695, %v305_v28 }
  0xff   : > { %v418_v32 = vmul.f32 -1.442695, %v300_v30 }
 0x100   : > { %522 = vpow2.f32 %v419_v31 }
 0x101   : > { %524 = vpow2.f32 %v418_v32 }
 0x10a   : > { %v523_v34 = vpop.eup %522 }
 0x10b   : > { %v525_v35 = vpop.eup %524  ;;  %v316_v37 = vadd.f32 1.0, %v523_v34 }
 0x10c   : > { %v315_v39 = vadd.f32 1.0, %v525_v35 }
 0x10d   : > { %526 = vrcp.f32 %v316_v37 }
 0x10e   : > { %528 = vrcp.f32 %v315_v39 }
 0x117   : > { %v527_v46 = vpop.eup %526 }
 0x118   : > { %v529_v47 = vpop.eup %528  ;;  %v322_v48 = vmul.f32 1.05, %v527_v46  ;;  %v334_v51 = vsel %vm332_vm2, %v305_v28, %v527_v46 }
 0x119   : > { %v321_v49 = vmul.f32 1.05, %v529_v47  ;;  %v333_v54 = vsel %vm332_vm2, %v300_v30, %v529_v47 }
 0x11a   : > { %v421_v50 = vadd.f32 -0.025, %v322_v48 }
 0x11b   : > { %v420_v52 = vadd.f32 -0.025, %v321_v49 }
 0x11c   : > { %v342_v53 = vsel %vm340_vm3, %v421_v50, %v334_v51 }
 0x11d   : > { %v346_v55 = vcombine.high %v342_v53, %v342_v53  ;;  %351 = vst [vmem:[%s197_s10 + $0x8] sm:$0xf] %v342_v53  ;;  %v341_v56 = vsel %vm340_vm3, %v420_v52, %v333_v54 }
 0x11e   : > { %v345_v57 = vcombine.high %v341_v56, %v341_v56  ;;  %349 = vst [vmem:[%s197_s10] sm:$0xf] %v341_v56 }
 0x11f   : > { %352 = vst [vmem:[%s197_s10 + $0xc] sm:$0xf] %v346_v55 }
 0x120   : > { %350 = vst [vmem:[%s197_s10 + $0x4] sm:$0xf] %v345_v57 }
 0x121 PF: > { %s14_s15 = sadd.s32 1, %s536_s15  }
 0x122   : > { %p11_p4 = scmp.ge.s32.totalorder %s14_s15, 4  }
 0x124   :  { %13 = sbr.rel (!%p11_p4) target bundleno = 1 (0x1), region = 66 }

// kernel: _run.15
= control target key start
LH: loop header
LB: loop body
LE: loop exit
PB: predicated region body
PF: predicated region fallthrough
CT: control target
= control target key end

     0   :  { %s713_s15 = smov 0   ;;  %s859_s0 = inlined_call_operand.vmem [shape: f32[2,1,8,8,128], index: 0, kind: input, shape index: {}]   ;;  %s860_s1 = inlined_call_operand.vmem [shape: f32[1,128,128], index: 1, kind: input, shape index: {}]   ;;  %s861_s2 = inlined_call_operand.vmem [shape: f32[1,128], index: 2, kind: input, shape index: {}]   ;;  %s862_s3 = inlined_call_operand.vmem [shape: s32[1,128], index: 3, kind: input, shape index: {}]   ;;  %s863_s4 = inlined_call_operand.vmem [shape: f32[2,8,8,128], index: 4, kind: output, shape index: {}]  }
   0x1 LB: > { %s492_s16 = sadd.s32 4294967295, %s685_s15   ;;  %p496_p0 = scmp.ge.s32.totalorder %s685_s15, 1  ;;  %s685_s15 = sphi %s713_s15, %s14_s15  }
   0x2   : > { %p162_p1 = scmp.lt.s32.totalorder %s685_s15, 3 }
   0x4   : > { %p163_p2 = pnand %p496_p0, %p162_p1 }
   0x5   : > { %v206_v0 = vld [vmem:[%s860_s1] sm:$0xff] (!%p163_p2)  ;;  %v207_v1 = vld [vmem:[%s860_s1 + $0x8] sm:$0xff] (!%p163_p2)  ;;  %v208_v2 = vld [vmem:[%s860_s1 + $0x10] sm:$0xff] (!%p163_p2)  ;;  %p188_p3 = scmp.lt.s32.totalorder (!%p163_p2), %s492_s16, 1  ;;  %v402_v57 = vlaneseq (!%p163_p2) }
   0x6   : > { %166 = sbr.rel (%p163_p2) target bundleno = 293 (0x125), region = 36  ;;  %v590_v3 = vpack.c.bf16 (!%p163_p2), %v207_v1, %v206_v0  ;;  %v209_v4 = vld [vmem:[%s860_s1 + $0x18] sm:$0xff] (!%p163_p2)  ;;  %v210_v6 = vld [vmem:[%s860_s1 + $0x20] sm:$0xff] (!%p163_p2)  ;;  %v211_v7 = vld [vmem:[%s860_s1 + $0x28] sm:$0xff] (!%p163_p2) }
   0x7   : > { %v594_v5 = vpack.c.bf16 (!%p163_p2), %v209_v4, %v208_v2  ;;  %v598_v8 = vpack.c.bf16 (!%p163_p2), %v211_v7, %v210_v6  ;;  %v212_v9 = vld [vmem:[%s860_s1 + $0x30] sm:$0xff] (!%p163_p2)  ;;  %v213_v10 = vld [vmem:[%s860_s1 + $0x38] sm:$0xff] (!%p163_p2)  ;;  %v214_v14 = vld [vmem:[%s860_s1 + $0x40] sm:$0xff] (!%p163_p2)  ;;  %v403_v63 = vshrl.u32 (!%p163_p2), %v402_v57, 7 }
   0x8   : > { %591 = vmatprep.subr.bf16.mxu0 (!%p163_p2), %v590_v3  ;;  %622 = vmatprep.subr.bf16.mxu1 (!%p163_p2), %v590_v3  ;;  %v602_v13 = vpack.c.bf16 (!%p163_p2), %v213_v10, %v212_v9  ;;  %v215_v15 = vld [vmem:[%s860_s1 + $0x48] sm:$0xff] (!%p163_p2)  ;;  %v216_v17 = vld [vmem:[%s860_s1 + $0x50] sm:$0xff] (!%p163_p2)  ;;  %v217_v18 = vld [vmem:[%s860_s1 + $0x58] sm:$0xff] (!%p163_p2) }
   0x9   : > { %593 = vmatpush3.bf16.msra.mxu0 (!%p163_p2), %v590_v3  ;;  %630 = vmatpush3.bf16.msra.mxu1 (!%p163_p2), %v590_v3  ;;  %v606_v16 = vpack.c.bf16 (!%p163_p2), %v215_v15, %v214_v14  ;;  %v610_v19 = vpack.c.bf16 (!%p163_p2), %v217_v18, %v216_v17  ;;  %v218_v20 = vld [vmem:[%s860_s1 + $0x60] sm:$0xff] (!%p163_p2)  ;;  %v219_v21 = vld [vmem:[%s860_s1 + $0x68] sm:$0xff] (!%p163_p2)  ;;  %v220_v23 = vld [vmem:[%s860_s1 + $0x70] sm:$0xff] (!%p163_p2) }
   0xa   : > { %595 = vmatprep.subr.bf16.mxu0 (!%p163_p2), %v594_v5  ;;  %623 = vmatprep.subr.bf16.mxu1 (!%p163_p2), %v594_v5  ;;  %v614_v22 = vpack.c.bf16 (!%p163_p2), %v219_v21, %v218_v20  ;;  %v221_v24 = vld [vmem:[%s860_s1 + $0x78] sm:$0xff] (!%p163_p2)  ;;  %v501_v32 = vld [vmem:[%s861_s2] ss:$0 sm:$0xff] (!%p163_p2) }
   0xb   : > { %v618_v25 = vpack.c.bf16 (!%p163_p2), %v221_v24, %v220_v23  ;;  %v334_v60 = vld [vmem:[%s862_s3] sm:$0x1] (!%p163_p2) }
   0xc   : > { %vm400_vm0 = vcmp.eq.s32.totalorder (!%p163_p2), %v334_v60, 1  ;;  %vm399_vm1 = vcmp.eq.s32.totalorder (!%p163_p2), %v334_v60, 0 }
   0xd   : > { %s865_s16 = smov (!%p188_p3, %s492_s16), 1  ;;  %597 = vmatpush3.bf16.msra.mxu0 %v594_v5  ;;  %631 = vmatpush3.bf16.msra.mxu1 %v594_v5 }
   0xe   : > { %s520_s29 = sshll.u32 %s865_s16, 6  ;;  %599 = vmatprep.subr.bf16.mxu0 %v598_v8  ;;  %624 = vmatprep.subr.bf16.mxu1 %v598_v8 }
   0xf   : > { %s750_s8 = scalar_lea.vmem %s859_s0, %s520_s29  ;;  %s822_s10 = scalar_lea.vmem %s863_s4, %s520_s29 }
  0x10   : > { %v198_v11 = vld [vmem:[%s750_s8] sm:$0xff]  ;;  %v199_v26 = vld [vmem:[%s750_s8 + $0x8] sm:$0xff]  ;;  %v200_v28 = vld [vmem:[%s750_s8 + $0x10] sm:$0xff] }
  0x11   : > { %v202_v12 = vld [vmem:[%s750_s8 + $0x20] sm:$0xff]  ;;  %578 = vmatprep.mubr.f32.mxu0 %v198_v11  ;;  %601 = vmatpush3.bf16.msra.mxu0 %v598_v8  ;;  %v203_v27 = vld [vmem:[%s750_s8 + $0x28] sm:$0xff]  ;;  %v204_v29 = vld [vmem:[%s750_s8 + $0x30] sm:$0xff]  ;;  %v687_v11 = vmov 0  }
  0x12   : > { %584 = vmatprep.mubr.f32.mxu1 %v202_v12  ;;  %632 = vmatpush3.bf16.msra.mxu1 %v598_v8  ;;  %v201_v30 = vld [vmem:[%s750_s8 + $0x18] sm:$0xff]  ;;  %v404_v8 = vsub.s32 0, %v403_v63  ;;  %v401_v12 = vsel %vm400_vm0, 1, %v687_v11  ;;  %v415_v14 = vsel %vm399_vm1, 1, %v687_v11 }
  0x13   : > { %603 = vmatprep.subr.bf16.mxu0 %v602_v13  ;;  %625 = vmatprep.subr.bf16.mxu1 %v602_v13  ;;  %v205_v31 = vld [vmem:[%s750_s8 + $0x38] sm:$0xff] }
  0x14   : > { %v419_v17 = vrot.slane %v415_v14, %v404_v8 }
  0x15   : > { %605 = vmatpush3.bf16.msra.mxu0 %v602_v13 }
  0x16   : > { %633 = vmatpush3.bf16.msra.mxu1 %v602_v13  ;;  %607 = vmatprep.subr.bf16.mxu0 %v606_v16  ;;  %vm420_vm3 = vcmp.eq.s32.totalorder %v419_v17, 1 }
  0x17   : > { %626 = vmatprep.subr.bf16.mxu1 %v606_v16 }
  0x19   : > { %609 = vmatpush3.bf16.msra.mxu0 %v606_v16 }
  0x1a   : > { %634 = vmatpush3.bf16.msra.mxu1 %v606_v16  ;;  %611 = vmatprep.subr.bf16.mxu0 %v610_v19  ;;  %v405_v16 = vrot.slane %v401_v12, %v404_v8 }
  0x1b   : > { %627 = vmatprep.subr.bf16.mxu1 %v610_v19 }
  0x1c   : > { %vm406_vm2 = vcmp.eq.s32.totalorder %v405_v16, 1 }
  0x1d   : > { %613 = vmatpush3.bf16.msra.mxu0 %v610_v19 }
  0x1e   : > { %635 = vmatpush3.bf16.msra.mxu1 %v610_v19  ;;  %615 = vmatprep.subr.bf16.mxu0 %v614_v22 }
  0x1f   : > { %628 = vmatprep.subr.bf16.mxu1 %v614_v22 }
  0x21   : > { %617 = vmatpush3.bf16.msra.mxu0 %v614_v22 }
  0x22   : > { %636 = vmatpush3.bf16.msra.mxu1 %v614_v22  ;;  %619 = vmatprep.subr.bf16.mxu0 %v618_v25 }
  0x23   : > { %629 = vmatprep.subr.bf16.mxu1 %v618_v25 }
  0x25   : > { %621 = vmatpush3.bf16.msra.mxu0 %v618_v25 }
  0x26   : > { %637 = vmatpush3.bf16.msra.mxu1 %v618_v25 }
  0x28   : > { %579 = vmatmul.mubr.f32.vlgmr.msra.gmra.mrb[0].mxu0 %v199_v26 }
  0x29   : > { %585 = vmatmul.mubr.f32.vlgmr.msra.gmra.mrb[0].mxu1 %v203_v27  ;;  %581 = vmatprep.mubr.f32.mxu0 %v200_v28 }
  0x2a   : > { %587 = vmatprep.mubr.f32.mxu1 %v204_v29 }
  0x2c   : > { %582 = vmatmul.mubr.f32.gmra.mrb[2].mxu0 %v201_v30 }
  0x2d   : > { %588 = vmatmul.mubr.f32.gmra.mrb[2].mxu1 %v205_v31 }
  0xfb   : > { %v580_v33 = vpop.f32.mrb[0].mxu0 }
  0xfc   : > { %v586_v34 = vpop.f32.mrb[0].mxu1  ;;  %v790_v35 = vadd.f32 %v580_v33, %v501_v32  ;;  %v295_v37 = vpop.f32.mrb[1].mxu0 }
  0xfd   : > { %v792_v36 = vadd.f32 %v586_v34, %v501_v32  ;;  %v315_v38 = vpop.f32.mrb[1].mxu1  ;;  %v794_v39 = vadd.f32 %v501_v32, %v295_v37 }
  0xfe   : > { %v796_v40 = vadd.f32 %v501_v32, %v315_v38  ;;  %v503_v41 = vmul.f32 -1.442695, %v790_v35 }
  0xff   : > { %v507_v42 = vmul.f32 -1.442695, %v792_v36  ;;  %v502_v43 = vmul.f32 -1.442695, %v794_v39  ;;  %v583_v45 = vpop.f32.mrb[2].mxu0 }
 0x100   : > { %v506_v44 = vmul.f32 -1.442695, %v796_v40  ;;  %v589_v46 = vpop.f32.mrb[2].mxu1  ;;  %647 = vpow2.f32 %v503_v41  ;;  %v802_v47 = vadd.f32 %v583_v45, %v501_v32  ;;  %v305_v49 = vpop.f32.mrb[3].mxu0 }
 0x101   : > { %v804_v48 = vadd.f32 %v589_v46, %v501_v32  ;;  %v325_v50 = vpop.f32.mrb[3].mxu1  ;;  %649 = vpow2.f32 %v507_v42  ;;  %v806_v51 = vadd.f32 %v501_v32, %v305_v49 }
 0x102   : > { %v808_v52 = vadd.f32 %v501_v32, %v325_v50  ;;  %651 = vpow2.f32 %v502_v43  ;;  %v505_v53 = vmul.f32 -1.442695, %v802_v47 }
 0x103   : > { %v509_v54 = vmul.f32 -1.442695, %v804_v48  ;;  %653 = vpow2.f32 %v506_v44  ;;  %v504_v55 = vmul.f32 -1.442695, %v806_v51 }
 0x104   : > { %v508_v56 = vmul.f32 -1.442695, %v808_v52  ;;  %655 = vpow2.f32 %v505_v53 }
 0x105   : > { %657 = vpow2.f32 %v509_v54 }
 0x106   : > { %659 = vpow2.f32 %v504_v55 }
 0x107   : > { %661 = vpow2.f32 %v508_v56 }
 0x10a   : > { %v648_v58 = vpop.eup %647 }
 0x10b   : > { %v650_v59 = vpop.eup %649  ;;  %v360_v61 = vadd.f32 1.0, %v648_v58 }
 0x10c   : > { %v652_v62 = vpop.eup %651  ;;  %v364_v0 = vadd.f32 1.0, %v650_v59 }
 0x10d   : > { %v654_v1 = vpop.eup %653  ;;  %663 = vrcp.f32 %v360_v61  ;;  %v359_v2 = vadd.f32 1.0, %v652_v62 }
 0x10e   : > { %v656_v3 = vpop.eup %655  ;;  %665 = vrcp.f32 %v364_v0  ;;  %v363_v4 = vadd.f32 1.0, %v654_v1 }
 0x10f   : > { %v658_v5 = vpop.eup %657  ;;  %667 = vrcp.f32 %v359_v2  ;;  %v362_v6 = vadd.f32 1.0, %v656_v3 }
 0x110   : > { %v660_v7 = vpop.eup %659  ;;  %669 = vrcp.f32 %v363_v4  ;;  %v366_v9 = vadd.f32 1.0, %v658_v5 }
 0x111   : > { %v662_v10 = vpop.eup %661  ;;  %671 = vrcp.f32 %v362_v6  ;;  %v361_v13 = vadd.f32 1.0, %v660_v7 }
 0x112   : > { %673 = vrcp.f32 %v366_v9  ;;  %v365_v15 = vadd.f32 1.0, %v662_v10 }
 0x113   : > { %675 = vrcp.f32 %v361_v13 }
 0x114   : > { %677 = vrcp.f32 %v365_v15 }
 0x117   : > { %v664_v18 = vpop.eup %663 }
 0x118   : > { %v666_v19 = vpop.eup %665  ;;  %v384_v20 = vmul.f32 1.1, %v664_v18  ;;  %v408_v27 = vsel %vm406_vm2, %v790_v35, %v664_v18 }
 0x119   : > { %v668_v21 = vpop.eup %667  ;;  %v388_v22 = vmul.f32 1.1, %v666_v19  ;;  %v412_v32 = vsel %vm406_vm2, %v792_v36, %v666_v19 }
 0x11a   : > { %v670_v23 = vpop.eup %669  ;;  %v511_v24 = vadd.f32 -0.05, %v384_v20  ;;  %v383_v25 = vmul.f32 1.1, %v668_v21  ;;  %v407_v41 = vsel %vm406_vm2, %v794_v39, %v668_v21 }
 0x11b   : > { %v672_v26 = vpop.eup %671  ;;  %v515_v28 = vadd.f32 -0.05, %v388_v22  ;;  %v387_v29 = vmul.f32 1.1, %v670_v23  ;;  %v411_v36 = vsel %vm406_vm2, %v796_v40, %v670_v23 }
 0x11c   : > { %v674_v30 = vpop.eup %673  ;;  %v422_v31 = vsel %vm420_vm3, %v511_v24, %v408_v27  ;;  %v510_v33 = vadd.f32 -0.05, %v383_v25  ;;  %v386_v34 = vmul.f32 1.1, %v672_v26  ;;  %v410_v39 = vsel %vm406_vm2, %v802_v47, %v672_v26 }
 0x11d   : > { %v676_v37 = vpop.eup %675  ;;  %430 = vst [vmem:[%s822_s10 + $0x8] sm:$0xff] %v422_v31  ;;  %v426_v38 = vsel %vm420_vm3, %v515_v28, %v412_v32  ;;  %v514_v35 = vadd.f32 -0.05, %v387_v29  ;;  %v390_v42 = vmul.f32 1.1, %v674_v30  ;;  %v414_v55 = vsel %vm406_vm2, %v804_v48, %v674_v30 }
 0x11e   : > { %v678_v43 = vpop.eup %677  ;;  %434 = vst [vmem:[%s822_s10 + $0x28] sm:$0xff] %v426_v38  ;;  %v421_v44 = vsel %vm420_vm3, %v510_v33, %v407_v41  ;;  %v513_v45 = vadd.f32 -0.05, %v386_v34  ;;  %v385_v46 = vmul.f32 1.1, %v676_v37  ;;  %v409_v57 = vsel %vm406_vm2, %v806_v51, %v676_v37 }
 0x11f   : > { %429 = vst [vmem:[%s822_s10] sm:$0xff] %v421_v44  ;;  %v425_v49 = vsel %vm420_vm3, %v514_v35, %v411_v36  ;;  %v517_v50 = vadd.f32 -0.05, %v390_v42  ;;  %v389_v53 = vmul.f32 1.1, %v678_v43  ;;  %v413_v59 = vsel %vm406_vm2, %v808_v52, %v678_v43 }
 0x120   : > { %433 = vst [vmem:[%s822_s10 + $0x20] sm:$0xff] %v425_v49  ;;  %v424_v54 = vsel %vm420_vm3, %v513_v45, %v410_v39  ;;  %v512_v40 = vadd.f32 -0.05, %v385_v46 }
 0x121   : > { %432 = vst [vmem:[%s822_s10 + $0x18] sm:$0xff] %v424_v54  ;;  %v428_v56 = vsel %vm420_vm3, %v517_v50, %v414_v55  ;;  %v516_v58 = vadd.f32 -0.05, %v389_v53 }
 0x122   : > { %436 = vst [vmem:[%s822_s10 + $0x38] sm:$0xff] %v428_v56  ;;  %v423_v47 = vsel %vm420_vm3, %v512_v40, %v409_v57 }
 0x123   : > { %431 = vst [vmem:[%s822_s10 + $0x10] sm:$0xff] %v423_v47  ;;  %v427_v60 = vsel %vm420_vm3, %v516_v58, %v413_v59 }
 0x124   : > { %435 = vst [vmem:[%s822_s10 + $0x30] sm:$0xff] %v427_v60 }
 0x125 PF: > { %s14_s15 = sadd.s32 1, %s685_s15  }
 0x126   : > { %p11_p4 = scmp.ge.s32.totalorder %s14_s15, 4  }
 0x128   :  { %13 = sbr.rel (!%p11_p4) target bundleno = 1 (0x1), region = 66 }

</bundles_post_ra>
